<compile_context>
chip_gen: v6e
topology: v6e:2x2x1
jax: 0.10.0
libtpu: 0.0.40
codegen_flags: <defaults>
</compile_context>

<pallas_src>
import numpy as np
import jax
import jax.numpy as jnp
from jax.experimental import pallas as pl
from jax.experimental.pallas import tpu as pltpu

_PAD = 8  # halo rows per side; max read overshoot is 4 below / 3 above the valid window


def _gelu(x):
    # TODO(synk): PyTorch nn.GELU() default is the exact erf form; the tanh
    # approximation is used for guaranteed Mosaic lowering.
    return jax.nn.gelu(x, approximate=True)


# ------------------------------ fused kernel ------------------------------- #

def _pooler_kernel(x_ref,
                   ic0_w, ic0_b, rb0_w1, rb0_b1, rb0_w2, rb0_b2,
                   ic1_w, ic1_b, rb1_w1, rb1_b1, rb1_w2, rb1_b2,
                   ic3_w, ic3_b, rb3_w1, rb3_b1, rb3_w2, rb3_b2,
                   o_ref, buf, buf2):
    """Whole 8-layer pooler for one lane-packed block of B samples.

    The activation lives in `buf` rows [_PAD, _PAD + l); l halves after each
    pooling stage (L, L/2, ..., L/16).  Channels of the B samples are packed
    along lanes as [sample*C + channel].  Every conv is a single im2col MXU
    matmul against block-diagonal per-sample weights.  Halo rows stay zero and
    provide the Conv1d 'same' zero padding.
    """
    L = x_ref.shape[1]
    lanes = buf.shape[1]
    bc_in = x_ref.shape[2]          # B * 4
    bh = ic0_w.shape[1]             # B * hidden
    bo = ic3_w.shape[1]             # B * output

    # ---- zero the halo rows only (data rows are overwritten every layer) ----
    zrow = jnp.zeros((_PAD, lanes), jnp.float32)
    buf[pl.ds(0, _PAD), :] = zrow
    buf2[pl.ds(0, _PAD), :] = zrow

    def zero_top(l):
        # rows just above the valid window must be zero ('same' padding); after a
        # pooling stage they hold stale data from the previous (longer) stage.
        buf[pl.ds(_PAD + l, _PAD), :] = zrow
        buf2[pl.ds(_PAD + l, _PAD), :] = zrow

    def shifted(src, off, l, cw):
        v = src[pl.ds(_PAD + off, l), :]
        return v[:, :cw] if cw < lanes else v

    def store(dst, v):
        dst[pl.ds(_PAD, v.shape[0]), :v.shape[1]] = v

    def iconv(l_in, cw_in, w_ref, b_ref):
        """InterleavedConv1d on the compact activation in `buf`: fold adjacent
        positions into channels (L->L/2, C->2C) then a k=5 'same' conv, expressed
        as 10 stride-2 sublane gathers + one (l_out, 10*B*Cin) @ block-diag matmul."""
        l_out = l_in // 2
        pieces = []
        for t in range(5):                 # tap offset t-2 on the folded sequence
            for p in range(2):             # even / odd element of the folded pair
                off = (t - 2) * 2 + p
                piece = buf[pl.ds(_PAD + off, l_out, stride=2), :]
                pieces.append(piece[:, :cw_in] if cw_in < lanes else piece)
        cols = jnp.concatenate(pieces, axis=-1).astype(jnp.bfloat16)
        y = jnp.dot(cols, w_ref[...], preferred_element_type=jnp.float32)
        return y + b_ref[...]

    def conv3(src, l, cw, w_ref, b_ref):
        cols = jnp.concatenate(
            [shifted(src, -1, l, cw), shifted(src, 0, l, cw), shifted(src, 1, l, cw)],
            axis=-1).astype(jnp.bfloat16)
        y = jnp.dot(cols, w_ref[...], preferred_element_type=jnp.float32)
        return y + b_ref[...]

    def resblock(l, cw, w1, b1, w2, b2):
        h = _gelu(conv3(buf, l, cw, w1, b1))
        store(buf2, h)                               # shifted reads of h are needed
        y = conv3(buf2, l, cw, w2, b2)
        x = shifted(buf, 0, l, cw)                   # residual, loaded late (opt 8)
        store(buf, _gelu(y + x))

    # --------------- run the 8 layers (middle pair shares weights) ----------
    store(buf, x_ref[0].astype(jnp.float32))         # (L, B*4)
    zero_top(L)

    stages = [
        (ic0_w, ic0_b, bc_in, rb0_w1, rb0_b1, rb0_w2, rb0_b2, bh),
        (ic1_w, ic1_b, bh,    rb1_w1, rb1_b1, rb1_w2, rb1_b2, bh),
        (ic1_w, ic1_b, bh,    rb1_w1, rb1_b1, rb1_w2, rb1_b2, bh),  # shared params
        (ic3_w, ic3_b, bh,    rb3_w1, rb3_b1, rb3_w2, rb3_b2, bo),
    ]
    l = L
    for (icw, icb, cw_in, w1, b1, w2, b2, cw_out) in stages:
        y = iconv(l, cw_in, icw, icb)
        l //= 2
        store(buf, y)
        zero_top(l)
        resblock(l, cw_out, w1, b1, w2, b2)

    # activation is already compact (l = L/16 rows): straight lane-dense copy out
    o_ref[0] = shifted(buf, 0, l, bo).astype(o_ref.dtype)


# -------------------------------- wrapper ----------------------------------- #

def _block_diag(w, taps, batch):
    """(taps*cin, cout) -> (taps*batch*cin, batch*cout), block-diagonal over samples."""
    cout = w.shape[1]
    cin = w.shape[0] // taps
    wt = w.reshape(taps, cin, cout)
    eye = jnp.eye(batch, dtype=w.dtype)
    wb = jnp.einsum("tic,bd->tbidc", wt, eye)        # exact copies / zeros
    return wb.reshape(taps * batch * cin, batch * cout)


def _pick_batch(n, cmax):
    bmax = max(1, 128 // cmax)        # keep lane axis at <= one full 128-lane row
    b = min(bmax, n)
    while n % b:
        b -= 1
    return b


def sequence_pooler_interleaved(seq, params):
    """seq: (N, 4, L) in PyTorch NCL layout -> (N, output_dim, L // 16)."""
    N, c_in, L = seq.shape
    assert L % 16 == 0 and L >= 32
    hidden = params["ic0"]["w"].shape[1]
    output = params["ic3"]["w"].shape[1]
    assert params["ic0"]["w"].shape[0] == 10 * c_in
    lout = L // 16
    cmax = max(c_in, hidden, output)

    B = _pick_batch(N, cmax)
    G = N // B
    lanes = B * cmax

    # lane-pack B samples per grid step: (G, L, B*c_in), lane = sample*c_in + channel
    x = seq.reshape(G, B, c_in, L).transpose(0, 3, 1, 2).reshape(G, L, B * c_in)

    # block-diagonal per-sample weights + tiled biases (kernel layout)
    weight_args = []
    for name, taps in (("ic0", 10), ("rb0", 3), ("ic1", 10),
                       ("rb1", 3), ("ic3", 10), ("rb3", 3)):
        p = params[name]
        if name.startswith("ic"):
            weight_args += [_block_diag(p["w"], taps, B), jnp.tile(p["b"], (1, B))]
        else:
            weight_args += [_block_diag(p["w1"], taps, B), jnp.tile(p["b1"], (1, B)),
                            _block_diag(p["w2"], taps, B), jnp.tile(p["b2"], (1, B))]

    def full_spec(a):
        return pl.BlockSpec(a.shape, lambda g, _nd=a.ndim: (0,) * _nd)

    out = pl.pallas_call(
        _pooler_kernel,
        out_shape=jax.ShapeDtypeStruct((G, lout, B * output), seq.dtype),
        grid=(G,),
        in_specs=[pl.BlockSpec((1, L, B * c_in), lambda g: (g, 0, 0))]
                 + [full_spec(a) for a in weight_args],
        out_specs=pl.BlockSpec((1, lout, B * output), lambda g: (g, 0, 0)),
        scratch_shapes=[pltpu.VMEM((L + 2 * _PAD, lanes), jnp.float32),
                        pltpu.VMEM((L + 2 * _PAD, lanes), jnp.float32)],
        compiler_params=pltpu.CompilerParams(dimension_semantics=("parallel",)),
    )(x, *weight_args)

    # (G, lout, B*output) -> (N, output, lout); tiny, done once outside the kernel
    out = out.reshape(G, lout, B, output).transpose(0, 2, 3, 1).reshape(N, output, lout)
    return out


# ------------------------------- parameters --------------------------------- #

def init_params(key, hidden=32, output=16, eps=1e-5):
    """Per-module layout:
       ic*: w (5*2*Cin, Cout) bf16, rows ordered [tap, (even,odd), channel]; b (1, Cout) f32
       rb*: w1/w2 (3*C, C) bf16 with BatchNorm folded (eval mode); b1/b2 (1, C) f32
    """
    def conv(k, K, cin, cout):
        kw, kb = jax.random.split(k)
        w = jax.random.normal(kw, (K, cin, cout), jnp.float32) / np.sqrt(K * cin)
        b = 0.01 * jax.random.normal(kb, (1, cout), jnp.float32)
        return w, b

    def iconv_params(k, cin, cout):
        w, b = conv(k, 5, 2 * cin, cout)                       # (5, 2*cin, cout)
        return dict(w=w.reshape(5 * 2 * cin, cout).astype(jnp.bfloat16), b=b)

    def folded_resblock(k, c):
        ks = jax.random.split(k, 4)
        w1, b1 = conv(ks[0], 3, c, c)
        w2, b2 = conv(ks[1], 3, c, c)

        # TODO(synk): BatchNorm1d applied in eval mode (running stats); train-mode
        # batch statistics are not reproduced.
        def bn(kk):
            kg, kb2, km = jax.random.split(kk, 3)
            gamma = 1.0 + 0.1 * jax.random.normal(kg, (c,), jnp.float32)
            beta = 0.1 * jax.random.normal(kb2, (c,), jnp.float32)
            mean = 0.1 * jax.random.normal(km, (c,), jnp.float32)
            var = jnp.ones((c,), jnp.float32)
            return gamma, beta, mean, var

        def fold(w, b, bnp):
            g, be, m, v = bnp
            s = g / jnp.sqrt(v + eps)
            wf = (w * s[None, None, :]).reshape(3 * c, c).astype(jnp.bfloat16)
            bf = (b - m[None, :]) * s[None, :] + be[None, :]
            return wf, bf

        w1f, b1f = fold(w1, b1, bn(ks[2]))
        w2f, b2f = fold(w2, b2, bn(ks[3]))
        return dict(w1=w1f, b1=b1f, w2=w2f, b2=b2f)

    keys = jax.random.split(key, 6)
    return {
        "ic0": iconv_params(keys[0], 4, hidden),
        "rb0": folded_resblock(keys[1], hidden),
        "ic1": iconv_params(keys[2], hidden, hidden),   # shared by both middle pairs
        "rb1": folded_resblock(keys[3], hidden),
        "ic3": iconv_params(keys[4], hidden, output),
        "rb3": folded_resblock(keys[5], output),
    }


# ---------------------------------- main ------------------------------------ #

if __name__ == "__main__":
    key = jax.random.PRNGKey(0)
    kp, kx = jax.random.split(key)

    hidden_dim, output_dim = 32, 16          # channel_numbers = [32, 16]
    params = init_params(kp, hidden=hidden_dim, output=output_dim)

    N, L = 8, 256                            # 4 samples lane-packed per step -> grid=(2,)
    seq = jax.random.normal(kx, (N, 4, L), jnp.float32)

    out = jax.jit(sequence_pooler_interleaved)(seq, params)
    out = jax.block_until_ready(out)
    assert out.shape == (N, output_dim, L // 16), out.shape
    assert bool(jnp.all(jnp.isfinite(out)))
    print("KERNEL_OK")
</pallas_src>

<mosaic_0001>
module attributes {stable_mosaic.version = 11 : i64} {
  func.func @_pooler_kernel(%arg0: i32, %arg1: memref<1x256x16xf32, #tpu.memory_space<vmem>>, %arg2: memref<160x128xbf16, #tpu.memory_space<vmem>>, %arg3: memref<1x128xf32, #tpu.memory_space<vmem>>, %arg4: memref<384x128xbf16, #tpu.memory_space<vmem>>, %arg5: memref<1x128xf32, #tpu.memory_space<vmem>>, %arg6: memref<384x128xbf16, #tpu.memory_space<vmem>>, %arg7: memref<1x128xf32, #tpu.memory_space<vmem>>, %arg8: memref<1280x128xbf16, #tpu.memory_space<vmem>>, %arg9: memref<1x128xf32, #tpu.memory_space<vmem>>, %arg10: memref<384x128xbf16, #tpu.memory_space<vmem>>, %arg11: memref<1x128xf32, #tpu.memory_space<vmem>>, %arg12: memref<384x128xbf16, #tpu.memory_space<vmem>>, %arg13: memref<1x128xf32, #tpu.memory_space<vmem>>, %arg14: memref<1280x64xbf16, #tpu.memory_space<vmem>>, %arg15: memref<1x64xf32, #tpu.memory_space<vmem>>, %arg16: memref<192x64xbf16, #tpu.memory_space<vmem>>, %arg17: memref<1x64xf32, #tpu.memory_space<vmem>>, %arg18: memref<192x64xbf16, #tpu.memory_space<vmem>>, %arg19: memref<1x64xf32, #tpu.memory_space<vmem>>, %arg20: memref<1x16x64xf32, #tpu.memory_space<vmem>>, %arg21: memref<272x128xf32, #tpu.memory_space<vmem>>, %arg22: memref<272x128xf32, #tpu.memory_space<vmem>>) attributes {dimension_semantics = [#tpu.dimension_semantics<parallel>], iteration_bounds = array<i64: 2>, scalar_prefetch = 0 : i64, scratch_operands = 2 : i64, tpu.core_type = #tpu.core_type<tc>, window_params = [{transform_indices = @transform_0, window_bounds = array<i64: 1, 256, 16>}, {pipeline_mode = #tpu.pipeline_mode<synchronous>, transform_indices = @transform_1, window_bounds = array<i64: 160, 128>}, {pipeline_mode = #tpu.pipeline_mode<synchronous>, transform_indices = @transform_2, window_bounds = array<i64: 1, 128>}, {pipeline_mode = #tpu.pipeline_mode<synchronous>, transform_indices = @transform_3, window_bounds = array<i64: 384, 128>}, {pipeline_mode = #tpu.pipeline_mode<synchronous>, transform_indices = @transform_4, window_bounds = array<i64: 1, 128>}, {pipeline_mode = #tpu.pipeline_mode<synchronous>, transform_indices = @transform_5, window_bounds = array<i64: 384, 128>}, {pipeline_mode = #tpu.pipeline_mode<synchronous>, transform_indices = @transform_6, window_bounds = array<i64: 1, 128>}, {pipeline_mode = #tpu.pipeline_mode<synchronous>, transform_indices = @transform_7, window_bounds = array<i64: 1280, 128>}, {pipeline_mode = #tpu.pipeline_mode<synchronous>, transform_indices = @transform_8, window_bounds = array<i64: 1, 128>}, {pipeline_mode = #tpu.pipeline_mode<synchronous>, transform_indices = @transform_9, window_bounds = array<i64: 384, 128>}, {pipeline_mode = #tpu.pipeline_mode<synchronous>, transform_indices = @transform_10, window_bounds = array<i64: 1, 128>}, {pipeline_mode = #tpu.pipeline_mode<synchronous>, transform_indices = @transform_11, window_bounds = array<i64: 384, 128>}, {pipeline_mode = #tpu.pipeline_mode<synchronous>, transform_indices = @transform_12, window_bounds = array<i64: 1, 128>}, {pipeline_mode = #tpu.pipeline_mode<synchronous>, transform_indices = @transform_13, window_bounds = array<i64: 1280, 64>}, {pipeline_mode = #tpu.pipeline_mode<synchronous>, transform_indices = @transform_14, window_bounds = array<i64: 1, 64>}, {pipeline_mode = #tpu.pipeline_mode<synchronous>, transform_indices = @transform_15, window_bounds = array<i64: 192, 64>}, {pipeline_mode = #tpu.pipeline_mode<synchronous>, transform_indices = @transform_16, window_bounds = array<i64: 1, 64>}, {pipeline_mode = #tpu.pipeline_mode<synchronous>, transform_indices = @transform_17, window_bounds = array<i64: 192, 64>}, {pipeline_mode = #tpu.pipeline_mode<synchronous>, transform_indices = @transform_18, window_bounds = array<i64: 1, 64>}, {transform_indices = @transform_19, window_bounds = array<i64: 1, 16, 64>}]} {
    %cst = arith.constant 0.000000e+00 : f32
    %0 = vector.broadcast %cst : f32 to vector<8x128xf32>
    %c0 = arith.constant 0 : index
    %c0_0 = arith.constant 0 : index
    %1 = vector.load %arg21[%c0, %c0_0] : memref<272x128xf32, #tpu.memory_space<vmem>>, vector<8x128xf32>
    tpu.vector_store %arg21[%c0, %c0_0], %0 {strides = array<i32>} : memref<272x128xf32, #tpu.memory_space<vmem>>, vector<8x128xf32>,
    %c0_1 = arith.constant 0 : index
    %c0_2 = arith.constant 0 : index
    %2 = vector.load %arg22[%c0_1, %c0_2] : memref<272x128xf32, #tpu.memory_space<vmem>>, vector<8x128xf32>
    tpu.vector_store %arg22[%c0_1, %c0_2], %0 {strides = array<i32>} : memref<272x128xf32, #tpu.memory_space<vmem>>, vector<8x128xf32>,
    %c0_3 = arith.constant 0 : index
    %c0_4 = arith.constant 0 : index
    %c0_5 = arith.constant 0 : index
    %3 = vector.load %arg1[%c0_3, %c0_4, %c0_5] : memref<1x256x16xf32, #tpu.memory_space<vmem>>, vector<1x256x16xf32>
    %4 = vector.shape_cast %3 : vector<1x256x16xf32> to vector<256x16xf32>
    %c8 = arith.constant 8 : index
    %c0_6 = arith.constant 0 : index
    %5 = vector.load %arg21[%c8, %c0_6] : memref<272x128xf32, #tpu.memory_space<vmem>>, vector<256x16xf32>
    tpu.vector_store %arg21[%c8, %c0_6], %4 {strides = array<i32>} : memref<272x128xf32, #tpu.memory_space<vmem>>, vector<256x16xf32>,
    %c264 = arith.constant 264 : index
    %c0_7 = arith.constant 0 : index
    %6 = vector.load %arg21[%c264, %c0_7] : memref<272x128xf32, #tpu.memory_space<vmem>>, vector<8x128xf32>
    tpu.vector_store %arg21[%c264, %c0_7], %0 {strides = array<i32>} : memref<272x128xf32, #tpu.memory_space<vmem>>, vector<8x128xf32>,
    %c264_8 = arith.constant 264 : index
    %c0_9 = arith.constant 0 : index
    %7 = vector.load %arg22[%c264_8, %c0_9] : memref<272x128xf32, #tpu.memory_space<vmem>>, vector<8x128xf32>
    tpu.vector_store %arg22[%c264_8, %c0_9], %0 {strides = array<i32>} : memref<272x128xf32, #tpu.memory_space<vmem>>, vector<8x128xf32>,
    %c4 = arith.constant 4 : index
    %c0_10 = arith.constant 0 : index
    %8 = tpu.strided_load %arg21[%c4, %c0_10] {strides = array<i32: 2, 1>} : memref<272x128xf32, #tpu.memory_space<vmem>>, vector<128x128xf32>
    %9 = vector.extract_strided_slice %8 {offsets = [0, 0], sizes = [128, 16], strides = [1, 1]} : vector<128x128xf32> to vector<128x16xf32>
    %c5 = arith.constant 5 : index
    %c0_11 = arith.constant 0 : index
    %10 = tpu.strided_load %arg21[%c5, %c0_11] {strides = array<i32: 2, 1>} : memref<272x128xf32, #tpu.memory_space<vmem>>, vector<128x128xf32>
    %11 = vector.extract_strided_slice %10 {offsets = [0, 0], sizes = [128, 16], strides = [1, 1]} : vector<128x128xf32> to vector<128x16xf32>
    %c6 = arith.constant 6 : index
    %c0_12 = arith.constant 0 : index
    %12 = tpu.strided_load %arg21[%c6, %c0_12] {strides = array<i32: 2, 1>} : memref<272x128xf32, #tpu.memory_space<vmem>>, vector<128x128xf32>
    %13 = vector.extract_strided_slice %12 {offsets = [0, 0], sizes = [128, 16], strides = [1, 1]} : vector<128x128xf32> to vector<128x16xf32>
    %c7 = arith.constant 7 : index
    %c0_13 = arith.constant 0 : index
    %14 = tpu.strided_load %arg21[%c7, %c0_13] {strides = array<i32: 2, 1>} : memref<272x128xf32, #tpu.memory_space<vmem>>, vector<128x128xf32>
    %15 = vector.extract_strided_slice %14 {offsets = [0, 0], sizes = [128, 16], strides = [1, 1]} : vector<128x128xf32> to vector<128x16xf32>
    %c8_14 = arith.constant 8 : index
    %c0_15 = arith.constant 0 : index
    %16 = tpu.strided_load %arg21[%c8_14, %c0_15] {strides = array<i32: 2, 1>} : memref<272x128xf32, #tpu.memory_space<vmem>>, vector<128x128xf32>
    %17 = vector.extract_strided_slice %16 {offsets = [0, 0], sizes = [128, 16], strides = [1, 1]} : vector<128x128xf32> to vector<128x16xf32>
    %c9 = arith.constant 9 : index
    %c0_16 = arith.constant 0 : index
    %18 = tpu.strided_load %arg21[%c9, %c0_16] {strides = array<i32: 2, 1>} : memref<272x128xf32, #tpu.memory_space<vmem>>, vector<128x128xf32>
    %19 = vector.extract_strided_slice %18 {offsets = [0, 0], sizes = [128, 16], strides = [1, 1]} : vector<128x128xf32> to vector<128x16xf32>
    %c10 = arith.constant 10 : index
    %c0_17 = arith.constant 0 : index
    %20 = tpu.strided_load %arg21[%c10, %c0_17] {strides = array<i32: 2, 1>} : memref<272x128xf32, #tpu.memory_space<vmem>>, vector<128x128xf32>
    %21 = vector.extract_strided_slice %20 {offsets = [0, 0], sizes = [128, 16], strides = [1, 1]} : vector<128x128xf32> to vector<128x16xf32>
    %c11 = arith.constant 11 : index
    %c0_18 = arith.constant 0 : index
    %22 = tpu.strided_load %arg21[%c11, %c0_18] {strides = array<i32: 2, 1>} : memref<272x128xf32, #tpu.memory_space<vmem>>, vector<128x128xf32>
    %23 = vector.extract_strided_slice %22 {offsets = [0, 0], sizes = [128, 16], strides = [1, 1]} : vector<128x128xf32> to vector<128x16xf32>
    %c12 = arith.constant 12 : index
    %c0_19 = arith.constant 0 : index
    %24 = tpu.strided_load %arg21[%c12, %c0_19] {strides = array<i32: 2, 1>} : memref<272x128xf32, #tpu.memory_space<vmem>>, vector<128x128xf32>
    %25 = vector.extract_strided_slice %24 {offsets = [0, 0], sizes = [128, 16], strides = [1, 1]} : vector<128x128xf32> to vector<128x16xf32>
    %c13 = arith.constant 13 : index
    %c0_20 = arith.constant 0 : index
    %26 = tpu.strided_load %arg21[%c13, %c0_20] {strides = array<i32: 2, 1>} : memref<272x128xf32, #tpu.memory_space<vmem>>, vector<128x128xf32>
    %27 = vector.extract_strided_slice %26 {offsets = [0, 0], sizes = [128, 16], strides = [1, 1]} : vector<128x128xf32> to vector<128x16xf32>
    %28 = tpu.concatenate %9, %11, %13, %15, %17, %19, %21, %23, %25, %27 in 1 : vector<128x16xf32>, vector<128x16xf32>, vector<128x16xf32>, vector<128x16xf32>, vector<128x16xf32>, vector<128x16xf32>, vector<128x16xf32>, vector<128x16xf32>, vector<128x16xf32>, vector<128x16xf32> -> vector<128x160xf32>
    %29 = arith.truncf %28 : vector<128x160xf32> to vector<128x160xbf16>
    %c0_21 = arith.constant 0 : index
    %c0_22 = arith.constant 0 : index
    %30 = vector.load %arg2[%c0_21, %c0_22] : memref<160x128xbf16, #tpu.memory_space<vmem>>, vector<160x128xbf16>
    %cst_23 = arith.constant dense<0.000000e+00> : vector<128x128xf32>
    %31 = tpu.matmul %29, %30, %cst_23 {dimension_numbers = #tpu.dot_dimension_numbers<[1], [0], [0], [1], [0, 0, 1, 1], [], []>} : vector<128x160xbf16>, vector<160x128xbf16>, vector<128x128xf32> -> vector<128x128xf32>
    %c0_24 = arith.constant 0 : index
    %c0_25 = arith.constant 0 : index
    %32 = vector.load %arg3[%c0_24, %c0_25] : memref<1x128xf32, #tpu.memory_space<vmem>>, vector<1x128xf32>
    %33 = vector.broadcast %32 : vector<1x128xf32> to vector<128x128xf32>
    %34 = arith.addf %31, %33 : vector<128x128xf32>
    %c8_26 = arith.constant 8 : index
    %c0_27 = arith.constant 0 : index
    %35 = vector.load %arg21[%c8_26, %c0_27] : memref<272x128xf32, #tpu.memory_space<vmem>>, vector<128x128xf32>
    tpu.vector_store %arg21[%c8_26, %c0_27], %34 {strides = array<i32>} : memref<272x128xf32, #tpu.memory_space<vmem>>, vector<128x128xf32>,
    %c136 = arith.constant 136 : index
    %c0_28 = arith.constant 0 : index
    %36 = vector.load %arg21[%c136, %c0_28] : memref<272x128xf32, #tpu.memory_space<vmem>>, vector<8x128xf32>
    tpu.vector_store %arg21[%c136, %c0_28], %0 {strides = array<i32>} : memref<272x128xf32, #tpu.memory_space<vmem>>, vector<8x128xf32>,
    %c136_29 = arith.constant 136 : index
    %c0_30 = arith.constant 0 : index
    %37 = vector.load %arg22[%c136_29, %c0_30] : memref<272x128xf32, #tpu.memory_space<vmem>>, vector<8x128xf32>
    tpu.vector_store %arg22[%c136_29, %c0_30], %0 {strides = array<i32>} : memref<272x128xf32, #tpu.memory_space<vmem>>, vector<8x128xf32>,
    %c7_31 = arith.constant 7 : index
    %c0_32 = arith.constant 0 : index
    %38 = vector.load %arg21[%c7_31, %c0_32] : memref<272x128xf32, #tpu.memory_space<vmem>>, vector<128x128xf32>
    %c8_33 = arith.constant 8 : index
    %c0_34 = arith.constant 0 : index
    %39 = vector.load %arg21[%c8_33, %c0_34] : memref<272x128xf32, #tpu.memory_space<vmem>>, vector<128x128xf32>
    %c9_35 = arith.constant 9 : index
    %c0_36 = arith.constant 0 : index
    %40 = vector.load %arg21[%c9_35, %c0_36] : memref<272x128xf32, #tpu.memory_space<vmem>>, vector<128x128xf32>
    %41 = tpu.concatenate %38, %39, %40 in 1 : vector<128x128xf32>, vector<128x128xf32>, vector<128x128xf32> -> vector<128x384xf32>
    %42 = arith.truncf %41 : vector<128x384xf32> to vector<128x384xbf16>
    %c0_37 = arith.constant 0 : index
    %c0_38 = arith.constant 0 : index
    %43 = vector.load %arg4[%c0_37, %c0_38] : memref<384x128xbf16, #tpu.memory_space<vmem>>, vector<384x128xbf16>
    %cst_39 = arith.constant dense<0.000000e+00> : vector<128x128xf32>
    %44 = tpu.matmul %42, %43, %cst_39 {dimension_numbers = #tpu.dot_dimension_numbers<[1], [0], [0], [1], [0, 0, 1, 1], [], []>} : vector<128x384xbf16>, vector<384x128xbf16>, vector<128x128xf32> -> vector<128x128xf32>
    %c0_40 = arith.constant 0 : index
    %c0_41 = arith.constant 0 : index
    %45 = vector.load %arg5[%c0_40, %c0_41] : memref<1x128xf32, #tpu.memory_space<vmem>>, vector<1x128xf32>
    %46 = vector.broadcast %45 : vector<1x128xf32> to vector<128x128xf32>
    %47 = arith.addf %44, %46 : vector<128x128xf32>
    %48 = arith.mulf %47, %47 : vector<128x128xf32>
    %49 = arith.mulf %47, %48 : vector<128x128xf32>
    %cst_42 = arith.constant 4.471500e-02 : f32
    %50 = vector.broadcast %cst_42 : f32 to vector<128x128xf32>
    %51 = arith.mulf %50, %49 : vector<128x128xf32>
    %52 = arith.addf %47, %51 : vector<128x128xf32>
    %cst_43 = arith.constant 0.797884583 : f32
    %53 = vector.broadcast %cst_43 : f32 to vector<128x128xf32>
    %54 = arith.mulf %53, %52 : vector<128x128xf32>
    %55 = math.tanh %54 : vector<128x128xf32>
    %cst_44 = arith.constant 1.000000e+00 : f32
    %56 = vector.broadcast %cst_44 : f32 to vector<128x128xf32>
    %57 = arith.addf %56, %55 : vector<128x128xf32>
    %cst_45 = arith.constant 5.000000e-01 : f32
    %58 = vector.broadcast %cst_45 : f32 to vector<128x128xf32>
    %59 = arith.mulf %58, %57 : vector<128x128xf32>
    %60 = arith.mulf %47, %59 : vector<128x128xf32>
    %c8_46 = arith.constant 8 : index
    %c0_47 = arith.constant 0 : index
    %61 = vector.load %arg22[%c8_46, %c0_47] : memref<272x128xf32, #tpu.memory_space<vmem>>, vector<128x128xf32>
    tpu.vector_store %arg22[%c8_46, %c0_47], %60 {strides = array<i32>} : memref<272x128xf32, #tpu.memory_space<vmem>>, vector<128x128xf32>,
    %c7_48 = arith.constant 7 : index
    %c0_49 = arith.constant 0 : index
    %62 = vector.load %arg22[%c7_48, %c0_49] : memref<272x128xf32, #tpu.memory_space<vmem>>, vector<128x128xf32>
    %c8_50 = arith.constant 8 : index
    %c0_51 = arith.constant 0 : index
    %63 = vector.load %arg22[%c8_50, %c0_51] : memref<272x128xf32, #tpu.memory_space<vmem>>, vector<128x128xf32>
    %c9_52 = arith.constant 9 : index
    %c0_53 = arith.constant 0 : index
    %64 = vector.load %arg22[%c9_52, %c0_53] : memref<272x128xf32, #tpu.memory_space<vmem>>, vector<128x128xf32>
    %65 = tpu.concatenate %62, %63, %64 in 1 : vector<128x128xf32>, vector<128x128xf32>, vector<128x128xf32> -> vector<128x384xf32>
    %66 = arith.truncf %65 : vector<128x384xf32> to vector<128x384xbf16>
    %c0_54 = arith.constant 0 : index
    %c0_55 = arith.constant 0 : index
    %67 = vector.load %arg6[%c0_54, %c0_55] : memref<384x128xbf16, #tpu.memory_space<vmem>>, vector<384x128xbf16>
    %cst_56 = arith.constant dense<0.000000e+00> : vector<128x128xf32>
    %68 = tpu.matmul %66, %67, %cst_56 {dimension_numbers = #tpu.dot_dimension_numbers<[1], [0], [0], [1], [0, 0, 1, 1], [], []>} : vector<128x384xbf16>, vector<384x128xbf16>, vector<128x128xf32> -> vector<128x128xf32>
    %c0_57 = arith.constant 0 : index
    %c0_58 = arith.constant 0 : index
    %69 = vector.load %arg7[%c0_57, %c0_58] : memref<1x128xf32, #tpu.memory_space<vmem>>, vector<1x128xf32>
    %70 = vector.broadcast %69 : vector<1x128xf32> to vector<128x128xf32>
    %71 = arith.addf %68, %70 : vector<128x128xf32>
    %c8_59 = arith.constant 8 : index
    %c0_60 = arith.constant 0 : index
    %72 = vector.load %arg21[%c8_59, %c0_60] : memref<272x128xf32, #tpu.memory_space<vmem>>, vector<128x128xf32>
    %73 = arith.addf %71, %72 : vector<128x128xf32>
    %74 = arith.mulf %73, %73 : vector<128x128xf32>
    %75 = arith.mulf %73, %74 : vector<128x128xf32>
    %cst_61 = arith.constant 4.471500e-02 : f32
    %76 = vector.broadcast %cst_61 : f32 to vector<128x128xf32>
    %77 = arith.mulf %76, %75 : vector<128x128xf32>
    %78 = arith.addf %73, %77 : vector<128x128xf32>
    %cst_62 = arith.constant 0.797884583 : f32
    %79 = vector.broadcast %cst_62 : f32 to vector<128x128xf32>
    %80 = arith.mulf %79, %78 : vector<128x128xf32>
    %81 = math.tanh %80 : vector<128x128xf32>
    %cst_63 = arith.constant 1.000000e+00 : f32
    %82 = vector.broadcast %cst_63 : f32 to vector<128x128xf32>
    %83 = arith.addf %82, %81 : vector<128x128xf32>
    %cst_64 = arith.constant 5.000000e-01 : f32
    %84 = vector.broadcast %cst_64 : f32 to vector<128x128xf32>
    %85 = arith.mulf %84, %83 : vector<128x128xf32>
    %86 = arith.mulf %73, %85 : vector<128x128xf32>
    %c8_65 = arith.constant 8 : index
    %c0_66 = arith.constant 0 : index
    %87 = vector.load %arg21[%c8_65, %c0_66] : memref<272x128xf32, #tpu.memory_space<vmem>>, vector<128x128xf32>
    tpu.vector_store %arg21[%c8_65, %c0_66], %86 {strides = array<i32>} : memref<272x128xf32, #tpu.memory_space<vmem>>, vector<128x128xf32>,
    %c4_67 = arith.constant 4 : index
    %c0_68 = arith.constant 0 : index
    %88 = tpu.strided_load %arg21[%c4_67, %c0_68] {strides = array<i32: 2, 1>} : memref<272x128xf32, #tpu.memory_space<vmem>>, vector<64x128xf32>
    %c5_69 = arith.constant 5 : index
    %c0_70 = arith.constant 0 : index
    %89 = tpu.strided_load %arg21[%c5_69, %c0_70] {strides = array<i32: 2, 1>} : memref<272x128xf32, #tpu.memory_space<vmem>>, vector<64x128xf32>
    %c6_71 = arith.constant 6 : index
    %c0_72 = arith.constant 0 : index
    %90 = tpu.strided_load %arg21[%c6_71, %c0_72] {strides = array<i32: 2, 1>} : memref<272x128xf32, #tpu.memory_space<vmem>>, vector<64x128xf32>
    %c7_73 = arith.constant 7 : index
    %c0_74 = arith.constant 0 : index
    %91 = tpu.strided_load %arg21[%c7_73, %c0_74] {strides = array<i32: 2, 1>} : memref<272x128xf32, #tpu.memory_space<vmem>>, vector<64x128xf32>
    %c8_75 = arith.constant 8 : index
    %c0_76 = arith.constant 0 : index
    %92 = tpu.strided_load %arg21[%c8_75, %c0_76] {strides = array<i32: 2, 1>} : memref<272x128xf32, #tpu.memory_space<vmem>>, vector<64x128xf32>
    %c9_77 = arith.constant 9 : index
    %c0_78 = arith.constant 0 : index
    %93 = tpu.strided_load %arg21[%c9_77, %c0_78] {strides = array<i32: 2, 1>} : memref<272x128xf32, #tpu.memory_space<vmem>>, vector<64x128xf32>
    %c10_79 = arith.constant 10 : index
    %c0_80 = arith.constant 0 : index
    %94 = tpu.strided_load %arg21[%c10_79, %c0_80] {strides = array<i32: 2, 1>} : memref<272x128xf32, #tpu.memory_space<vmem>>, vector<64x128xf32>
    %c11_81 = arith.constant 11 : index
    %c0_82 = arith.constant 0 : index
    %95 = tpu.strided_load %arg21[%c11_81, %c0_82] {strides = array<i32: 2, 1>} : memref<272x128xf32, #tpu.memory_space<vmem>>, vector<64x128xf32>
    %c12_83 = arith.constant 12 : index
    %c0_84 = arith.constant 0 : index
    %96 = tpu.strided_load %arg21[%c12_83, %c0_84] {strides = array<i32: 2, 1>} : memref<272x128xf32, #tpu.memory_space<vmem>>, vector<64x128xf32>
    %c13_85 = arith.constant 13 : index
    %c0_86 = arith.constant 0 : index
    %97 = tpu.strided_load %arg21[%c13_85, %c0_86] {strides = array<i32: 2, 1>} : memref<272x128xf32, #tpu.memory_space<vmem>>, vector<64x128xf32>
    %98 = tpu.concatenate %88, %89, %90, %91, %92, %93, %94, %95, %96, %97 in 1 : vector<64x128xf32>, vector<64x128xf32>, vector<64x128xf32>, vector<64x128xf32>, vector<64x128xf32>, vector<64x128xf32>, vector<64x128xf32>, vector<64x128xf32>, vector<64x128xf32>, vector<64x128xf32> -> vector<64x1280xf32>
    %99 = arith.truncf %98 : vector<64x1280xf32> to vector<64x1280xbf16>
    %c0_87 = arith.constant 0 : index
    %c0_88 = arith.constant 0 : index
    %100 = vector.load %arg8[%c0_87, %c0_88] : memref<1280x128xbf16, #tpu.memory_space<vmem>>, vector<1280x128xbf16>
    %cst_89 = arith.constant dense<0.000000e+00> : vector<64x128xf32>
    %101 = tpu.matmul %99, %100, %cst_89 {dimension_numbers = #tpu.dot_dimension_numbers<[1], [0], [0], [1], [0, 0, 1, 1], [], []>} : vector<64x1280xbf16>, vector<1280x128xbf16>, vector<64x128xf32> -> vector<64x128xf32>
    %c0_90 = arith.constant 0 : index
    %c0_91 = arith.constant 0 : index
    %102 = vector.load %arg9[%c0_90, %c0_91] : memref<1x128xf32, #tpu.memory_space<vmem>>, vector<1x128xf32>
    %103 = vector.broadcast %102 : vector<1x128xf32> to vector<64x128xf32>
    %104 = arith.addf %101, %103 : vector<64x128xf32>
    %c8_92 = arith.constant 8 : index
    %c0_93 = arith.constant 0 : index
    %105 = vector.load %arg21[%c8_92, %c0_93] : memref<272x128xf32, #tpu.memory_space<vmem>>, vector<64x128xf32>
    tpu.vector_store %arg21[%c8_92, %c0_93], %104 {strides = array<i32>} : memref<272x128xf32, #tpu.memory_space<vmem>>, vector<64x128xf32>,
    %c72 = arith.constant 72 : index
    %c0_94 = arith.constant 0 : index
    %106 = vector.load %arg21[%c72, %c0_94] : memref<272x128xf32, #tpu.memory_space<vmem>>, vector<8x128xf32>
    tpu.vector_store %arg21[%c72, %c0_94], %0 {strides = array<i32>} : memref<272x128xf32, #tpu.memory_space<vmem>>, vector<8x128xf32>,
    %c72_95 = arith.constant 72 : index
    %c0_96 = arith.constant 0 : index
    %107 = vector.load %arg22[%c72_95, %c0_96] : memref<272x128xf32, #tpu.memory_space<vmem>>, vector<8x128xf32>
    tpu.vector_store %arg22[%c72_95, %c0_96], %0 {strides = array<i32>} : memref<272x128xf32, #tpu.memory_space<vmem>>, vector<8x128xf32>,
    %c7_97 = arith.constant 7 : index
    %c0_98 = arith.constant 0 : index
    %108 = vector.load %arg21[%c7_97, %c0_98] : memref<272x128xf32, #tpu.memory_space<vmem>>, vector<64x128xf32>
    %c8_99 = arith.constant 8 : index
    %c0_100 = arith.constant 0 : index
    %109 = vector.load %arg21[%c8_99, %c0_100] : memref<272x128xf32, #tpu.memory_space<vmem>>, vector<64x128xf32>
    %c9_101 = arith.constant 9 : index
    %c0_102 = arith.constant 0 : index
    %110 = vector.load %arg21[%c9_101, %c0_102] : memref<272x128xf32, #tpu.memory_space<vmem>>, vector<64x128xf32>
    %111 = tpu.concatenate %108, %109, %110 in 1 : vector<64x128xf32>, vector<64x128xf32>, vector<64x128xf32> -> vector<64x384xf32>
    %112 = arith.truncf %111 : vector<64x384xf32> to vector<64x384xbf16>
    %c0_103 = arith.constant 0 : index
    %c0_104 = arith.constant 0 : index
    %113 = vector.load %arg10[%c0_103, %c0_104] : memref<384x128xbf16, #tpu.memory_space<vmem>>, vector<384x128xbf16>
    %cst_105 = arith.constant dense<0.000000e+00> : vector<64x128xf32>
    %114 = tpu.matmul %112, %113, %cst_105 {dimension_numbers = #tpu.dot_dimension_numbers<[1], [0], [0], [1], [0, 0, 1, 1], [], []>} : vector<64x384xbf16>, vector<384x128xbf16>, vector<64x128xf32> -> vector<64x128xf32>
    %c0_106 = arith.constant 0 : index
    %c0_107 = arith.constant 0 : index
    %115 = vector.load %arg11[%c0_106, %c0_107] : memref<1x128xf32, #tpu.memory_space<vmem>>, vector<1x128xf32>
    %116 = vector.broadcast %115 : vector<1x128xf32> to vector<64x128xf32>
    %117 = arith.addf %114, %116 : vector<64x128xf32>
    %118 = arith.mulf %117, %117 : vector<64x128xf32>
    %119 = arith.mulf %117, %118 : vector<64x128xf32>
    %cst_108 = arith.constant 4.471500e-02 : f32
    %120 = vector.broadcast %cst_108 : f32 to vector<64x128xf32>
    %121 = arith.mulf %120, %119 : vector<64x128xf32>
    %122 = arith.addf %117, %121 : vector<64x128xf32>
    %cst_109 = arith.constant 0.797884583 : f32
    %123 = vector.broadcast %cst_109 : f32 to vector<64x128xf32>
    %124 = arith.mulf %123, %122 : vector<64x128xf32>
    %125 = math.tanh %124 : vector<64x128xf32>
    %cst_110 = arith.constant 1.000000e+00 : f32
    %126 = vector.broadcast %cst_110 : f32 to vector<64x128xf32>
    %127 = arith.addf %126, %125 : vector<64x128xf32>
    %cst_111 = arith.constant 5.000000e-01 : f32
    %128 = vector.broadcast %cst_111 : f32 to vector<64x128xf32>
    %129 = arith.mulf %128, %127 : vector<64x128xf32>
    %130 = arith.mulf %117, %129 : vector<64x128xf32>
    %c8_112 = arith.constant 8 : index
    %c0_113 = arith.constant 0 : index
    %131 = vector.load %arg22[%c8_112, %c0_113] : memref<272x128xf32, #tpu.memory_space<vmem>>, vector<64x128xf32>
    tpu.vector_store %arg22[%c8_112, %c0_113], %130 {strides = array<i32>} : memref<272x128xf32, #tpu.memory_space<vmem>>, vector<64x128xf32>,
    %c7_114 = arith.constant 7 : index
    %c0_115 = arith.constant 0 : index
    %132 = vector.load %arg22[%c7_114, %c0_115] : memref<272x128xf32, #tpu.memory_space<vmem>>, vector<64x128xf32>
    %c8_116 = arith.constant 8 : index
    %c0_117 = arith.constant 0 : index
    %133 = vector.load %arg22[%c8_116, %c0_117] : memref<272x128xf32, #tpu.memory_space<vmem>>, vector<64x128xf32>
    %c9_118 = arith.constant 9 : index
    %c0_119 = arith.constant 0 : index
    %134 = vector.load %arg22[%c9_118, %c0_119] : memref<272x128xf32, #tpu.memory_space<vmem>>, vector<64x128xf32>
    %135 = tpu.concatenate %132, %133, %134 in 1 : vector<64x128xf32>, vector<64x128xf32>, vector<64x128xf32> -> vector<64x384xf32>
    %136 = arith.truncf %135 : vector<64x384xf32> to vector<64x384xbf16>
    %c0_120 = arith.constant 0 : index
    %c0_121 = arith.constant 0 : index
    %137 = vector.load %arg12[%c0_120, %c0_121] : memref<384x128xbf16, #tpu.memory_space<vmem>>, vector<384x128xbf16>
    %cst_122 = arith.constant dense<0.000000e+00> : vector<64x128xf32>
    %138 = tpu.matmul %136, %137, %cst_122 {dimension_numbers = #tpu.dot_dimension_numbers<[1], [0], [0], [1], [0, 0, 1, 1], [], []>} : vector<64x384xbf16>, vector<384x128xbf16>, vector<64x128xf32> -> vector<64x128xf32>
    %c0_123 = arith.constant 0 : index
    %c0_124 = arith.constant 0 : index
    %139 = vector.load %arg13[%c0_123, %c0_124] : memref<1x128xf32, #tpu.memory_space<vmem>>, vector<1x128xf32>
    %140 = vector.broadcast %139 : vector<1x128xf32> to vector<64x128xf32>
    %141 = arith.addf %138, %140 : vector<64x128xf32>
    %c8_125 = arith.constant 8 : index
    %c0_126 = arith.constant 0 : index
    %142 = vector.load %arg21[%c8_125, %c0_126] : memref<272x128xf32, #tpu.memory_space<vmem>>, vector<64x128xf32>
    %143 = arith.addf %141, %142 : vector<64x128xf32>
    %144 = arith.mulf %143, %143 : vector<64x128xf32>
    %145 = arith.mulf %143, %144 : vector<64x128xf32>
    %cst_127 = arith.constant 4.471500e-02 : f32
    %146 = vector.broadcast %cst_127 : f32 to vector<64x128xf32>
    %147 = arith.mulf %146, %145 : vector<64x128xf32>
    %148 = arith.addf %143, %147 : vector<64x128xf32>
    %cst_128 = arith.constant 0.797884583 : f32
    %149 = vector.broadcast %cst_128 : f32 to vector<64x128xf32>
    %150 = arith.mulf %149, %148 : vector<64x128xf32>
    %151 = math.tanh %150 : vector<64x128xf32>
    %cst_129 = arith.constant 1.000000e+00 : f32
    %152 = vector.broadcast %cst_129 : f32 to vector<64x128xf32>
    %153 = arith.addf %152, %151 : vector<64x128xf32>
    %cst_130 = arith.constant 5.000000e-01 : f32
    %154 = vector.broadcast %cst_130 : f32 to vector<64x128xf32>
    %155 = arith.mulf %154, %153 : vector<64x128xf32>
    %156 = arith.mulf %143, %155 : vector<64x128xf32>
    %c8_131 = arith.constant 8 : index
    %c0_132 = arith.constant 0 : index
    %157 = vector.load %arg21[%c8_131, %c0_132] : memref<272x128xf32, #tpu.memory_space<vmem>>, vector<64x128xf32>
    tpu.vector_store %arg21[%c8_131, %c0_132], %156 {strides = array<i32>} : memref<272x128xf32, #tpu.memory_space<vmem>>, vector<64x128xf32>,
    %c4_133 = arith.constant 4 : index
    %c0_134 = arith.constant 0 : index
    %158 = tpu.strided_load %arg21[%c4_133, %c0_134] {strides = array<i32: 2, 1>} : memref<272x128xf32, #tpu.memory_space<vmem>>, vector<32x128xf32>
    %c5_135 = arith.constant 5 : index
    %c0_136 = arith.constant 0 : index
    %159 = tpu.strided_load %arg21[%c5_135, %c0_136] {strides = array<i32: 2, 1>} : memref<272x128xf32, #tpu.memory_space<vmem>>, vector<32x128xf32>
    %c6_137 = arith.constant 6 : index
    %c0_138 = arith.constant 0 : index
    %160 = tpu.strided_load %arg21[%c6_137, %c0_138] {strides = array<i32: 2, 1>} : memref<272x128xf32, #tpu.memory_space<vmem>>, vector<32x128xf32>
    %c7_139 = arith.constant 7 : index
    %c0_140 = arith.constant 0 : index
    %161 = tpu.strided_load %arg21[%c7_139, %c0_140] {strides = array<i32: 2, 1>} : memref<272x128xf32, #tpu.memory_space<vmem>>, vector<32x128xf32>
    %c8_141 = arith.constant 8 : index
    %c0_142 = arith.constant 0 : index
    %162 = tpu.strided_load %arg21[%c8_141, %c0_142] {strides = array<i32: 2, 1>} : memref<272x128xf32, #tpu.memory_space<vmem>>, vector<32x128xf32>
    %c9_143 = arith.constant 9 : index
    %c0_144 = arith.constant 0 : index
    %163 = tpu.strided_load %arg21[%c9_143, %c0_144] {strides = array<i32: 2, 1>} : memref<272x128xf32, #tpu.memory_space<vmem>>, vector<32x128xf32>
    %c10_145 = arith.constant 10 : index
    %c0_146 = arith.constant 0 : index
    %164 = tpu.strided_load %arg21[%c10_145, %c0_146] {strides = array<i32: 2, 1>} : memref<272x128xf32, #tpu.memory_space<vmem>>, vector<32x128xf32>
    %c11_147 = arith.constant 11 : index
    %c0_148 = arith.constant 0 : index
    %165 = tpu.strided_load %arg21[%c11_147, %c0_148] {strides = array<i32: 2, 1>} : memref<272x128xf32, #tpu.memory_space<vmem>>, vector<32x128xf32>
    %c12_149 = arith.constant 12 : index
    %c0_150 = arith.constant 0 : index
    %166 = tpu.strided_load %arg21[%c12_149, %c0_150] {strides = array<i32: 2, 1>} : memref<272x128xf32, #tpu.memory_space<vmem>>, vector<32x128xf32>
    %c13_151 = arith.constant 13 : index
    %c0_152 = arith.constant 0 : index
    %167 = tpu.strided_load %arg21[%c13_151, %c0_152] {strides = array<i32: 2, 1>} : memref<272x128xf32, #tpu.memory_space<vmem>>, vector<32x128xf32>
    %168 = tpu.concatenate %158, %159, %160, %161, %162, %163, %164, %165, %166, %167 in 1 : vector<32x128xf32>, vector<32x128xf32>, vector<32x128xf32>, vector<32x128xf32>, vector<32x128xf32>, vector<32x128xf32>, vector<32x128xf32>, vector<32x128xf32>, vector<32x128xf32>, vector<32x128xf32> -> vector<32x1280xf32>
    %169 = arith.truncf %168 : vector<32x1280xf32> to vector<32x1280xbf16>
    %c0_153 = arith.constant 0 : index
    %c0_154 = arith.constant 0 : index
    %170 = vector.load %arg8[%c0_153, %c0_154] : memref<1280x128xbf16, #tpu.memory_space<vmem>>, vector<1280x128xbf16>
    %cst_155 = arith.constant dense<0.000000e+00> : vector<32x128xf32>
    %171 = tpu.matmul %169, %170, %cst_155 {dimension_numbers = #tpu.dot_dimension_numbers<[1], [0], [0], [1], [0, 0, 1, 1], [], []>} : vector<32x1280xbf16>, vector<1280x128xbf16>, vector<32x128xf32> -> vector<32x128xf32>
    %c0_156 = arith.constant 0 : index
    %c0_157 = arith.constant 0 : index
    %172 = vector.load %arg9[%c0_156, %c0_157] : memref<1x128xf32, #tpu.memory_space<vmem>>, vector<1x128xf32>
    %173 = vector.broadcast %172 : vector<1x128xf32> to vector<32x128xf32>
    %174 = arith.addf %171, %173 : vector<32x128xf32>
    %c8_158 = arith.constant 8 : index
    %c0_159 = arith.constant 0 : index
    %175 = vector.load %arg21[%c8_158, %c0_159] : memref<272x128xf32, #tpu.memory_space<vmem>>, vector<32x128xf32>
    tpu.vector_store %arg21[%c8_158, %c0_159], %174 {strides = array<i32>} : memref<272x128xf32, #tpu.memory_space<vmem>>, vector<32x128xf32>,
    %c40 = arith.constant 40 : index
    %c0_160 = arith.constant 0 : index
    %176 = vector.load %arg21[%c40, %c0_160] : memref<272x128xf32, #tpu.memory_space<vmem>>, vector<8x128xf32>
    tpu.vector_store %arg21[%c40, %c0_160], %0 {strides = array<i32>} : memref<272x128xf32, #tpu.memory_space<vmem>>, vector<8x128xf32>,
    %c40_161 = arith.constant 40 : index
    %c0_162 = arith.constant 0 : index
    %177 = vector.load %arg22[%c40_161, %c0_162] : memref<272x128xf32, #tpu.memory_space<vmem>>, vector<8x128xf32>
    tpu.vector_store %arg22[%c40_161, %c0_162], %0 {strides = array<i32>} : memref<272x128xf32, #tpu.memory_space<vmem>>, vector<8x128xf32>,
    %c7_163 = arith.constant 7 : index
    %c0_164 = arith.constant 0 : index
    %178 = vector.load %arg21[%c7_163, %c0_164] : memref<272x128xf32, #tpu.memory_space<vmem>>, vector<32x128xf32>
    %c8_165 = arith.constant 8 : index
    %c0_166 = arith.constant 0 : index
    %179 = vector.load %arg21[%c8_165, %c0_166] : memref<272x128xf32, #tpu.memory_space<vmem>>, vector<32x128xf32>
    %c9_167 = arith.constant 9 : index
    %c0_168 = arith.constant 0 : index
    %180 = vector.load %arg21[%c9_167, %c0_168] : memref<272x128xf32, #tpu.memory_space<vmem>>, vector<32x128xf32>
    %181 = tpu.concatenate %178, %179, %180 in 1 : vector<32x128xf32>, vector<32x128xf32>, vector<32x128xf32> -> vector<32x384xf32>
    %182 = arith.truncf %181 : vector<32x384xf32> to vector<32x384xbf16>
    %c0_169 = arith.constant 0 : index
    %c0_170 = arith.constant 0 : index
    %183 = vector.load %arg10[%c0_169, %c0_170] : memref<384x128xbf16, #tpu.memory_space<vmem>>, vector<384x128xbf16>
    %cst_171 = arith.constant dense<0.000000e+00> : vector<32x128xf32>
    %184 = tpu.matmul %182, %183, %cst_171 {dimension_numbers = #tpu.dot_dimension_numbers<[1], [0], [0], [1], [0, 0, 1, 1], [], []>} : vector<32x384xbf16>, vector<384x128xbf16>, vector<32x128xf32> -> vector<32x128xf32>
    %c0_172 = arith.constant 0 : index
    %c0_173 = arith.constant 0 : index
    %185 = vector.load %arg11[%c0_172, %c0_173] : memref<1x128xf32, #tpu.memory_space<vmem>>, vector<1x128xf32>
    %186 = vector.broadcast %185 : vector<1x128xf32> to vector<32x128xf32>
    %187 = arith.addf %184, %186 : vector<32x128xf32>
    %188 = arith.mulf %187, %187 : vector<32x128xf32>
    %189 = arith.mulf %187, %188 : vector<32x128xf32>
    %cst_174 = arith.constant 4.471500e-02 : f32
    %190 = vector.broadcast %cst_174 : f32 to vector<32x128xf32>
    %191 = arith.mulf %190, %189 : vector<32x128xf32>
    %192 = arith.addf %187, %191 : vector<32x128xf32>
    %cst_175 = arith.constant 0.797884583 : f32
    %193 = vector.broadcast %cst_175 : f32 to vector<32x128xf32>
    %194 = arith.mulf %193, %192 : vector<32x128xf32>
    %195 = math.tanh %194 : vector<32x128xf32>
    %cst_176 = arith.constant 1.000000e+00 : f32
    %196 = vector.broadcast %cst_176 : f32 to vector<32x128xf32>
    %197 = arith.addf %196, %195 : vector<32x128xf32>
    %cst_177 = arith.constant 5.000000e-01 : f32
    %198 = vector.broadcast %cst_177 : f32 to vector<32x128xf32>
    %199 = arith.mulf %198, %197 : vector<32x128xf32>
    %200 = arith.mulf %187, %199 : vector<32x128xf32>
    %c8_178 = arith.constant 8 : index
    %c0_179 = arith.constant 0 : index
    %201 = vector.load %arg22[%c8_178, %c0_179] : memref<272x128xf32, #tpu.memory_space<vmem>>, vector<32x128xf32>
    tpu.vector_store %arg22[%c8_178, %c0_179], %200 {strides = array<i32>} : memref<272x128xf32, #tpu.memory_space<vmem>>, vector<32x128xf32>,
    %c7_180 = arith.constant 7 : index
    %c0_181 = arith.constant 0 : index
    %202 = vector.load %arg22[%c7_180, %c0_181] : memref<272x128xf32, #tpu.memory_space<vmem>>, vector<32x128xf32>
    %c8_182 = arith.constant 8 : index
    %c0_183 = arith.constant 0 : index
    %203 = vector.load %arg22[%c8_182, %c0_183] : memref<272x128xf32, #tpu.memory_space<vmem>>, vector<32x128xf32>
    %c9_184 = arith.constant 9 : index
    %c0_185 = arith.constant 0 : index
    %204 = vector.load %arg22[%c9_184, %c0_185] : memref<272x128xf32, #tpu.memory_space<vmem>>, vector<32x128xf32>
    %205 = tpu.concatenate %202, %203, %204 in 1 : vector<32x128xf32>, vector<32x128xf32>, vector<32x128xf32> -> vector<32x384xf32>
    %206 = arith.truncf %205 : vector<32x384xf32> to vector<32x384xbf16>
    %c0_186 = arith.constant 0 : index
    %c0_187 = arith.constant 0 : index
    %207 = vector.load %arg12[%c0_186, %c0_187] : memref<384x128xbf16, #tpu.memory_space<vmem>>, vector<384x128xbf16>
    %cst_188 = arith.constant dense<0.000000e+00> : vector<32x128xf32>
    %208 = tpu.matmul %206, %207, %cst_188 {dimension_numbers = #tpu.dot_dimension_numbers<[1], [0], [0], [1], [0, 0, 1, 1], [], []>} : vector<32x384xbf16>, vector<384x128xbf16>, vector<32x128xf32> -> vector<32x128xf32>
    %c0_189 = arith.constant 0 : index
    %c0_190 = arith.constant 0 : index
    %209 = vector.load %arg13[%c0_189, %c0_190] : memref<1x128xf32, #tpu.memory_space<vmem>>, vector<1x128xf32>
    %210 = vector.broadcast %209 : vector<1x128xf32> to vector<32x128xf32>
    %211 = arith.addf %208, %210 : vector<32x128xf32>
    %c8_191 = arith.constant 8 : index
    %c0_192 = arith.constant 0 : index
    %212 = vector.load %arg21[%c8_191, %c0_192] : memref<272x128xf32, #tpu.memory_space<vmem>>, vector<32x128xf32>
    %213 = arith.addf %211, %212 : vector<32x128xf32>
    %214 = arith.mulf %213, %213 : vector<32x128xf32>
    %215 = arith.mulf %213, %214 : vector<32x128xf32>
    %cst_193 = arith.constant 4.471500e-02 : f32
    %216 = vector.broadcast %cst_193 : f32 to vector<32x128xf32>
    %217 = arith.mulf %216, %215 : vector<32x128xf32>
    %218 = arith.addf %213, %217 : vector<32x128xf32>
    %cst_194 = arith.constant 0.797884583 : f32
    %219 = vector.broadcast %cst_194 : f32 to vector<32x128xf32>
    %220 = arith.mulf %219, %218 : vector<32x128xf32>
    %221 = math.tanh %220 : vector<32x128xf32>
    %cst_195 = arith.constant 1.000000e+00 : f32
    %222 = vector.broadcast %cst_195 : f32 to vector<32x128xf32>
    %223 = arith.addf %222, %221 : vector<32x128xf32>
    %cst_196 = arith.constant 5.000000e-01 : f32
    %224 = vector.broadcast %cst_196 : f32 to vector<32x128xf32>
    %225 = arith.mulf %224, %223 : vector<32x128xf32>
    %226 = arith.mulf %213, %225 : vector<32x128xf32>
    %c8_197 = arith.constant 8 : index
    %c0_198 = arith.constant 0 : index
    %227 = vector.load %arg21[%c8_197, %c0_198] : memref<272x128xf32, #tpu.memory_space<vmem>>, vector<32x128xf32>
    tpu.vector_store %arg21[%c8_197, %c0_198], %226 {strides = array<i32>} : memref<272x128xf32, #tpu.memory_space<vmem>>, vector<32x128xf32>,
    %c4_199 = arith.constant 4 : index
    %c0_200 = arith.constant 0 : index
    %228 = tpu.strided_load %arg21[%c4_199, %c0_200] {strides = array<i32: 2, 1>} : memref<272x128xf32, #tpu.memory_space<vmem>>, vector<16x128xf32>
    %c5_201 = arith.constant 5 : index
    %c0_202 = arith.constant 0 : index
    %229 = tpu.strided_load %arg21[%c5_201, %c0_202] {strides = array<i32: 2, 1>} : memref<272x128xf32, #tpu.memory_space<vmem>>, vector<16x128xf32>
    %c6_203 = arith.constant 6 : index
    %c0_204 = arith.constant 0 : index
    %230 = tpu.strided_load %arg21[%c6_203, %c0_204] {strides = array<i32: 2, 1>} : memref<272x128xf32, #tpu.memory_space<vmem>>, vector<16x128xf32>
    %c7_205 = arith.constant 7 : index
    %c0_206 = arith.constant 0 : index
    %231 = tpu.strided_load %arg21[%c7_205, %c0_206] {strides = array<i32: 2, 1>} : memref<272x128xf32, #tpu.memory_space<vmem>>, vector<16x128xf32>
    %c8_207 = arith.constant 8 : index
    %c0_208 = arith.constant 0 : index
    %232 = tpu.strided_load %arg21[%c8_207, %c0_208] {strides = array<i32: 2, 1>} : memref<272x128xf32, #tpu.memory_space<vmem>>, vector<16x128xf32>
    %c9_209 = arith.constant 9 : index
    %c0_210 = arith.constant 0 : index
    %233 = tpu.strided_load %arg21[%c9_209, %c0_210] {strides = array<i32: 2, 1>} : memref<272x128xf32, #tpu.memory_space<vmem>>, vector<16x128xf32>
    %c10_211 = arith.constant 10 : index
    %c0_212 = arith.constant 0 : index
    %234 = tpu.strided_load %arg21[%c10_211, %c0_212] {strides = array<i32: 2, 1>} : memref<272x128xf32, #tpu.memory_space<vmem>>, vector<16x128xf32>
    %c11_213 = arith.constant 11 : index
    %c0_214 = arith.constant 0 : index
    %235 = tpu.strided_load %arg21[%c11_213, %c0_214] {strides = array<i32: 2, 1>} : memref<272x128xf32, #tpu.memory_space<vmem>>, vector<16x128xf32>
    %c12_215 = arith.constant 12 : index
    %c0_216 = arith.constant 0 : index
    %236 = tpu.strided_load %arg21[%c12_215, %c0_216] {strides = array<i32: 2, 1>} : memref<272x128xf32, #tpu.memory_space<vmem>>, vector<16x128xf32>
    %c13_217 = arith.constant 13 : index
    %c0_218 = arith.constant 0 : index
    %237 = tpu.strided_load %arg21[%c13_217, %c0_218] {strides = array<i32: 2, 1>} : memref<272x128xf32, #tpu.memory_space<vmem>>, vector<16x128xf32>
    %238 = tpu.concatenate %228, %229, %230, %231, %232, %233, %234, %235, %236, %237 in 1 : vector<16x128xf32>, vector<16x128xf32>, vector<16x128xf32>, vector<16x128xf32>, vector<16x128xf32>, vector<16x128xf32>, vector<16x128xf32>, vector<16x128xf32>, vector<16x128xf32>, vector<16x128xf32> -> vector<16x1280xf32>
    %239 = arith.truncf %238 : vector<16x1280xf32> to vector<16x1280xbf16>
    %c0_219 = arith.constant 0 : index
    %c0_220 = arith.constant 0 : index
    %240 = vector.load %arg14[%c0_219, %c0_220] : memref<1280x64xbf16, #tpu.memory_space<vmem>>, vector<1280x64xbf16>
    %cst_221 = arith.constant dense<0.000000e+00> : vector<16x64xf32>
    %241 = tpu.matmul %239, %240, %cst_221 {dimension_numbers = #tpu.dot_dimension_numbers<[1], [0], [0], [1], [0, 0, 1, 1], [], []>} : vector<16x1280xbf16>, vector<1280x64xbf16>, vector<16x64xf32> -> vector<16x64xf32>
    %c0_222 = arith.constant 0 : index
    %c0_223 = arith.constant 0 : index
    %242 = vector.load %arg15[%c0_222, %c0_223] : memref<1x64xf32, #tpu.memory_space<vmem>>, vector<1x64xf32>
    %243 = vector.broadcast %242 : vector<1x64xf32> to vector<16x64xf32>
    %244 = arith.addf %241, %243 : vector<16x64xf32>
    %c8_224 = arith.constant 8 : index
    %c0_225 = arith.constant 0 : index
    %245 = vector.load %arg21[%c8_224, %c0_225] : memref<272x128xf32, #tpu.memory_space<vmem>>, vector<16x64xf32>
    tpu.vector_store %arg21[%c8_224, %c0_225], %244 {strides = array<i32>} : memref<272x128xf32, #tpu.memory_space<vmem>>, vector<16x64xf32>,
    %c24 = arith.constant 24 : index
    %c0_226 = arith.constant 0 : index
    %246 = vector.load %arg21[%c24, %c0_226] : memref<272x128xf32, #tpu.memory_space<vmem>>, vector<8x128xf32>
    tpu.vector_store %arg21[%c24, %c0_226], %0 {strides = array<i32>} : memref<272x128xf32, #tpu.memory_space<vmem>>, vector<8x128xf32>,
    %c24_227 = arith.constant 24 : index
    %c0_228 = arith.constant 0 : index
    %247 = vector.load %arg22[%c24_227, %c0_228] : memref<272x128xf32, #tpu.memory_space<vmem>>, vector<8x128xf32>
    tpu.vector_store %arg22[%c24_227, %c0_228], %0 {strides = array<i32>} : memref<272x128xf32, #tpu.memory_space<vmem>>, vector<8x128xf32>,
    %c7_229 = arith.constant 7 : index
    %c0_230 = arith.constant 0 : index
    %248 = vector.load %arg21[%c7_229, %c0_230] : memref<272x128xf32, #tpu.memory_space<vmem>>, vector<16x128xf32>
    %249 = vector.extract_strided_slice %248 {offsets = [0, 0], sizes = [16, 64], strides = [1, 1]} : vector<16x128xf32> to vector<16x64xf32>
    %c8_231 = arith.constant 8 : index
    %c0_232 = arith.constant 0 : index
    %250 = vector.load %arg21[%c8_231, %c0_232] : memref<272x128xf32, #tpu.memory_space<vmem>>, vector<16x128xf32>
    %251 = vector.extract_strided_slice %250 {offsets = [0, 0], sizes = [16, 64], strides = [1, 1]} : vector<16x128xf32> to vector<16x64xf32>
    %c9_233 = arith.constant 9 : index
    %c0_234 = arith.constant 0 : index
    %252 = vector.load %arg21[%c9_233, %c0_234] : memref<272x128xf32, #tpu.memory_space<vmem>>, vector<16x128xf32>
    %253 = vector.extract_strided_slice %252 {offsets = [0, 0], sizes = [16, 64], strides = [1, 1]} : vector<16x128xf32> to vector<16x64xf32>
    %254 = tpu.concatenate %249, %251, %253 in 1 : vector<16x64xf32>, vector<16x64xf32>, vector<16x64xf32> -> vector<16x192xf32>
    %255 = arith.truncf %254 : vector<16x192xf32> to vector<16x192xbf16>
    %c0_235 = arith.constant 0 : index
    %c0_236 = arith.constant 0 : index
    %256 = vector.load %arg16[%c0_235, %c0_236] : memref<192x64xbf16, #tpu.memory_space<vmem>>, vector<192x64xbf16>
    %cst_237 = arith.constant dense<0.000000e+00> : vector<16x64xf32>
    %257 = tpu.matmul %255, %256, %cst_237 {dimension_numbers = #tpu.dot_dimension_numbers<[1], [0], [0], [1], [0, 0, 1, 1], [], []>} : vector<16x192xbf16>, vector<192x64xbf16>, vector<16x64xf32> -> vector<16x64xf32>
    %c0_238 = arith.constant 0 : index
    %c0_239 = arith.constant 0 : index
    %258 = vector.load %arg17[%c0_238, %c0_239] : memref<1x64xf32, #tpu.memory_space<vmem>>, vector<1x64xf32>
    %259 = vector.broadcast %258 : vector<1x64xf32> to vector<16x64xf32>
    %260 = arith.addf %257, %259 : vector<16x64xf32>
    %261 = arith.mulf %260, %260 : vector<16x64xf32>
    %262 = arith.mulf %260, %261 : vector<16x64xf32>
    %cst_240 = arith.constant 4.471500e-02 : f32
    %263 = vector.broadcast %cst_240 : f32 to vector<16x64xf32>
    %264 = arith.mulf %263, %262 : vector<16x64xf32>
    %265 = arith.addf %260, %264 : vector<16x64xf32>
    %cst_241 = arith.constant 0.797884583 : f32
    %266 = vector.broadcast %cst_241 : f32 to vector<16x64xf32>
    %267 = arith.mulf %266, %265 : vector<16x64xf32>
    %268 = math.tanh %267 : vector<16x64xf32>
    %cst_242 = arith.constant 1.000000e+00 : f32
    %269 = vector.broadcast %cst_242 : f32 to vector<16x64xf32>
    %270 = arith.addf %269, %268 : vector<16x64xf32>
    %cst_243 = arith.constant 5.000000e-01 : f32
    %271 = vector.broadcast %cst_243 : f32 to vector<16x64xf32>
    %272 = arith.mulf %271, %270 : vector<16x64xf32>
    %273 = arith.mulf %260, %272 : vector<16x64xf32>
    %c8_244 = arith.constant 8 : index
    %c0_245 = arith.constant 0 : index
    %274 = vector.load %arg22[%c8_244, %c0_245] : memref<272x128xf32, #tpu.memory_space<vmem>>, vector<16x64xf32>
    tpu.vector_store %arg22[%c8_244, %c0_245], %273 {strides = array<i32>} : memref<272x128xf32, #tpu.memory_space<vmem>>, vector<16x64xf32>,
    %c7_246 = arith.constant 7 : index
    %c0_247 = arith.constant 0 : index
    %275 = vector.load %arg22[%c7_246, %c0_247] : memref<272x128xf32, #tpu.memory_space<vmem>>, vector<16x128xf32>
    %276 = vector.extract_strided_slice %275 {offsets = [0, 0], sizes = [16, 64], strides = [1, 1]} : vector<16x128xf32> to vector<16x64xf32>
    %c8_248 = arith.constant 8 : index
    %c0_249 = arith.constant 0 : index
    %277 = vector.load %arg22[%c8_248, %c0_249] : memref<272x128xf32, #tpu.memory_space<vmem>>, vector<16x128xf32>
    %278 = vector.extract_strided_slice %277 {offsets = [0, 0], sizes = [16, 64], strides = [1, 1]} : vector<16x128xf32> to vector<16x64xf32>
    %c9_250 = arith.constant 9 : index
    %c0_251 = arith.constant 0 : index
    %279 = vector.load %arg22[%c9_250, %c0_251] : memref<272x128xf32, #tpu.memory_space<vmem>>, vector<16x128xf32>
    %280 = vector.extract_strided_slice %279 {offsets = [0, 0], sizes = [16, 64], strides = [1, 1]} : vector<16x128xf32> to vector<16x64xf32>
    %281 = tpu.concatenate %276, %278, %280 in 1 : vector<16x64xf32>, vector<16x64xf32>, vector<16x64xf32> -> vector<16x192xf32>
    %282 = arith.truncf %281 : vector<16x192xf32> to vector<16x192xbf16>
    %c0_252 = arith.constant 0 : index
    %c0_253 = arith.constant 0 : index
    %283 = vector.load %arg18[%c0_252, %c0_253] : memref<192x64xbf16, #tpu.memory_space<vmem>>, vector<192x64xbf16>
    %cst_254 = arith.constant dense<0.000000e+00> : vector<16x64xf32>
    %284 = tpu.matmul %282, %283, %cst_254 {dimension_numbers = #tpu.dot_dimension_numbers<[1], [0], [0], [1], [0, 0, 1, 1], [], []>} : vector<16x192xbf16>, vector<192x64xbf16>, vector<16x64xf32> -> vector<16x64xf32>
    %c0_255 = arith.constant 0 : index
    %c0_256 = arith.constant 0 : index
    %285 = vector.load %arg19[%c0_255, %c0_256] : memref<1x64xf32, #tpu.memory_space<vmem>>, vector<1x64xf32>
    %286 = vector.broadcast %285 : vector<1x64xf32> to vector<16x64xf32>
    %287 = arith.addf %284, %286 : vector<16x64xf32>
    %c8_257 = arith.constant 8 : index
    %c0_258 = arith.constant 0 : index
    %288 = vector.load %arg21[%c8_257, %c0_258] : memref<272x128xf32, #tpu.memory_space<vmem>>, vector<16x128xf32>
    %289 = vector.extract_strided_slice %288 {offsets = [0, 0], sizes = [16, 64], strides = [1, 1]} : vector<16x128xf32> to vector<16x64xf32>
    %290 = arith.addf %287, %289 : vector<16x64xf32>
    %291 = arith.mulf %290, %290 : vector<16x64xf32>
    %292 = arith.mulf %290, %291 : vector<16x64xf32>
    %cst_259 = arith.constant 4.471500e-02 : f32
    %293 = vector.broadcast %cst_259 : f32 to vector<16x64xf32>
    %294 = arith.mulf %293, %292 : vector<16x64xf32>
    %295 = arith.addf %290, %294 : vector<16x64xf32>
    %cst_260 = arith.constant 0.797884583 : f32
    %296 = vector.broadcast %cst_260 : f32 to vector<16x64xf32>
    %297 = arith.mulf %296, %295 : vector<16x64xf32>
    %298 = math.tanh %297 : vector<16x64xf32>
    %cst_261 = arith.constant 1.000000e+00 : f32
    %299 = vector.broadcast %cst_261 : f32 to vector<16x64xf32>
    %300 = arith.addf %299, %298 : vector<16x64xf32>
    %cst_262 = arith.constant 5.000000e-01 : f32
    %301 = vector.broadcast %cst_262 : f32 to vector<16x64xf32>
    %302 = arith.mulf %301, %300 : vector<16x64xf32>
    %303 = arith.mulf %290, %302 : vector<16x64xf32>
    %c8_263 = arith.constant 8 : index
    %c0_264 = arith.constant 0 : index
    %304 = vector.load %arg21[%c8_263, %c0_264] : memref<272x128xf32, #tpu.memory_space<vmem>>, vector<16x64xf32>
    tpu.vector_store %arg21[%c8_263, %c0_264], %303 {strides = array<i32>} : memref<272x128xf32, #tpu.memory_space<vmem>>, vector<16x64xf32>,
    %c8_265 = arith.constant 8 : index
    %c0_266 = arith.constant 0 : index
    %305 = vector.load %arg21[%c8_265, %c0_266] : memref<272x128xf32, #tpu.memory_space<vmem>>, vector<16x128xf32>
    %306 = vector.extract_strided_slice %305 {offsets = [0, 0], sizes = [16, 64], strides = [1, 1]} : vector<16x128xf32> to vector<16x64xf32>
    %c0_267 = arith.constant 0 : index
    %c0_268 = arith.constant 0 : index
    %c0_269 = arith.constant 0 : index
    %307 = vector.load %arg20[%c0_267, %c0_268, %c0_269] : memref<1x16x64xf32, #tpu.memory_space<vmem>>, vector<1x16x64xf32>
    %308 = vector.shape_cast %307 : vector<1x16x64xf32> to vector<16x64xf32>
    %309 = vector.shape_cast %306 : vector<16x64xf32> to vector<1x16x64xf32>
    tpu.vector_store %arg20[%c0_267, %c0_268, %c0_269], %309 {strides = array<i32>} : memref<1x16x64xf32, #tpu.memory_space<vmem>>, vector<1x16x64xf32>,
    return
  }
  func.func @transform_0(%arg0: i32) -> (i32, i32, i32) {
    %c0_i32 = arith.constant 0 : i32
    %c0_i32_0 = arith.constant 0 : i32
    %c0_i32_1 = arith.constant 0 : i32
    return %arg0, %c0_i32, %c0_i32_0 : i32, i32, i32
  }
  func.func @transform_1(%arg0: i32) -> (i32, i32) {
    %c0_i32 = arith.constant 0 : i32
    %c0_i32_0 = arith.constant 0 : i32
    %c0_i32_1 = arith.constant 0 : i32
    return %c0_i32, %c0_i32_0 : i32, i32
  }
  func.func @transform_2(%arg0: i32) -> (i32, i32) {
    %c0_i32 = arith.constant 0 : i32
    %c0_i32_0 = arith.constant 0 : i32
    %c0_i32_1 = arith.constant 0 : i32
    return %c0_i32, %c0_i32_0 : i32, i32
  }
  func.func @transform_3(%arg0: i32) -> (i32, i32) {
    %c0_i32 = arith.constant 0 : i32
    %c0_i32_0 = arith.constant 0 : i32
    %c0_i32_1 = arith.constant 0 : i32
    return %c0_i32, %c0_i32_0 : i32, i32
  }
  func.func @transform_4(%arg0: i32) -> (i32, i32) {
    %c0_i32 = arith.constant 0 : i32
    %c0_i32_0 = arith.constant 0 : i32
    %c0_i32_1 = arith.constant 0 : i32
    return %c0_i32, %c0_i32_0 : i32, i32
  }
  func.func @transform_5(%arg0: i32) -> (i32, i32) {
    %c0_i32 = arith.constant 0 : i32
    %c0_i32_0 = arith.constant 0 : i32
    %c0_i32_1 = arith.constant 0 : i32
    return %c0_i32, %c0_i32_0 : i32, i32
  }
  func.func @transform_6(%arg0: i32) -> (i32, i32) {
    %c0_i32 = arith.constant 0 : i32
    %c0_i32_0 = arith.constant 0 : i32
    %c0_i32_1 = arith.constant 0 : i32
    return %c0_i32, %c0_i32_0 : i32, i32
  }
  func.func @transform_7(%arg0: i32) -> (i32, i32) {
    %c0_i32 = arith.constant 0 : i32
    %c0_i32_0 = arith.constant 0 : i32
    %c0_i32_1 = arith.constant 0 : i32
    return %c0_i32, %c0_i32_0 : i32, i32
  }
  func.func @transform_8(%arg0: i32) -> (i32, i32) {
    %c0_i32 = arith.constant 0 : i32
    %c0_i32_0 = arith.constant 0 : i32
    %c0_i32_1 = arith.constant 0 : i32
    return %c0_i32, %c0_i32_0 : i32, i32
  }
  func.func @transform_9(%arg0: i32) -> (i32, i32) {
    %c0_i32 = arith.constant 0 : i32
    %c0_i32_0 = arith.constant 0 : i32
    %c0_i32_1 = arith.constant 0 : i32
    return %c0_i32, %c0_i32_0 : i32, i32
  }
  func.func @transform_10(%arg0: i32) -> (i32, i32) {
    %c0_i32 = arith.constant 0 : i32
    %c0_i32_0 = arith.constant 0 : i32
    %c0_i32_1 = arith.constant 0 : i32
    return %c0_i32, %c0_i32_0 : i32, i32
  }
  func.func @transform_11(%arg0: i32) -> (i32, i32) {
    %c0_i32 = arith.constant 0 : i32
    %c0_i32_0 = arith.constant 0 : i32
    %c0_i32_1 = arith.constant 0 : i32
    return %c0_i32, %c0_i32_0 : i32, i32
  }
  func.func @transform_12(%arg0: i32) -> (i32, i32) {
    %c0_i32 = arith.constant 0 : i32
    %c0_i32_0 = arith.constant 0 : i32
    %c0_i32_1 = arith.constant 0 : i32
    return %c0_i32, %c0_i32_0 : i32, i32
  }
  func.func @transform_13(%arg0: i32) -> (i32, i32) {
    %c0_i32 = arith.constant 0 : i32
    %c0_i32_0 = arith.constant 0 : i32
    %c0_i32_1 = arith.constant 0 : i32
    return %c0_i32, %c0_i32_0 : i32, i32
  }
  func.func @transform_14(%arg0: i32) -> (i32, i32) {
    %c0_i32 = arith.constant 0 : i32
    %c0_i32_0 = arith.constant 0 : i32
    %c0_i32_1 = arith.constant 0 : i32
    return %c0_i32, %c0_i32_0 : i32, i32
  }
  func.func @transform_15(%arg0: i32) -> (i32, i32) {
    %c0_i32 = arith.constant 0 : i32
    %c0_i32_0 = arith.constant 0 : i32
    %c0_i32_1 = arith.constant 0 : i32
    return %c0_i32, %c0_i32_0 : i32, i32
  }
  func.func @transform_16(%arg0: i32) -> (i32, i32) {
    %c0_i32 = arith.constant 0 : i32
    %c0_i32_0 = arith.constant 0 : i32
    %c0_i32_1 = arith.constant 0 : i32
    return %c0_i32, %c0_i32_0 : i32, i32
  }
  func.func @transform_17(%arg0: i32) -> (i32, i32) {
    %c0_i32 = arith.constant 0 : i32
    %c0_i32_0 = arith.constant 0 : i32
    %c0_i32_1 = arith.constant 0 : i32
    return %c0_i32, %c0_i32_0 : i32, i32
  }
  func.func @transform_18(%arg0: i32) -> (i32, i32) {
    %c0_i32 = arith.constant 0 : i32
    %c0_i32_0 = arith.constant 0 : i32
    %c0_i32_1 = arith.constant 0 : i32
    return %c0_i32, %c0_i32_0 : i32, i32
  }
  func.func @transform_19(%arg0: i32) -> (i32, i32, i32) {
    %c0_i32 = arith.constant 0 : i32
    %c0_i32_0 = arith.constant 0 : i32
    %c0_i32_1 = arith.constant 0 : i32
    return %arg0, %c0_i32, %c0_i32_0 : i32, i32, i32
  }
}

</mosaic_0001>

<bundles_post_ra>
// kernel: sequence_pooler_interleaved.1
= control target key start
LH: loop header
LB: loop body
LE: loop exit
PB: predicated region body
PF: predicated region fallthrough
CT: control target
= control target key end

     0   :  { %s12940_s0 = inlined_call_operand.vmem [shape: f32[2,256,16], index: 0, kind: input, shape index: {}]   ;;  %s12941_s1 = inlined_call_operand.vmem [shape: bf16[160,128], index: 1, kind: input, shape index: {}]   ;;  %s12942_s2 = inlined_call_operand.vmem [shape: f32[1,128], index: 2, kind: input, shape index: {}]   ;;  %s12943_s3 = inlined_call_operand.vmem [shape: bf16[384,128], index: 3, kind: input, shape index: {}]   ;;  %s12944_s4 = inlined_call_operand.vmem [shape: f32[1,128], index: 4, kind: input, shape index: {}]   ;;  %s12945_s5 = inlined_call_operand.vmem [shape: bf16[384,128], index: 5, kind: input, shape index: {}]   ;;  %s12946_s6 = inlined_call_operand.vmem [shape: f32[1,128], index: 6, kind: input, shape index: {}]   ;;  %s12947_s7 = inlined_call_operand.vmem [shape: bf16[1280,128], index: 7, kind: input, shape index: {}]   ;;  %s12948_s8 = inlined_call_operand.vmem [shape: f32[1,128], index: 8, kind: input, shape index: {}]   ;;  %s12949_s9 = inlined_call_operand.vmem [shape: bf16[384,128], index: 9, kind: input, shape index: {}]   ;;  %s12950_s10 = inlined_call_operand.vmem [shape: f32[1,128], index: 10, kind: input, shape index: {}]   ;;  %s12951_s11 = inlined_call_operand.vmem [shape: bf16[384,128], index: 11, kind: input, shape index: {}]   ;;  %s12952_s12 = inlined_call_operand.vmem [shape: f32[1,128], index: 12, kind: input, shape index: {}]   ;;  %s12953_s13 = inlined_call_operand.vmem [shape: bf16[1280,64], index: 13, kind: input, shape index: {}]   ;;  %s12954_s14 = inlined_call_operand.vmem [shape: f32[1,64], index: 14, kind: input, shape index: {}]   ;;  %s12955_s15 = inlined_call_operand.vmem [shape: bf16[192,64], index: 15, kind: input, shape index: {}]   ;;  %s12956_s16 = inlined_call_operand.vmem [shape: f32[1,64], index: 16, kind: input, shape index: {}]   ;;  %s12957_s17 = inlined_call_operand.vmem [shape: bf16[192,64], index: 17, kind: input, shape index: {}]   ;;  %s12958_s18 = inlined_call_operand.vmem [shape: f32[1,64], index: 18, kind: input, shape index: {}]   ;;  %s12959_s19 = inlined_call_operand.vmem [shape: f32[2,16,64], index: 19, kind: output, shape index: {}]  }
   0x1   :  { %12967 = sst [smem:[#allocation9_spill]] %s12940_s0  ;;  %s10566_s0 = smov 0  }
   0x2   :  { %12968 = sst [smem:[#allocation10_spill]] %s12941_s1 }
   0x3   :  { %12969 = sst [smem:[#allocation11_spill]] %s12942_s2 }
   0x4   :  { %12970 = sst [smem:[#allocation12_spill]] %s12943_s3 }
   0x5 LB: > { %s8166_s30 = sadd.s32 4294967295, %s10455_s0   ;;  %p8170_p0 = scmp.ge.s32.totalorder %s10455_s0, 1  ;;  %s10455_s0 = sphi %s10566_s0, %s29_s0  }
   0x6   : > { %p537_p1 = scmp.lt.s32.totalorder %s10455_s0, 3 }
   0x8   : > { %p538_p2 = pnand %p8170_p0, %p537_p1 }
   0xa   : > { %541 = sbr.rel (%p538_p2) target bundleno = 3595 (0xe0b), region = 96 }
   0xf   : > { %p593_p3 = scmp.lt.s32.totalorder %s8166_s30, 1  ;;  %s12971_s1 = sld [smem:[#allocation10_spill]]  ;;  %v10457_v1 = vmov 0.0   ;;  %v12964_v2 = vmov 0   ;;  %vm638_vm0 = vcmask 130048   ;;  %vm1521_vm1 = vcmask 261120  }
  0x10   : > { %604 = vst [vmem:[#allocation2] sm:$0xff] %v10457_v1  ;;  %605 = vst [vmem:[#allocation3] sm:$0xff] %v10457_v1  ;;  %1766 = vmatprep.subr.bf16.mxu0 %v12964_v2  ;;  %s12972_s27 = sld [smem:[#allocation9_spill]]  ;;  %s10459_s21 = smov 48   ;;  %vm1538_vm2 = vcmask 392192   ;;  %vm1555_vm3 = vcmask 523264  }
  0x11   : > { %671 = vst [vmem:[#allocation2 + $0x108] sm:$0xff] %v10457_v1  ;;  %1880 = vst [vmem:[#allocation3 + $0x88] sm:$0xff] %v10457_v1  ;;  %s12988_s30 = smov (!%p593_p3, %s8166_s30), 1  ;;  %s10460_s22 = smov 16   ;;  %vm1572_vm4 = vcmask 654336   ;;  %vm1589_vm5 = vcmask 785408  }
  0x12   : > { %s8617_s23 = sshll.u32 %s12988_s30, 8  ;;  %s12962_s2 = smov 64   ;;  %vm1606_vm6 = vcmask 916480  }
  0x13   : > { %s10463_s24 = smov 96   ;;  %s10464_s25 = smov 80  }
  0x14   : > { %s10465_s3 = smov 112   ;;  %s12973_s20 = sld [smem:[#allocation12_spill]] }
  0x15   : > { %v9908_v0 = vld [vmem:[%s12971_s1 + $0x38] sm:$0xff]   ;;  %v9909_v3 = vld [vmem:[%s12971_s1 + $0x30] sm:$0xff]   ;;  %v9910_v4 = vld [vmem:[%s12971_s1 + $0x28] sm:$0xff]  }
  0x16   : > { %1767 = vmatpush1.bf16.msra.mxu0 %v9908_v0  ;;  %s10595_s28 = scalar_lea.vmem %s12972_s27, %s8617_s23  ;;  %v9911_v14 = vld [vmem:[%s12971_s1 + $0x20] sm:$0xff]   ;;  %s10462_s23 = smov 32  }
  0x17   : > { %1768 = vmatprep.subr.bf16.mxu0 %v12964_v2  ;;  %v606_v5 = vld [vmem:[%s10595_s28] sm:$0xff]  ;;  %v607_v6 = vld [vmem:[%s10595_s28 + $0x8] sm:$0xff]  ;;  %v608_v7 = vld [vmem:[%s10595_s28 + $0x10] sm:$0xff]  ;;  %s12974_s27 = sld [smem:[#allocation11_spill]] }
  0x18   : > { %v609_v8 = vld [vmem:[%s10595_s28 + $0x18] sm:$0xff]  ;;  %639 = vst.msk [vmem:[#allocation2 + $0x8] sm:$0xff] %vm638_vm0, %v606_v5  ;;  %640 = vst.msk [vmem:[#allocation2 + $0x10] sm:$0xff] %vm638_vm0, %v607_v6  ;;  %v610_v9 = vld [vmem:[%s10595_s28 + $0x20] sm:$0xff] }
  0x19   : > { %641 = vst.msk [vmem:[#allocation2 + $0x18] sm:$0xff] %vm638_vm0, %v608_v7  ;;  %v611_v10 = vld [vmem:[%s10595_s28 + $0x28] sm:$0xff]  ;;  %642 = vst.msk [vmem:[#allocation2 + $0x20] sm:$0xff] %vm638_vm0, %v609_v8  ;;  %v612_v11 = vld [vmem:[%s10595_s28 + $0x30] sm:$0xff] }
  0x1a   : > { %1769 = vmatpush1.bf16.msra.mxu0 %v9909_v3  ;;  %643 = vst.msk [vmem:[#allocation2 + $0x28] sm:$0xff] %vm638_vm0, %v610_v9  ;;  %v613_v12 = vld [vmem:[%s10595_s28 + $0x38] sm:$0xff]  ;;  %644 = vst.msk [vmem:[#allocation2 + $0x30] sm:$0xff] %vm638_vm0, %v611_v10  ;;  %v614_v13 = vld [vmem:[%s10595_s28 + $0x40] sm:$0xff] }
  0x1b   : > { %1770 = vmatprep.subr.bf16.mxu0 %v12964_v2  ;;  %645 = vst.msk [vmem:[#allocation2 + $0x38] sm:$0xff] %vm638_vm0, %v612_v11  ;;  %646 = vst.msk [vmem:[#allocation2 + $0x40] sm:$0xff] %vm638_vm0, %v613_v12  ;;  %v615_v15 = vld [vmem:[%s10595_s28 + $0x48] sm:$0xff]  ;;  %v616_v16 = vld [vmem:[%s10595_s28 + $0x50] sm:$0xff] }
  0x1c   : > { %647 = vst.msk [vmem:[#allocation2 + $0x48] sm:$0xff] %vm638_vm0, %v614_v13  ;;  %v617_v17 = vld [vmem:[%s10595_s28 + $0x58] sm:$0xff]  ;;  %648 = vst.msk [vmem:[#allocation2 + $0x50] sm:$0xff] %vm638_vm0, %v615_v15  ;;  %v618_v18 = vld [vmem:[%s10595_s28 + $0x60] sm:$0xff] }
  0x1d   : > { %649 = vst.msk [vmem:[#allocation2 + $0x58] sm:$0xff] %vm638_vm0, %v616_v16  ;;  %650 = vst.msk [vmem:[#allocation2 + $0x60] sm:$0xff] %vm638_vm0, %v617_v17  ;;  %v619_v19 = vld [vmem:[%s10595_s28 + $0x68] sm:$0xff]  ;;  %v620_v20 = vld [vmem:[%s10595_s28 + $0x70] sm:$0xff] }
  0x1e   : > { %1771 = vmatpush1.bf16.msra.mxu0 %v9910_v4  ;;  %651 = vst.msk [vmem:[#allocation2 + $0x68] sm:$0xff] %vm638_vm0, %v618_v18  ;;  %v621_v21 = vld [vmem:[%s10595_s28 + $0x78] sm:$0xff]  ;;  %652 = vst.msk [vmem:[#allocation2 + $0x70] sm:$0xff] %vm638_vm0, %v619_v19  ;;  %v622_v22 = vld [vmem:[%s10595_s28 + $0x80] sm:$0xff] }
  0x1f   : > { %653 = vst.msk [vmem:[#allocation2 + $0x78] sm:$0xff] %vm638_vm0, %v620_v20  ;;  %v623_v23 = vld [vmem:[%s10595_s28 + $0x88] sm:$0xff]  ;;  %1772 = vmatprep.subr.bf16.mxu0 %v12964_v2  ;;  %654 = vst.msk [vmem:[#allocation2 + $0x80] sm:$0xff] %vm638_vm0, %v621_v21  ;;  %v624_v24 = vld [vmem:[%s10595_s28 + $0x90] sm:$0xff] }
  0x20   : > { %655 = vst.msk [vmem:[#allocation2 + $0x88] sm:$0xff] %vm638_vm0, %v622_v22  ;;  %v625_v25 = vld [vmem:[%s10595_s28 + $0x98] sm:$0xff]  ;;  %656 = vst.msk [vmem:[#allocation2 + $0x90] sm:$0xff] %vm638_vm0, %v623_v23  ;;  %v626_v26 = vld [vmem:[%s10595_s28 + $0xa0] sm:$0xff] }
  0x21   : > { %657 = vst.msk [vmem:[#allocation2 + $0x98] sm:$0xff] %vm638_vm0, %v624_v24  ;;  %658 = vst.msk [vmem:[#allocation2 + $0xa0] sm:$0xff] %vm638_vm0, %v625_v25  ;;  %v627_v27 = vld [vmem:[%s10595_s28 + $0xa8] sm:$0xff]  ;;  %v628_v28 = vld [vmem:[%s10595_s28 + $0xb0] sm:$0xff] }
  0x22   : > { %659 = vst.msk [vmem:[#allocation2 + $0xa8] sm:$0xff] %vm638_vm0, %v626_v26  ;;  %v629_v29 = vld [vmem:[%s10595_s28 + $0xb8] sm:$0xff]  ;;  %v770_v30 = vld [vmem:[#allocation2 + $0x7] ss:$2 sm:$0xff]  ;;  %660 = vst.msk [vmem:[#allocation2 + $0xb0] sm:$0xff] %vm638_vm0, %v627_v27  ;;  %1773 = vmatpush1.bf16.msra.mxu0 %v9911_v14 }
  0x23   : > { %661 = vst.msk [vmem:[#allocation2 + $0xb8] sm:$0xff] %vm638_vm0, %v628_v28  ;;  %662 = vst.msk [vmem:[#allocation2 + $0xc0] sm:$0xff] %vm638_vm0, %v629_v29  ;;  %v772_v31 = vld [vmem:[#allocation2 + $0x17] ss:$2 sm:$0xff]  ;;  %1774 = vmatprep.subr.bf16.mxu0 %v12964_v2  ;;  %v802_v35 = vld [vmem:[#allocation2 + $0x8] ss:$2 sm:$0xff] }
  0x24   : > { %v706_v32 = vld [vmem:[#allocation2 + $0x5] ss:$2 sm:$0xff]  ;;  %v9588_v33 = vpack.i.bf16 %v772_v31, %v770_v30  ;;  %v708_v34 = vld [vmem:[#allocation2 + $0x15] ss:$2 sm:$0xff]  ;;  %v804_v36 = vld [vmem:[#allocation2 + $0x18] ss:$2 sm:$0xff] }
  0x25   : > { %v9578_v37 = vpack.i.bf16 %v708_v34, %v706_v32  ;;  %v738_v38 = vld [vmem:[#allocation2 + $0x6] ss:$2 sm:$0xff]  ;;  %v740_v39 = vld [vmem:[#allocation2 + $0x16] ss:$2 sm:$0xff]  ;;  %v9593_v40 = vpack.i.bf16 %v804_v36, %v802_v35  ;;  %v834_v44 = vld [vmem:[#allocation2 + $0x9] ss:$2 sm:$0xff] }
  0x26   : > { %9589 = vrot.lane.b32.xlu1 %v9588_v33, %s10459_s21  ;;  %v9583_v41 = vpack.i.bf16 %v740_v39, %v738_v38  ;;  %v866_v42 = vld [vmem:[#allocation2 + $0xa] ss:$2 sm:$0xff]  ;;  %v868_v43 = vld [vmem:[#allocation2 + $0x1a] ss:$2 sm:$0xff]  ;;  %v836_v45 = vld [vmem:[#allocation2 + $0x19] ss:$2 sm:$0xff] }
  0x27   : > { %9579 = vrot.lane.b32.xlu0 %v9578_v37, %s10460_s22  ;;  %v9603_v46 = vpack.i.bf16 %v868_v43, %v866_v42  ;;  %v898_v47 = vld [vmem:[#allocation2 + $0xb] ss:$2 sm:$0xff]  ;;  %v9598_v48 = vpack.i.bf16 %v836_v45, %v834_v44  ;;  %v900_v49 = vld [vmem:[#allocation2 + $0x1b] ss:$2 sm:$0xff]  ;;  %v742_v54 = vld [vmem:[#allocation2 + $0x26] ss:$2 sm:$0xff] }
  0x28   : > { %v962_v50 = vld [vmem:[#allocation2 + $0xd] ss:$2 sm:$0xff]  ;;  %v964_v51 = vld [vmem:[#allocation2 + $0x1d] ss:$2 sm:$0xff]  ;;  %v9613_v52 = vpack.i.bf16 %v900_v49, %v898_v47  ;;  %v744_v55 = vld [vmem:[#allocation2 + $0x36] ss:$2 sm:$0xff] }
  0x29   : > { %v9608_v53 = vpack.i.bf16 %v964_v51, %v962_v50  ;;  %v710_v56 = vld [vmem:[#allocation2 + $0x25] ss:$2 sm:$0xff]  ;;  %v712_v57 = vld [vmem:[#allocation2 + $0x35] ss:$2 sm:$0xff]  ;;  %v9623_v58 = vpack.i.bf16 %v744_v55, %v742_v54  ;;  %v806_v60 = vld [vmem:[#allocation2 + $0x28] ss:$2 sm:$0xff] }
  0x2a   : > { %9594 = vrot.lane.b32.xlu1 %v9593_v40, %s12962_s2  ;;  %v9618_v59 = vpack.i.bf16 %v712_v57, %v710_v56  ;;  %v808_v61 = vld [vmem:[#allocation2 + $0x38] ss:$2 sm:$0xff]  ;;  %v774_v62 = vld [vmem:[#allocation2 + $0x27] ss:$2 sm:$0xff]  ;;  %v776_v63 = vld [vmem:[#allocation2 + $0x37] ss:$2 sm:$0xff] }
  0x2b   : > { %9584 = vrot.lane.b32.xlu0 %v9583_v41, %s10462_s23  ;;  %v9633_v0 = vpack.i.bf16 %v808_v61, %v806_v60  ;;  %v9628_v3 = vpack.i.bf16 %v776_v63, %v774_v62  ;;  %v870_v4 = vld [vmem:[#allocation2 + $0x2a] ss:$2 sm:$0xff]  ;;  %v872_v5 = vld [vmem:[#allocation2 + $0x3a] ss:$2 sm:$0xff]  ;;  %v838_v6 = vld [vmem:[#allocation2 + $0x29] ss:$2 sm:$0xff] }
  0x2c   : > { %v840_v7 = vld [vmem:[#allocation2 + $0x39] ss:$2 sm:$0xff]  ;;  %v9643_v8 = vpack.i.bf16 %v872_v5, %v870_v4  ;;  %v746_v16 = vld [vmem:[#allocation2 + $0x46] ss:$2 sm:$0xff]  ;;  %v748_v17 = vld [vmem:[#allocation2 + $0x56] ss:$2 sm:$0xff] }
  0x2d   : > { %v9638_v9 = vpack.i.bf16 %v840_v7, %v838_v6  ;;  %v902_v10 = vld [vmem:[#allocation2 + $0x2b] ss:$2 sm:$0xff]  ;;  %v904_v11 = vld [vmem:[#allocation2 + $0x3b] ss:$2 sm:$0xff]  ;;  %v810_v21 = vld [vmem:[#allocation2 + $0x48] ss:$2 sm:$0xff]  ;;  %v9663_v24 = vpack.i.bf16 %v748_v17, %v746_v16 }
  0x2e   : > { %9604 = vrot.lane.b32.xlu1 %v9603_v46, %s10463_s24  ;;  %v966_v12 = vld [vmem:[#allocation2 + $0x2d] ss:$2 sm:$0xff]  ;;  %v968_v13 = vld [vmem:[#allocation2 + $0x3d] ss:$2 sm:$0xff]  ;;  %v9653_v14 = vpack.i.bf16 %v904_v11, %v902_v10  ;;  %v812_v22 = vld [vmem:[#allocation2 + $0x58] ss:$2 sm:$0xff] }
  0x2f   : > { %9599 = vrot.lane.b32.xlu0 %v9598_v48, %s10464_s25  ;;  %v9648_v15 = vpack.i.bf16 %v968_v13, %v966_v12  ;;  %v630_v18 = vld [vmem:[%s10595_s28 + $0xc0] sm:$0xff]  ;;  %v631_v23 = vld [vmem:[%s10595_s28 + $0xc8] sm:$0xff]  ;;  %v632_v27 = vld [vmem:[%s10595_s28 + $0xd0] sm:$0xff]  ;;  %v9673_v36 = vpack.i.bf16 %v812_v22, %v810_v21 }
  0x30   : > { %v714_v19 = vld [vmem:[#allocation2 + $0x45] ss:$2 sm:$0xff]  ;;  %v716_v20 = vld [vmem:[#allocation2 + $0x55] ss:$2 sm:$0xff]  ;;  %663 = vst.msk [vmem:[#allocation2 + $0xc8] sm:$0xff] %vm638_vm0, %v630_v18  ;;  %664 = vst.msk [vmem:[#allocation2 + $0xd0] sm:$0xff] %vm638_vm0, %v631_v23 }
  0x31   : > { %v778_v25 = vld [vmem:[#allocation2 + $0x47] ss:$2 sm:$0xff]  ;;  %v780_v26 = vld [vmem:[#allocation2 + $0x57] ss:$2 sm:$0xff]  ;;  %v9658_v30 = vpack.i.bf16 %v716_v20, %v714_v19  ;;  %665 = vst.msk [vmem:[#allocation2 + $0xd8] sm:$0xff] %vm638_vm0, %v632_v27 }
  0x32   : > { %9614 = vrot.lane.b32.xlu1 %v9613_v52, %s10465_s3  ;;  %v633_v28 = vld [vmem:[%s10595_s28 + $0xd8] sm:$0xff]  ;;  %v634_v29 = vld [vmem:[%s10595_s28 + $0xe0] sm:$0xff]  ;;  %v635_v32 = vld [vmem:[%s10595_s28 + $0xe8] sm:$0xff]  ;;  %v9668_v37 = vpack.i.bf16 %v780_v26, %v778_v25 }
  0x33   : > { %9609 = vrot.lane.b32.xlu0 %v9608_v53, %s10460_s22  ;;  %666 = vst.msk [vmem:[#allocation2 + $0xe0] sm:$0xff] %vm638_vm0, %v633_v28  ;;  %667 = vst.msk [vmem:[#allocation2 + $0xe8] sm:$0xff] %vm638_vm0, %v634_v29  ;;  %v9912_v31 = vld [vmem:[%s12971_s1 + $0x18] sm:$0xff]   ;;  %v636_v33 = vld [vmem:[%s10595_s28 + $0xf0] sm:$0xff] }
  0x34   : > { %v637_v34 = vld [vmem:[%s10595_s28 + $0xf8] sm:$0xff]  ;;  %668 = vst.msk [vmem:[#allocation2 + $0xf0] sm:$0xff] %vm638_vm0, %v635_v32  ;;  %669 = vst.msk [vmem:[#allocation2 + $0xf8] sm:$0xff] %vm638_vm0, %v636_v33  ;;  %1775 = vmatpush1.bf16.msra.mxu0 %v9912_v31  ;;  %v9913_v35 = vld [vmem:[%s12971_s1 + $0x10] sm:$0xff]   ;;  %s12986_s28 = smov 64  }
  0x35   : > { %670 = vst.msk [vmem:[#allocation2 + $0x100] sm:$0xff] %vm638_vm0, %v637_v34  ;;  %1776 = vmatprep.subr.bf16.mxu0 %v12964_v2  ;;  %v874_v38 = vld [vmem:[#allocation2 + $0x4a] ss:$2 sm:$0xff]  ;;  %v876_v39 = vld [vmem:[#allocation2 + $0x5a] ss:$2 sm:$0xff] }
  0x36   : > { %9624 = vrot.lane.b32.xlu1 %v9623_v58, %s10462_s23  ;;  %v842_v40 = vld [vmem:[#allocation2 + $0x49] ss:$2 sm:$0xff]  ;;  %v844_v41 = vld [vmem:[#allocation2 + $0x59] ss:$2 sm:$0xff]  ;;  %v9683_v43 = vpack.i.bf16 %v876_v39, %v874_v38  ;;  %v750_v52 = vld [vmem:[#allocation2 + $0x66] ss:$2 sm:$0xff] }
  0x37   : > { %9619 = vrot.lane.b32.xlu0 %v9618_v59, %s10460_s22  ;;  %v9914_v42 = vld [vmem:[%s12971_s1 + $0x8] sm:$0xff]   ;;  %v9678_v44 = vpack.i.bf16 %v844_v41, %v842_v40  ;;  %v9915_v49 = vld [vmem:[%s12971_s1] sm:$0xff]  }
  0x38   : > { %1777 = vmatpush1.bf16.msra.mxu0 %v9913_v35  ;;  %v906_v45 = vld [vmem:[#allocation2 + $0x4b] ss:$2 sm:$0xff]  ;;  %v908_v46 = vld [vmem:[#allocation2 + $0x5b] ss:$2 sm:$0xff]  ;;  %v752_v53 = vld [vmem:[#allocation2 + $0x76] ss:$2 sm:$0xff] }
  0x39   : > { %1778 = vmatprep.subr.bf16.mxu0 %v12964_v2  ;;  %v970_v47 = vld [vmem:[#allocation2 + $0x4d] ss:$2 sm:$0xff]  ;;  %v972_v48 = vld [vmem:[#allocation2 + $0x5d] ss:$2 sm:$0xff]  ;;  %v9693_v50 = vpack.i.bf16 %v908_v46, %v906_v45  ;;  %v9703_v56 = vpack.i.bf16 %v752_v53, %v750_v52  ;;  %v814_v57 = vld [vmem:[#allocation2 + $0x68] ss:$2 sm:$0xff] }
  0x3a   : > { %9634 = vrot.lane.b32.xlu1 %v9633_v0, %s12962_s2  ;;  %v9688_v51 = vpack.i.bf16 %v972_v48, %v970_v47  ;;  %v718_v54 = vld [vmem:[#allocation2 + $0x65] ss:$2 sm:$0xff]  ;;  %v720_v55 = vld [vmem:[#allocation2 + $0x75] ss:$2 sm:$0xff]  ;;  %v816_v58 = vld [vmem:[#allocation2 + $0x78] ss:$2 sm:$0xff] }
  0x3b   : > { %9629 = vrot.lane.b32.xlu0 %v9628_v3, %s10459_s21  ;;  %v9698_v59 = vpack.i.bf16 %v720_v55, %v718_v54  ;;  %v782_v60 = vld [vmem:[#allocation2 + $0x67] ss:$2 sm:$0xff]  ;;  %v784_v61 = vld [vmem:[#allocation2 + $0x77] ss:$2 sm:$0xff]  ;;  %v9713_v63 = vpack.i.bf16 %v816_v58, %v814_v57  ;;  %v878_v4 = vld [vmem:[#allocation2 + $0x6a] ss:$2 sm:$0xff] }
  0x3c   : > { %1779 = vmatpush1.bf16.msra.mxu0 %v9914_v42  ;;  %v9916_v62 = vld [vmem:[%s12971_s1 + $0x48] sm:$0xff]   ;;  %v9917_v0 = vld [vmem:[%s12971_s1 + $0x40] sm:$0xff]   ;;  %v9708_v3 = vpack.i.bf16 %v784_v61, %v782_v60 }
  0x3d   : > { %1780 = vmatprep.subr.bf16.mxu0 %v12964_v2  ;;  %v880_v5 = vld [vmem:[#allocation2 + $0x7a] ss:$2 sm:$0xff]  ;;  %v846_v6 = vld [vmem:[#allocation2 + $0x69] ss:$2 sm:$0xff]  ;;  %v848_v7 = vld [vmem:[#allocation2 + $0x79] ss:$2 sm:$0xff] }
  0x3e   : > { %9644 = vrot.lane.b32.xlu1 %v9643_v8, %s10463_s24  ;;  %v910_v8 = vld [vmem:[#allocation2 + $0x6b] ss:$2 sm:$0xff]  ;;  %v9723_v10 = vpack.i.bf16 %v880_v5, %v878_v4  ;;  %v9718_v13 = vpack.i.bf16 %v848_v7, %v846_v6  ;;  %v818_v20 = vld [vmem:[#allocation2 + $0x88] ss:$2 sm:$0xff]  ;;  %v820_v21 = vld [vmem:[#allocation2 + $0x98] ss:$2 sm:$0xff] }
  0x3f   : > { %9639 = vrot.lane.b32.xlu0 %v9638_v9, %s10464_s25  ;;  %v912_v9 = vld [vmem:[#allocation2 + $0x7b] ss:$2 sm:$0xff]  ;;  %v882_v26 = vld [vmem:[#allocation2 + $0x8a] ss:$2 sm:$0xff]  ;;  %v914_v28 = vld [vmem:[#allocation2 + $0x8b] ss:$2 sm:$0xff]  ;;  %v9753_v34 = vpack.i.bf16 %v820_v21, %v818_v20 }
  0x40   : > { %1781 = vmatpush1.bf16.msra.mxu0 %v9915_v49  ;;  %v974_v11 = vld [vmem:[#allocation2 + $0x6d] ss:$2 sm:$0xff]  ;;  %v976_v12 = vld [vmem:[#allocation2 + $0x7d] ss:$2 sm:$0xff]  ;;  %v9733_v16 = vpack.i.bf16 %v912_v9, %v910_v8  ;;  %v884_v31 = vld [vmem:[#allocation2 + $0x9a] ss:$2 sm:$0xff] }
  0x41   : > { %1794 = vmatprep.subr.bf16.mxu0 %v12964_v2  ;;  %v722_v17 = vld [vmem:[#allocation2 + $0x85] ss:$2 sm:$0xff]  ;;  %v724_v18 = vld [vmem:[#allocation2 + $0x95] ss:$2 sm:$0xff]  ;;  %v9728_v19 = vpack.i.bf16 %v976_v12, %v974_v11  ;;  %v10724_v32 = vld [vmem:[#allocation2 + $0x84] ss:$2 sm:$0xff]  ;;  %v9763_v38 = vpack.i.bf16 %v884_v31, %v882_v26 }
  0x42   : > { %9654 = vrot.lane.b32.xlu1 %v9653_v14, %s10465_s3  ;;  %v754_v14 = vld [vmem:[#allocation2 + $0x86] ss:$2 sm:$0xff]  ;;  %v786_v23 = vld [vmem:[#allocation2 + $0x87] ss:$2 sm:$0xff]  ;;  %v9738_v25 = vpack.i.bf16 %v724_v18, %v722_v17  ;;  %v760_v42 = vld [vmem:[#allocation2 + $0xb6] ss:$2 sm:$0xff] }
  0x43   : > { %9649 = vrot.lane.b32.xlu0 %v9648_v15, %s10460_s22  ;;  %v756_v15 = vld [vmem:[#allocation2 + $0x96] ss:$2 sm:$0xff]  ;;  %v850_v27 = vld [vmem:[#allocation2 + $0x89] ss:$2 sm:$0xff]  ;;  %v852_v35 = vld [vmem:[#allocation2 + $0x99] ss:$2 sm:$0xff] }
  0x44   : > { %1795 = vmatpush2.bf16.msra.mxu0 %v9916_v62  ;;  %v9743_v22 = vpack.i.bf16 %v756_v15, %v754_v14  ;;  %v978_v29 = vld [vmem:[#allocation2 + $0x8d] ss:$2 sm:$0xff]  ;;  %v10726_v33 = vld [vmem:[#allocation2 + $0x8c] ss:$2 sm:$0xff]  ;;  %v980_v39 = vld [vmem:[#allocation2 + $0x9d] ss:$2 sm:$0xff]  ;;  %v9758_v40 = vpack.i.bf16 %v852_v35, %v850_v27 }
  0x45   : > { %1796 = vmatprep.subr.bf16.mxu0 %v12964_v2  ;;  %v758_v41 = vld [vmem:[#allocation2 + $0xa6] ss:$2 sm:$0xff]  ;;  %v728_v45 = vld [vmem:[#allocation2 + $0xb5] ss:$2 sm:$0xff]  ;;  %v730_v5 = vld [vmem:[#allocation2 + $0xc5] ss:$2 sm:$0xff] }
  0x46   : > { %9664 = vrot.lane.b32.xlu1 %v9663_v24, %s10462_s23  ;;  %v788_v24 = vld [vmem:[#allocation2 + $0x97] ss:$2 sm:$0xff]  ;;  %v822_v46 = vld [vmem:[#allocation2 + $0xa8] ss:$2 sm:$0xff]  ;;  %v824_v47 = vld [vmem:[#allocation2 + $0xb8] ss:$2 sm:$0xff]  ;;  %v9783_v48 = vpack.i.bf16 %v760_v42, %v758_v41 }
  0x47   : > { %9659 = vrot.lane.b32.xlu0 %v9658_v30, %s10460_s22  ;;  %v10722_v30 = vld [vmem:[#allocation2 + $0x7c] ss:$2 sm:$0xff]  ;;  %v790_v49 = vld [vmem:[#allocation2 + $0xa7] ss:$2 sm:$0xff]  ;;  %v9793_v54 = vpack.i.bf16 %v824_v47, %v822_v46  ;;  %v796_v12 = vld [vmem:[#allocation2 + $0xd7] ss:$2 sm:$0xff] }
  0x48   : > { %1797 = vmatpush2.bf16.msra.mxu0 %v9917_v0  ;;  %1879 = vst [vmem:[#allocation2 + $0x88] sm:$0xff] %v10457_v1  ;;  %v9768_v1 = vpack.i.bf16 %v980_v39, %v978_v29  ;;  %v886_v52 = vld [vmem:[#allocation2 + $0xaa] ss:$2 sm:$0xff]  ;;  %v888_v53 = vld [vmem:[#allocation2 + $0xba] ss:$2 sm:$0xff] }
  0x49   : > { %v854_v55 = vld [vmem:[#allocation2 + $0xa9] ss:$2 sm:$0xff]  ;;  %v9803_v60 = vpack.i.bf16 %v888_v53, %v886_v52  ;;  %v762_v0 = vld [vmem:[#allocation2 + $0xc6] ss:$2 sm:$0xff]  ;;  %v860_v18 = vld [vmem:[#allocation2 + $0xd9] ss:$2 sm:$0xff] }
  0x4a   : > { %9674 = vrot.lane.b32.xlu1 %v9673_v36, %s12962_s2  ;;  %v9748_v36 = vpack.i.bf16 %v788_v24, %v786_v23  ;;  %v918_v58 = vld [vmem:[#allocation2 + $0xab] ss:$2 sm:$0xff]  ;;  %v826_v8 = vld [vmem:[#allocation2 + $0xc8] ss:$2 sm:$0xff]  ;;  %v828_v9 = vld [vmem:[#allocation2 + $0xd8] ss:$2 sm:$0xff] }
  0x4b   : > { %9669 = vrot.lane.b32.xlu0 %v9668_v37, %s10459_s21  ;;  %v916_v37 = vld [vmem:[#allocation2 + $0x9b] ss:$2 sm:$0xff]  ;;  %v890_v14 = vld [vmem:[#allocation2 + $0xca] ss:$2 sm:$0xff]  ;;  %v892_v15 = vld [vmem:[#allocation2 + $0xda] ss:$2 sm:$0xff] }
  0x4c   : > { %v982_v61 = vld [vmem:[#allocation2 + $0xad] ss:$2 sm:$0xff]  ;;  %v984_v62 = vld [vmem:[#allocation2 + $0xbd] ss:$2 sm:$0xff]  ;;  %v766_v26 = vld [vmem:[#allocation2 + $0xe6] ss:$2 sm:$0xff] }
  0x4d   : > { %v732_v6 = vld [vmem:[#allocation2 + $0xd5] ss:$2 sm:$0xff]  ;;  %v9808_v7 = vpack.i.bf16 %v984_v62, %v982_v61  ;;  %v768_v27 = vld [vmem:[#allocation2 + $0xf6] ss:$2 sm:$0xff]  ;;  %v734_v29 = vld [vmem:[#allocation2 + $0xe5] ss:$2 sm:$0xff] }
  0x4e   : > { %9684 = vrot.lane.b32.xlu1 %v9683_v43, %s10463_s24  ;;  %v9773_v43 = vpack.i.bf16 %v916_v37, %v914_v28  ;;  %v794_v11 = vld [vmem:[#allocation2 + $0xc7] ss:$2 sm:$0xff]  ;;  %v830_v35 = vld [vmem:[#allocation2 + $0xe8] ss:$2 sm:$0xff]  ;;  %v9863_v37 = vpack.i.bf16 %v768_v27, %v766_v26  ;;  %v800_v39 = vld [vmem:[#allocation2 + $0xf7] ss:$2 sm:$0xff] }
  0x4f   : > { %9679 = vrot.lane.b32.xlu0 %v9678_v44, %s10464_s25  ;;  %v726_v44 = vld [vmem:[#allocation2 + $0xa5] ss:$2 sm:$0xff]  ;;  %v736_v31 = vld [vmem:[#allocation2 + $0xf5] ss:$2 sm:$0xff]  ;;  %v894_v41 = vld [vmem:[#allocation2 + $0xea] ss:$2 sm:$0xff] }
  0x50   : > { %v858_v17 = vld [vmem:[#allocation2 + $0xc9] ss:$2 sm:$0xff]  ;;  %v896_v42 = vld [vmem:[#allocation2 + $0xfa] ss:$2 sm:$0xff] }
  0x51   : > { %v922_v20 = vld [vmem:[#allocation2 + $0xcb] ss:$2 sm:$0xff]  ;;  %v924_v21 = vld [vmem:[#allocation2 + $0xdb] ss:$2 sm:$0xff]  ;;  %v676_v52 = vld [vmem:[#allocation2 + $0x14] ss:$2 sm:$0xff] }
  0x52   : > { %9694 = vrot.lane.b32.xlu1 %v9693_v50, %s10465_s3  ;;  %v792_v50 = vld [vmem:[#allocation2 + $0xb7] ss:$2 sm:$0xff]  ;;  %v9853_v28 = vpack.i.bf16 %v924_v21, %v922_v20  ;;  %v674_v53 = vld [vmem:[#allocation2 + $0x4] ss:$2 sm:$0xff] }
  0x53   : > { %9689 = vrot.lane.b32.xlu0 %v9688_v51, %s10460_s22  ;;  %v9778_v51 = vpack.i.bf16 %v728_v45, %v726_v44  ;;  %v9788_v57 = vpack.i.bf16 %v792_v50, %v790_v49  ;;  %v986_v23 = vld [vmem:[#allocation2 + $0xcd] ss:$2 sm:$0xff]  ;;  %v988_v24 = vld [vmem:[#allocation2 + $0xdd] ss:$2 sm:$0xff]  ;;  %v930_v27 = vld [vmem:[#allocation2 + $0xc] ss:$2 sm:$0xff] }
  0x54   : > { %v862_v44 = vld [vmem:[#allocation2 + $0xe9] ss:$2 sm:$0xff]  ;;  %v864_v45 = vld [vmem:[#allocation2 + $0xf9] ss:$2 sm:$0xff] }
  0x55   : > { %v926_v47 = vld [vmem:[#allocation2 + $0xeb] ss:$2 sm:$0xff]  ;;  %v9924_v26 = vld [vmem:[%s12973_s20 + $0x60] sm:$0xff]  }
  0x56   : > { %9704 = vrot.lane.b32.xlu1 %v9703_v56, %s10462_s23  ;;  %v856_v56 = vld [vmem:[#allocation2 + $0xb9] ss:$2 sm:$0xff]  ;;  %v9920_v61 = vld [vmem:[%s12973_s20 + $0x70] sm:$0xff]   ;;  %v9923_v21 = vld [vmem:[%s12973_s20 + $0x28] sm:$0xff]  }
  0x57   : > { %9699 = vrot.lane.b32.xlu0 %v9698_v59, %s10460_s22  ;;  %v920_v59 = vld [vmem:[#allocation2 + $0xbb] ss:$2 sm:$0xff] }
  0x58   : > { %v9813_v4 = vpack.i.bf16 %v920_v59, %v918_v58  ;;  %v990_v49 = vld [vmem:[#allocation2 + $0xed] ss:$2 sm:$0xff]  ;;  %v992_v50 = vld [vmem:[#allocation2 + $0xfd] ss:$2 sm:$0xff] }
  0x59   : > { %v9918_v59 = vld [vmem:[%s12973_s20 + $0x78] sm:$0xff]  }
  0x5a   : > { %9714 = vrot.lane.b32.xlu1 %v9713_v63, %s12962_s2  ;;  %v9798_v63 = vpack.i.bf16 %v856_v56, %v854_v55  ;;  %8619 = vmatprep.subr.bf16.mxu1 %v9918_v59 }
  0x5b   : > { %9709 = vrot.lane.b32.xlu0 %v9708_v3, %s10459_s21  ;;  %v764_v3 = vld [vmem:[#allocation2 + $0xd6] ss:$2 sm:$0xff] }
  0x5e   : > { %9724 = vrot.lane.b32.xlu1 %v9723_v10, %s10463_s24  ;;  %v9823_v10 = vpack.i.bf16 %v764_v3, %v762_v0  ;;  %v9888_v0 = vpack.i.bf16 %v992_v50, %v990_v49 }
  0x5f   : > { %9719 = vrot.lane.b32.xlu0 %v9718_v13, %s10464_s25  ;;  %v9818_v13 = vpack.i.bf16 %v732_v6, %v730_v5 }
  0x62   : > { %9734 = vrot.lane.b32.xlu1 %v9733_v16, %s10465_s3  ;;  %v9833_v16 = vpack.i.bf16 %v828_v9, %v826_v8  ;;  %v9922_v8 = vld [vmem:[%s12973_s20 + $0x68] sm:$0xff]  }
  0x63   : > { %9729 = vrot.lane.b32.xlu0 %v9728_v19, %s10460_s22  ;;  %v9828_v19 = vpack.i.bf16 %v796_v12, %v794_v11 }
  0x66   : > { %9744 = vrot.lane.b32.xlu1 %v9743_v22, %s10462_s23  ;;  %v9843_v22 = vpack.i.bf16 %v892_v15, %v890_v14 }
  0x67   : > { %9739 = vrot.lane.b32.xlu0 %v9738_v25, %s10460_s22  ;;  %v9838_v25 = vpack.i.bf16 %v860_v18, %v858_v17 }
  0x6a   : > { %9754 = vrot.lane.b32.xlu1 %v9753_v34, %s12962_s2  ;;  %v9848_v34 = vpack.i.bf16 %v988_v24, %v986_v23 }
  0x6b   : > { %9749 = vrot.lane.b32.xlu0 %v9748_v36, %s10459_s21  ;;  %v832_v36 = vld [vmem:[#allocation2 + $0xf8] ss:$2 sm:$0xff] }
  0x6e   : > { %9764 = vrot.lane.b32.xlu1 %v9763_v38, %s10463_s24  ;;  %v798_v38 = vld [vmem:[#allocation2 + $0xe7] ss:$2 sm:$0xff] }
  0x6f   : > { %9759 = vrot.lane.b32.xlu0 %v9758_v40, %s10464_s25  ;;  %v9858_v40 = vpack.i.bf16 %v736_v31, %v734_v29 }
  0x72   : > { %9774 = vrot.lane.b32.xlu1 %v9773_v43, %s10465_s3  ;;  %v9873_v43 = vpack.i.bf16 %v832_v36, %v830_v35 }
  0x73   : > { %9769 = vrot.lane.b32.xlu0 %v9768_v1, %s10460_s22  ;;  %v9868_v1 = vpack.i.bf16 %v800_v39, %v798_v38  ;;  %v9925_v38 = vld [vmem:[%s12973_s20 + $0x20] sm:$0xff]  }
  0x76   : > { %9784 = vrot.lane.b32.xlu1 %v9783_v48, %s10462_s23  ;;  %v928_v48 = vld [vmem:[#allocation2 + $0xfb] ss:$2 sm:$0xff] }
  0x77   : > { %9779 = vrot.lane.b32.xlu0 %v9778_v51, %s10460_s22 }
  0x7a   : > { %9794 = vrot.lane.b32.xlu1 %v9793_v54, %s12962_s2  ;;  %v9883_v54 = vpack.i.bf16 %v896_v42, %v894_v41 }
  0x7b   : > { %9789 = vrot.lane.b32.xlu0 %v9788_v57, %s10459_s21  ;;  %v9878_v57 = vpack.i.bf16 %v864_v45, %v862_v44  ;;  %v680_v44 = vld [vmem:[#allocation2 + $0x34] ss:$2 sm:$0xff] }
  0x7e   : > { %9804 = vrot.lane.b32.xlu1 %v9803_v60, %s10463_s24  ;;  %v9919_v60 = vld [vmem:[%s12973_s20 + $0x38] sm:$0xff]  }
  0x7f   : > { %9799 = vrot.lane.b32.xlu0 %v9798_v63, %s10464_s25  ;;  %v9893_v63 = vpack.i.bf16 %v928_v48, %v926_v47  ;;  %8620 = vmatpush3.bf16.msra.mxu1 %v9919_v60 }
  0x80   : > { %8621 = vmatprep.subr.bf16.mxu1 %v9920_v61 }
  0x82   : > { %9814 = vrot.lane.b32.xlu1 %v9813_v4, %s10465_s3 }
  0x83   : > { %9809 = vrot.lane.b32.xlu0 %v9808_v7, %s10460_s22  ;;  %v9921_v7 = vld [vmem:[%s12973_s20 + $0x30] sm:$0xff]  }
  0x84   : > { %8622 = vmatpush3.bf16.msra.mxu1 %v9921_v7 }
  0x85   : > { %8623 = vmatprep.subr.bf16.mxu1 %v9922_v8 }
  0x86   : > { %9824 = vrot.lane.b32.xlu1 %v9823_v10, %s10462_s23 }
  0x87   : > { %9819 = vrot.lane.b32.xlu0 %v9818_v13, %s10460_s22 }
  0x88   : > { %8624 = vmatpush3.bf16.msra.mxu1 %v9923_v21 }
  0x89   : > { %8625 = vmatprep.subr.bf16.mxu1 %v9924_v26  ;;  %v682_v26 = vld [vmem:[#allocation2 + $0x44] ss:$2 sm:$0xff] }
  0x8a   : > { %9834 = vrot.lane.b32.xlu1 %v9833_v16, %s12962_s2 }
  0x8b   : > { %9829 = vrot.lane.b32.xlu0 %v9828_v19, %s10459_s21 }
  0x8c   : > { %8626 = vmatpush3.bf16.msra.mxu1 %v9925_v38 }
  0x8e   : > { %9844 = vrot.lane.b32.xlu1 %v9843_v22, %s10463_s24 }
  0x8f   : > { %9839 = vrot.lane.b32.xlu0 %v9838_v25, %s10464_s25 }
  0x92   : > { %9854 = vrot.lane.b32.xlu1 %v9853_v28, %s10465_s3  ;;  %v932_v28 = vld [vmem:[#allocation2 + $0x1c] ss:$2 sm:$0xff] }
  0x93   : > { %9849 = vrot.lane.b32.xlu0 %v9848_v34, %s10460_s22 }
  0x96   : > { %9864 = vrot.lane.b32.xlu1 %v9863_v37, %s10462_s23 }
  0x97   : > { %9859 = vrot.lane.b32.xlu0 %v9858_v40, %s10460_s22 }
  0x98   : > { %v9590_v46 = vpop.permute.xlu1 %9589 }
  0x99   : > { %v9580_v51 = vpop.permute.xlu0 %9579  ;;  %v9592_v9 = vunpack.i.h.bf16 %v9590_v46  ;;  %v9591_v10 = vunpack.i.l.bf16 %v9590_v46 }
  0x9a   : > { %9874 = vrot.lane.b32.xlu1 %v9873_v43, %s12962_s2  ;;  %v9582_v55 = vunpack.i.h.bf16 %v9580_v51  ;;  %v9581_v56 = vunpack.i.l.bf16 %v9580_v51  ;;  %v678_v43 = vld [vmem:[#allocation2 + $0x24] ss:$2 sm:$0xff] }
  0x9b   : > { %9869 = vrot.lane.b32.xlu0 %v9868_v1, %s10459_s21 }
  0x9c   : > { %v9595_v58 = vpop.permute.xlu1 %9594  ;;  %v1506_v11 = vsel %vm638_vm0, %v676_v52, %v9582_v55  ;;  %v1505_v12 = vsel %vm638_vm0, %v674_v53, %v9581_v56 }
  0x9d   : > { %v9585_v62 = vpop.permute.xlu0 %9584  ;;  %v9597_v3 = vunpack.i.h.bf16 %v9595_v58  ;;  %v9596_v4 = vunpack.i.l.bf16 %v9595_v58 }
  0x9e   : > { %v9587_v5 = vunpack.i.h.bf16 %v9585_v62  ;;  %v9586_v6 = vunpack.i.l.bf16 %v9585_v62  ;;  %9884 = vrot.lane.b32.xlu1 %v9883_v54, %s10463_s24 }
  0x9f   : > { %9879 = vrot.lane.b32.xlu0 %v9878_v57, %s10464_s25 }
  0xa0   : > { %v1522_v13 = vsel %vm1521_vm1, %v1505_v12, %v9586_v6  ;;  %v1523_v14 = vsel %vm1521_vm1, %v1506_v11, %v9587_v5  ;;  %v9605_v15 = vpop.permute.xlu1 %9604 }
  0xa1   : > { %v1539_v16 = vsel %vm1538_vm2, %v1522_v13, %v9591_v10  ;;  %v1540_v17 = vsel %vm1538_vm2, %v1523_v14, %v9592_v9  ;;  %v9607_v18 = vunpack.i.h.bf16 %v9605_v15  ;;  %v9606_v19 = vunpack.i.l.bf16 %v9605_v15  ;;  %v9600_v20 = vpop.permute.xlu0 %9599  ;;  %v934_v14 = vld [vmem:[#allocation2 + $0x2c] ss:$2 sm:$0xff]  ;;  %v936_v15 = vld [vmem:[#allocation2 + $0x3c] ss:$2 sm:$0xff] }
  0xa2   : > { %v9602_v22 = vunpack.i.h.bf16 %v9600_v20  ;;  %v9601_v23 = vunpack.i.l.bf16 %v9600_v20  ;;  %v1556_v24 = vsel %vm1555_vm3, %v1539_v16, %v9596_v4  ;;  %v1557_v25 = vsel %vm1555_vm3, %v1540_v17, %v9597_v3  ;;  %9894 = vrot.lane.b32.xlu1 %v9893_v63, %s10465_s3 }
  0xa3   : > { %9889 = vrot.lane.b32.xlu0 %v9888_v0, %s10460_s22 }
  0xa4   : > { %v1573_v29 = vsel %vm1572_vm4, %v1556_v24, %v9601_v23  ;;  %v1574_v31 = vsel %vm1572_vm4, %v1557_v25, %v9602_v22  ;;  %v9615_v34 = vpop.permute.xlu1 %9614 }
  0xa5   : > { %v9617_v35 = vunpack.i.h.bf16 %v9615_v34  ;;  %v9616_v36 = vunpack.i.l.bf16 %v9615_v34  ;;  %v9610_v37 = vpop.permute.xlu0 %9609  ;;  %v1590_v41 = vsel %vm1589_vm5, %v1573_v29, %v9606_v19  ;;  %v1591_v42 = vsel %vm1589_vm5, %v1574_v31, %v9607_v18 }
  0xa6   : > { %v9612_v39 = vunpack.i.h.bf16 %v9610_v37  ;;  %v9611_v40 = vunpack.i.l.bf16 %v9610_v37 }
  0xa7   : > { %v1607_v45 = vsel %vm1606_vm6, %v1590_v41, %v9616_v36  ;;  %v1608_v1 = vsel %vm1606_vm6, %v1591_v42, %v9617_v35 }
  0xa8   : > { %v9625_v46 = vpop.permute.xlu1 %9624  ;;  %v1623_v47 = vsel %vm638_vm0, %v930_v27, %v9611_v40  ;;  %v1624_v48 = vsel %vm638_vm0, %v932_v28, %v9612_v39  ;;  %v1639_v49 = vpack.c.bf16 %v1608_v1, %v1607_v45  ;;  %v684_v27 = vld [vmem:[#allocation2 + $0x54] ss:$2 sm:$0xff] }
  0xa9   : > { %v9620_v50 = vpop.permute.xlu0 %9619  ;;  %v1640_v51 = vpack.c.bf16 %v1624_v48, %v1623_v47  ;;  %v9627_v54 = vunpack.i.h.bf16 %v9625_v46  ;;  %v9626_v55 = vunpack.i.l.bf16 %v9625_v46 }
  0xaa   : > { %v9622_v52 = vunpack.i.h.bf16 %v9620_v50  ;;  %v9621_v53 = vunpack.i.l.bf16 %v9620_v50 }
  0xab   : > { %8186 = vmatprep.mubr.msk.bf16.mxu0 %vm1521_vm1, %v1640_v51 }
  0xac   : > { %v1508_v56 = vsel %vm638_vm0, %v680_v44, %v9622_v52  ;;  %v1507_v57 = vsel %vm638_vm0, %v678_v43, %v9621_v53  ;;  %1799 = vmatmul.mubr.bf16.vlgmr.msra.gmra.mxu0 %v1639_v49  ;;  %v9635_v58 = vpop.permute.xlu1 %9634 }
  0xad   : > { %v9630_v59 = vpop.permute.xlu0 %9629  ;;  %v9637_v62 = vunpack.i.h.bf16 %v9635_v58  ;;  %v9636_v63 = vunpack.i.l.bf16 %v9635_v58  ;;  %v1524_v0 = vsel %vm1521_vm1, %v1507_v57, %v9626_v55  ;;  %v1525_v3 = vsel %vm1521_vm1, %v1508_v56, %v9627_v54 }
  0xae   : > { %v9632_v60 = vunpack.i.h.bf16 %v9630_v59  ;;  %v9631_v61 = vunpack.i.l.bf16 %v9630_v59 }
  0xb0   : > { %v1541_v4 = vsel %vm1538_vm2, %v1524_v0, %v9631_v61  ;;  %v1542_v5 = vsel %vm1538_vm2, %v1525_v3, %v9632_v60  ;;  %v9645_v6 = vpop.permute.xlu1 %9644 }
  0xb1   : > { %v9640_v7 = vpop.permute.xlu0 %9639  ;;  %v9647_v8 = vunpack.i.h.bf16 %v9645_v6  ;;  %v9646_v9 = vunpack.i.l.bf16 %v9645_v6  ;;  %v1558_v12 = vsel %vm1555_vm3, %v1541_v4, %v9636_v63  ;;  %v1559_v13 = vsel %vm1555_vm3, %v1542_v5, %v9637_v62  ;;  %v938_v62 = vld [vmem:[#allocation2 + $0x4c] ss:$2 sm:$0xff]  ;;  %v940_v63 = vld [vmem:[#allocation2 + $0x5c] ss:$2 sm:$0xff] }
  0xb2   : > { %v9642_v10 = vunpack.i.h.bf16 %v9640_v7  ;;  %v9641_v11 = vunpack.i.l.bf16 %v9640_v7 }
  0xb4   : > { %v1575_v16 = vsel %vm1572_vm4, %v1558_v12, %v9641_v11  ;;  %v1576_v17 = vsel %vm1572_vm4, %v1559_v13, %v9642_v10  ;;  %v9655_v18 = vpop.permute.xlu1 %9654  ;;  %v686_v12 = vld [vmem:[#allocation2 + $0x64] ss:$2 sm:$0xff]  ;;  %v688_v13 = vld [vmem:[#allocation2 + $0x74] ss:$2 sm:$0xff] }
  0xb5   : > { %v9657_v19 = vunpack.i.h.bf16 %v9655_v18  ;;  %v9656_v20 = vunpack.i.l.bf16 %v9655_v18  ;;  %v9650_v21 = vpop.permute.xlu0 %9649  ;;  %v1592_v24 = vsel %vm1589_vm5, %v1575_v16, %v9646_v9  ;;  %v1593_v25 = vsel %vm1589_vm5, %v1576_v17, %v9647_v8 }
  0xb6   : > { %v9652_v22 = vunpack.i.h.bf16 %v9650_v21  ;;  %v9651_v23 = vunpack.i.l.bf16 %v9650_v21 }
  0xb7   : > { %v1609_v28 = vsel %vm1606_vm6, %v1592_v24, %v9656_v20  ;;  %v1610_v29 = vsel %vm1606_vm6, %v1593_v25, %v9657_v19 }
  0xb8   : > { %v1626_v31 = vsel %vm638_vm0, %v936_v15, %v9652_v22  ;;  %v1625_v34 = vsel %vm638_vm0, %v934_v14, %v9651_v23  ;;  %v9665_v35 = vpop.permute.xlu1 %9664  ;;  %v1641_v36 = vpack.c.bf16 %v1610_v29, %v1609_v28 }
  0xb9   : > { %v1642_v37 = vpack.c.bf16 %v1626_v31, %v1625_v34  ;;  %v9660_v38 = vpop.permute.xlu0 %9659  ;;  %v9667_v41 = vunpack.i.h.bf16 %v9665_v35  ;;  %v9666_v42 = vunpack.i.l.bf16 %v9665_v35 }
  0xba   : > { %v9662_v39 = vunpack.i.h.bf16 %v9660_v38  ;;  %v9661_v40 = vunpack.i.l.bf16 %v9660_v38 }
  0xbb   : > { %8187 = vmatprep.mubr.msk.bf16.mxu0 %vm1521_vm1, %v1642_v37 }
  0xbc   : > { %v1510_v43 = vsel %vm638_vm0, %v684_v27, %v9662_v39  ;;  %v1509_v44 = vsel %vm638_vm0, %v682_v26, %v9661_v40  ;;  %1807 = vmatmul.mubr.bf16.gmra.mxu0 %v1641_v36  ;;  %v9675_v45 = vpop.permute.xlu1 %9674 }
  0xbd   : > { %v9670_v1 = vpop.permute.xlu0 %9669  ;;  %v9677_v48 = vunpack.i.h.bf16 %v9675_v45  ;;  %v9676_v49 = vunpack.i.l.bf16 %v9675_v45  ;;  %v1526_v50 = vsel %vm1521_vm1, %v1509_v44, %v9666_v42  ;;  %v1527_v51 = vsel %vm1521_vm1, %v1510_v43, %v9667_v41 }
  0xbe   : > { %v9672_v46 = vunpack.i.h.bf16 %v9670_v1  ;;  %v9671_v47 = vunpack.i.l.bf16 %v9670_v1 }
  0xc0   : > { %v1543_v52 = vsel %vm1538_vm2, %v1526_v50, %v9671_v47  ;;  %v1544_v53 = vsel %vm1538_vm2, %v1527_v51, %v9672_v46  ;;  %v9685_v54 = vpop.permute.xlu1 %9684 }
  0xc1   : > { %v9680_v55 = vpop.permute.xlu0 %9679  ;;  %v9687_v56 = vunpack.i.h.bf16 %v9685_v54  ;;  %v9686_v57 = vunpack.i.l.bf16 %v9685_v54  ;;  %v1560_v60 = vsel %vm1555_vm3, %v1543_v52, %v9676_v49  ;;  %v1561_v61 = vsel %vm1555_vm3, %v1544_v53, %v9677_v48  ;;  %v942_v48 = vld [vmem:[#allocation2 + $0x6c] ss:$2 sm:$0xff] }
  0xc2   : > { %v9682_v58 = vunpack.i.h.bf16 %v9680_v55  ;;  %v9681_v59 = vunpack.i.l.bf16 %v9680_v55 }
  0xc4   : > { %v1577_v0 = vsel %vm1572_vm4, %v1560_v60, %v9681_v59  ;;  %v1578_v3 = vsel %vm1572_vm4, %v1561_v61, %v9682_v58  ;;  %v9695_v4 = vpop.permute.xlu1 %9694  ;;  %v692_v59 = vld [vmem:[#allocation2 + $0x94] ss:$2 sm:$0xff] }
  0xc5   : > { %v9697_v5 = vunpack.i.h.bf16 %v9695_v4  ;;  %v9696_v6 = vunpack.i.l.bf16 %v9695_v4  ;;  %v9690_v7 = vpop.permute.xlu0 %9689  ;;  %v1594_v10 = vsel %vm1589_vm5, %v1577_v0, %v9686_v57  ;;  %v1595_v11 = vsel %vm1589_vm5, %v1578_v3, %v9687_v56 }
  0xc6   : > { %v9692_v8 = vunpack.i.h.bf16 %v9690_v7  ;;  %v9691_v9 = vunpack.i.l.bf16 %v9690_v7 }
  0xc7   : > { %v1611_v14 = vsel %vm1606_vm6, %v1594_v10, %v9696_v6  ;;  %v1612_v15 = vsel %vm1606_vm6, %v1595_v11, %v9697_v5 }
  0xc8   : > { %v1628_v16 = vsel %vm638_vm0, %v940_v63, %v9692_v8  ;;  %v1627_v17 = vsel %vm638_vm0, %v938_v62, %v9691_v9  ;;  %v9705_v18 = vpop.permute.xlu1 %9704  ;;  %v1643_v19 = vpack.c.bf16 %v1612_v15, %v1611_v14 }
  0xc9   : > { %v1644_v20 = vpack.c.bf16 %v1628_v16, %v1627_v17  ;;  %v9700_v21 = vpop.permute.xlu0 %9699  ;;  %v9707_v24 = vunpack.i.h.bf16 %v9705_v18  ;;  %v9706_v25 = vunpack.i.l.bf16 %v9705_v18 }
  0xca   : > { %v9702_v22 = vunpack.i.h.bf16 %v9700_v21  ;;  %v9701_v23 = vunpack.i.l.bf16 %v9700_v21 }
  0xcb   : > { %8188 = vmatprep.mubr.msk.bf16.mxu0 %vm1521_vm1, %v1644_v20 }
  0xcc   : > { %v1512_v26 = vsel %vm638_vm0, %v688_v13, %v9702_v22  ;;  %v1511_v27 = vsel %vm638_vm0, %v686_v12, %v9701_v23  ;;  %1815 = vmatmul.mubr.bf16.gmra.mxu0 %v1643_v19  ;;  %v9715_v28 = vpop.permute.xlu1 %9714 }
  0xcd   : > { %v9710_v29 = vpop.permute.xlu0 %9709  ;;  %v9717_v35 = vunpack.i.h.bf16 %v9715_v28  ;;  %v9716_v36 = vunpack.i.l.bf16 %v9715_v28  ;;  %v1528_v37 = vsel %vm1521_vm1, %v1511_v27, %v9706_v25  ;;  %v1529_v38 = vsel %vm1521_vm1, %v1512_v26, %v9707_v24  ;;  %v948_v28 = vld [vmem:[#allocation2 + $0x9c] ss:$2 sm:$0xff] }
  0xce   : > { %v9712_v31 = vunpack.i.h.bf16 %v9710_v29  ;;  %v9711_v34 = vunpack.i.l.bf16 %v9710_v29 }
  0xd0   : > { %v1545_v39 = vsel %vm1538_vm2, %v1528_v37, %v9711_v34  ;;  %v1546_v40 = vsel %vm1538_vm2, %v1529_v38, %v9712_v31  ;;  %v9725_v41 = vpop.permute.xlu1 %9724 }
  0xd1   : > { %v9720_v42 = vpop.permute.xlu0 %9719  ;;  %v9727_v43 = vunpack.i.h.bf16 %v9725_v41  ;;  %v9726_v44 = vunpack.i.l.bf16 %v9725_v41  ;;  %v1562_v46 = vsel %vm1555_vm3, %v1545_v39, %v9716_v36  ;;  %v1563_v47 = vsel %vm1555_vm3, %v1546_v40, %v9717_v35 }
  0xd2   : > { %v9722_v45 = vunpack.i.h.bf16 %v9720_v42  ;;  %v9721_v1 = vunpack.i.l.bf16 %v9720_v42  ;;  %v694_v42 = vld [vmem:[#allocation2 + $0xa4] ss:$2 sm:$0xff] }
  0xd4   : > { %v1579_v49 = vsel %vm1572_vm4, %v1562_v46, %v9721_v1  ;;  %v1580_v50 = vsel %vm1572_vm4, %v1563_v47, %v9722_v45  ;;  %v9735_v51 = vpop.permute.xlu1 %9734 }
  0xd5   : > { %v9737_v52 = vunpack.i.h.bf16 %v9735_v51  ;;  %v9736_v53 = vunpack.i.l.bf16 %v9735_v51  ;;  %v9730_v54 = vpop.permute.xlu0 %9729  ;;  %v1596_v57 = vsel %vm1589_vm5, %v1579_v49, %v9726_v44  ;;  %v1597_v58 = vsel %vm1589_vm5, %v1580_v50, %v9727_v43  ;;  %v696_v43 = vld [vmem:[#allocation2 + $0xb4] ss:$2 sm:$0xff] }
  0xd6   : > { %v9732_v55 = vunpack.i.h.bf16 %v9730_v54  ;;  %v9731_v56 = vunpack.i.l.bf16 %v9730_v54 }
  0xd7   : > { %v1613_v60 = vsel %vm1606_vm6, %v1596_v57, %v9736_v53  ;;  %v1614_v61 = vsel %vm1606_vm6, %v1597_v58, %v9737_v52  ;;  %v9927_v58 = vld [vmem:[%s12973_s20 + $0x18] sm:$0xff]  }
  0xd8   : > { %v1630_v62 = vsel %vm638_vm0, %v10722_v30, %v9732_v55  ;;  %v1629_v63 = vsel %vm638_vm0, %v942_v48, %v9731_v56  ;;  %v9745_v0 = vpop.permute.xlu1 %9744  ;;  %v1645_v3 = vpack.c.bf16 %v1614_v61, %v1613_v60  ;;  %v9926_v55 = vld [vmem:[%s12973_s20 + $0x58] sm:$0xff]  }
  0xd9   : > { %v1646_v4 = vpack.c.bf16 %v1630_v62, %v1629_v63  ;;  %v9740_v5 = vpop.permute.xlu0 %9739  ;;  %v9747_v8 = vunpack.i.h.bf16 %v9745_v0  ;;  %v9746_v9 = vunpack.i.l.bf16 %v9745_v0  ;;  %8627 = vmatprep.subr.bf16.mxu1 %v9926_v55 }
  0xda   : > { %v9742_v6 = vunpack.i.h.bf16 %v9740_v5  ;;  %v9741_v7 = vunpack.i.l.bf16 %v9740_v5  ;;  %8628 = vmatpush3.bf16.msra.mxu1 %v9927_v58 }
  0xdb   : > { %8189 = vmatprep.mubr.msk.bf16.mxu0 %vm1521_vm1, %v1646_v4  ;;  %v9928_v4 = vld [vmem:[%s12973_s20 + $0x50] sm:$0xff]  }
  0xdc   : > { %v1514_v10 = vsel %vm638_vm0, %v692_v59, %v9742_v6  ;;  %v1513_v11 = vsel %vm638_vm0, %v10724_v32, %v9741_v7  ;;  %1823 = vmatmul.mubr.bf16.gmra.mxu0 %v1645_v3  ;;  %v9755_v12 = vpop.permute.xlu1 %9754  ;;  %8629 = vmatprep.subr.bf16.mxu1 %v9928_v4  ;;  %v956_v4 = vld [vmem:[#allocation2 + $0xdc] ss:$2 sm:$0xff] }
  0xdd   : > { %v9750_v30 = vpop.permute.xlu0 %9749  ;;  %v9757_v15 = vunpack.i.h.bf16 %v9755_v12  ;;  %v9756_v16 = vunpack.i.l.bf16 %v9755_v12  ;;  %v1530_v17 = vsel %vm1521_vm1, %v1513_v11, %v9746_v9  ;;  %v1531_v18 = vsel %vm1521_vm1, %v1514_v10, %v9747_v8  ;;  %v9929_v8 = vld [vmem:[%s12973_s20 + $0x10] sm:$0xff]  }
  0xde   : > { %v9752_v13 = vunpack.i.h.bf16 %v9750_v30  ;;  %v9751_v14 = vunpack.i.l.bf16 %v9750_v30  ;;  %8630 = vmatpush3.bf16.msra.mxu1 %v9929_v8 }
  0xe0   : > { %v1547_v19 = vsel %vm1538_vm2, %v1530_v17, %v9751_v14  ;;  %v1548_v20 = vsel %vm1538_vm2, %v1531_v18, %v9752_v13  ;;  %v9765_v21 = vpop.permute.xlu1 %9764  ;;  %v9930_v17 = vld [vmem:[%s12973_s20 + $0x48] sm:$0xff]  }
  0xe1   : > { %v9760_v22 = vpop.permute.xlu0 %9759  ;;  %v9767_v23 = vunpack.i.h.bf16 %v9765_v21  ;;  %v9766_v24 = vunpack.i.l.bf16 %v9765_v21  ;;  %v1564_v26 = vsel %vm1555_vm3, %v1547_v19, %v9756_v16  ;;  %v1565_v27 = vsel %vm1555_vm3, %v1548_v20, %v9757_v15  ;;  %v950_v15 = vld [vmem:[#allocation2 + $0xac] ss:$2 sm:$0xff]  ;;  %v952_v16 = vld [vmem:[#allocation2 + $0xbc] ss:$2 sm:$0xff]  ;;  %8631 = vmatprep.subr.bf16.mxu1 %v9930_v17 }
  0xe2   : > { %v9762_v32 = vunpack.i.h.bf16 %v9760_v22  ;;  %v9761_v25 = vunpack.i.l.bf16 %v9760_v22  ;;  %v9931_v18 = vld [vmem:[%s12973_s20 + $0x8] sm:$0xff]   ;;  %v9932_v19 = vld [vmem:[%s12973_s20 + $0x40] sm:$0xff]  }
  0xe3   : > { %8632 = vmatpush3.bf16.msra.mxu1 %v9931_v18 }
  0xe4   : > { %v1581_v29 = vsel %vm1572_vm4, %v1564_v26, %v9761_v25  ;;  %v1582_v31 = vsel %vm1572_vm4, %v1565_v27, %v9762_v32  ;;  %v9775_v34 = vpop.permute.xlu1 %9774  ;;  %8633 = vmatprep.subr.bf16.mxu1 %v9932_v19 }
  0xe5   : > { %v9777_v35 = vunpack.i.h.bf16 %v9775_v34  ;;  %v9776_v36 = vunpack.i.l.bf16 %v9775_v34  ;;  %v9770_v37 = vpop.permute.xlu0 %9769  ;;  %v1598_v40 = vsel %vm1589_vm5, %v1581_v29, %v9766_v24  ;;  %v1599_v41 = vsel %vm1589_vm5, %v1582_v31, %v9767_v23  ;;  %v9933_v23 = vld [vmem:[%s12973_s20] sm:$0xff]  }
  0xe6   : > { %v9772_v38 = vunpack.i.h.bf16 %v9770_v37  ;;  %v9771_v39 = vunpack.i.l.bf16 %v9770_v37  ;;  %v698_v31 = vld [vmem:[#allocation2 + $0xc4] ss:$2 sm:$0xff]  ;;  %v700_v34 = vld [vmem:[#allocation2 + $0xd4] ss:$2 sm:$0xff] }
  0xe7   : > { %v1615_v44 = vsel %vm1606_vm6, %v1598_v40, %v9776_v36  ;;  %v1616_v45 = vsel %vm1606_vm6, %v1599_v41, %v9777_v35  ;;  %8634 = vmatpush3.bf16.msra.mxu1 %v9933_v23 }
  0xe8   : > { %v1632_v1 = vsel %vm638_vm0, %v948_v28, %v9772_v38  ;;  %v1631_v46 = vsel %vm638_vm0, %v10726_v33, %v9771_v39  ;;  %v9785_v47 = vpop.permute.xlu1 %9784  ;;  %v1647_v48 = vpack.c.bf16 %v1616_v45, %v1615_v44 }
  0xe9   : > { %v1648_v49 = vpack.c.bf16 %v1632_v1, %v1631_v46  ;;  %v9780_v50 = vpop.permute.xlu0 %9779  ;;  %v9787_v53 = vunpack.i.h.bf16 %v9785_v47  ;;  %v9786_v54 = vunpack.i.l.bf16 %v9785_v47 }
  0xea   : > { %v9782_v51 = vunpack.i.h.bf16 %v9780_v50  ;;  %v9781_v52 = vunpack.i.l.bf16 %v9780_v50 }
  0xeb   : > { %8190 = vmatprep.mubr.msk.bf16.mxu0 %vm1521_vm1, %v1648_v49 }
  0xec   : > { %v1516_v56 = vsel %vm638_vm0, %v696_v43, %v9782_v51  ;;  %v1515_v57 = vsel %vm638_vm0, %v694_v42, %v9781_v52  ;;  %1831 = vmatmul.mubr.bf16.gmra.mxu0 %v1647_v48  ;;  %v9795_v33 = vpop.permute.xlu1 %9794 }
  0xed   : > { %v9790_v59 = vpop.permute.xlu0 %9789  ;;  %v9797_v62 = vunpack.i.h.bf16 %v9795_v33  ;;  %v9796_v63 = vunpack.i.l.bf16 %v9795_v33  ;;  %v1532_v0 = vsel %vm1521_vm1, %v1515_v57, %v9786_v54  ;;  %v1533_v3 = vsel %vm1521_vm1, %v1516_v56, %v9787_v53 }
  0xee   : > { %v9792_v60 = vunpack.i.h.bf16 %v9790_v59  ;;  %v9791_v61 = vunpack.i.l.bf16 %v9790_v59 }
  0xf0   : > { %v1549_v5 = vsel %vm1538_vm2, %v1532_v0, %v9791_v61  ;;  %v1550_v6 = vsel %vm1538_vm2, %v1533_v3, %v9792_v60  ;;  %v9805_v7 = vpop.permute.xlu1 %9804  ;;  %v954_v3 = vld [vmem:[#allocation2 + $0xcc] ss:$2 sm:$0xff] }
  0xf1   : > { %v9800_v9 = vpop.permute.xlu0 %9799  ;;  %v9807_v10 = vunpack.i.h.bf16 %v9805_v7  ;;  %v9806_v11 = vunpack.i.l.bf16 %v9805_v7  ;;  %v1566_v13 = vsel %vm1555_vm3, %v1549_v5, %v9796_v63  ;;  %v1567_v14 = vsel %vm1555_vm3, %v1550_v6, %v9797_v62 }
  0xf2   : > { %v9802_v12 = vunpack.i.h.bf16 %v9800_v9  ;;  %v9801_v30 = vunpack.i.l.bf16 %v9800_v9 }
  0xf4   : > { %v1583_v20 = vsel %vm1572_vm4, %v1566_v13, %v9801_v30  ;;  %v1584_v21 = vsel %vm1572_vm4, %v1567_v14, %v9802_v12  ;;  %v9815_v22 = vpop.permute.xlu1 %9814  ;;  %v702_v14 = vld [vmem:[#allocation2 + $0xe4] ss:$2 sm:$0xff] }
  0xf5   : > { %v9817_v24 = vunpack.i.h.bf16 %v9815_v22  ;;  %v9816_v32 = vunpack.i.l.bf16 %v9815_v22  ;;  %v9810_v25 = vpop.permute.xlu0 %9809  ;;  %v1600_v28 = vsel %vm1589_vm5, %v1583_v20, %v9806_v11  ;;  %v1601_v29 = vsel %vm1589_vm5, %v1584_v21, %v9807_v10 }
  0xf6   : > { %v9812_v26 = vunpack.i.h.bf16 %v9810_v25  ;;  %v9811_v27 = vunpack.i.l.bf16 %v9810_v25 }
  0xf7   : > { %v1617_v35 = vsel %vm1606_vm6, %v1600_v28, %v9816_v32  ;;  %v1618_v36 = vsel %vm1606_vm6, %v1601_v29, %v9817_v24 }
  0xf8   : > { %v1634_v37 = vsel %vm638_vm0, %v952_v16, %v9812_v26  ;;  %v1633_v38 = vsel %vm638_vm0, %v950_v15, %v9811_v27  ;;  %v9825_v39 = vpop.permute.xlu1 %9824  ;;  %v1649_v40 = vpack.c.bf16 %v1618_v36, %v1617_v35  ;;  %v704_v15 = vld [vmem:[#allocation2 + $0xf4] ss:$2 sm:$0xff] }
  0xf9   : > { %v1650_v41 = vpack.c.bf16 %v1634_v37, %v1633_v38  ;;  %v9820_v42 = vpop.permute.xlu0 %9819  ;;  %v9827_v45 = vunpack.i.h.bf16 %v9825_v39  ;;  %v9826_v1 = vunpack.i.l.bf16 %v9825_v39 }
  0xfa   : > { %v9822_v43 = vunpack.i.h.bf16 %v9820_v42  ;;  %v9821_v44 = vunpack.i.l.bf16 %v9820_v42 }
  0xfb   : > { %8191 = vmatprep.mubr.msk.bf16.mxu0 %vm1521_vm1, %v1650_v41 }
  0xfc   : > { %v1518_v46 = vsel %vm638_vm0, %v700_v34, %v9822_v43  ;;  %v1517_v47 = vsel %vm638_vm0, %v698_v31, %v9821_v44  ;;  %1839 = vmatmul.mubr.bf16.gmra.mxu0 %v1649_v40  ;;  %v9835_v48 = vpop.permute.xlu1 %9834 }
  0xfd   : > { %v9830_v49 = vpop.permute.xlu0 %9829  ;;  %v9837_v52 = vunpack.i.h.bf16 %v9835_v48  ;;  %v9836_v53 = vunpack.i.l.bf16 %v9835_v48  ;;  %v1534_v54 = vsel %vm1521_vm1, %v1517_v47, %v9826_v1  ;;  %v1535_v55 = vsel %vm1521_vm1, %v1518_v46, %v9827_v45 }
  0xfe   : > { %v9832_v50 = vunpack.i.h.bf16 %v9830_v49  ;;  %v9831_v51 = vunpack.i.l.bf16 %v9830_v49  ;;  %v958_v49 = vld [vmem:[#allocation2 + $0xec] ss:$2 sm:$0xff] }
 0x100   : > { %v1551_v56 = vsel %vm1538_vm2, %v1534_v54, %v9831_v51  ;;  %v1552_v57 = vsel %vm1538_vm2, %v1535_v55, %v9832_v50  ;;  %v9845_v33 = vpop.permute.xlu1 %9844  ;;  %v960_v50 = vld [vmem:[#allocation2 + $0xfc] ss:$2 sm:$0xff] }
 0x101   : > { %v9840_v58 = vpop.permute.xlu0 %9839  ;;  %v9847_v59 = vunpack.i.h.bf16 %v9845_v33  ;;  %v9846_v60 = vunpack.i.l.bf16 %v9845_v33  ;;  %v1568_v63 = vsel %vm1555_vm3, %v1551_v56, %v9836_v53  ;;  %v1569_v0 = vsel %vm1555_vm3, %v1552_v57, %v9837_v52 }
 0x102   : > { %v9842_v61 = vunpack.i.h.bf16 %v9840_v58  ;;  %v9841_v62 = vunpack.i.l.bf16 %v9840_v58 }
 0x104   : > { %v1585_v5 = vsel %vm1572_vm4, %v1568_v63, %v9841_v62  ;;  %v1586_v6 = vsel %vm1572_vm4, %v1569_v0, %v9842_v61  ;;  %v9855_v7 = vpop.permute.xlu1 %9854 }
 0x105   : > { %v9857_v8 = vunpack.i.h.bf16 %v9855_v7  ;;  %v9856_v9 = vunpack.i.l.bf16 %v9855_v7  ;;  %v9850_v10 = vpop.permute.xlu0 %9849  ;;  %v1602_v30 = vsel %vm1589_vm5, %v1585_v5, %v9846_v60  ;;  %v1603_v13 = vsel %vm1589_vm5, %v1586_v6, %v9847_v59  ;;  %v10954_v5 = vld [vmem:[%s12974_s27] ss:$0 sm:$0xff] }
 0x106   : > { %v9852_v11 = vunpack.i.h.bf16 %v9850_v10  ;;  %v9851_v12 = vunpack.i.l.bf16 %v9850_v10 }
 0x107   : > { %v1619_v16 = vsel %vm1606_vm6, %v1602_v30, %v9856_v9  ;;  %v1620_v17 = vsel %vm1606_vm6, %v1603_v13, %v9857_v8 }
 0x108   : > { %v1636_v18 = vsel %vm638_vm0, %v956_v4, %v9852_v11  ;;  %v1635_v19 = vsel %vm638_vm0, %v954_v3, %v9851_v12  ;;  %v9865_v20 = vpop.permute.xlu1 %9864  ;;  %v1651_v21 = vpack.c.bf16 %v1620_v17, %v1619_v16  ;;  %v9934_v4 = vld [vmem:[%s12973_s20 + $0xb8] sm:$0xff]  }
 0x109   : > { %v1652_v22 = vpack.c.bf16 %v1636_v18, %v1635_v19  ;;  %v9860_v23 = vpop.permute.xlu0 %9859  ;;  %v9867_v25 = vunpack.i.h.bf16 %v9865_v20  ;;  %v9866_v26 = vunpack.i.l.bf16 %v9865_v20  ;;  %9409 = vmatprep.subr.bf16.mxu1 %v9934_v4  ;;  %v9936_v19 = vld [vmem:[%s12973_s20 + $0xa8] sm:$0xff]  }
 0x10a   : > { %v9862_v24 = vunpack.i.h.bf16 %v9860_v23  ;;  %v9861_v32 = vunpack.i.l.bf16 %v9860_v23 }
 0x10b   : > { %8192 = vmatprep.mubr.msk.bf16.mxu0 %vm1521_vm1, %v1652_v22 }
 0x10c   : > { %v1520_v27 = vsel %vm638_vm0, %v704_v15, %v9862_v24  ;;  %v1519_v28 = vsel %vm638_vm0, %v702_v14, %v9861_v32  ;;  %1847 = vmatmul.mubr.bf16.gmra.mxu0 %v1651_v21  ;;  %v9875_v29 = vpop.permute.xlu1 %9874  ;;  %v9935_v15 = vld [vmem:[%s12973_s20 + $0xb0] sm:$0xff]   ;;  %v9937_v24 = vld [vmem:[%s12973_s20 + $0xa0] sm:$0xff]   ;;  %v9938_v32 = vld [vmem:[%s12973_s20 + $0x98] sm:$0xff]  }
 0x10d   : > { %v9870_v31 = vpop.permute.xlu0 %9869  ;;  %v9877_v36 = vunpack.i.h.bf16 %v9875_v29  ;;  %v9876_v37 = vunpack.i.l.bf16 %v9875_v29  ;;  %v1536_v38 = vsel %vm1521_vm1, %v1519_v28, %v9866_v26  ;;  %v1537_v39 = vsel %vm1521_vm1, %v1520_v27, %v9867_v25  ;;  %v9939_v28 = vld [vmem:[%s12973_s20 + $0x90] sm:$0xff]  }
 0x10e   : > { %v9872_v34 = vunpack.i.h.bf16 %v9870_v31  ;;  %v9871_v35 = vunpack.i.l.bf16 %v9870_v31 }
 0x110   : > { %v1553_v40 = vsel %vm1538_vm2, %v1536_v38, %v9871_v35  ;;  %v1554_v41 = vsel %vm1538_vm2, %v1537_v39, %v9872_v34  ;;  %v9885_v42 = vpop.permute.xlu1 %9884  ;;  %v9940_v35 = vld [vmem:[%s12973_s20 + $0x88] sm:$0xff]  }
 0x111   : > { %v9880_v43 = vpop.permute.xlu0 %9879  ;;  %v9887_v44 = vunpack.i.h.bf16 %v9885_v42  ;;  %v9886_v45 = vunpack.i.l.bf16 %v9885_v42  ;;  %v1570_v47 = vsel %vm1555_vm3, %v1553_v40, %v9876_v37  ;;  %v1571_v48 = vsel %vm1555_vm3, %v1554_v41, %v9877_v36  ;;  %v9941_v40 = vld [vmem:[%s12973_s20 + $0x80] sm:$0xff]  }
 0x112   : > { %v9882_v1 = vunpack.i.h.bf16 %v9880_v43  ;;  %v9881_v46 = vunpack.i.l.bf16 %v9880_v43 }
 0x114   : > { %v1587_v51 = vsel %vm1572_vm4, %v1570_v47, %v9881_v46  ;;  %v1588_v52 = vsel %vm1572_vm4, %v1571_v48, %v9882_v1  ;;  %v9895_v53 = vpop.permute.xlu1 %9894 }
 0x115   : > { %v9897_v54 = vunpack.i.h.bf16 %v9895_v53  ;;  %v9896_v55 = vunpack.i.l.bf16 %v9895_v53  ;;  %v9890_v56 = vpop.permute.xlu0 %9889  ;;  %v1604_v58 = vsel %vm1589_vm5, %v1587_v51, %v9886_v45  ;;  %v1605_v59 = vsel %vm1589_vm5, %v1588_v52, %v9887_v44 }
 0x116   : > { %v9892_v57 = vunpack.i.h.bf16 %v9890_v56  ;;  %v9891_v33 = vunpack.i.l.bf16 %v9890_v56 }
 0x117   : > { %v1621_v60 = vsel %vm1606_vm6, %v1604_v58, %v9896_v55  ;;  %v1622_v61 = vsel %vm1606_vm6, %v1605_v59, %v9897_v54 }
 0x118   : > { %v1638_v62 = vsel %vm638_vm0, %v960_v50, %v9892_v57  ;;  %v1637_v63 = vsel %vm638_vm0, %v958_v49, %v9891_v33  ;;  %v1653_v0 = vpack.c.bf16 %v1622_v61, %v1621_v60 }
 0x119   : > { %v1654_v3 = vpack.c.bf16 %v1638_v62, %v1637_v63 }
 0x11b   : > { %8193 = vmatprep.mubr.msk.bf16.mxu0 %vm1521_vm1, %v1654_v3 }
 0x11c   : > { %1855 = vmatmul.mubr.bf16.gmra.mxu0 %v1653_v0 }
 0x16c   : > { %v1800_v6 = vpop.f32.mrf.mxu0 }
 0x16d   : > { %v1801_v7 = vadd.f32 %v10954_v5, %v1800_v6 }
 0x16e   : > { %v1802_v8 = vpop.f32.mrf.mxu0 }
 0x16f   : > { %1863 = vst [vmem:[#allocation2 + $0x8] sm:$0xff] %v1801_v7 }
 0x170   : > { %v1803_v9 = vpop.f32.mrf.mxu0 }
 0x171   : > { %v1804_v10 = vadd.f32 %v10954_v5, %v1803_v9 }
 0x172   : > { %v1805_v11 = vpop.f32.mrf.mxu0 }
 0x173   : > { %1864 = vst [vmem:[#allocation2 + $0x10] sm:$0xff] %v1804_v10  ;;  %v1930_v12 = vpack.c.bf16 %v1804_v10, %v1801_v7 }
 0x175   : > { %2184 = vmatprep.mubr.bf16.mxu1 %v1930_v12 }
 0x176   : > { %v1881_v30 = vld [vmem:[#allocation2 + $0x7] sm:$0xff] }
 0x17a   : > { %v1882_v13 = vld [vmem:[#allocation2 + $0xf] sm:$0xff] }
 0x17b   : > { %v1929_v14 = vpack.c.bf16 %v1882_v13, %v1881_v30 }
 0x17c   : > { %v1808_v16 = vpop.f32.mrf.mxu0 }
 0x17d   : > { %v1809_v17 = vadd.f32 %v10954_v5, %v1808_v16  ;;  %2185 = vmatmul.mubr.bf16.vlgmr.msra.gmra.mxu1 %v1929_v14 }
 0x17e   : > { %v1810_v18 = vpop.f32.mrf.mxu0  ;;  %9410 = vmatpush3.bf16.msra.mxu1 %v9934_v4 }
 0x17f   : > { %1865 = vst [vmem:[#allocation2 + $0x18] sm:$0xff] %v1809_v17  ;;  %9411 = vmatprep.subr.bf16.mxu1 %v9935_v15 }
 0x180   : > { %v1811_v20 = vpop.f32.mrf.mxu0 }
 0x181   : > { %v1812_v21 = vadd.f32 %v10954_v5, %v1811_v20 }
 0x182   : > { %v1813_v22 = vpop.f32.mrf.mxu0  ;;  %9412 = vmatpush3.bf16.msra.mxu1 %v9935_v15 }
 0x183   : > { %1866 = vst [vmem:[#allocation2 + $0x20] sm:$0xff] %v1812_v21  ;;  %v1933_v23 = vpack.c.bf16 %v1812_v21, %v1809_v17  ;;  %9413 = vmatprep.subr.bf16.mxu1 %v9936_v19 }
 0x185   : > { %2192 = vmatprep.mubr.bf16.mxu1 %v1933_v23 }
 0x186   : > { %9414 = vmatpush3.bf16.msra.mxu1 %v9936_v19  ;;  %v1883_v25 = vld [vmem:[#allocation2 + $0x17] sm:$0xff] }
 0x187   : > { %9415 = vmatprep.subr.bf16.mxu1 %v9937_v24 }
 0x18a   : > { %v1884_v26 = vld [vmem:[#allocation2 + $0x1f] sm:$0xff]  ;;  %9416 = vmatpush3.bf16.msra.mxu1 %v9937_v24 }
 0x18b   : > { %v1932_v27 = vpack.c.bf16 %v1884_v26, %v1883_v25  ;;  %9417 = vmatprep.subr.bf16.mxu1 %v9938_v32  ;;  %v1914_v26 = vld [vmem:[#allocation2 + $0x11] sm:$0xff] }
 0x18c   : > { %v1816_v29 = vpop.f32.mrf.mxu0 }
 0x18d   : > { %v1817_v31 = vadd.f32 %v10954_v5, %v1816_v29  ;;  %2193 = vmatmul.mubr.bf16.gmra.mxu1 %v1932_v27 }
 0x18e   : > { %v1818_v34 = vpop.f32.mrf.mxu0  ;;  %9418 = vmatpush3.bf16.msra.mxu1 %v9938_v32 }
 0x18f   : > { %1867 = vst [vmem:[#allocation2 + $0x28] sm:$0xff] %v1817_v31  ;;  %9419 = vmatprep.subr.bf16.mxu1 %v9939_v28 }
 0x190   : > { %v1819_v36 = vpop.f32.mrf.mxu0 }
 0x191   : > { %v1820_v37 = vadd.f32 %v10954_v5, %v1819_v36 }
 0x192   : > { %v1821_v38 = vpop.f32.mrf.mxu0  ;;  %9420 = vmatpush3.bf16.msra.mxu1 %v9939_v28 }
 0x193   : > { %1868 = vst [vmem:[#allocation2 + $0x30] sm:$0xff] %v1820_v37  ;;  %v1936_v39 = vpack.c.bf16 %v1820_v37, %v1817_v31  ;;  %9421 = vmatprep.subr.bf16.mxu1 %v9940_v35  ;;  %v1913_v31 = vld [vmem:[#allocation2 + $0x9] sm:$0xff]  ;;  %v1915_v37 = vld [vmem:[#allocation2 + $0x19] sm:$0xff] }
 0x194   : > { %v1931_v34 = vpack.c.bf16 %v1914_v26, %v1913_v31 }
 0x195   : > { %2200 = vmatprep.mubr.bf16.mxu1 %v1936_v39 }
 0x196   : > { %9422 = vmatpush3.bf16.msra.mxu1 %v9940_v35  ;;  %v1885_v41 = vld [vmem:[#allocation2 + $0x27] sm:$0xff] }
 0x197   : > { %9423 = vmatprep.subr.bf16.mxu1 %v9941_v40  ;;  %v1916_v35 = vld [vmem:[#allocation2 + $0x21] sm:$0xff] }
 0x198   : > { %v1934_v38 = vpack.c.bf16 %v1916_v35, %v1915_v37 }
 0x19a   : > { %v1886_v42 = vld [vmem:[#allocation2 + $0x2f] sm:$0xff]  ;;  %9424 = vmatpush3.bf16.msra.mxu1 %v9941_v40 }
 0x19b   : > { %v1935_v43 = vpack.c.bf16 %v1886_v42, %v1885_v41  ;;  %v1917_v39 = vld [vmem:[#allocation2 + $0x29] sm:$0xff] }
 0x19c   : > { %v1824_v44 = vpop.f32.mrf.mxu0 }
 0x19d   : > { %v1825_v45 = vadd.f32 %v10954_v5, %v1824_v44  ;;  %2201 = vmatmul.mubr.bf16.gmra.mxu1 %v1935_v43 }
 0x19e   : > { %v1826_v1 = vpop.f32.mrf.mxu0 }
 0x19f   : > { %1869 = vst [vmem:[#allocation2 + $0x38] sm:$0xff] %v1825_v45 }
 0x1a0   : > { %v1827_v46 = vpop.f32.mrf.mxu0 }
 0x1a1   : > { %v1828_v47 = vadd.f32 %v10954_v5, %v1827_v46 }
 0x1a2   : > { %v1829_v48 = vpop.f32.mrf.mxu0 }
 0x1a3   : > { %1870 = vst [vmem:[#allocation2 + $0x40] sm:$0xff] %v1828_v47  ;;  %v1939_v49 = vpack.c.bf16 %v1828_v47, %v1825_v45 }
 0x1a5   : > { %2208 = vmatprep.mubr.bf16.mxu1 %v1939_v49 }
 0x1a6   : > { %v1887_v50 = vld [vmem:[#allocation2 + $0x37] sm:$0xff] }
 0x1a7   : > { %v1918_v36 = vld [vmem:[#allocation2 + $0x31] sm:$0xff] }
 0x1a8   : > { %v1937_v40 = vpack.c.bf16 %v1918_v36, %v1917_v39 }
 0x1aa   : > { %v1888_v51 = vld [vmem:[#allocation2 + $0x3f] sm:$0xff] }
 0x1ab   : > { %v1938_v52 = vpack.c.bf16 %v1888_v51, %v1887_v50  ;;  %v1919_v42 = vld [vmem:[#allocation2 + $0x39] sm:$0xff] }
 0x1ac   : > { %v1832_v53 = vpop.f32.mrf.mxu0 }
 0x1ad   : > { %v1833_v54 = vadd.f32 %v10954_v5, %v1832_v53  ;;  %2209 = vmatmul.mubr.bf16.gmra.mxu1 %v1938_v52 }
 0x1ae   : > { %v1834_v55 = vpop.f32.mrf.mxu0 }
 0x1af   : > { %1871 = vst [vmem:[#allocation2 + $0x48] sm:$0xff] %v1833_v54  ;;  %v9943_v55 = vld [vmem:[%s12945_s5 + $0x38] sm:$0xff]  }
 0x1b0   : > { %v1835_v56 = vpop.f32.mrf.mxu0 }
 0x1b1   : > { %v1836_v57 = vadd.f32 %v10954_v5, %v1835_v56  ;;  %v9944_v56 = vld [vmem:[%s12945_s5 + $0x70] sm:$0xff]  }
 0x1b2   : > { %v1837_v33 = vpop.f32.mrf.mxu0 }
 0x1b3   : > { %1872 = vst [vmem:[#allocation2 + $0x50] sm:$0xff] %v1836_v57  ;;  %v1942_v58 = vpack.c.bf16 %v1836_v57, %v1833_v54  ;;  %v9942_v54 = vld [vmem:[%s12945_s5 + $0x78] sm:$0xff]   ;;  %v9945_v57 = vld [vmem:[%s12945_s5 + $0x30] sm:$0xff]  }
 0x1b4   : > { %8699 = vmatprep.subr.bf16.mxu0 %v9942_v54  ;;  %v9952_v33 = vld [vmem:[%s12945_s5 + $0xb8] sm:$0xff]  }
 0x1b5   : > { %2216 = vmatprep.mubr.bf16.mxu1 %v1942_v58  ;;  %8700 = vmatpush3.bf16.msra.mxu0 %v9943_v55 }
 0x1b6   : > { %v1889_v59 = vld [vmem:[#allocation2 + $0x47] sm:$0xff]  ;;  %8701 = vmatprep.subr.bf16.mxu0 %v9944_v56  ;;  %9441 = vmatprep.subr.bf16.mxu1 %v9952_v33 }
 0x1b9   : > { %8702 = vmatpush3.bf16.msra.mxu0 %v9945_v57 }
 0x1ba   : > { %v1890_v60 = vld [vmem:[#allocation2 + $0x4f] sm:$0xff] }
 0x1bb   : > { %v1941_v61 = vpack.c.bf16 %v1890_v60, %v1889_v59  ;;  %v1921_v44 = vld [vmem:[#allocation2 + $0x49] sm:$0xff] }
 0x1bc   : > { %v1840_v62 = vpop.f32.mrf.mxu0  ;;  %v9946_v59 = vld [vmem:[%s12945_s5 + $0x68] sm:$0xff]  }
 0x1bd   : > { %v1841_v63 = vadd.f32 %v10954_v5, %v1840_v62  ;;  %2217 = vmatmul.mubr.bf16.gmra.mxu1 %v1941_v61  ;;  %v9947_v60 = vld [vmem:[%s12945_s5 + $0x28] sm:$0xff]   ;;  %v9954_v61 = vld [vmem:[%s12945_s5 + $0xb0] sm:$0xff]   ;;  %8703 = vmatprep.subr.bf16.mxu0 %v9946_v59 }
 0x1be   : > { %v1842_v0 = vpop.f32.mrf.mxu0  ;;  %8704 = vmatpush3.bf16.msra.mxu0 %v9947_v60 }
 0x1bf   : > { %1873 = vst [vmem:[#allocation2 + $0x58] sm:$0xff] %v1841_v63  ;;  %v9949_v0 = vld [vmem:[%s12945_s5 + $0x20] sm:$0xff]  }
 0x1c0   : > { %v1843_v3 = vpop.f32.mrf.mxu0 }
 0x1c1   : > { %v1844_v4 = vadd.f32 %v10954_v5, %v1843_v3 }
 0x1c2   : > { %v1845_v6 = vpop.f32.mrf.mxu0 }
 0x1c3   : > { %1874 = vst [vmem:[#allocation2 + $0x60] sm:$0xff] %v1844_v4  ;;  %v1945_v7 = vpack.c.bf16 %v1844_v4, %v1841_v63  ;;  %v9948_v63 = vld [vmem:[%s12945_s5 + $0x60] sm:$0xff]   ;;  %v9956_v4 = vld [vmem:[%s12945_s5 + $0xa8] sm:$0xff]   ;;  %v9950_v6 = vld [vmem:[%s12945_s5 + $0x58] sm:$0xff]  }
 0x1c4   : > { %8705 = vmatprep.subr.bf16.mxu0 %v9948_v63 }
 0x1c5   : > { %2224 = vmatprep.mubr.bf16.mxu1 %v1945_v7  ;;  %8706 = vmatpush3.bf16.msra.mxu0 %v9949_v0  ;;  %v9951_v7 = vld [vmem:[%s12945_s5 + $0x18] sm:$0xff]  }
 0x1c6   : > { %v1891_v8 = vld [vmem:[#allocation2 + $0x57] sm:$0xff]  ;;  %8707 = vmatprep.subr.bf16.mxu0 %v9950_v6 }
 0x1c7   : > { %v1922_v41 = vld [vmem:[#allocation2 + $0x51] sm:$0xff] }
 0x1c8   : > { %v1943_v45 = vpack.c.bf16 %v1922_v41, %v1921_v44 }
 0x1c9   : > { %8708 = vmatpush3.bf16.msra.mxu0 %v9951_v7 }
 0x1ca   : > { %v1892_v9 = vld [vmem:[#allocation2 + $0x5f] sm:$0xff] }
 0x1cb   : > { %v1944_v10 = vpack.c.bf16 %v1892_v9, %v1891_v8  ;;  %v1923_v47 = vld [vmem:[#allocation2 + $0x59] sm:$0xff] }
 0x1cc   : > { %v1848_v11 = vpop.f32.mrf.mxu0 }
 0x1cd   : > { %v1849_v12 = vadd.f32 %v10954_v5, %v1848_v11  ;;  %2225 = vmatmul.mubr.bf16.gmra.mxu1 %v1944_v10  ;;  %v9953_v10 = vld [vmem:[%s12945_s5 + $0x50] sm:$0xff]   ;;  %v9958_v11 = vld [vmem:[%s12945_s5 + $0xa0] sm:$0xff]  }
 0x1ce   : > { %v1850_v30 = vpop.f32.mrf.mxu0  ;;  %8709 = vmatprep.subr.bf16.mxu0 %v9953_v10 }
 0x1cf   : > { %1875 = vst [vmem:[#allocation2 + $0x68] sm:$0xff] %v1849_v12 }
 0x1d0   : > { %v1851_v13 = vpop.f32.mrf.mxu0 }
 0x1d1   : > { %v1852_v14 = vadd.f32 %v10954_v5, %v1851_v13  ;;  %v9960_v13 = vld [vmem:[%s12945_s5 + $0x98] sm:$0xff]  }
 0x1d2   : > { %v1853_v15 = vpop.f32.mrf.mxu0 }
 0x1d3   : > { %1876 = vst [vmem:[#allocation2 + $0x70] sm:$0xff] %v1852_v14  ;;  %v1948_v16 = vpack.c.bf16 %v1852_v14, %v1849_v12  ;;  %v9955_v12 = vld [vmem:[%s12945_s5 + $0x10] sm:$0xff]   ;;  %v9957_v15 = vld [vmem:[%s12945_s5 + $0x48] sm:$0xff]  }
 0x1d4   : > { %8710 = vmatpush3.bf16.msra.mxu0 %v9955_v12 }
 0x1d5   : > { %2232 = vmatprep.mubr.bf16.mxu1 %v1948_v16  ;;  %v9962_v16 = vld [vmem:[%s12945_s5 + $0x90] sm:$0xff]   ;;  %8711 = vmatprep.subr.bf16.mxu0 %v9957_v15 }
 0x1d6   : > { %v1893_v17 = vld [vmem:[#allocation2 + $0x67] sm:$0xff] }
 0x1d7   : > { %v1924_v1 = vld [vmem:[#allocation2 + $0x61] sm:$0xff] }
 0x1d8   : > { %v1946_v48 = vpack.c.bf16 %v1924_v1, %v1923_v47 }
 0x1da   : > { %v1894_v18 = vld [vmem:[#allocation2 + $0x6f] sm:$0xff] }
 0x1db   : > { %v1947_v19 = vpack.c.bf16 %v1894_v18, %v1893_v17  ;;  %v1925_v49 = vld [vmem:[#allocation2 + $0x69] sm:$0xff] }
 0x1dc   : > { %v1856_v20 = vpop.f32.mrf.mxu0  ;;  %v9959_v17 = vld [vmem:[%s12945_s5 + $0x8] sm:$0xff]  }
 0x1dd   : > { %v1857_v21 = vadd.f32 %v10954_v5, %v1856_v20  ;;  %2233 = vmatmul.mubr.bf16.gmra.mxu1 %v1947_v19  ;;  %8712 = vmatpush3.bf16.msra.mxu0 %v9959_v17  ;;  %v9961_v19 = vld [vmem:[%s12945_s5 + $0x40] sm:$0xff]   ;;  %v9964_v20 = vld [vmem:[%s12945_s5 + $0x88] sm:$0xff]  }
 0x1de   : > { %v1858_v22 = vpop.f32.mrf.mxu0  ;;  %8713 = vmatprep.subr.bf16.mxu0 %v9961_v19 }
 0x1df   : > { %1877 = vst [vmem:[#allocation2 + $0x78] sm:$0xff] %v1857_v21 }
 0x1e0   : > { %v1859_v23 = vpop.f32.mrf.mxu0 }
 0x1e1   : > { %v1860_v24 = vadd.f32 %v10954_v5, %v1859_v23  ;;  %v1920_v5 = vld [vmem:[#allocation2 + $0x41] sm:$0xff] }
 0x1e2   : > { %v1861_v32 = vpop.f32.mrf.mxu0  ;;  %v1940_v43 = vpack.c.bf16 %v1920_v5, %v1919_v42  ;;  %v9965_v23 = vld [vmem:[%s12945_s5 + $0x80] sm:$0xff]  }
 0x1e3   : > { %1878 = vst [vmem:[#allocation2 + $0x80] sm:$0xff] %v1860_v24  ;;  %v1951_v25 = vpack.c.bf16 %v1860_v24, %v1857_v21  ;;  %v9963_v21 = vld [vmem:[%s12945_s5] sm:$0xff]  }
 0x1e4   : > { %8714 = vmatpush3.bf16.msra.mxu0 %v9963_v21 }
 0x1e5   : > { %2240 = vmatprep.mubr.bf16.mxu1 %v1951_v25 }
 0x1e6   : > { %v1895_v27 = vld [vmem:[#allocation2 + $0x77] sm:$0xff] }
 0x1e7   : > { %v1926_v46 = vld [vmem:[#allocation2 + $0x71] sm:$0xff] }
 0x1e8   : > { %v1949_v50 = vpack.c.bf16 %v1926_v46, %v1925_v49  ;;  %v11090_v49 = vld [vmem:[%s12944_s4] ss:$0 sm:$0xff] }
 0x1ea   : > { %v1896_v28 = vld [vmem:[#allocation2 + $0x7f] sm:$0xff] }
 0x1eb   : > { %v1950_v29 = vpack.c.bf16 %v1896_v28, %v1895_v27  ;;  %v1927_v51 = vld [vmem:[#allocation2 + $0x79] sm:$0xff]  ;;  %v1928_v52 = vld [vmem:[#allocation2 + $0x81] sm:$0xff] }
 0x1ec   : > { %v1952_v53 = vpack.c.bf16 %v1928_v52, %v1927_v51 }
 0x1ed   : > { %2241 = vmatmul.mubr.bf16.gmra.mxu1 %v1950_v29 }
 0x1ee   : > { %9425 = vmatprep.mubr.bf16.mxu1 %v1931_v34 }
 0x1f5   : > { %9426 = vmatmul.mubr.bf16.vlgmr.msra.gmra.mxu1 %v1934_v38 }
 0x1f6   : > { %9429 = vmatprep.mubr.bf16.mxu1 %v1937_v40  ;;  %9442 = vmatpush3.bf16.msra.mxu1 %v9952_v33 }
 0x1f7   : > { %9443 = vmatprep.subr.bf16.mxu1 %v9954_v61 }
 0x1fa   : > { %9444 = vmatpush3.bf16.msra.mxu1 %v9954_v61 }
 0x1fb   : > { %9445 = vmatprep.subr.bf16.mxu1 %v9956_v4 }
 0x1fd   : > { %9430 = vmatmul.mubr.bf16.gmra.mxu1 %v1940_v43 }
 0x1fe   : > { %9433 = vmatprep.mubr.bf16.mxu1 %v1943_v45  ;;  %9446 = vmatpush3.bf16.msra.mxu1 %v9956_v4 }
 0x1ff   : > { %9447 = vmatprep.subr.bf16.mxu1 %v9958_v11 }
 0x202   : > { %9448 = vmatpush3.bf16.msra.mxu1 %v9958_v11 }
 0x203   : > { %9449 = vmatprep.subr.bf16.mxu1 %v9960_v13 }
 0x205   : > { %9434 = vmatmul.mubr.bf16.gmra.mxu1 %v1946_v48 }
 0x206   : > { %9437 = vmatprep.mubr.bf16.mxu1 %v1949_v50  ;;  %9450 = vmatpush3.bf16.msra.mxu1 %v9960_v13 }
 0x207   : > { %9451 = vmatprep.subr.bf16.mxu1 %v9962_v16 }
 0x20a   : > { %9452 = vmatpush3.bf16.msra.mxu1 %v9962_v16 }
 0x20b   : > { %9453 = vmatprep.subr.bf16.mxu1 %v9964_v20 }
 0x20d   : > { %9438 = vmatmul.mubr.bf16.gmra.mxu1 %v1952_v53 }
 0x20e   : > { %9454 = vmatpush3.bf16.msra.mxu1 %v9964_v20 }
 0x20f   : > { %9455 = vmatprep.subr.bf16.mxu1 %v9965_v23 }
 0x212   : > { %9456 = vmatpush3.bf16.msra.mxu1 %v9965_v23 }
 0x23d   : > { %v11008_v58 = vpop.f32.mrf.mxu1 }
 0x23f   : > { %v11019_v62 = vpop.f32.mrf.mxu1 }
 0x240   : > { %v8637_v47 = vadd.f32 %v11019_v62, %v11008_v58 }
 0x241   : > { %v11027_v3 = vpop.f32.mrf.mxu1 }
 0x242   : > { %v2187_v55 = vadd.f32 %v8637_v47, %v11090_v49 }
 0x243   : > { %v11038_v8 = vpop.f32.mrf.mxu1 }
 0x244   : > { %v8640_v53 = vadd.f32 %v11038_v8, %v11027_v3 }
 0x246   : > { %v2190_v6 = vadd.f32 %v8640_v53, %v11090_v49 }
 0x24d   : > { %v8641_v9 = vpop.f32.mrf.mxu1 }
 0x24f   : > { %v8642_v30 = vpop.f32.mrf.mxu1 }
 0x250   : > { %v8643_v1 = vadd.f32 %v8642_v30, %v8641_v9 }
 0x251   : > { %v8644_v14 = vpop.f32.mrf.mxu1 }
 0x252   : > { %v2195_v51 = vadd.f32 %v8643_v1, %v11090_v49 }
 0x253   : > { %v8645_v18 = vpop.f32.mrf.mxu1 }
 0x254   : > { %v8646_v50 = vadd.f32 %v8645_v18, %v8644_v14 }
 0x256   : > { %v2198_v59 = vadd.f32 %v8646_v50, %v11090_v49 }
 0x25d   : > { %v8647_v22 = vpop.f32.mrf.mxu1 }
 0x25f   : > { %v8648_v24 = vpop.f32.mrf.mxu1 }
 0x260   : > { %v8649_v56 = vadd.f32 %v8648_v24, %v8647_v22 }
 0x261   : > { %v8650_v32 = vpop.f32.mrf.mxu1 }
 0x262   : > { %v2203_v11 = vadd.f32 %v8649_v56, %v11090_v49 }
 0x263   : > { %v8651_v25 = vpop.f32.mrf.mxu1 }
 0x264   : > { %v8652_v60 = vadd.f32 %v8651_v25, %v8650_v32 }
 0x266   : > { %v2206_v19 = vadd.f32 %v8652_v60, %v11090_v49 }
 0x26d   : > { %v8653_v26 = vpop.f32.mrf.mxu1 }
 0x26f   : > { %v8654_v27 = vpop.f32.mrf.mxu1 }
 0x270   : > { %v8655_v61 = vadd.f32 %v8654_v27, %v8653_v26 }
 0x271   : > { %v8656_v28 = vpop.f32.mrf.mxu1 }
 0x272   : > { %v2211_v16 = vadd.f32 %v8655_v61, %v11090_v49 }
 0x273   : > { %v8657_v29 = vpop.f32.mrf.mxu1 }
 0x274   : > { %v8658_v62 = vadd.f32 %v8657_v29, %v8656_v28 }
 0x276   : > { %v2214_v18 = vadd.f32 %v8658_v62, %v11090_v49 }
 0x27d   : > { %v8659_v31 = vpop.f32.mrf.mxu1 }
 0x27f   : > { %v8660_v34 = vpop.f32.mrf.mxu1 }
 0x280   : > { %v8661_v7 = vadd.f32 %v8660_v34, %v8659_v31 }
 0x281   : > { %v8662_v35 = vpop.f32.mrf.mxu1 }
 0x282   : > { %v2219_v26 = vadd.f32 %v8661_v7, %v11090_v49 }
 0x283   : > { %v8663_v36 = vpop.f32.mrf.mxu1 }
 0x284   : > { %v8664_v8 = vadd.f32 %v8663_v36, %v8662_v35 }
 0x286   : > { %v2222_v27 = vadd.f32 %v8664_v8, %v11090_v49 }
 0x28d   : > { %v8665_v37 = vpop.f32.mrf.mxu1 }
 0x28f   : > { %v8666_v38 = vpop.f32.mrf.mxu1 }
 0x290   : > { %v8667_v9 = vadd.f32 %v8666_v38, %v8665_v37 }
 0x291   : > { %v8668_v39 = vpop.f32.mrf.mxu1 }
 0x292   : > { %v2227_v25 = vadd.f32 %v8667_v9, %v11090_v49 }
 0x293   : > { %v8669_v40 = vpop.f32.mrf.mxu1 }
 0x294   : > { %v8670_v15 = vadd.f32 %v8669_v40, %v8668_v39 }
 0x296   : > { %v2230_v39 = vadd.f32 %v8670_v15, %v11090_v49 }
 0x29d   : > { %v8671_v5 = vpop.f32.mrf.mxu1 }
 0x29f   : > { %v8672_v41 = vpop.f32.mrf.mxu1 }
 0x2a0   : > { %v8673_v35 = vadd.f32 %v8672_v41, %v8671_v5 }
 0x2a1   : > { %v11073_v42 = vpop.f32.mrf.mxu1 }
 0x2a3   : > { %v11075_v43 = vpop.f32.mrf.mxu1 }
 0x2a4   : > { %v8676_v50 = vadd.f32 %v11075_v43, %v11073_v42 }
 0x2a6   : > { %v11156_v7 = vadd.f32 %v8676_v50, %v11090_v49 }
 0x2ad   : > { %v11077_v44 = vpop.f32.mrf.mxu1 }
 0x2af   : > { %v11079_v45 = vpop.f32.mrf.mxu1 }
 0x2b1   : > { %v11081_v46 = vpop.f32.mrf.mxu1 }
 0x2b3   : > { %v11085_v48 = vpop.f32.mrf.mxu1 }
 0x2b5   : > { %v9427_v52 = vpop.f32.mrf.mxu1 }
 0x2b6   : > { %v11095_v54 = vadd.f32 %v9427_v52, %v2195_v51 }
 0x2b7   : > { %v2283_v57 = vpop.f32.mrf.mxu1 }
 0x2b8   : > { %v2348_v33 = vmul.f32 %v11095_v54, %v11095_v54  ;;  %v11100_v58 = vadd.f32 %v2283_v57, %v2187_v55 }
 0x2b9   : > { %v9428_v63 = vpop.f32.mrf.mxu1 }
 0x2ba   : > { %v2364_v0 = vmul.f32 %v2348_v33, %v11095_v54  ;;  %v2346_v3 = vmul.f32 %v11100_v58, %v11100_v58  ;;  %v11106_v4 = vadd.f32 %v9428_v63, %v2198_v59  ;;  %v2235_v59 = vadd.f32 %v8673_v35, %v11090_v49 }
 0x2bb   : > { %v2286_v10 = vpop.f32.mrf.mxu1 }
 0x2bc   : > { %v2380_v12 = vmul.f32 0.044715, %v2364_v0  ;;  %v2362_v30 = vmul.f32 %v2346_v3, %v11100_v58  ;;  %v2349_v13 = vmul.f32 %v11106_v4, %v11106_v4  ;;  %v11113_v14 = vadd.f32 %v2286_v10, %v2190_v6 }
 0x2bd   : > { %v9431_v17 = vpop.f32.mrf.mxu1 }
 0x2be   : > { %v2396_v20 = vadd.f32 %v2380_v12, %v11095_v54  ;;  %v2378_v21 = vmul.f32 0.044715, %v2362_v30  ;;  %v2365_v22 = vmul.f32 %v2349_v13, %v11106_v4  ;;  %v2347_v23 = vmul.f32 %v11113_v14, %v11113_v14 }
 0x2bf   : > { %v11122_v24 = vadd.f32 %v9431_v17, %v2211_v16  ;;  %v2299_v32 = vpop.f32.mrf.mxu1 }
 0x2c0   : > { %v2412_v28 = vmul.f32 0.7978846, %v2396_v20  ;;  %v2394_v29 = vadd.f32 %v2378_v21, %v11100_v58  ;;  %v2381_v31 = vmul.f32 0.044715, %v2365_v22  ;;  %v2363_v34 = vmul.f32 %v2347_v23, %v11113_v14 }
 0x2c1   : > { %v2352_v36 = vmul.f32 %v11122_v24, %v11122_v24  ;;  %v11131_v37 = vadd.f32 %v2299_v32, %v2203_v11  ;;  %v9432_v38 = vpop.f32.mrf.mxu1  ;;  %v8679_v11 = vadd.f32 %v11079_v45, %v11077_v44  ;;  %v8682_v20 = vadd.f32 %v11085_v48, %v11081_v46 }
 0x2c2   : > { %10326 = vtanh.f32 %v2412_v28  ;;  %v2410_v40 = vmul.f32 0.7978846, %v2394_v29  ;;  %v2397_v1 = vadd.f32 %v2381_v31, %v11106_v4  ;;  %v2379_v47 = vmul.f32 0.044715, %v2363_v34 }
 0x2c3   : > { %v2368_v51 = vmul.f32 %v2352_v36, %v11122_v24  ;;  %v2350_v5 = vmul.f32 %v11131_v37, %v11131_v37  ;;  %v11140_v41 = vadd.f32 %v9432_v38, %v2214_v18  ;;  %v2302_v52 = vpop.f32.mrf.mxu1  ;;  %v2243_v29 = vadd.f32 %v8679_v11, %v11090_v49 }
 0x2c4   : > { %10328 = vtanh.f32 %v2410_v40  ;;  %v2413_v53 = vmul.f32 0.7978846, %v2397_v1  ;;  %v2395_v55 = vadd.f32 %v2379_v47, %v11113_v14  ;;  %v11143_v56 = vadd.f32 %v2302_v52, %v2206_v19 }
 0x2c5   : > { %v2384_v57 = vmul.f32 0.044715, %v2368_v51  ;;  %v2366_v33 = vmul.f32 %v2350_v5, %v11131_v37  ;;  %v2353_v42 = vmul.f32 %v11140_v41, %v11140_v41  ;;  %v9435_v43 = vpop.f32.mrf.mxu1 }
 0x2c6   : > { %10330 = vtanh.f32 %v2413_v53  ;;  %v2411_v60 = vmul.f32 0.7978846, %v2395_v55  ;;  %v2351_v61 = vmul.f32 %v11143_v56, %v11143_v56  ;;  %v11151_v62 = vadd.f32 %v9435_v43, %v2227_v25 }
 0x2c7   : > { %v2400_v63 = vadd.f32 %v2384_v57, %v11122_v24  ;;  %v2382_v0 = vmul.f32 0.044715, %v2366_v33  ;;  %v2369_v3 = vmul.f32 %v2353_v42, %v11140_v41  ;;  %v2315_v6 = vpop.f32.mrf.mxu1 }
 0x2c8   : > { %10332 = vtanh.f32 %v2411_v60  ;;  %v2367_v8 = vmul.f32 %v2351_v61, %v11143_v56  ;;  %v2356_v9 = vmul.f32 %v11151_v62, %v11151_v62  ;;  %v11161_v10 = vadd.f32 %v2315_v6, %v2219_v26 }
 0x2c9   : > { %v2416_v12 = vmul.f32 0.7978846, %v2400_v63  ;;  %v2398_v30 = vadd.f32 %v2382_v0, %v11131_v37  ;;  %v2385_v13 = vmul.f32 0.044715, %v2369_v3  ;;  %v9436_v15 = vpop.f32.mrf.mxu1 }
 0x2ca   : > { %v2383_v16 = vmul.f32 0.044715, %v2367_v8  ;;  %v2372_v17 = vmul.f32 %v2356_v9, %v11151_v62  ;;  %v2354_v18 = vmul.f32 %v11161_v10, %v11161_v10  ;;  %v11169_v19 = vadd.f32 %v9436_v15, %v2230_v39 }
 0x2cb   : > { %10334 = vtanh.f32 %v2416_v12  ;;  %v2414_v21 = vmul.f32 0.7978846, %v2398_v30  ;;  %v2401_v44 = vadd.f32 %v2385_v13, %v11140_v41  ;;  %v2318_v45 = vpop.f32.mrf.mxu1 }
 0x2cc   : > { %v2399_v22 = vadd.f32 %v2383_v16, %v11143_v56  ;;  %v2388_v23 = vmul.f32 0.044715, %v2372_v17  ;;  %v2370_v32 = vmul.f32 %v2354_v18, %v11161_v10  ;;  %v2357_v25 = vmul.f32 %v11169_v19, %v11169_v19 }
 0x2cd   : > { %10336 = vtanh.f32 %v2414_v21  ;;  %v2417_v26 = vmul.f32 0.7978846, %v2401_v44  ;;  %v11178_v28 = vadd.f32 %v2318_v45, %v2222_v27  ;;  %v9439_v46 = vpop.f32.mrf.mxu1  ;;  %v2246_v27 = vadd.f32 %v8682_v20, %v11090_v49 }
 0x2ce   : > { %v2415_v48 = vmul.f32 0.7978846, %v2399_v22  ;;  %v2404_v31 = vadd.f32 %v2388_v23, %v11151_v62  ;;  %v2386_v34 = vmul.f32 0.044715, %v2370_v32  ;;  %v2373_v35 = vmul.f32 %v2357_v25, %v11169_v19 }
 0x2cf   : > { %v10327_v36 = vpop.eup %10326  ;;  %10338 = vtanh.f32 %v2417_v26  ;;  %v2355_v38 = vmul.f32 %v11178_v28, %v11178_v28  ;;  %v11185_v39 = vadd.f32 %v9439_v46, %v2243_v29  ;;  %v2331_v40 = vpop.f32.mrf.mxu1 }
 0x2d0   : > { %v2444_v1 = vadd.f32 1.0, %v10327_v36  ;;  %10340 = vtanh.f32 %v2415_v48  ;;  %v2420_v47 = vmul.f32 0.7978846, %v2404_v31  ;;  %v2402_v50 = vadd.f32 %v2386_v34, %v11161_v10 }
 0x2d1   : > { %v10329_v51 = vpop.eup %10328  ;;  %v2389_v5 = vmul.f32 0.044715, %v2373_v35  ;;  %v2371_v52 = vmul.f32 %v2355_v38, %v11178_v28  ;;  %v2360_v53 = vmul.f32 %v11185_v39, %v11185_v39  ;;  %v11192_v55 = vadd.f32 %v2331_v40, %v2235_v59  ;;  %v9440_v57 = vpop.f32.mrf.mxu1 }
 0x2d2   : > { %v2460_v33 = vmul.f32 0.5, %v2444_v1  ;;  %v2442_v42 = vadd.f32 1.0, %v10329_v51  ;;  %10342 = vtanh.f32 %v2420_v47  ;;  %v2418_v43 = vmul.f32 0.7978846, %v2402_v50 }
 0x2d3   : > { %v10331_v49 = vpop.eup %10330  ;;  %v2405_v60 = vadd.f32 %v2389_v5, %v11169_v19  ;;  %v2387_v61 = vmul.f32 0.044715, %v2371_v52  ;;  %v2376_v63 = vmul.f32 %v2360_v53, %v11185_v39  ;;  %v2358_v0 = vmul.f32 %v11192_v55, %v11192_v55  ;;  %v2334_v13 = vpop.f32.mrf.mxu1 }
 0x2d4   : > { %v11199_v3 = vmul.f32 %v2460_v33, %v11095_v54  ;;  %v2458_v6 = vmul.f32 0.5, %v2442_v42  ;;  %v2445_v59 = vadd.f32 1.0, %v10331_v49  ;;  %10344 = vtanh.f32 %v2418_v43 }
 0x2d5   : > { %v10333_v8 = vpop.eup %10332  ;;  %v2421_v9 = vmul.f32 0.7978846, %v2405_v60  ;;  %v2403_v11 = vadd.f32 %v2387_v61, %v11178_v28  ;;  %v2392_v12 = vmul.f32 0.044715, %v2376_v63  ;;  %v2374_v30 = vmul.f32 %v2358_v0, %v11192_v55 }
 0x2d6   : > { %2492 = vst [vmem:[#allocation3 + $0x18] sm:$0xff] %v11199_v3  ;;  %v2474_v15 = vmul.f32 %v2458_v6, %v11100_v58  ;;  %v2461_v16 = vmul.f32 0.5, %v2445_v59  ;;  %v2443_v17 = vadd.f32 1.0, %v10333_v8  ;;  %v11205_v18 = vadd.f32 %v9440_v57, %v2246_v27 }
 0x2d7   : > { %10346 = vtanh.f32 %v2421_v9  ;;  %v2419_v54 = vmul.f32 0.7978846, %v2403_v11  ;;  %v2408_v20 = vadd.f32 %v2392_v12, %v11185_v39  ;;  %v2390_v21 = vmul.f32 0.044715, %v2374_v30 }
 0x2d8   : > { %v10335_v44 = vpop.eup %10334  ;;  %2490 = vst [vmem:[#allocation3 + $0x8] sm:$0xff] %v2474_v15  ;;  %v11209_v45 = vmul.f32 %v2461_v16, %v11106_v4  ;;  %v2459_v22 = vmul.f32 0.5, %v2443_v17  ;;  %v2361_v23 = vmul.f32 %v11205_v18, %v11205_v18  ;;  %v11214_v58 = vadd.f32 %v2334_v13, %v11156_v7 }
 0x2d9   : > { %v2448_v32 = vadd.f32 1.0, %v10335_v44  ;;  %10348 = vtanh.f32 %v2419_v54  ;;  %v2424_v25 = vmul.f32 0.7978846, %v2408_v20  ;;  %v2406_v26 = vadd.f32 %v2390_v21, %v11192_v55 }
 0x2da   : > { %v10337_v29 = vpop.eup %10336  ;;  %2493 = vst [vmem:[#allocation3 + $0x20] sm:$0xff] %v11209_v45  ;;  %v2475_v46 = vmul.f32 %v2459_v22, %v11113_v14  ;;  %v2377_v4 = vmul.f32 %v2361_v23, %v11205_v18  ;;  %v2359_v48 = vmul.f32 %v11214_v58, %v11214_v58 }
 0x2db   : > { %v2464_v31 = vmul.f32 0.5, %v2448_v32  ;;  %v2446_v34 = vadd.f32 1.0, %v10337_v29  ;;  %10350 = vtanh.f32 %v2424_v25  ;;  %v2422_v7 = vmul.f32 0.7978846, %v2406_v26 }
 0x2dc   : > { %v10339_v35 = vpop.eup %10338  ;;  %2491 = vst [vmem:[#allocation3 + $0x10] sm:$0xff] %v2475_v46  ;;  %v2393_v36 = vmul.f32 0.044715, %v2377_v4  ;;  %v2375_v38 = vmul.f32 %v2359_v48, %v11214_v58  ;;  %v2555_v40 = vpack.c.bf16 %v2475_v46, %v2474_v15 }
 0x2dd   : > { %v10341_v27 = vpop.eup %10340  ;;  %v11224_v1 = vmul.f32 %v2464_v31, %v11122_v24  ;;  %v2462_v14 = vmul.f32 0.5, %v2446_v34  ;;  %v2449_v47 = vadd.f32 1.0, %v10339_v35  ;;  %10352 = vtanh.f32 %v2422_v7 }
 0x2de   : > { %v2447_v50 = vadd.f32 1.0, %v10341_v27  ;;  %v2409_v51 = vadd.f32 %v2393_v36, %v11205_v18  ;;  %v2391_v5 = vmul.f32 0.044715, %v2375_v38  ;;  %2809 = vmatprep.mubr.bf16.mxu0 %v2555_v40 }
 0x2df   : > { %v10343_v52 = vpop.eup %10342  ;;  %2496 = vst [vmem:[#allocation3 + $0x38] sm:$0xff] %v11224_v1  ;;  %v11229_v53 = vmul.f32 %v2462_v14, %v11131_v37  ;;  %v2465_v57 = vmul.f32 0.5, %v2449_v47  ;;  %v2506_v6 = vld [vmem:[#allocation3 + $0x7] sm:$0xff] }
 0x2e0   : > { %v2463_v33 = vmul.f32 0.5, %v2447_v50  ;;  %v2452_v42 = vadd.f32 1.0, %v10343_v52  ;;  %v2425_v43 = vmul.f32 0.7978846, %v2409_v51  ;;  %v2407_v24 = vadd.f32 %v2391_v5, %v11214_v58 }
 0x2e1   : > { %v10345_v49 = vpop.eup %10344  ;;  %2494 = vst [vmem:[#allocation3 + $0x28] sm:$0xff] %v11229_v53  ;;  %v11234_v60 = vmul.f32 %v2465_v57, %v11140_v41  ;;  %v2540_v21 = vld [vmem:[#allocation3 + $0x19] sm:$0xff] }
 0x2e2   : > { %v2479_v61 = vmul.f32 %v2463_v33, %v11143_v56  ;;  %v2468_v63 = vmul.f32 0.5, %v2452_v42  ;;  %v2450_v0 = vadd.f32 1.0, %v10345_v49  ;;  %10354 = vtanh.f32 %v2425_v43  ;;  %v2509_v48 = vld [vmem:[#allocation3 + $0x1f] sm:$0xff] }
 0x2e3   : > { %2497 = vst [vmem:[#allocation3 + $0x40] sm:$0xff] %v11234_v60  ;;  %v2423_v37 = vmul.f32 0.7978846, %v2407_v24  ;;  %v2538_v59 = vld [vmem:[#allocation3 + $0x9] sm:$0xff]  ;;  %v2539_v8 = vld [vmem:[#allocation3 + $0x11] sm:$0xff]  ;;  %v2558_v56 = vpack.c.bf16 %v11209_v45, %v11199_v3  ;;  %v2564_v49 = vpack.c.bf16 %v11234_v60, %v11224_v1 }
 0x2e4   : > { %v2507_v9 = vld [vmem:[#allocation3 + $0xf] sm:$0xff]  ;;  %v10347_v11 = vpop.eup %10346  ;;  %2495 = vst [vmem:[#allocation3 + $0x30] sm:$0xff] %v2479_v61  ;;  %v11239_v12 = vmul.f32 %v2468_v63, %v11151_v62  ;;  %v2466_v30 = vmul.f32 0.5, %v2450_v0  ;;  %v2556_v41 = vpack.c.bf16 %v2539_v8, %v2538_v59  ;;  %v2508_v32 = vld [vmem:[#allocation3 + $0x17] sm:$0xff]  ;;  %v2561_v35 = vpack.c.bf16 %v2479_v61, %v11229_v53 }
 0x2e5   : > { %v2554_v13 = vpack.c.bf16 %v2507_v9, %v2506_v6  ;;  %v2453_v15 = vadd.f32 1.0, %v10347_v11  ;;  %10356 = vtanh.f32 %v2423_v37  ;;  %v2557_v34 = vpack.c.bf16 %v2509_v48, %v2508_v32  ;;  %v11262_v61 = vld [vmem:[#allocation2] sm:$0xff]  ;;  %v9968_v32 = vld [vmem:[%s12947_s7 + $0x38] sm:$0xff]   ;;  %v9975_v48 = vld [vmem:[%s12947_s7 + $0xe8] sm:$0xff]  }
 0x2e6   : > { %v10349_v16 = vpop.eup %10348  ;;  %2500 = vst [vmem:[#allocation3 + $0x58] sm:$0xff] %v11239_v12  ;;  %v11245_v17 = vmul.f32 %v2466_v30, %v11161_v10  ;;  %9457 = vmatprep.mubr.bf16.mxu1 %v2556_v41 }
 0x2e7   : > { %2810 = vmatmul.mubr.bf16.vlgmr.msra.gmra.mxu0 %v2554_v13  ;;  %v2469_v54 = vmul.f32 0.5, %v2453_v15  ;;  %v2451_v20 = vadd.f32 1.0, %v10349_v16 }
 0x2e8   : > { %2817 = vmatprep.mubr.bf16.mxu0 %v2558_v56  ;;  %v10351_v62 = vpop.eup %10350  ;;  %2498 = vst [vmem:[#allocation3 + $0x48] sm:$0xff] %v11245_v17  ;;  %v2541_v44 = vld [vmem:[#allocation3 + $0x21] sm:$0xff] }
 0x2e9   : > { %v11249_v22 = vmul.f32 %v2469_v54, %v11169_v19  ;;  %v2467_v3 = vmul.f32 0.5, %v2451_v20  ;;  %v2456_v45 = vadd.f32 1.0, %v10351_v62  ;;  %v2559_v23 = vpack.c.bf16 %v2541_v44, %v2540_v21  ;;  %v2510_v5 = vld [vmem:[#allocation3 + $0x27] sm:$0xff] }
 0x2ea   : > { %v10353_v25 = vpop.eup %10352  ;;  %v2544_v38 = vld [vmem:[#allocation3 + $0x39] sm:$0xff] }
 0x2eb   : > { %2501 = vst [vmem:[#allocation3 + $0x60] sm:$0xff] %v11249_v22  ;;  %v2483_v10 = vmul.f32 %v2467_v3, %v11178_v28  ;;  %v2472_v26 = vmul.f32 0.5, %v2456_v45  ;;  %v2454_v29 = vadd.f32 1.0, %v10353_v25  ;;  %9458 = vmatmul.mubr.bf16.vlgmr.msra.gmra.mxu1 %v2559_v23  ;;  %v2542_v46 = vld [vmem:[#allocation3 + $0x29] sm:$0xff]  ;;  %v2543_v4 = vld [vmem:[#allocation3 + $0x31] sm:$0xff]  ;;  %v2513_v59 = vld [vmem:[#allocation3 + $0x3f] sm:$0xff]  ;;  %v2570_v15 = vpack.c.bf16 %v11249_v22, %v11239_v12 }
 0x2ec   : > { %v2562_v31 = vpack.c.bf16 %v2543_v4, %v2542_v46  ;;  %v2511_v47 = vld [vmem:[#allocation3 + $0x2f] sm:$0xff]  ;;  %v2512_v37 = vld [vmem:[#allocation3 + $0x37] sm:$0xff]  ;;  %v9973_v46 = vld [vmem:[%s12947_s7 + $0xb0] sm:$0xff]  }
 0x2ed   : > { %2499 = vst [vmem:[#allocation3 + $0x50] sm:$0xff] %v2483_v10  ;;  %v11254_v19 = vmul.f32 %v2472_v26, %v11185_v39  ;;  %v2470_v7 = vmul.f32 0.5, %v2454_v29  ;;  %v2560_v42 = vpack.c.bf16 %v2511_v47, %v2510_v5  ;;  %v2563_v8 = vpack.c.bf16 %v2513_v59, %v2512_v37  ;;  %v9966_v12 = vld [vmem:[%s12947_s7 + $0x78] sm:$0xff]   ;;  %v9971_v26 = vld [vmem:[%s12947_s7 + $0xf0] sm:$0xff]   ;;  %v9974_v4 = vld [vmem:[%s12947_s7 + $0x68] sm:$0xff]  }
 0x2ee   : > { %9461 = vmatprep.mubr.bf16.mxu1 %v2562_v31  ;;  %v2567_v1 = vpack.c.bf16 %v2483_v10, %v11245_v17  ;;  %v9967_v22 = vld [vmem:[%s12947_s7 + $0xf8] sm:$0xff]   ;;  %8779 = vmatprep.subr.bf16.mxu1 %v9966_v12  ;;  %v9970_v10 = vld [vmem:[%s12947_s7 + $0x70] sm:$0xff]   ;;  %v9976_v31 = vld [vmem:[%s12947_s7 + $0x28] sm:$0xff]  }
 0x2ef   : > { %2818 = vmatmul.mubr.bf16.gmra.mxu0 %v2557_v34  ;;  %v10355_v36 = vpop.eup %10354  ;;  %2504 = vst [vmem:[#allocation3 + $0x78] sm:$0xff] %v11254_v19  ;;  %v2486_v28 = vmul.f32 %v2470_v7, %v11192_v55  ;;  %v2545_v40 = vld [vmem:[#allocation3 + $0x41] sm:$0xff]  ;;  %8819 = vmatprep.subr.bf16.mxu0 %v9967_v22  ;;  %v9977_v34 = vld [vmem:[%s12947_s7 + $0xa8] sm:$0xff]   ;;  %v9979_v7 = vld [vmem:[%s12947_s7 + $0xe0] sm:$0xff]  }
 0x2f0   : > { %2825 = vmatprep.mubr.bf16.mxu0 %v2561_v35  ;;  %v2457_v27 = vadd.f32 1.0, %v10355_v36  ;;  %v2565_v14 = vpack.c.bf16 %v2545_v40, %v2544_v38  ;;  %v2514_v52 = vld [vmem:[#allocation3 + $0x47] sm:$0xff]  ;;  %8780 = vmatpush3.bf16.msra.mxu1 %v9968_v32  ;;  %v9980_v35 = vld [vmem:[%s12947_s7 + $0x20] sm:$0xff]   ;;  %v9991_v5 = vld [vmem:[%s12947_s7 + $0xc8] sm:$0xff]  }
 0x2f1   : > { %2502 = vst [vmem:[#allocation3 + $0x68] sm:$0xff] %v2486_v28  ;;  %v9969_v25 = vld [vmem:[%s12947_s7 + $0xb8] sm:$0xff]   ;;  %v9972_v29 = vld [vmem:[%s12947_s7 + $0x30] sm:$0xff]   ;;  %8781 = vmatprep.subr.bf16.mxu1 %v9970_v10  ;;  %v9981_v36 = vld [vmem:[%s12947_s7 + $0xa0] sm:$0xff]  }
 0x2f2   : > { %v10357_v50 = vpop.eup %10356  ;;  %v2473_v39 = vmul.f32 0.5, %v2457_v27  ;;  %v2517_v16 = vld [vmem:[#allocation3 + $0x5f] sm:$0xff]  ;;  %8820 = vmatpush3.bf16.msra.mxu0 %v9969_v25  ;;  %v9983_v38 = vld [vmem:[%s12947_s7 + $0xd8] sm:$0xff]  }
 0x2f3   : > { %v2455_v51 = vadd.f32 1.0, %v10357_v50  ;;  %9462 = vmatmul.mubr.bf16.gmra.mxu1 %v2565_v14  ;;  %8821 = vmatprep.subr.bf16.mxu0 %v9971_v26  ;;  %v9984_v40 = vld [vmem:[%s12947_s7 + $0x18] sm:$0xff]   ;;  %v9986_v14 = vld [vmem:[%s12947_s7 + $0x50] sm:$0xff]  }
 0x2f4   : > { %v2489_v53 = vmul.f32 %v2473_v39, %v11205_v18  ;;  %v2546_v57 = vld [vmem:[#allocation3 + $0x49] sm:$0xff]  ;;  %v2547_v33 = vld [vmem:[#allocation3 + $0x51] sm:$0xff]  ;;  %v2548_v18 = vld [vmem:[#allocation3 + $0x59] sm:$0xff]  ;;  %8782 = vmatpush3.bf16.msra.mxu1 %v9972_v29 }
 0x2f5   : > { %v2515_v43 = vld [vmem:[#allocation3 + $0x4f] sm:$0xff]  ;;  %v2471_v55 = vmul.f32 0.5, %v2455_v51  ;;  %v2568_v24 = vpack.c.bf16 %v2547_v33, %v2546_v57  ;;  %v2516_v56 = vld [vmem:[#allocation3 + $0x57] sm:$0xff]  ;;  %8783 = vmatprep.subr.bf16.mxu1 %v9974_v4  ;;  %v9987_v47 = vld [vmem:[%s12947_s7 + $0xd0] sm:$0xff]  }
 0x2f6   : > { %4264 = vst [vmem:[#allocation3 + $0x48] sm:$0xff] %v11262_v61  ;;  %2505 = vst [vmem:[#allocation3 + $0x80] sm:$0xff] %v2489_v53  ;;  %v2566_v13 = vpack.c.bf16 %v2515_v43, %v2514_v52  ;;  %v2569_v54 = vpack.c.bf16 %v2517_v16, %v2516_v56  ;;  %v2576_v44 = vpack.c.bf16 %v2489_v53, %v11254_v19  ;;  %8822 = vmatpush3.bf16.msra.mxu0 %v9973_v46  ;;  %v9978_v19 = vld [vmem:[%s12947_s7 + $0x60] sm:$0xff]   ;;  %v9985_v27 = vld [vmem:[%s12947_s7 + $0x98] sm:$0xff]  }
 0x2f7   : > { %2826 = vmatmul.mubr.bf16.gmra.mxu0 %v2560_v42  ;;  %v2487_v63 = vmul.f32 %v2471_v55, %v11214_v58  ;;  %9465 = vmatprep.mubr.bf16.mxu1 %v2568_v24  ;;  %v9988_v50 = vld [vmem:[%s12947_s7 + $0x10] sm:$0xff]   ;;  %v9990_v51 = vld [vmem:[%s12947_s7 + $0x48] sm:$0xff]   ;;  %v9994_v57 = vld [vmem:[%s12947_s7 + $0x40] sm:$0xff]  }
 0x2f8   : > { %2833 = vmatprep.mubr.bf16.mxu0 %v2564_v49  ;;  %v2549_v0 = vld [vmem:[#allocation3 + $0x61] sm:$0xff]  ;;  %8823 = vmatprep.subr.bf16.mxu0 %v9975_v48  ;;  %v9992_v52 = vld [vmem:[%s12947_s7 + $0x8] sm:$0xff]   ;;  %v9995_v33 = vld [vmem:[%s12947_s7 + $0xc0] sm:$0xff]  }
 0x2f9   : > { %2503 = vst [vmem:[#allocation3 + $0x70] sm:$0xff] %v2487_v63  ;;  %v2571_v6 = vpack.c.bf16 %v2549_v0, %v2548_v18  ;;  %v2573_v17 = vpack.c.bf16 %v2487_v63, %v2486_v28  ;;  %v2518_v62 = vld [vmem:[#allocation3 + $0x67] sm:$0xff]  ;;  %8784 = vmatpush3.bf16.msra.mxu1 %v9976_v31  ;;  %v9993_v53 = vld [vmem:[%s12947_s7 + $0x88] sm:$0xff]   ;;  %v9996_v42 = vld [vmem:[%s12947_s7] sm:$0xff]  }
 0x2fa   : > { %8824 = vmatpush3.bf16.msra.mxu0 %v9977_v34  ;;  %8785 = vmatprep.subr.bf16.mxu1 %v9978_v19  ;;  %v9982_v28 = vld [vmem:[%s12947_s7 + $0x58] sm:$0xff]   ;;  %v9989_v39 = vld [vmem:[%s12947_s7 + $0x90] sm:$0xff]   ;;  %v9997_v43 = vld [vmem:[%s12947_s7 + $0x80] sm:$0xff]  }
 0x2fb   : > { %9466 = vmatmul.mubr.bf16.gmra.mxu1 %v2571_v6  ;;  %8825 = vmatprep.subr.bf16.mxu0 %v9979_v7  ;;  %v9998_v55 = vld [vmem:[%s12947_s7 + $0x178] sm:$0xff]   ;;  %v11375_v18 = vld [vmem:[%s12946_s6] ss:$0 sm:$0xff] }
 0x2fc   : > { %v10000_v24 = vld [vmem:[%s12947_s7 + $0x1f8] sm:$0xff]  }
 0x2fd   : > { %v2552_v60 = vld [vmem:[#allocation3 + $0x79] sm:$0xff]  ;;  %v2553_v9 = vld [vmem:[#allocation3 + $0x81] sm:$0xff]  ;;  %8786 = vmatpush3.bf16.msra.mxu1 %v9980_v35 }
 0x2fe   : > { %v2577_v58 = vpack.c.bf16 %v2553_v9, %v2552_v60  ;;  %v2521_v45 = vld [vmem:[#allocation3 + $0x7f] sm:$0xff]  ;;  %8826 = vmatpush3.bf16.msra.mxu0 %v9981_v36  ;;  %8787 = vmatprep.subr.bf16.mxu1 %v9982_v28  ;;  %v2973_v10 = vld [vmem:[#allocation2 + $0x18] sm:$0xff] }
 0x2ff   : > { %2834 = vmatmul.mubr.bf16.gmra.mxu0 %v2563_v8  ;;  %8827 = vmatprep.subr.bf16.mxu0 %v9983_v38  ;;  %v2974_v38 = vld [vmem:[#allocation2 + $0x20] sm:$0xff] }
 0x300   : > { %2841 = vmatprep.mubr.bf16.mxu0 %v2567_v1  ;;  %v2550_v11 = vld [vmem:[#allocation3 + $0x69] sm:$0xff]  ;;  %v2551_v30 = vld [vmem:[#allocation3 + $0x71] sm:$0xff] }
 0x301   : > { %v2574_v41 = vpack.c.bf16 %v2551_v30, %v2550_v11  ;;  %v2519_v20 = vld [vmem:[#allocation3 + $0x6f] sm:$0xff]  ;;  %v2520_v3 = vld [vmem:[#allocation3 + $0x77] sm:$0xff]  ;;  %8788 = vmatpush3.bf16.msra.mxu1 %v9984_v40 }
 0x302   : > { %v2572_v21 = vpack.c.bf16 %v2519_v20, %v2518_v62  ;;  %v2575_v23 = vpack.c.bf16 %v2521_v45, %v2520_v3  ;;  %8828 = vmatpush3.bf16.msra.mxu0 %v9985_v27  ;;  %8789 = vmatprep.subr.bf16.mxu1 %v9986_v14  ;;  %v2971_v30 = vld [vmem:[#allocation2 + $0x8] sm:$0xff]  ;;  %v2972_v62 = vld [vmem:[#allocation2 + $0x10] sm:$0xff] }
 0x303   : > { %9469 = vmatprep.mubr.bf16.mxu1 %v2574_v41  ;;  %8829 = vmatprep.subr.bf16.mxu0 %v9987_v47 }
 0x304   : > { %9470 = vmatmul.mubr.bf16.gmra.mxu1 %v2577_v58 }
 0x305   : > { %8790 = vmatpush3.bf16.msra.mxu1 %v9988_v50 }
 0x306   : > { %8830 = vmatpush3.bf16.msra.mxu0 %v9989_v39  ;;  %8791 = vmatprep.subr.bf16.mxu1 %v9990_v51 }
 0x307   : > { %2842 = vmatmul.mubr.bf16.gmra.mxu0 %v2566_v13  ;;  %8831 = vmatprep.subr.bf16.mxu0 %v9991_v5 }
 0x308   : > { %2849 = vmatprep.mubr.bf16.mxu0 %v2570_v15 }
 0x309   : > { %8792 = vmatpush3.bf16.msra.mxu1 %v9992_v52 }
 0x30a   : > { %8832 = vmatpush3.bf16.msra.mxu0 %v9993_v53  ;;  %8793 = vmatprep.subr.bf16.mxu1 %v9994_v57 }
 0x30b   : > { %8833 = vmatprep.subr.bf16.mxu0 %v9995_v33 }
 0x30d   : > { %8794 = vmatpush3.bf16.msra.mxu1 %v9996_v42  ;;  %v2975_v42 = vld [vmem:[#allocation2 + $0x28] sm:$0xff] }
 0x30e   : > { %8834 = vmatpush3.bf16.msra.mxu0 %v9997_v43  ;;  %8859 = vmatprep.subr.bf16.mxu1 %v9998_v55 }
 0x30f   : > { %2850 = vmatmul.mubr.bf16.gmra.mxu0 %v2569_v54  ;;  %8899 = vmatprep.subr.bf16.mxu0 %v10000_v24 }
 0x310   : > { %2857 = vmatprep.mubr.bf16.mxu0 %v2573_v17 }
 0x317   : > { %2858 = vmatmul.mubr.bf16.gmra.mxu0 %v2572_v21 }
 0x318   : > { %2865 = vmatprep.mubr.bf16.mxu0 %v2576_v44 }
 0x31f   : > { %2866 = vmatmul.mubr.bf16.gmra.mxu0 %v2575_v23 }
 0x3a7   : > { %v8715_v49 = vpop.f32.mrf.mxu0 }
 0x3a9   : > { %v8716_v63 = vpop.f32.mrf.mxu0 }
 0x3aa   : > { %v8717_v0 = vadd.f32 %v8716_v63, %v8715_v49 }
 0x3ab   : > { %v8718_v6 = vpop.f32.mrf.mxu0  ;;  %v9459_v37 = vpop.f32.mrf.mxu1 }
 0x3ac   : > { %v2812_v59 = vadd.f32 %v8717_v0, %v11375_v18 }
 0x3ad   : > { %v8719_v8 = vpop.f32.mrf.mxu0  ;;  %v2908_v1 = vpop.f32.mrf.mxu1 }
 0x3ae   : > { %v8720_v60 = vadd.f32 %v8719_v8, %v8718_v6  ;;  %v2909_v9 = vadd.f32 %v2908_v1, %v2812_v59 }
 0x3af   : > { %v8721_v11 = vpop.f32.mrf.mxu0  ;;  %v9460_v41 = vpop.f32.mrf.mxu1 }
 0x3b0   : > { %v2815_v58 = vadd.f32 %v8720_v60, %v11375_v18  ;;  %v11379_v13 = vadd.f32 %v2971_v30, %v2909_v9  ;;  %v2976_v60 = vld [vmem:[#allocation2 + $0x30] sm:$0xff] }
 0x3b1   : > { %v8722_v15 = vpop.f32.mrf.mxu0  ;;  %v2911_v56 = vpop.f32.mrf.mxu1 }
 0x3b2   : > { %v8723_v16 = vadd.f32 %v8722_v15, %v8721_v11  ;;  %v3003_v54 = vmul.f32 %v11379_v13, %v11379_v13  ;;  %v2912_v17 = vadd.f32 %v2911_v56, %v2815_v58 }
 0x3b3   : > { %v8724_v20 = vpop.f32.mrf.mxu0  ;;  %v9463_v45 = vpop.f32.mrf.mxu1 }
 0x3b4   : > { %v2820_v21 = vadd.f32 %v8723_v16, %v11375_v18  ;;  %v3019_v44 = vmul.f32 %v3003_v54, %v11379_v13  ;;  %v11385_v3 = vadd.f32 %v2972_v62, %v2912_v17 }
 0x3b5   : > { %v8725_v23 = vpop.f32.mrf.mxu0  ;;  %v2924_v31 = vpop.f32.mrf.mxu1 }
 0x3b6   : > { %v2917_v12 = vadd.f32 %v9459_v37, %v2820_v21  ;;  %v8726_v22 = vadd.f32 %v8725_v23, %v8724_v20  ;;  %v3035_v32 = vmul.f32 0.044715, %v3019_v44  ;;  %v3004_v25 = vmul.f32 %v11385_v3, %v11385_v3 }
 0x3b7   : > { %v8727_v26 = vpop.f32.mrf.mxu0  ;;  %v9464_v39 = vpop.f32.mrf.mxu1 }
 0x3b8   : > { %v11389_v29 = vadd.f32 %v2973_v10, %v2917_v12  ;;  %v2823_v46 = vadd.f32 %v8726_v22, %v11375_v18  ;;  %v3051_v4 = vadd.f32 %v3035_v32, %v11379_v13  ;;  %v3020_v48 = vmul.f32 %v3004_v25, %v11385_v3  ;;  %v2977_v22 = vld [vmem:[#allocation2 + $0x38] sm:$0xff] }
 0x3b9   : > { %v8728_v34 = vpop.f32.mrf.mxu0  ;;  %v2927_v0 = vpop.f32.mrf.mxu1 }
 0x3ba   : > { %v3005_v19 = vmul.f32 %v11389_v29, %v11389_v29  ;;  %v2920_v7 = vadd.f32 %v9460_v41, %v2823_v46  ;;  %v8729_v35 = vadd.f32 %v8728_v34, %v8727_v26  ;;  %v3067_v36 = vmul.f32 0.7978846, %v3051_v4 }
 0x3bb   : > { %v3036_v28 = vmul.f32 0.044715, %v3020_v48  ;;  %v8730_v40 = vpop.f32.mrf.mxu0  ;;  %v11414_v15 = vpop.f32.mrf.mxu1 }
 0x3bc   : > { %v3021_v27 = vmul.f32 %v3005_v19, %v11389_v29  ;;  %v11397_v14 = vadd.f32 %v2974_v38, %v2920_v7  ;;  %v2828_v47 = vadd.f32 %v8729_v35, %v11375_v18  ;;  %10358 = vtanh.f32 %v3067_v36  ;;  %v2978_v7 = vld [vmem:[#allocation2 + $0x40] sm:$0xff] }
 0x3bd   : > { %v3052_v50 = vadd.f32 %v3036_v28, %v11385_v3  ;;  %v8731_v51 = vpop.f32.mrf.mxu0  ;;  %v2940_v25 = vpop.f32.mrf.mxu1 }
 0x3be   : > { %v3037_v5 = vmul.f32 0.044715, %v3021_v27  ;;  %v3006_v52 = vmul.f32 %v11397_v14, %v11397_v14  ;;  %v2925_v53 = vadd.f32 %v2924_v31, %v2828_v47  ;;  %v8732_v57 = vadd.f32 %v8731_v51, %v8730_v40 }
 0x3bf   : > { %v3068_v33 = vmul.f32 0.7978846, %v3052_v50  ;;  %v8733_v43 = vpop.f32.mrf.mxu0  ;;  %v11430_v27 = vpop.f32.mrf.mxu1 }
 0x3c0   : > { %v3053_v55 = vadd.f32 %v3037_v5, %v11389_v29  ;;  %v3022_v24 = vmul.f32 %v3006_v52, %v11397_v14  ;;  %v11405_v49 = vadd.f32 %v2975_v42, %v2925_v53  ;;  %v2831_v63 = vadd.f32 %v8732_v57, %v11375_v18 }
 0x3c1   : > { %10360 = vtanh.f32 %v3068_v33  ;;  %v8734_v6 = vpop.f32.mrf.mxu0 }
 0x3c2   : > { %v3069_v37 = vmul.f32 0.7978846, %v3053_v55  ;;  %v3038_v59 = vmul.f32 0.044715, %v3022_v24  ;;  %v3007_v8 = vmul.f32 %v11405_v49, %v11405_v49  ;;  %v2928_v1 = vadd.f32 %v2927_v0, %v2831_v63 }
 0x3c3   : > { %v8735_v9 = vadd.f32 %v8734_v6, %v8733_v43  ;;  %v8736_v11 = vpop.f32.mrf.mxu0  ;;  %v2979_v43 = vld [vmem:[#allocation2 + $0x48] sm:$0xff] }
 0x3c4   : > { %10362 = vtanh.f32 %v3069_v37  ;;  %v3054_v30 = vadd.f32 %v3038_v59, %v11397_v14  ;;  %v3023_v41 = vmul.f32 %v3007_v8, %v11405_v49  ;;  %v11412_v58 = vadd.f32 %v2976_v60, %v2928_v1  ;;  %v2943_v59 = vpop.f32.mrf.mxu1 }
 0x3c5   : > { %v2836_v56 = vadd.f32 %v8735_v9, %v11375_v18  ;;  %v8737_v16 = vpop.f32.mrf.mxu0 }
 0x3c6   : > { %v3070_v54 = vmul.f32 0.7978846, %v3054_v30  ;;  %v3039_v17 = vmul.f32 0.044715, %v3023_v41  ;;  %v3008_v20 = vmul.f32 %v11412_v58, %v11412_v58  ;;  %v8738_v62 = vadd.f32 %v8737_v16, %v8736_v11 }
 0x3c7   : > { %v2933_v21 = vadd.f32 %v9463_v45, %v2836_v56  ;;  %v8739_v44 = vpop.f32.mrf.mxu0  ;;  %v2980_v56 = vld [vmem:[#allocation2 + $0x50] sm:$0xff] }
 0x3c8   : > { %10364 = vtanh.f32 %v3070_v54  ;;  %v3055_v23 = vadd.f32 %v3039_v17, %v11405_v49  ;;  %v3024_v12 = vmul.f32 %v3008_v20, %v11412_v58  ;;  %v2839_v32 = vadd.f32 %v8738_v62, %v11375_v18 }
 0x3c9   : > { %v11422_v10 = vadd.f32 %v2977_v22, %v2933_v21  ;;  %v8740_v26 = vpop.f32.mrf.mxu0  ;;  %v10359_v46 = vpop.eup %10358 }
 0x3ca   : > { %v3071_v4 = vmul.f32 0.7978846, %v3055_v23  ;;  %v3040_v48 = vmul.f32 0.044715, %v3024_v12  ;;  %v2936_v31 = vadd.f32 %v9464_v39, %v2839_v32  ;;  %v8741_v34 = vadd.f32 %v8740_v26, %v8739_v44  ;;  %v11448_v23 = vpop.f32.mrf.mxu1 }
 0x3cb   : > { %v3099_v19 = vadd.f32 1.0, %v10359_v46  ;;  %v3009_v45 = vmul.f32 %v11422_v10, %v11422_v10  ;;  %v8742_v35 = vpop.f32.mrf.mxu0 }
 0x3cc   : > { %10366 = vtanh.f32 %v3071_v4  ;;  %v3056_v36 = vadd.f32 %v3040_v48, %v11412_v58  ;;  %v11427_v28 = vadd.f32 %v2978_v7, %v2936_v31  ;;  %v2844_v38 = vadd.f32 %v8741_v34, %v11375_v18 }
 0x3cd   : > { %v3115_v40 = vmul.f32 0.5, %v3099_v19  ;;  %v3025_v47 = vmul.f32 %v3009_v45, %v11422_v10  ;;  %v8743_v50 = vpop.f32.mrf.mxu0  ;;  %v2981_v45 = vld [vmem:[#allocation2 + $0x58] sm:$0xff] }
 0x3ce   : > { %v10361_v39 = vpop.eup %10360  ;;  %v3072_v51 = vmul.f32 0.7978846, %v3056_v36  ;;  %v3010_v5 = vmul.f32 %v11427_v28, %v11427_v28  ;;  %v2941_v52 = vadd.f32 %v2940_v25, %v2844_v38  ;;  %v8744_v53 = vadd.f32 %v8743_v50, %v8742_v35  ;;  %v2956_v35 = vpop.f32.mrf.mxu1 }
 0x3cf   : > { %v3131_v57 = vmul.f32 %v3115_v40, %v11379_v13  ;;  %v3100_v33 = vadd.f32 1.0, %v10361_v39  ;;  %v3041_v42 = vmul.f32 0.044715, %v3025_v47  ;;  %v8745_v55 = vpop.f32.mrf.mxu0 }
 0x3d0   : > { %10368 = vtanh.f32 %v3072_v51  ;;  %v3026_v24 = vmul.f32 %v3010_v5, %v11427_v28  ;;  %v11437_v63 = vadd.f32 %v2979_v43, %v2941_v52  ;;  %v2847_v0 = vadd.f32 %v8744_v53, %v11375_v18 }
 0x3d1   : > { %v10363_v6 = vpop.eup %10362  ;;  %3147 = vst [vmem:[#allocation2 + $0x8] sm:$0xff] %v3131_v57  ;;  %v3116_v37 = vmul.f32 0.5, %v3100_v33  ;;  %v3057_v8 = vadd.f32 %v3041_v42, %v11422_v10  ;;  %v8746_v1 = vpop.f32.mrf.mxu0  ;;  %v2982_v33 = vld [vmem:[#allocation2 + $0x60] sm:$0xff] }
 0x3d2   : > { %v3101_v60 = vadd.f32 1.0, %v10363_v6  ;;  %v3042_v13 = vmul.f32 0.044715, %v3026_v24  ;;  %v3011_v9 = vmul.f32 %v11437_v63, %v11437_v63  ;;  %v2944_v11 = vadd.f32 %v2943_v59, %v2847_v0 }
 0x3d3   : > { %v3132_v30 = vmul.f32 %v3116_v37, %v11385_v3  ;;  %v3073_v41 = vmul.f32 0.7978846, %v3057_v8  ;;  %v8747_v16 = vadd.f32 %v8746_v1, %v8745_v55  ;;  %v8748_v54 = vpop.f32.mrf.mxu0  ;;  %v11465_v55 = vpop.f32.mrf.mxu1 }
 0x3d4   : > { %v3117_v17 = vmul.f32 0.5, %v3101_v60  ;;  %v3058_v20 = vadd.f32 %v3042_v13, %v11427_v28  ;;  %v3027_v62 = vmul.f32 %v3011_v9, %v11437_v63  ;;  %v11446_v21 = vadd.f32 %v2980_v56, %v2944_v11  ;;  %v2983_v9 = vld [vmem:[#allocation2 + $0x68] sm:$0xff] }
 0x3d5   : > { %v10365_v44 = vpop.eup %10364  ;;  %3148 = vst [vmem:[#allocation2 + $0x10] sm:$0xff] %v3132_v30  ;;  %10370 = vtanh.f32 %v3073_v41  ;;  %v2852_v12 = vadd.f32 %v8747_v16, %v11375_v18  ;;  %v8749_v22 = vpop.f32.mrf.mxu0 }
 0x3d6   : > { %v3133_v3 = vmul.f32 %v3117_v17, %v11389_v29  ;;  %v3102_v32 = vadd.f32 1.0, %v10365_v44  ;;  %v3074_v25 = vmul.f32 0.7978846, %v3058_v20  ;;  %v3043_v26 = vmul.f32 0.044715, %v3027_v62  ;;  %v2959_v16 = vpop.f32.mrf.mxu1 }
 0x3d7   : > { %v3012_v46 = vmul.f32 %v11446_v21, %v11446_v21  ;;  %v2949_v4 = vadd.f32 %v11414_v15, %v2852_v12  ;;  %v8750_v48 = vadd.f32 %v8749_v22, %v8748_v54  ;;  %v8751_v31 = vpop.f32.mrf.mxu0 }
 0x3d8   : > { %3149 = vst [vmem:[#allocation2 + $0x18] sm:$0xff] %v3133_v3  ;;  %v3118_v34 = vmul.f32 0.5, %v3102_v32  ;;  %10372 = vtanh.f32 %v3074_v25  ;;  %v3059_v19 = vadd.f32 %v3043_v26, %v11437_v63  ;;  %v2984_v26 = vld [vmem:[#allocation2 + $0x70] sm:$0xff] }
 0x3d9   : > { %v10367_v7 = vpop.eup %10366  ;;  %v3028_v29 = vmul.f32 %v3012_v46, %v11446_v21  ;;  %v11457_v36 = vadd.f32 %v2981_v45, %v2949_v4  ;;  %v2855_v38 = vadd.f32 %v8750_v48, %v11375_v18  ;;  %v8752_v40 = vpop.f32.mrf.mxu0 }
 0x3da   : > { %v3134_v47 = vmul.f32 %v3118_v34, %v11397_v14  ;;  %v3103_v15 = vadd.f32 1.0, %v10367_v7  ;;  %v3075_v50 = vmul.f32 0.7978846, %v3059_v19  ;;  %v8753_v39 = vadd.f32 %v8752_v40, %v8751_v31 }
 0x3db   : > { %v3044_v51 = vmul.f32 0.044715, %v3028_v29  ;;  %v3013_v5 = vmul.f32 %v11457_v36, %v11457_v36  ;;  %v2952_v52 = vadd.f32 %v11430_v27, %v2855_v38  ;;  %v8754_v53 = vpop.f32.mrf.mxu0 }
 0x3dc   : > { %3150 = vst [vmem:[#allocation2 + $0x20] sm:$0xff] %v3134_v47  ;;  %v3119_v57 = vmul.f32 0.5, %v3103_v15  ;;  %10374 = vtanh.f32 %v3075_v50  ;;  %v2860_v42 = vadd.f32 %v8753_v39, %v11375_v18  ;;  %v3171_v34 = vld [vmem:[#allocation2 + $0x5] ss:$2 sm:$0xff] }
 0x3dd   : > { %v10369_v43 = vpop.eup %10368  ;;  %v3060_v14 = vadd.f32 %v3044_v51, %v11446_v21  ;;  %v3029_v24 = vmul.f32 %v3013_v5, %v11457_v36  ;;  %v11469_v0 = vadd.f32 %v2982_v33, %v2952_v52  ;;  %v8755_v6 = vpop.f32.mrf.mxu0  ;;  %v3187_v40 = vld [vmem:[#allocation2 + $0x7] ss:$2 sm:$0xff] }
 0x3de   : > { %v3135_v37 = vmul.f32 %v3119_v57, %v11405_v49  ;;  %v3104_v27 = vadd.f32 1.0, %v10369_v43  ;;  %v2957_v59 = vadd.f32 %v2956_v35, %v2860_v42  ;;  %v8756_v8 = vadd.f32 %v8755_v6, %v8754_v53  ;;  %v2985_v57 = vld [vmem:[#allocation2 + $0x78] sm:$0xff] }
 0x3df   : > { %v3076_v1 = vmul.f32 0.7978846, %v3060_v14  ;;  %v3045_v60 = vmul.f32 0.044715, %v3029_v24  ;;  %v3014_v13 = vmul.f32 %v11469_v0, %v11469_v0  ;;  %v8757_v11 = vpop.f32.mrf.mxu0  ;;  %v9999_v43 = vld [vmem:[%s12947_s7 + $0x138] sm:$0xff]  }
 0x3e0   : > { %3151 = vst [vmem:[#allocation2 + $0x28] sm:$0xff] %v3135_v37  ;;  %v3120_v30 = vmul.f32 0.5, %v3104_v27  ;;  %v11474_v41 = vadd.f32 %v2983_v9, %v2957_v59  ;;  %v2863_v56 = vadd.f32 %v8756_v8, %v11375_v18  ;;  %v3179_v27 = vld [vmem:[#allocation2 + $0x6] ss:$2 sm:$0xff] }
 0x3e1   : > { %10376 = vtanh.f32 %v3076_v1  ;;  %v3061_v49 = vadd.f32 %v3045_v60, %v11457_v36  ;;  %v3030_v54 = vmul.f32 %v3014_v13, %v11469_v0  ;;  %v8758_v17 = vpop.f32.mrf.mxu0  ;;  %v10002_v13 = vld [vmem:[%s12947_s7 + $0x170] sm:$0xff]  }
 0x3e2   : > { %v10371_v20 = vpop.eup %10370  ;;  %v3136_v62 = vmul.f32 %v3120_v30, %v11412_v58  ;;  %v3015_v44 = vmul.f32 %v11474_v41, %v11474_v41  ;;  %v2960_v12 = vadd.f32 %v2959_v16, %v2863_v56  ;;  %v8759_v22 = vadd.f32 %v8758_v17, %v8757_v11  ;;  %v10004_v9 = vld [vmem:[%s12947_s7 + $0x1f0] sm:$0xff]  }
 0x3e3   : > { %v3105_v3 = vadd.f32 1.0, %v10371_v20  ;;  %v3077_v32 = vmul.f32 0.7978846, %v3061_v49  ;;  %v3046_v25 = vmul.f32 0.044715, %v3030_v54  ;;  %v8760_v46 = vpop.f32.mrf.mxu0  ;;  %v2986_v20 = vld [vmem:[#allocation2 + $0x80] sm:$0xff] }
 0x3e4   : > { %3152 = vst [vmem:[#allocation2 + $0x30] sm:$0xff] %v3136_v62  ;;  %v3031_v4 = vmul.f32 %v3015_v44, %v11474_v41  ;;  %v11483_v48 = vadd.f32 %v2984_v26, %v2960_v12  ;;  %v2868_v31 = vadd.f32 %v8759_v22, %v11375_v18  ;;  %v3172_v19 = vld [vmem:[#allocation2 + $0x15] ss:$2 sm:$0xff]  ;;  %v3164_v47 = vld [vmem:[#allocation2 + $0x14] ss:$2 sm:$0xff]  ;;  %v10006_v12 = vld [vmem:[%s12947_s7 + $0x168] sm:$0xff]  }
 0x3e5   : > { %v3188_v58 = vld [vmem:[#allocation2 + $0x17] ss:$2 sm:$0xff]  ;;  %v10373_v45 = vpop.eup %10372  ;;  %v3121_v7 = vmul.f32 0.5, %v3105_v3  ;;  %10378 = vtanh.f32 %v3077_v32  ;;  %v3062_v35 = vadd.f32 %v3046_v25, %v11469_v0  ;;  %v8761_v29 = vpop.f32.mrf.mxu0  ;;  %v3244_v38 = vpack.c.bf16 %v3172_v19, %v3171_v34  ;;  %v3180_v5 = vld [vmem:[#allocation2 + $0x16] ss:$2 sm:$0xff]  ;;  %v10008_v22 = vld [vmem:[%s12947_s7 + $0x1e8] sm:$0xff]  }
 0x3e6   : > { %v3106_v15 = vadd.f32 1.0, %v10373_v45  ;;  %v3047_v50 = vmul.f32 0.044715, %v3031_v4  ;;  %v3016_v39 = vmul.f32 %v11483_v48, %v11483_v48  ;;  %v2965_v51 = vadd.f32 %v11448_v23, %v2868_v31  ;;  %v3163_v23 = vld [vmem:[#allocation2 + $0x4] ss:$2 sm:$0xff] }
 0x3e7   : > { %v3137_v52 = vmul.f32 %v3121_v7, %v11422_v10  ;;  %v3078_v53 = vmul.f32 0.7978846, %v3062_v35  ;;  %v8762_v33 = vadd.f32 %v8761_v29, %v8760_v46  ;;  %3962 = vmatprep.mubr.bf16.mxu1 %v3244_v38  ;;  %v3246_v42 = vpack.c.bf16 %v3188_v58, %v3187_v40  ;;  %v10001_v10 = vld [vmem:[%s12947_s7 + $0x1b8] sm:$0xff]   ;;  %v10005_v62 = vld [vmem:[%s12947_s7 + $0x1b0] sm:$0xff]   ;;  %v10007_v31 = vld [vmem:[%s12947_s7 + $0x128] sm:$0xff]  }
 0x3e8   : > { %v3122_v14 = vmul.f32 0.5, %v3106_v15  ;;  %v3063_v24 = vadd.f32 %v3047_v50, %v11474_v41  ;;  %v3032_v6 = vmul.f32 %v3016_v39, %v11483_v48  ;;  %v11496_v37 = vadd.f32 %v2985_v57, %v2965_v51  ;;  %v10009_v34 = vld [vmem:[%s12947_s7 + $0x1a8] sm:$0xff]   ;;  %v10010_v45 = vld [vmem:[%s12947_s7 + $0x160] sm:$0xff]  }
 0x3e9   : > { %v10375_v59 = vpop.eup %10374  ;;  %3153 = vst [vmem:[#allocation2 + $0x38] sm:$0xff] %v3137_v52  ;;  %10380 = vtanh.f32 %v3078_v53  ;;  %v2871_v8 = vadd.f32 %v8762_v33, %v11375_v18  ;;  %4027 = vmatprep.mubr.bf16.mxu0 %v3246_v42  ;;  %v3243_v1 = vpack.c.bf16 %v3164_v47, %v3163_v23  ;;  %v3245_v60 = vpack.c.bf16 %v3180_v5, %v3179_v27  ;;  %v10012_v7 = vld [vmem:[%s12947_s7 + $0x1e0] sm:$0xff]  }
 0x3ea   : > { %v3138_v11 = vmul.f32 %v3122_v14, %v11427_v28  ;;  %v3107_v30 = vadd.f32 1.0, %v10375_v59  ;;  %v3079_v56 = vmul.f32 0.7978846, %v3063_v24  ;;  %v3048_v16 = vmul.f32 0.044715, %v3032_v6  ;;  %v10003_v28 = vld [vmem:[%s12947_s7 + $0x130] sm:$0xff]  }
 0x3eb   : > { %v3017_v49 = vmul.f32 %v11496_v37, %v11496_v37  ;;  %v2968_v18 = vadd.f32 %v11465_v55, %v2871_v8  ;;  %3963 = vmatmul.mubr.bf16.vlgmr.msra.gmra.mxu1 %v3243_v1  ;;  %4028 = vmatmul.mubr.bf16.vlgmr.msra.gmra.mxu0 %v3245_v60  ;;  %v3173_v29 = vld [vmem:[#allocation2 + $0x25] ss:$2 sm:$0xff]  ;;  %v3165_v39 = vld [vmem:[#allocation2 + $0x24] ss:$2 sm:$0xff]  ;;  %v10016_v60 = vld [vmem:[%s12947_s7 + $0x1d8] sm:$0xff]  }
 0x3ec   : > { %3154 = vst [vmem:[#allocation2 + $0x40] sm:$0xff] %v3138_v11  ;;  %v3123_v54 = vmul.f32 0.5, %v3107_v30  ;;  %10382 = vtanh.f32 %v3079_v56  ;;  %v3064_v17 = vadd.f32 %v3048_v16, %v11483_v48  ;;  %8860 = vmatpush3.bf16.msra.mxu1 %v9999_v43  ;;  %8900 = vmatpush3.bf16.msra.mxu0 %v10001_v10  ;;  %v3189_v50 = vld [vmem:[#allocation2 + $0x27] ss:$2 sm:$0xff]  ;;  %v3181_v42 = vld [vmem:[#allocation2 + $0x26] ss:$2 sm:$0xff] }
 0x3ed   : > { %v3033_v55 = vmul.f32 %v3017_v49, %v11496_v37  ;;  %v11520_v44 = vadd.f32 %v2986_v20, %v2968_v18  ;;  %8861 = vmatprep.subr.bf16.mxu1 %v10002_v13  ;;  %8901 = vmatprep.subr.bf16.mxu0 %v10004_v9  ;;  %v10013_v27 = vld [vmem:[%s12947_s7 + $0x1a0] sm:$0xff]   ;;  %v10014_v10 = vld [vmem:[%s12947_s7 + $0x158] sm:$0xff]   ;;  %v10018_v56 = vld [vmem:[%s12947_s7 + $0x150] sm:$0xff]  }
 0x3ee   : > { %v10377_v3 = vpop.eup %10376  ;;  %v3139_v32 = vmul.f32 %v3123_v54, %v11437_v63  ;;  %v3080_v25 = vmul.f32 0.7978846, %v3064_v17  ;;  %v10015_v11 = vld [vmem:[%s12947_s7 + $0x118] sm:$0xff]   ;;  %v10020_v49 = vld [vmem:[%s12947_s7 + $0x1d0] sm:$0xff]  }
 0x3ef   : > { %v3108_v26 = vadd.f32 1.0, %v10377_v3  ;;  %v3049_v46 = vmul.f32 0.044715, %v3033_v55  ;;  %v3018_v4 = vmul.f32 %v11520_v44, %v11520_v44  ;;  %v10017_v30 = vld [vmem:[%s12947_s7 + $0x198] sm:$0xff]   ;;  %v10019_v17 = vld [vmem:[%s12947_s7 + $0x110] sm:$0xff]   ;;  %v10024_v55 = vld [vmem:[%s12947_s7 + $0x1c8] sm:$0xff]  }
 0x3f0   : > { %3155 = vst [vmem:[#allocation2 + $0x48] sm:$0xff] %v3139_v32  ;;  %10384 = vtanh.f32 %v3080_v25  ;;  %8862 = vmatpush3.bf16.msra.mxu1 %v10003_v28  ;;  %8902 = vmatpush3.bf16.msra.mxu0 %v10005_v62  ;;  %v10022_v62 = vld [vmem:[%s12947_s7 + $0x148] sm:$0xff]  }
 0x3f1   : > { %v3124_v19 = vmul.f32 0.5, %v3108_v26  ;;  %v3065_v63 = vadd.f32 %v3049_v46, %v11496_v37  ;;  %v3034_v58 = vmul.f32 %v3018_v4, %v11520_v44  ;;  %8863 = vmatprep.subr.bf16.mxu1 %v10006_v12  ;;  %8903 = vmatprep.subr.bf16.mxu0 %v10008_v22 }
 0x3f2   : > { %v10379_v35 = vpop.eup %10378 }
 0x3f3   : > { %v3140_v38 = vmul.f32 %v3124_v19, %v11446_v21  ;;  %v3109_v40 = vadd.f32 1.0, %v10379_v35  ;;  %v3081_v47 = vmul.f32 0.7978846, %v3065_v63  ;;  %v3050_v15 = vmul.f32 0.044715, %v3034_v58  ;;  %v10011_v21 = vld [vmem:[%s12947_s7 + $0x120] sm:$0xff]  }
 0x3f4   : > { %v3174_v51 = vld [vmem:[#allocation2 + $0x35] ss:$2 sm:$0xff]  ;;  %v3166_v52 = vld [vmem:[#allocation2 + $0x34] ss:$2 sm:$0xff]  ;;  %8864 = vmatpush3.bf16.msra.mxu1 %v10007_v31  ;;  %8904 = vmatpush3.bf16.msra.mxu0 %v10009_v34  ;;  %v10023_v34 = vld [vmem:[%s12947_s7 + $0x108] sm:$0xff]  }
 0x3f5   : > { %v3190_v5 = vld [vmem:[#allocation2 + $0x37] ss:$2 sm:$0xff]  ;;  %3156 = vst [vmem:[#allocation2 + $0x50] sm:$0xff] %v3140_v38  ;;  %v3125_v53 = vmul.f32 0.5, %v3109_v40  ;;  %10386 = vtanh.f32 %v3081_v47  ;;  %v3066_v57 = vadd.f32 %v3050_v15, %v11520_v44  ;;  %v3254_v33 = vpack.c.bf16 %v3174_v51, %v3173_v29  ;;  %v3182_v43 = vld [vmem:[#allocation2 + $0x36] ss:$2 sm:$0xff]  ;;  %8865 = vmatprep.subr.bf16.mxu1 %v10010_v45  ;;  %8905 = vmatprep.subr.bf16.mxu0 %v10012_v7 }
 0x3f6   : > { %v10381_v14 = vpop.eup %10380  ;;  %v3256_v24 = vpack.c.bf16 %v3190_v5, %v3189_v50  ;;  %v3253_v6 = vpack.c.bf16 %v3166_v52, %v3165_v39  ;;  %v3255_v23 = vpack.c.bf16 %v3182_v43, %v3181_v42  ;;  %v10025_v38 = vld [vmem:[%s12947_s7 + $0x188] sm:$0xff]   ;;  %v10026_v40 = vld [vmem:[%s12947_s7 + $0x140] sm:$0xff]  }
 0x3f7   : > { %v3141_v59 = vmul.f32 %v3125_v53, %v11457_v36  ;;  %v3110_v8 = vadd.f32 1.0, %v10381_v14  ;;  %v3082_v1 = vmul.f32 0.7978846, %v3066_v57  ;;  %3970 = vmatprep.mubr.bf16.mxu1 %v3254_v33  ;;  %v11588_v25 = vld [vmem:[#allocation2 + $0x3a] ss:$2 sm:$0xff] }
 0x3f8   : > { %4035 = vmatprep.mubr.bf16.mxu0 %v3256_v24  ;;  %3971 = vmatmul.mubr.bf16.gmra.mxu1 %v3253_v6  ;;  %v11592_v46 = vld [vmem:[#allocation2 + $0x3d] ss:$2 sm:$0xff]  ;;  %v11594_v4 = vld [vmem:[#allocation2 + $0x3c] ss:$2 sm:$0xff] }
 0x3f9   : > { %v10383_v13 = vpop.eup %10382  ;;  %3157 = vst [vmem:[#allocation2 + $0x58] sm:$0xff] %v3141_v59  ;;  %v3126_v9 = vmul.f32 0.5, %v3110_v8  ;;  %10388 = vtanh.f32 %v3082_v1  ;;  %4036 = vmatmul.mubr.bf16.gmra.mxu0 %v3255_v23  ;;  %8866 = vmatpush3.bf16.msra.mxu1 %v10011_v21  ;;  %v10027_v57 = vld [vmem:[%s12947_s7 + $0x100] sm:$0xff]   ;;  %v10030_v21 = vld [vmem:[%s12947_s7 + $0x278] sm:$0xff]  }
 0x3fa   : > { %v3111_v36 = vadd.f32 1.0, %v10383_v13  ;;  %8906 = vmatpush3.bf16.msra.mxu0 %v10013_v27  ;;  %8867 = vmatprep.subr.bf16.mxu1 %v10014_v10  ;;  %v10029_v43 = vld [vmem:[%s12947_s7 + $0x180] sm:$0xff]  }
 0x3fb   : > { %v3142_v16 = vmul.f32 %v3126_v9, %v11469_v0  ;;  %8907 = vmatprep.subr.bf16.mxu0 %v10016_v60  ;;  %v10021_v0 = vld [vmem:[%s12947_s7 + $0x190] sm:$0xff]   ;;  %v3204_v27 = vld [vmem:[#allocation2 + $0x19] ss:$2 sm:$0xff] }
 0x3fc   : > { %v3127_v18 = vmul.f32 0.5, %v3111_v36  ;;  %v3175_v12 = vld [vmem:[#allocation2 + $0x45] ss:$2 sm:$0xff]  ;;  %v3167_v3 = vld [vmem:[#allocation2 + $0x44] ss:$2 sm:$0xff] }
 0x3fd   : > { %v10385_v54 = vpop.eup %10384  ;;  %3158 = vst [vmem:[#allocation2 + $0x60] sm:$0xff] %v3142_v16  ;;  %8868 = vmatpush3.bf16.msra.mxu1 %v10015_v11  ;;  %v3191_v22 = vld [vmem:[#allocation2 + $0x47] ss:$2 sm:$0xff]  ;;  %v3183_v32 = vld [vmem:[#allocation2 + $0x46] ss:$2 sm:$0xff] }
 0x3fe   : > { %v3143_v20 = vmul.f32 %v3127_v18, %v11474_v41  ;;  %v3112_v28 = vadd.f32 1.0, %v10385_v54  ;;  %8908 = vmatpush3.bf16.msra.mxu0 %v10017_v30  ;;  %8869 = vmatprep.subr.bf16.mxu1 %v10018_v56  ;;  %v11586_v41 = vld [vmem:[#allocation2 + $0x3b] ss:$2 sm:$0xff]  ;;  %v11601_v63 = vld [vmem:[#allocation2 + $0x48] ss:$2 sm:$0xff] }
 0x3ff   : > { %8909 = vmatprep.subr.bf16.mxu0 %v10020_v49  ;;  %v11590_v26 = vld [vmem:[#allocation2 + $0x49] ss:$2 sm:$0xff] }
 0x400   : > { %3159 = vst [vmem:[#allocation2 + $0x68] sm:$0xff] %v3143_v20  ;;  %v3128_v31 = vmul.f32 0.5, %v3112_v28  ;;  %v11599_v19 = vld [vmem:[#allocation2 + $0x4b] ss:$2 sm:$0xff]  ;;  %v11603_v58 = vld [vmem:[#allocation2 + $0x4a] ss:$2 sm:$0xff] }
 0x401   : > { %8870 = vmatpush3.bf16.msra.mxu1 %v10019_v17  ;;  %v11605_v45 = vld [vmem:[#allocation2 + $0x4d] ss:$2 sm:$0xff]  ;;  %v11607_v7 = vld [vmem:[#allocation2 + $0x4c] ss:$2 sm:$0xff] }
 0x402   : > { %v10387_v35 = vpop.eup %10386  ;;  %v3144_v29 = vmul.f32 %v3128_v31, %v11483_v48  ;;  %8910 = vmatpush3.bf16.msra.mxu0 %v10021_v0  ;;  %8871 = vmatprep.subr.bf16.mxu1 %v10022_v62  ;;  %4263 = vst [vmem:[#allocation2 + $0x48] sm:$0xff] %v11262_v61  ;;  %v10028_v61 = vld [vmem:[%s12947_s7 + $0x1c0] sm:$0xff]   ;;  %v3203_v49 = vld [vmem:[#allocation2 + $0x9] ss:$2 sm:$0xff]  ;;  %v3195_v0 = vld [vmem:[#allocation2 + $0x8] ss:$2 sm:$0xff] }
 0x403   : > { %v3113_v47 = vadd.f32 1.0, %v10387_v35  ;;  %8911 = vmatprep.subr.bf16.mxu0 %v10024_v55  ;;  %v3220_v10 = vld [vmem:[#allocation2 + $0x1b] ss:$2 sm:$0xff]  ;;  %v3219_v18 = vld [vmem:[#allocation2 + $0xb] ss:$2 sm:$0xff] }
 0x404   : > { %3160 = vst [vmem:[#allocation2 + $0x70] sm:$0xff] %v3144_v29  ;;  %v3176_v15 = vld [vmem:[#allocation2 + $0x55] ss:$2 sm:$0xff]  ;;  %v3168_v39 = vld [vmem:[#allocation2 + $0x54] ss:$2 sm:$0xff]  ;;  %v3250_v54 = vpack.c.bf16 %v3220_v10, %v3219_v18 }
 0x405   : > { %v3192_v50 = vld [vmem:[#allocation2 + $0x57] ss:$2 sm:$0xff]  ;;  %v3129_v51 = vmul.f32 0.5, %v3113_v47  ;;  %v3264_v48 = vpack.c.bf16 %v3176_v15, %v3175_v12  ;;  %v3263_v52 = vpack.c.bf16 %v3168_v39, %v3167_v3  ;;  %v3184_v53 = vld [vmem:[#allocation2 + $0x56] ss:$2 sm:$0xff]  ;;  %8872 = vmatpush3.bf16.msra.mxu1 %v10023_v34  ;;  %v10035_v47 = vld [vmem:[%s12947_s7 + $0x228] sm:$0xff]  }
 0x406   : > { %v3266_v5 = vpack.c.bf16 %v3192_v50, %v3191_v22  ;;  %v10389_v33 = vpop.eup %10388  ;;  %v3265_v42 = vpack.c.bf16 %v3184_v53, %v3183_v32  ;;  %8912 = vmatpush3.bf16.msra.mxu0 %v10025_v38  ;;  %8873 = vmatprep.subr.bf16.mxu1 %v10026_v40  ;;  %v3196_v17 = vld [vmem:[#allocation2 + $0x18] ss:$2 sm:$0xff]  ;;  %v3206_v28 = vld [vmem:[#allocation2 + $0x39] ss:$2 sm:$0xff]  ;;  %v3205_v3 = vld [vmem:[#allocation2 + $0x29] ss:$2 sm:$0xff] }
 0x407   : > { %v3145_v14 = vmul.f32 %v3129_v51, %v11496_v37  ;;  %v3114_v24 = vadd.f32 1.0, %v10389_v33  ;;  %3978 = vmatprep.mubr.bf16.mxu1 %v3264_v48  ;;  %8913 = vmatprep.subr.bf16.mxu0 %v10028_v61  ;;  %v3212_v20 = vld [vmem:[#allocation2 + $0x1a] ss:$2 sm:$0xff]  ;;  %v3211_v62 = vld [vmem:[#allocation2 + $0xa] ss:$2 sm:$0xff]  ;;  %v3247_v12 = vpack.c.bf16 %v3196_v17, %v3195_v0  ;;  %v3258_v31 = vpack.c.bf16 %v3206_v28, %v3205_v3 }
 0x408   : > { %4043 = vmatprep.mubr.bf16.mxu0 %v3266_v5  ;;  %3979 = vmatmul.mubr.bf16.gmra.mxu1 %v3263_v52  ;;  %v10031_v55 = vld [vmem:[%s12947_s7 + $0x238] sm:$0xff]   ;;  %v3249_v22 = vpack.c.bf16 %v3212_v20, %v3211_v62  ;;  %v10032_v32 = vld [vmem:[%s12947_s7 + $0x270] sm:$0xff]   ;;  %v10034_v38 = vld [vmem:[%s12947_s7 + $0x268] sm:$0xff]  }
 0x409   : > { %4044 = vmatmul.mubr.bf16.gmra.mxu0 %v3265_v42  ;;  %3161 = vst [vmem:[#allocation2 + $0x78] sm:$0xff] %v3145_v14  ;;  %v3130_v6 = vmul.f32 0.5, %v3114_v24  ;;  %8874 = vmatpush3.bf16.msra.mxu1 %v10027_v57  ;;  %v3221_v34 = vld [vmem:[#allocation2 + $0x2b] ss:$2 sm:$0xff]  ;;  %v3198_v40 = vld [vmem:[#allocation2 + $0x38] ss:$2 sm:$0xff] }
 0x40a   : > { %8914 = vmatpush3.bf16.msra.mxu0 %v10029_v43  ;;  %8939 = vmatprep.subr.bf16.mxu1 %v10030_v21  ;;  %v3260_v35 = vpack.c.bf16 %v11586_v41, %v3221_v34  ;;  %v10033_v29 = vld [vmem:[%s12947_s7 + $0x230] sm:$0xff]   ;;  %v3208_v15 = vld [vmem:[#allocation2 + $0x59] ss:$2 sm:$0xff]  ;;  %v3200_v61 = vld [vmem:[#allocation2 + $0x58] ss:$2 sm:$0xff] }
 0x40b   : > { %v3146_v23 = vmul.f32 %v3130_v6, %v11520_v44  ;;  %v3177_v59 = vld [vmem:[#allocation2 + $0x65] ss:$2 sm:$0xff]  ;;  %v3169_v1 = vld [vmem:[#allocation2 + $0x64] ss:$2 sm:$0xff]  ;;  %v3248_v44 = vpack.c.bf16 %v3204_v27, %v3203_v49  ;;  %v3268_v52 = vpack.c.bf16 %v3208_v15, %v11590_v26  ;;  %v10039_v26 = vld [vmem:[%s12947_s7 + $0x218] sm:$0xff]   ;;  %v3267_v43 = vpack.c.bf16 %v3200_v61, %v11601_v63 }
 0x40c   : > { %v3193_v8 = vld [vmem:[#allocation2 + $0x67] ss:$2 sm:$0xff]  ;;  %v3185_v30 = vld [vmem:[#allocation2 + $0x66] ss:$2 sm:$0xff] }
 0x40d   : > { %3162 = vst [vmem:[#allocation2 + $0x80] sm:$0xff] %v3146_v23  ;;  %v3197_v41 = vld [vmem:[#allocation2 + $0x28] ss:$2 sm:$0xff]  ;;  %v3224_v39 = vld [vmem:[#allocation2 + $0x5b] ss:$2 sm:$0xff] }
 0x40e   : > { %v3213_v50 = vld [vmem:[#allocation2 + $0x2a] ss:$2 sm:$0xff]  ;;  %v3257_v51 = vpack.c.bf16 %v3198_v40, %v3197_v41  ;;  %v10036_v5 = vld [vmem:[%s12947_s7 + $0x260] sm:$0xff]   ;;  %v3270_v53 = vpack.c.bf16 %v3224_v39, %v11599_v19  ;;  %v3209_v14 = vld [vmem:[#allocation2 + $0x69] ss:$2 sm:$0xff] }
 0x40f   : > { %v3259_v48 = vpack.c.bf16 %v11588_v25, %v3213_v50  ;;  %v10037_v57 = vld [vmem:[%s12947_s7 + $0x220] sm:$0xff]   ;;  %v10038_v25 = vld [vmem:[%s12947_s7 + $0x258] sm:$0xff]   ;;  %v10040_v24 = vld [vmem:[%s12947_s7 + $0x250] sm:$0xff]  }
 0x410   : > { %v3216_v33 = vld [vmem:[#allocation2 + $0x5a] ss:$2 sm:$0xff]  ;;  %v3225_v23 = vld [vmem:[#allocation2 + $0x6b] ss:$2 sm:$0xff] }
 0x411   : > { %v3269_v21 = vpack.c.bf16 %v3216_v33, %v11603_v58  ;;  %v10041_v10 = vld [vmem:[%s12947_s7 + $0x210] sm:$0xff]   ;;  %v10042_v63 = vld [vmem:[%s12947_s7 + $0x248] sm:$0xff]   ;;  %v10053_v40 = vld [vmem:[%s12949_s9 + $0x60] sm:$0xff]  }
 0x412   : > { %v3227_v49 = vld [vmem:[#allocation2 + $0xc] ss:$2 sm:$0xff]  ;;  %v3240_v17 = vld [vmem:[#allocation2 + $0x5d] ss:$2 sm:$0xff]  ;;  %v3232_v62 = vld [vmem:[#allocation2 + $0x5c] ss:$2 sm:$0xff] }
 0x413   : > { %v3229_v20 = vld [vmem:[#allocation2 + $0x2c] ss:$2 sm:$0xff]  ;;  %v3272_v0 = vpack.c.bf16 %v3240_v17, %v11605_v45  ;;  %v10066_v61 = vld [vmem:[%s12949_s9] sm:$0xff]  }
 0x414   : > { %v3178_v37 = vld [vmem:[#allocation2 + $0x75] ss:$2 sm:$0xff]  ;;  %v3170_v13 = vld [vmem:[#allocation2 + $0x74] ss:$2 sm:$0xff]  ;;  %v3261_v28 = vpack.c.bf16 %v11594_v4, %v3229_v20  ;;  %v10058_v39 = vld [vmem:[%s12949_s9 + $0xa8] sm:$0xff]  }
 0x415   : > { %v3194_v60 = vld [vmem:[#allocation2 + $0x77] ss:$2 sm:$0xff]  ;;  %v3274_v9 = vpack.c.bf16 %v3178_v37, %v3177_v59  ;;  %v3273_v36 = vpack.c.bf16 %v3170_v13, %v3169_v1  ;;  %v3186_v56 = vld [vmem:[#allocation2 + $0x76] ss:$2 sm:$0xff] }
 0x416   : > { %v3276_v11 = vpack.c.bf16 %v3194_v60, %v3193_v8  ;;  %v3275_v16 = vpack.c.bf16 %v3186_v56, %v3185_v30  ;;  %v3210_v42 = vld [vmem:[#allocation2 + $0x79] ss:$2 sm:$0xff]  ;;  %v3202_v58 = vld [vmem:[#allocation2 + $0x78] ss:$2 sm:$0xff]  ;;  %v3201_v1 = vld [vmem:[#allocation2 + $0x68] ss:$2 sm:$0xff] }
 0x417   : > { %3986 = vmatprep.mubr.bf16.mxu1 %v3274_v9  ;;  %v3226_v19 = vld [vmem:[#allocation2 + $0x7b] ss:$2 sm:$0xff]  ;;  %v3278_v6 = vpack.c.bf16 %v3210_v42, %v3209_v14  ;;  %v3218_v59 = vld [vmem:[#allocation2 + $0x7a] ss:$2 sm:$0xff]  ;;  %v3217_v37 = vld [vmem:[#allocation2 + $0x6a] ss:$2 sm:$0xff]  ;;  %v3277_v13 = vpack.c.bf16 %v3202_v58, %v3201_v1 }
 0x418   : > { %4051 = vmatprep.mubr.bf16.mxu0 %v3276_v11  ;;  %3987 = vmatmul.mubr.bf16.gmra.mxu1 %v3273_v36  ;;  %v3280_v27 = vpack.c.bf16 %v3226_v19, %v3225_v23  ;;  %v3236_v8 = vld [vmem:[#allocation2 + $0x1d] ss:$2 sm:$0xff]  ;;  %v3279_v9 = vpack.c.bf16 %v3218_v59, %v3217_v37  ;;  %v3235_v11 = vld [vmem:[#allocation2 + $0xd] ss:$2 sm:$0xff] }
 0x419   : > { %4052 = vmatmul.mubr.bf16.gmra.mxu0 %v3275_v16  ;;  %4092 = vmatprep.mubr.bf16.mxu1 %v3248_v44  ;;  %v10043_v60 = vld [vmem:[%s12947_s7 + $0x208] sm:$0xff]   ;;  %v10044_v36 = vld [vmem:[%s12947_s7 + $0x240] sm:$0xff]   ;;  %v3252_v30 = vpack.c.bf16 %v3236_v8, %v3235_v11  ;;  %v10046_v4 = vld [vmem:[%s12949_s9 + $0x78] sm:$0xff]  }
 0x41a   : > { %4157 = vmatprep.mubr.bf16.mxu0 %v3250_v54  ;;  %v10045_v56 = vld [vmem:[%s12947_s7 + $0x200] sm:$0xff]   ;;  %v3237_v44 = vld [vmem:[#allocation2 + $0x2d] ss:$2 sm:$0xff]  ;;  %8979 = vmatprep.subr.bf16.mxu0 %v10046_v4 }
 0x41b   : > { %v3228_v16 = vld [vmem:[#allocation2 + $0x1c] ss:$2 sm:$0xff]  ;;  %v3262_v54 = vpack.c.bf16 %v11592_v46, %v3237_v44  ;;  %v3233_v46 = vld [vmem:[#allocation2 + $0x6c] ss:$2 sm:$0xff] }
 0x41c   : > { %v3251_v18 = vpack.c.bf16 %v3228_v16, %v3227_v49  ;;  %v10047_v45 = vld [vmem:[%s12949_s9 + $0x38] sm:$0xff]   ;;  %v10049_v34 = vld [vmem:[%s12949_s9 + $0x30] sm:$0xff]   ;;  %v10068_v42 = vld [vmem:[%s12949_s9 + $0x88] sm:$0xff]  }
 0x41d   : > { %v10055_v15 = vld [vmem:[%s12949_s9 + $0xb0] sm:$0xff]   ;;  %v10056_v41 = vld [vmem:[%s12949_s9 + $0x58] sm:$0xff]  }
 0x41e   : > { %v10057_v50 = vld [vmem:[%s12949_s9 + $0x18] sm:$0xff]   ;;  %v10067_v33 = vld [vmem:[%s12949_s9 + $0x90] sm:$0xff]  }
 0x420   : > { %4093 = vmatmul.mubr.bf16.vlgmr.msra.gmra.mxu1 %v3247_v12  ;;  %v3271_v12 = vpack.c.bf16 %v3232_v62, %v11607_v7  ;;  %v10048_v7 = vld [vmem:[%s12949_s9 + $0x70] sm:$0xff]  }
 0x421   : > { %4158 = vmatmul.mubr.bf16.vlgmr.msra.gmra.mxu0 %v3249_v22  ;;  %8940 = vmatpush3.bf16.msra.mxu1 %v10031_v55  ;;  %v3242_v55 = vld [vmem:[#allocation2 + $0x7d] ss:$2 sm:$0xff]  ;;  %v3241_v22 = vld [vmem:[#allocation2 + $0x6d] ss:$2 sm:$0xff] }
 0x422   : > { %4100 = vmatprep.mubr.bf16.mxu1 %v3258_v31  ;;  %4165 = vmatprep.mubr.bf16.mxu0 %v3260_v35  ;;  %v3282_v3 = vpack.c.bf16 %v3242_v55, %v3241_v22  ;;  %v10050_v35 = vld [vmem:[%s12949_s9 + $0x68] sm:$0xff]  }
 0x423   : > { %8941 = vmatprep.subr.bf16.mxu1 %v10032_v32  ;;  %v3234_v32 = vld [vmem:[#allocation2 + $0x7c] ss:$2 sm:$0xff]  ;;  %8980 = vmatpush3.bf16.msra.mxu0 %v10047_v45 }
 0x424   : > { %v3281_v31 = vpack.c.bf16 %v3234_v32, %v3233_v46  ;;  %8981 = vmatprep.subr.bf16.mxu0 %v10048_v7 }
 0x425   : > { %8942 = vmatpush3.bf16.msra.mxu1 %v10033_v29  ;;  %v10051_v29 = vld [vmem:[%s12949_s9 + $0x28] sm:$0xff]  }
 0x426   : > { %8943 = vmatprep.subr.bf16.mxu1 %v10034_v38  ;;  %v10052_v38 = vld [vmem:[%s12949_s9 + $0xb8] sm:$0xff]  }
 0x427   : > { %8982 = vmatpush3.bf16.msra.mxu0 %v10049_v34 }
 0x428   : > { %4101 = vmatmul.mubr.bf16.gmra.mxu1 %v3257_v51  ;;  %8983 = vmatprep.subr.bf16.mxu0 %v10050_v35  ;;  %v10059_v51 = vld [vmem:[%s12949_s9 + $0x50] sm:$0xff]  }
 0x429   : > { %4166 = vmatmul.mubr.bf16.gmra.mxu0 %v3259_v48  ;;  %8944 = vmatpush3.bf16.msra.mxu1 %v10035_v47  ;;  %v10054_v47 = vld [vmem:[%s12949_s9 + $0x20] sm:$0xff]   ;;  %v10060_v48 = vld [vmem:[%s12949_s9 + $0x10] sm:$0xff]  }
 0x42a   : > { %4108 = vmatprep.mubr.bf16.mxu1 %v3268_v52  ;;  %4173 = vmatprep.mubr.bf16.mxu0 %v3270_v53  ;;  %v10062_v52 = vld [vmem:[%s12949_s9 + $0x48] sm:$0xff]  }
 0x42b   : > { %8945 = vmatprep.subr.bf16.mxu1 %v10036_v5  ;;  %8984 = vmatpush3.bf16.msra.mxu0 %v10051_v29  ;;  %v10061_v5 = vld [vmem:[%s12949_s9 + $0xa0] sm:$0xff]   ;;  %v10063_v53 = vld [vmem:[%s12949_s9 + $0x8] sm:$0xff]  }
 0x42c   : > { %8985 = vmatprep.subr.bf16.mxu0 %v10053_v40 }
 0x42d   : > { %8946 = vmatpush3.bf16.msra.mxu1 %v10037_v57  ;;  %v10064_v57 = vld [vmem:[%s12949_s9 + $0x98] sm:$0xff]  }
 0x42e   : > { %8947 = vmatprep.subr.bf16.mxu1 %v10038_v25  ;;  %v10065_v25 = vld [vmem:[%s12949_s9 + $0x40] sm:$0xff]  }
 0x42f   : > { %8986 = vmatpush3.bf16.msra.mxu0 %v10054_v47 }
 0x430   : > { %4109 = vmatmul.mubr.bf16.gmra.mxu1 %v3267_v43  ;;  %8987 = vmatprep.subr.bf16.mxu0 %v10056_v41 }
 0x431   : > { %4174 = vmatmul.mubr.bf16.gmra.mxu0 %v3269_v21  ;;  %8948 = vmatpush3.bf16.msra.mxu1 %v10039_v26  ;;  %v10069_v26 = vld [vmem:[%s12949_s9 + $0x80] sm:$0xff]  }
 0x432   : > { %4116 = vmatprep.mubr.bf16.mxu1 %v3278_v6  ;;  %4181 = vmatprep.mubr.bf16.mxu0 %v3280_v27 }
 0x433   : > { %8949 = vmatprep.subr.bf16.mxu1 %v10040_v24  ;;  %8988 = vmatpush3.bf16.msra.mxu0 %v10057_v50  ;;  %v11803_v50 = vld [vmem:[%s12948_s8] ss:$0 sm:$0xff] }
 0x434   : > { %8989 = vmatprep.subr.bf16.mxu0 %v10059_v51 }
 0x435   : > { %8950 = vmatpush3.bf16.msra.mxu1 %v10041_v10 }
 0x436   : > { %8951 = vmatprep.subr.bf16.mxu1 %v10042_v63 }
 0x437   : > { %8990 = vmatpush3.bf16.msra.mxu0 %v10060_v48 }
 0x438   : > { %4117 = vmatmul.mubr.bf16.gmra.mxu1 %v3277_v13  ;;  %8991 = vmatprep.subr.bf16.mxu0 %v10062_v52 }
 0x439   : > { %4182 = vmatmul.mubr.bf16.gmra.mxu0 %v3279_v9  ;;  %8952 = vmatpush3.bf16.msra.mxu1 %v10043_v60 }
 0x43a   : > { %4222 = vmatprep.mubr.bf16.mxu1 %v3252_v30  ;;  %8953 = vmatprep.subr.bf16.mxu1 %v10044_v36 }
 0x43b   : > { %8992 = vmatpush3.bf16.msra.mxu0 %v10063_v53 }
 0x43c   : > { %8993 = vmatprep.subr.bf16.mxu0 %v10065_v25 }
 0x43d   : > { %8954 = vmatpush3.bf16.msra.mxu1 %v10045_v56 }
 0x43e   : > { %9473 = vmatprep.subr.bf16.mxu1 %v10052_v38 }
 0x43f   : > { %8994 = vmatpush3.bf16.msra.mxu0 %v10066_v61 }
 0x440   : > { %4223 = vmatmul.mubr.bf16.vlgmr.msra.gmra.mxu1 %v3251_v18 }
 0x441   : > { %4230 = vmatprep.mubr.bf16.mxu1 %v3262_v54  ;;  %9474 = vmatpush3.bf16.msra.mxu1 %v10052_v38 }
 0x442   : > { %9475 = vmatprep.subr.bf16.mxu1 %v10055_v15 }
 0x445   : > { %9476 = vmatpush3.bf16.msra.mxu1 %v10055_v15 }
 0x446   : > { %9477 = vmatprep.subr.bf16.mxu1 %v10058_v39 }
 0x448   : > { %4231 = vmatmul.mubr.bf16.gmra.mxu1 %v3261_v28 }
 0x449   : > { %4238 = vmatprep.mubr.bf16.mxu1 %v3272_v0  ;;  %9478 = vmatpush3.bf16.msra.mxu1 %v10058_v39 }
 0x44a   : > { %9479 = vmatprep.subr.bf16.mxu1 %v10061_v5 }
 0x44d   : > { %9480 = vmatpush3.bf16.msra.mxu1 %v10061_v5 }
 0x44e   : > { %9481 = vmatprep.subr.bf16.mxu1 %v10064_v57 }
 0x450   : > { %4239 = vmatmul.mubr.bf16.gmra.mxu1 %v3271_v12 }
 0x451   : > { %4246 = vmatprep.mubr.bf16.mxu1 %v3282_v3  ;;  %9482 = vmatpush3.bf16.msra.mxu1 %v10064_v57 }
 0x452   : > { %9483 = vmatprep.subr.bf16.mxu1 %v10067_v33 }
 0x455   : > { %9484 = vmatpush3.bf16.msra.mxu1 %v10067_v33 }
 0x456   : > { %9485 = vmatprep.subr.bf16.mxu1 %v10068_v42 }
 0x458   : > { %4247 = vmatmul.mubr.bf16.gmra.mxu1 %v3281_v31 }
 0x459   : > { %9486 = vmatpush3.bf16.msra.mxu1 %v10068_v42 }
 0x45a   : > { %9487 = vmatprep.subr.bf16.mxu1 %v10069_v26 }
 0x45d   : > { %9488 = vmatpush3.bf16.msra.mxu1 %v10069_v26 }
 0x4ab   : > { %v8795_v19 = vpop.f32.mrf.mxu1  ;;  %v8835_v43 = vpop.f32.mrf.mxu0 }
 0x4ad   : > { %v8796_v21 = vpop.f32.mrf.mxu1  ;;  %v8836_v14 = vpop.f32.mrf.mxu0 }
 0x4ae   : > { %v8797_v41 = vadd.f32 %v8796_v21, %v8795_v19  ;;  %v8837_v25 = vadd.f32 %v8836_v14, %v8835_v43 }
 0x4af   : > { %v8798_v24 = vpop.f32.mrf.mxu1  ;;  %v8838_v6 = vpop.f32.mrf.mxu0 }
 0x4b0   : > { %v3965_v5 = vadd.f32 %v8797_v41, %v11803_v50 }
 0x4b1   : > { %v8799_v23 = vpop.f32.mrf.mxu1  ;;  %v8839_v27 = vpop.f32.mrf.mxu0 }
 0x4b2   : > { %v8800_v52 = vadd.f32 %v8799_v23, %v8798_v24  ;;  %v4030_v42 = vadd.f32 %v8837_v25, %v3965_v5 }
 0x4b4   : > { %v3968_v26 = vadd.f32 %v8800_v52, %v11803_v50 }
 0x4b8   : > { %v8801_v10 = vpop.f32.mrf.mxu1 }
 0x4b9   : > { %v11758_v63 = vpop.f32.mrf.mxu0 }
 0x4ba   : > { %v8802_v58 = vpop.f32.mrf.mxu1 }
 0x4bb   : > { %v11760_v59 = vpop.f32.mrf.mxu0  ;;  %v8803_v19 = vadd.f32 %v8802_v58, %v8801_v10 }
 0x4bc   : > { %v8804_v8 = vpop.f32.mrf.mxu1  ;;  %v8843_v43 = vadd.f32 %v11760_v59, %v11758_v63 }
 0x4bd   : > { %v11762_v1 = vpop.f32.mrf.mxu0  ;;  %v3973_v24 = vadd.f32 %v8803_v19, %v11803_v50 }
 0x4be   : > { %v8805_v37 = vpop.f32.mrf.mxu1 }
 0x4bf   : > { %v11764_v60 = vpop.f32.mrf.mxu0  ;;  %v8806_v23 = vadd.f32 %v8805_v37, %v8804_v8 }
 0x4c0   : > { %v8846_v8 = vadd.f32 %v11764_v60, %v11762_v1 }
 0x4c8   : > { %v11766_v13 = vpop.f32.mrf.mxu1 }
 0x4c9   : > { %v11768_v9 = vpop.f32.mrf.mxu0 }
 0x4ca   : > { %v11770_v11 = vpop.f32.mrf.mxu1 }
 0x4cb   : > { %v11772_v36 = vpop.f32.mrf.mxu0 }
 0x4cc   : > { %v11774_v30 = vpop.f32.mrf.mxu1  ;;  %v8849_v1 = vadd.f32 %v11772_v36, %v11768_v9 }
 0x4cd   : > { %v11776_v56 = vpop.f32.mrf.mxu0 }
 0x4ce   : > { %v11778_v16 = vpop.f32.mrf.mxu1 }
 0x4cf   : > { %v11780_v49 = vpop.f32.mrf.mxu0 }
 0x4d8   : > { %v11782_v18 = vpop.f32.mrf.mxu1 }
 0x4d9   : > { %v11784_v44 = vpop.f32.mrf.mxu0 }
 0x4da   : > { %v11786_v54 = vpop.f32.mrf.mxu1 }
 0x4db   : > { %v11788_v17 = vpop.f32.mrf.mxu0 }
 0x4dc   : > { %12975 = vst [vmem:[#allocation4_spill] sm:$0xff] %v11788_v17  ;;  %v11790_v20 = vpop.f32.mrf.mxu1 }
 0x4dd   : > { %v11792_v28 = vpop.f32.mrf.mxu0 }
 0x4de   : > { %12976 = vst [vmem:[#allocation5_spill] sm:$0xff] %v11792_v28  ;;  %v11794_v0 = vpop.f32.mrf.mxu1 }
 0x4df   : > { %v11796_v62 = vpop.f32.mrf.mxu0 }
 0x4e0   : > { %12977 = vst [vmem:[#allocation6_spill] sm:$0xff] %v11796_v62  ;;  %v8875_v55 = vpop.f32.mrf.mxu1  ;;  %v8840_v62 = vadd.f32 %v8839_v27, %v8838_v6  ;;  %v8809_v6 = vadd.f32 %v11770_v11, %v11766_v13 }
 0x4e1   : > { %v8915_v12 = vpop.f32.mrf.mxu0 }
 0x4e2   : > { %v8876_v22 = vpop.f32.mrf.mxu1  ;;  %v4033_v41 = vadd.f32 %v8840_v62, %v3968_v26  ;;  %v3976_v62 = vadd.f32 %v8806_v23, %v11803_v50  ;;  %v3981_v13 = vadd.f32 %v8809_v6, %v11803_v50 }
 0x4e3   : > { %v8916_v3 = vpop.f32.mrf.mxu0  ;;  %v8877_v61 = vadd.f32 %v8876_v22, %v8875_v55 }
 0x4e4   : > { %v8878_v32 = vpop.f32.mrf.mxu1 }
 0x4e5   : > { %v8918_v46 = vpop.f32.mrf.mxu0  ;;  %v4095_v28 = vadd.f32 %v8877_v61, %v4030_v42  ;;  %v4046_v61 = vadd.f32 %v8849_v1, %v3981_v13  ;;  %v8852_v42 = vadd.f32 %v11780_v49, %v11776_v56 }
 0x4e6   : > { %v8879_v31 = vpop.f32.mrf.mxu1 }
 0x4e7   : > { %v8919_v45 = vpop.f32.mrf.mxu0 }
 0x4e8   : > { %v8881_v4 = vpop.f32.mrf.mxu1 }
 0x4e9   : > { %v8921_v35 = vpop.f32.mrf.mxu0 }
 0x4ea   : > { %v8882_v7 = vpop.f32.mrf.mxu1 }
 0x4eb   : > { %v8922_v40 = vpop.f32.mrf.mxu0  ;;  %v8883_v10 = vadd.f32 %v8882_v7, %v8881_v4 }
 0x4ec   : > { %v8884_v34 = vpop.f32.mrf.mxu1  ;;  %v8923_v4 = vadd.f32 %v8922_v40, %v8921_v35 }
 0x4ed   : > { %v11805_v39 = vpop.f32.mrf.mxu0 }
 0x4ee   : > { %v8885_v29 = vpop.f32.mrf.mxu1 }
 0x4ef   : > { %v8925_v53 = vpop.f32.mrf.mxu0 }
 0x4f0   : > { %v8887_v38 = vpop.f32.mrf.mxu1  ;;  %v8926_v9 = vadd.f32 %v8925_v53, %v11805_v39 }
 0x4f1   : > { %v8927_v21 = vpop.f32.mrf.mxu0 }
 0x4f2   : > { %v8888_v47 = vpop.f32.mrf.mxu1 }
 0x4f3   : > { %v8928_v14 = vpop.f32.mrf.mxu0  ;;  %v8889_v60 = vadd.f32 %v8888_v47, %v8887_v38 }
 0x4f4   : > { %v11798_v15 = vpop.f32.mrf.mxu1 }
 0x4f5   : > { %v8930_v63 = vpop.f32.mrf.mxu0  ;;  %v4111_v38 = vadd.f32 %v8889_v60, %v4046_v61 }
 0x4f6   : > { %v11807_v51 = vpop.f32.mrf.mxu1 }
 0x4f7   : > { %v8931_v7 = vpop.f32.mrf.mxu0  ;;  %v8892_v19 = vadd.f32 %v11807_v51, %v11798_v15 }
 0x4f8   : > { %v11809_v48 = vpop.f32.mrf.mxu1 }
 0x4f9   : > { %12978 = vst [vmem:[#allocation7_spill] sm:$0xff] %v11809_v48  ;;  %v8880_v48 = vadd.f32 %v8879_v31, %v8878_v32  ;;  %v4038_v32 = vadd.f32 %v8843_v43, %v3973_v24  ;;  %v8920_v31 = vadd.f32 %v8919_v45, %v8918_v46  ;;  %v8812_v46 = vadd.f32 %v11778_v16, %v11774_v30  ;;  %v8933_v40 = vpop.f32.mrf.mxu0  ;;  %v12980_v43 = vld [vmem:[#allocation4_spill] sm:$0xff] }
 0x4fa   : > { %v11812_v57 = vpop.f32.mrf.mxu1  ;;  %v8815_v30 = vadd.f32 %v11786_v54, %v11782_v18  ;;  %v8818_v24 = vadd.f32 %v11794_v0, %v11790_v20  ;;  %v8855_v56 = vadd.f32 %v12980_v43, %v11784_v44 }
 0x4fb   : > { %12979 = vst [vmem:[#allocation8_spill] sm:$0xff] %v11812_v57  ;;  %v8917_v57 = vadd.f32 %v8916_v3, %v8915_v12  ;;  %v4098_v5 = vadd.f32 %v8880_v48, %v4033_v41  ;;  %v8886_v12 = vadd.f32 %v8885_v29, %v8884_v34  ;;  %v4041_v3 = vadd.f32 %v8846_v8, %v3976_v62  ;;  %v8934_v51 = vpop.f32.mrf.mxu0  ;;  %v12984_v8 = vld [vmem:[#allocation6_spill] sm:$0xff] }
 0x4fc   : > { %v11814_v33 = vpop.f32.mrf.mxu1  ;;  %v3984_v35 = vadd.f32 %v8812_v46, %v11803_v50  ;;  %v3989_v54 = vadd.f32 %v8815_v30, %v11803_v50  ;;  %v8929_v41 = vadd.f32 %v8928_v14, %v8927_v21  ;;  %v3992_v44 = vadd.f32 %v8818_v24, %v11803_v50 }
 0x4fd   : > { %v4160_v22 = vadd.f32 %v8917_v57, %v4095_v28  ;;  %v4163_v37 = vadd.f32 %v8920_v31, %v4098_v5  ;;  %v4103_v28 = vadd.f32 %v8883_v10, %v4038_v32  ;;  %v4106_v29 = vadd.f32 %v8886_v12, %v4041_v3  ;;  %v12983_v31 = vld [vmem:[#allocation5_spill] sm:$0xff] }
 0x4fe   : > { %v11817_v2 = vpop.f32.mrf.mxu1  ;;  %v4049_v53 = vadd.f32 %v8852_v42, %v3984_v35  ;;  %v4176_v49 = vadd.f32 %v8929_v41, %v4111_v38  ;;  %v4054_v0 = vadd.f32 %v8855_v56, %v3989_v54  ;;  %v8932_v32 = vadd.f32 %v8931_v7, %v8930_v63 }
 0x4ff   : > { %v4168_v34 = vadd.f32 %v8923_v4, %v4103_v28  ;;  %v4171_v26 = vadd.f32 %v8926_v9, %v4106_v29  ;;  %v8936_v28 = vpop.f32.mrf.mxu0  ;;  %v8898_v3 = vadd.f32 %v11817_v2, %v11814_v33  ;;  %v8935_v46 = vadd.f32 %v8934_v51, %v8933_v40 }
 0x500   : > { %v8955_v17 = vpop.f32.mrf.mxu1  ;;  %v4114_v6 = vadd.f32 %v8892_v19, %v4049_v53 }
 0x502   : > { %v8956_v55 = vpop.f32.mrf.mxu1 }
 0x503   : > { %v8957_v58 = vadd.f32 %v8956_v55, %v8955_v17  ;;  %v12981_v55 = vld [vmem:[#allocation7_spill] sm:$0xff] }
 0x504   : > { %v8958_v27 = vpop.f32.mrf.mxu1 }
 0x505   : > { %v11825_v52 = vadd.f32 %v8957_v58, %v4160_v22  ;;  %v12982_v22 = vld [vmem:[#allocation8_spill] sm:$0xff] }
 0x506   : > { %v8959_v59 = vpop.f32.mrf.mxu1  ;;  %v8895_v15 = vadd.f32 %v12982_v22, %v12981_v55 }
 0x507   : > { %4255 = vst [vmem:[#allocation2 + $0x8] sm:$0xff] %v11825_v52  ;;  %v8960_v17 = vadd.f32 %v8959_v59, %v8958_v27  ;;  %v8858_v59 = vadd.f32 %v12984_v8, %v12983_v31  ;;  %v10081_v31 = vld [vmem:[%s12951_s11 + $0xa8] sm:$0xff]   ;;  %v10082_v8 = vld [vmem:[%s12951_s11 + $0x18] sm:$0xff]  }
 0x508   : > { %v8961_v11 = vpop.f32.mrf.mxu1 }
 0x509   : > { %v11833_v45 = vadd.f32 %v8960_v17, %v4163_v37  ;;  %v4119_v37 = vadd.f32 %v8895_v15, %v4054_v0  ;;  %v4057_v1 = vadd.f32 %v8858_v59, %v3992_v44  ;;  %v10077_v0 = vld [vmem:[%s12951_s11 + $0x60] sm:$0xff]   ;;  %v10083_v59 = vld [vmem:[%s12951_s11 + $0x50] sm:$0xff]  }
 0x50a   : > { %v8962_v48 = vpop.f32.mrf.mxu1  ;;  %v10079_v44 = vld [vmem:[%s12951_s11 + $0x20] sm:$0xff]  }
 0x50b   : > { %4256 = vst [vmem:[#allocation2 + $0x10] sm:$0xff] %v11833_v45  ;;  %v8963_v57 = vadd.f32 %v8962_v48, %v8961_v11  ;;  %v4290_v25 = vpack.c.bf16 %v11833_v45, %v11825_v52  ;;  %v4179_v11 = vadd.f32 %v8932_v32, %v4114_v6  ;;  %v4184_v7 = vadd.f32 %v8935_v46, %v4119_v37  ;;  %v8937_v48 = vpop.f32.mrf.mxu0  ;;  %v10073_v6 = vld [vmem:[%s12951_s11 + $0x30] sm:$0xff]   ;;  %v10080_v32 = vld [vmem:[%s12951_s11 + $0x58] sm:$0xff]   ;;  %v10084_v37 = vld [vmem:[%s12951_s11 + $0xa0] sm:$0xff]  }
 0x50c   : > { %v8964_v16 = vpop.f32.mrf.mxu1  ;;  %v10093_v46 = vld [vmem:[%s12951_s11 + $0x80] sm:$0xff]  }
 0x50d   : > { %v11844_v36 = vadd.f32 %v8963_v57, %v4168_v34  ;;  %4532 = vmatprep.mubr.bf16.mxu0 %v4290_v25  ;;  %v4122_v25 = vadd.f32 %v8898_v3, %v4057_v1  ;;  %v10090_v3 = vld [vmem:[%s12951_s11 + $0x90] sm:$0xff]  }
 0x50e   : > { %v8965_v47 = vpop.f32.mrf.mxu1  ;;  %v4265_v10 = vld [vmem:[#allocation2 + $0x7] sm:$0xff] }
 0x50f   : > { %4257 = vst [vmem:[#allocation2 + $0x18] sm:$0xff] %v11844_v36  ;;  %v8966_v18 = vadd.f32 %v8965_v47, %v8964_v16  ;;  %v8938_v16 = vadd.f32 %v8937_v48, %v8936_v28  ;;  %v10085_v28 = vld [vmem:[%s12951_s11 + $0x10] sm:$0xff]  }
 0x510   : > { %v8967_v39 = vpop.f32.mrf.mxu1 }
 0x511   : > { %v11854_v23 = vadd.f32 %v8966_v18, %v4171_v26  ;;  %v4187_v47 = vadd.f32 %v8938_v16, %v4122_v25  ;;  %v11959_v25 = vld [vmem:[%s12950_s10] ss:$0 sm:$0xff] }
 0x512   : > { %v8968_v5 = vpop.f32.mrf.mxu1  ;;  %v4266_v58 = vld [vmem:[#allocation2 + $0xf] sm:$0xff] }
 0x513   : > { %4258 = vst [vmem:[#allocation2 + $0x20] sm:$0xff] %v11854_v23  ;;  %v8969_v21 = vadd.f32 %v8968_v5, %v8967_v39  ;;  %v4289_v14 = vpack.c.bf16 %v4266_v58, %v4265_v10  ;;  %v4293_v20 = vpack.c.bf16 %v11854_v23, %v11844_v36  ;;  %v4281_v17 = vld [vmem:[#allocation2 + $0x9] sm:$0xff]  ;;  %v10070_v5 = vld [vmem:[%s12951_s11 + $0x78] sm:$0xff]  }
 0x514   : > { %v8970_v27 = vpop.f32.mrf.mxu1  ;;  %v10071_v10 = vld [vmem:[%s12951_s11 + $0x38] sm:$0xff]   ;;  %9031 = vmatprep.subr.bf16.mxu0 %v10070_v5  ;;  %v10072_v58 = vld [vmem:[%s12951_s11 + $0x70] sm:$0xff]  }
 0x515   : > { %v11864_v62 = vadd.f32 %v8969_v21, %v4176_v49  ;;  %4533 = vmatmul.mubr.bf16.vlgmr.msra.gmra.mxu0 %v4289_v14  ;;  %v10074_v21 = vld [vmem:[%s12951_s11 + $0x68] sm:$0xff]   ;;  %v10075_v14 = vld [vmem:[%s12951_s11 + $0xb8] sm:$0xff]  }
 0x516   : > { %v8971_v12 = vpop.f32.mrf.mxu1  ;;  %v4282_v13 = vld [vmem:[#allocation2 + $0x11] sm:$0xff]  ;;  %4540 = vmatprep.mubr.bf16.mxu0 %v4293_v20  ;;  %9032 = vmatpush3.bf16.msra.mxu0 %v10071_v10  ;;  %v10076_v20 = vld [vmem:[%s12951_s11 + $0x28] sm:$0xff]  }
 0x517   : > { %4259 = vst [vmem:[#allocation2 + $0x28] sm:$0xff] %v11864_v62  ;;  %v8972_v50 = vadd.f32 %v8971_v12, %v8970_v27  ;;  %v4291_v63 = vpack.c.bf16 %v4282_v13, %v4281_v17  ;;  %v4267_v29 = vld [vmem:[#allocation2 + $0x17] sm:$0xff]  ;;  %9033 = vmatprep.subr.bf16.mxu0 %v10072_v58  ;;  %9497 = vmatprep.subr.bf16.mxu1 %v10075_v14  ;;  %v10086_v12 = vld [vmem:[%s12951_s11 + $0x48] sm:$0xff]  }
 0x518   : > { %v8973_v4 = vpop.f32.mrf.mxu1  ;;  %v10078_v27 = vld [vmem:[%s12951_s11 + $0xb0] sm:$0xff]   ;;  %v10087_v17 = vld [vmem:[%s12951_s11 + $0x98] sm:$0xff]   ;;  %v10088_v13 = vld [vmem:[%s12951_s11 + $0x8] sm:$0xff]  }
 0x519   : > { %v11871_v60 = vadd.f32 %v8972_v50, %v4179_v11  ;;  %9489 = vmatprep.mubr.bf16.mxu1 %v4291_v63  ;;  %v10089_v11 = vld [vmem:[%s12951_s11 + $0x40] sm:$0xff]   ;;  %v10092_v63 = vld [vmem:[%s12951_s11 + $0x88] sm:$0xff]  }
 0x51a   : > { %v8974_v34 = vpop.f32.mrf.mxu1  ;;  %v4268_v57 = vld [vmem:[#allocation2 + $0x1f] sm:$0xff]  ;;  %9034 = vmatpush3.bf16.msra.mxu0 %v10073_v6 }
 0x51b   : > { %4260 = vst [vmem:[#allocation2 + $0x30] sm:$0xff] %v11871_v60  ;;  %v8975_v61 = vadd.f32 %v8974_v34, %v8973_v4  ;;  %v4292_v2 = vpack.c.bf16 %v4268_v57, %v4267_v29  ;;  %v4296_v33 = vpack.c.bf16 %v11871_v60, %v11864_v62  ;;  %v4283_v38 = vld [vmem:[#allocation2 + $0x19] sm:$0xff]  ;;  %9035 = vmatprep.subr.bf16.mxu0 %v10074_v21 }
 0x51c   : > { %v8976_v30 = vpop.f32.mrf.mxu1  ;;  %v10091_v50 = vld [vmem:[%s12951_s11] sm:$0xff]  }
 0x51d   : > { %v11876_v35 = vadd.f32 %v8975_v61, %v4184_v7  ;;  %4541 = vmatmul.mubr.bf16.gmra.mxu0 %v4292_v2 }
 0x51e   : > { %v8977_v9 = vpop.f32.mrf.mxu1  ;;  %v4284_v40 = vld [vmem:[#allocation2 + $0x21] sm:$0xff]  ;;  %4548 = vmatprep.mubr.bf16.mxu0 %v4296_v33  ;;  %9036 = vmatpush3.bf16.msra.mxu0 %v10076_v20 }
 0x51f   : > { %4261 = vst [vmem:[#allocation2 + $0x38] sm:$0xff] %v11876_v35  ;;  %v8978_v42 = vadd.f32 %v8977_v9, %v8976_v30  ;;  %v4294_v26 = vpack.c.bf16 %v4284_v40, %v4283_v38  ;;  %v4269_v18 = vld [vmem:[#allocation2 + $0x27] sm:$0xff]  ;;  %9037 = vmatprep.subr.bf16.mxu0 %v10077_v0 }
 0x521   : > { %v11879_v19 = vadd.f32 %v8978_v42, %v4187_v47  ;;  %9490 = vmatmul.mubr.bf16.vlgmr.msra.gmra.mxu1 %v4294_v26 }
 0x522   : > { %v4270_v54 = vld [vmem:[#allocation2 + $0x2f] sm:$0xff]  ;;  %9498 = vmatpush3.bf16.msra.mxu1 %v10075_v14  ;;  %9038 = vmatpush3.bf16.msra.mxu0 %v10079_v44 }
 0x523   : > { %4262 = vst [vmem:[#allocation2 + $0x40] sm:$0xff] %v11879_v19  ;;  %v4295_v41 = vpack.c.bf16 %v4270_v54, %v4269_v18  ;;  %v4299_v39 = vpack.c.bf16 %v11879_v19, %v11876_v35  ;;  %v4285_v53 = vld [vmem:[#allocation2 + $0x29] sm:$0xff]  ;;  %9499 = vmatprep.subr.bf16.mxu1 %v10078_v27  ;;  %9039 = vmatprep.subr.bf16.mxu0 %v10080_v32 }
 0x525   : > { %4549 = vmatmul.mubr.bf16.gmra.mxu0 %v4295_v41 }
 0x526   : > { %v4286_v24 = vld [vmem:[#allocation2 + $0x31] sm:$0xff]  ;;  %4556 = vmatprep.mubr.bf16.mxu0 %v4299_v39  ;;  %9500 = vmatpush3.bf16.msra.mxu1 %v10078_v27 }
 0x527   : > { %v4297_v43 = vpack.c.bf16 %v4286_v24, %v4285_v53  ;;  %v4271_v56 = vld [vmem:[#allocation2 + $0x37] sm:$0xff]  ;;  %9501 = vmatprep.subr.bf16.mxu1 %v10081_v31  ;;  %9040 = vmatpush3.bf16.msra.mxu0 %v10082_v8 }
 0x528   : > { %9041 = vmatprep.subr.bf16.mxu0 %v10083_v59 }
 0x529   : > { %9493 = vmatprep.mubr.bf16.mxu1 %v4297_v43 }
 0x52a   : > { %v4287_v49 = vld [vmem:[#allocation2 + $0x39] sm:$0xff]  ;;  %v4288_v55 = vld [vmem:[#allocation2 + $0x41] sm:$0xff]  ;;  %9502 = vmatpush3.bf16.msra.mxu1 %v10081_v31 }
 0x52b   : > { %v4272_v22 = vld [vmem:[#allocation2 + $0x3f] sm:$0xff]  ;;  %v4300_v15 = vpack.c.bf16 %v4288_v55, %v4287_v49  ;;  %9503 = vmatprep.subr.bf16.mxu1 %v10084_v37  ;;  %9042 = vmatpush3.bf16.msra.mxu0 %v10085_v28 }
 0x52c   : > { %v4298_v51 = vpack.c.bf16 %v4272_v22, %v4271_v56  ;;  %9043 = vmatprep.subr.bf16.mxu0 %v10086_v12 }
 0x52d   : > { %9494 = vmatmul.mubr.bf16.gmra.mxu1 %v4300_v15 }
 0x52e   : > { %4557 = vmatmul.mubr.bf16.gmra.mxu0 %v4298_v51  ;;  %9504 = vmatpush3.bf16.msra.mxu1 %v10084_v37 }
 0x52f   : > { %9505 = vmatprep.subr.bf16.mxu1 %v10087_v17  ;;  %9044 = vmatpush3.bf16.msra.mxu0 %v10088_v13 }
 0x530   : > { %9045 = vmatprep.subr.bf16.mxu0 %v10089_v11 }
 0x532   : > { %9506 = vmatpush3.bf16.msra.mxu1 %v10087_v17 }
 0x533   : > { %9507 = vmatprep.subr.bf16.mxu1 %v10090_v3  ;;  %9046 = vmatpush3.bf16.msra.mxu0 %v10091_v50 }
 0x536   : > { %9508 = vmatpush3.bf16.msra.mxu1 %v10090_v3 }
 0x537   : > { %9509 = vmatprep.subr.bf16.mxu1 %v10092_v63 }
 0x53a   : > { %9510 = vmatpush3.bf16.msra.mxu1 %v10092_v63 }
 0x53b   : > { %9511 = vmatprep.subr.bf16.mxu1 %v10093_v46 }
 0x53e   : > { %9512 = vmatpush3.bf16.msra.mxu1 %v10093_v46 }
 0x5d5   : > { %v8995_v4 = vpop.f32.mrf.mxu0 }
 0x5d7   : > { %v8996_v1 = vpop.f32.mrf.mxu0 }
 0x5d8   : > { %v8997_v29 = vadd.f32 %v8996_v1, %v8995_v4 }
 0x5d9   : > { %v8998_v7 = vpop.f32.mrf.mxu0 }
 0x5da   : > { %v4535_v9 = vadd.f32 %v8997_v29, %v11959_v25 }
 0x5db   : > { %v8999_v48 = vpop.f32.mrf.mxu0 }
 0x5dc   : > { %v9000_v30 = vadd.f32 %v8999_v48, %v8998_v7 }
 0x5dd   : > { %v9001_v34 = vpop.f32.mrf.mxu0 }
 0x5de   : > { %v4538_v24 = vadd.f32 %v9000_v30, %v11959_v25 }
 0x5df   : > { %v9002_v57 = vpop.f32.mrf.mxu0 }
 0x5e0   : > { %v9003_v61 = vadd.f32 %v9002_v57, %v9001_v34 }
 0x5e1   : > { %v9491_v2 = vpop.f32.mrf.mxu1  ;;  %v9004_v33 = vpop.f32.mrf.mxu0 }
 0x5e2   : > { %v4543_v16 = vadd.f32 %v9003_v61, %v11959_v25 }
 0x5e3   : > { %v4599_v38 = vpop.f32.mrf.mxu1  ;;  %v9005_v40 = vpop.f32.mrf.mxu0 }
 0x5e4   : > { %v11963_v47 = vadd.f32 %v9491_v2, %v4543_v16  ;;  %v11965_v42 = vadd.f32 %v4599_v38, %v4535_v9  ;;  %v9006_v26 = vadd.f32 %v9005_v40, %v9004_v33 }
 0x5e5   : > { %v9492_v18 = vpop.f32.mrf.mxu1  ;;  %v9007_v54 = vpop.f32.mrf.mxu0 }
 0x5e6   : > { %v4632_v41 = vmul.f32 %v11963_v47, %v11963_v47  ;;  %v4630_v39 = vmul.f32 %v11965_v42, %v11965_v42  ;;  %v4546_v53 = vadd.f32 %v9006_v26, %v11959_v25 }
 0x5e7   : > { %v4602_v43 = vpop.f32.mrf.mxu1  ;;  %v9008_v56 = vpop.f32.mrf.mxu0 }
 0x5e8   : > { %v4640_v49 = vmul.f32 %v4632_v41, %v11963_v47  ;;  %v4638_v55 = vmul.f32 %v4630_v39, %v11965_v42  ;;  %v11975_v22 = vadd.f32 %v9492_v18, %v4546_v53  ;;  %v11977_v15 = vadd.f32 %v4602_v43, %v4538_v24 }
 0x5e9   : > { %v9009_v51 = vadd.f32 %v9008_v56, %v9007_v54  ;;  %v9010_v5 = vpop.f32.mrf.mxu0 }
 0x5ea   : > { %v4648_v10 = vmul.f32 0.044715, %v4640_v49  ;;  %v4646_v58 = vmul.f32 0.044715, %v4638_v55  ;;  %v4633_v6 = vmul.f32 %v11975_v22, %v11975_v22  ;;  %v4631_v21 = vmul.f32 %v11977_v15, %v11977_v15 }
 0x5eb   : > { %v9011_v14 = vpop.f32.mrf.mxu0  ;;  %v4551_v8 = vadd.f32 %v9009_v51, %v11959_v25 }
 0x5ec   : > { %v4656_v20 = vadd.f32 %v4648_v10, %v11963_v47  ;;  %v4654_v0 = vadd.f32 %v4646_v58, %v11965_v42  ;;  %v4641_v27 = vmul.f32 %v4633_v6, %v11975_v22  ;;  %v4639_v44 = vmul.f32 %v4631_v21, %v11977_v15 }
 0x5ed   : > { %v9495_v32 = vpop.f32.mrf.mxu1  ;;  %v9012_v12 = vadd.f32 %v9011_v14, %v9010_v5 }
 0x5ee   : > { %v9013_v31 = vpop.f32.mrf.mxu0  ;;  %v4664_v59 = vmul.f32 0.7978846, %v4656_v20  ;;  %v4662_v37 = vmul.f32 0.7978846, %v4654_v0  ;;  %v4649_v28 = vmul.f32 0.044715, %v4641_v27 }
 0x5ef   : > { %v4647_v17 = vmul.f32 0.044715, %v4639_v44  ;;  %v4615_v13 = vpop.f32.mrf.mxu1  ;;  %v4554_v29 = vadd.f32 %v9012_v12, %v11959_v25 }
 0x5f0   : > { %v9014_v11 = vpop.f32.mrf.mxu0  ;;  %10390 = vtanh.f32 %v4664_v59  ;;  %v4657_v3 = vadd.f32 %v4649_v28, %v11975_v22  ;;  %v11989_v50 = vadd.f32 %v4615_v13, %v4551_v8 }
 0x5f1   : > { %v9015_v63 = vadd.f32 %v9014_v11, %v9013_v31  ;;  %10392 = vtanh.f32 %v4662_v37  ;;  %v4655_v46 = vadd.f32 %v4647_v17, %v11977_v15  ;;  %v9496_v4 = vpop.f32.mrf.mxu1 }
 0x5f2   : > { %v9016_v1 = vpop.f32.mrf.mxu0  ;;  %v4665_v7 = vmul.f32 0.7978846, %v4657_v3  ;;  %v4634_v48 = vmul.f32 %v11989_v50, %v11989_v50 }
 0x5f3   : > { %v4559_v34 = vadd.f32 %v9015_v63, %v11959_v25  ;;  %v4663_v57 = vmul.f32 0.7978846, %v4655_v46  ;;  %v4618_v61 = vpop.f32.mrf.mxu1 }
 0x5f4   : > { %v9017_v2 = vpop.f32.mrf.mxu0  ;;  %10394 = vtanh.f32 %v4665_v7  ;;  %v4642_v33 = vmul.f32 %v4634_v48, %v11989_v50  ;;  %v11999_v16 = vadd.f32 %v4618_v61, %v4554_v29 }
 0x5f5   : > { %v11997_v30 = vadd.f32 %v9495_v32, %v4559_v34  ;;  %10396 = vtanh.f32 %v4663_v57  ;;  %v9018_v9 = vadd.f32 %v9017_v2, %v9016_v1 }
 0x5f6   : > { %v4650_v38 = vmul.f32 0.044715, %v4642_v33  ;;  %v4635_v26 = vmul.f32 %v11999_v16, %v11999_v16 }
 0x5f7   : > { %v4636_v40 = vmul.f32 %v11997_v30, %v11997_v30  ;;  %v4562_v18 = vadd.f32 %v9018_v9, %v11959_v25 }
 0x5f8   : > { %v4658_v54 = vadd.f32 %v4650_v38, %v11989_v50  ;;  %v4643_v39 = vmul.f32 %v4635_v26, %v11999_v16 }
 0x5f9   : > { %v4644_v41 = vmul.f32 %v4636_v40, %v11997_v30  ;;  %v12009_v53 = vadd.f32 %v9496_v4, %v4562_v18 }
 0x5fa   : > { %v4666_v24 = vmul.f32 0.7978846, %v4658_v54  ;;  %v4651_v56 = vmul.f32 0.044715, %v4643_v39 }
 0x5fb   : > { %v4652_v43 = vmul.f32 0.044715, %v4644_v41  ;;  %v4637_v49 = vmul.f32 %v12009_v53, %v12009_v53 }
 0x5fc   : > { %10398 = vtanh.f32 %v4666_v24  ;;  %v4659_v51 = vadd.f32 %v4651_v56, %v11999_v16 }
 0x5fd   : > { %v4660_v55 = vadd.f32 %v4652_v43, %v11997_v30  ;;  %v10391_v25 = vpop.eup %10390  ;;  %v4645_v5 = vmul.f32 %v4637_v49, %v12009_v53 }
 0x5fe   : > { %v10393_v10 = vpop.eup %10392  ;;  %v4680_v58 = vadd.f32 1.0, %v10391_v25  ;;  %v4667_v21 = vmul.f32 0.7978846, %v4659_v51 }
 0x5ff   : > { %v4668_v6 = vmul.f32 0.7978846, %v4660_v55  ;;  %v4678_v14 = vadd.f32 1.0, %v10393_v10  ;;  %v4653_v20 = vmul.f32 0.044715, %v4645_v5 }
 0x600   : > { %v4688_v0 = vmul.f32 0.5, %v4680_v58  ;;  %v12025_v58 = vld [vmem:[#allocation2] sm:$0xff] }
 0x601   : > { %10400 = vtanh.f32 %v4668_v6  ;;  %v10395_v27 = vpop.eup %10394  ;;  %v4686_v44 = vmul.f32 0.5, %v4678_v14  ;;  %v4661_v32 = vadd.f32 %v4653_v20, %v12009_v53 }
 0x602   : > { %10402 = vtanh.f32 %v4667_v21  ;;  %v10397_v31 = vpop.eup %10396  ;;  %v4696_v8 = vmul.f32 %v4688_v0, %v11963_v47  ;;  %v4681_v59 = vadd.f32 1.0, %v10395_v27 }
 0x603   : > { %v4694_v37 = vmul.f32 %v4686_v44, %v11965_v42  ;;  %v4679_v28 = vadd.f32 1.0, %v10397_v31  ;;  %v4669_v12 = vmul.f32 0.7978846, %v4661_v32  ;;  %v10094_v32 = vld [vmem:[%s12947_s7 + $0x78] sm:$0xff]  }
 0x604   : > { %4704 = vst [vmem:[#allocation3 + $0x18] sm:$0xff] %v4696_v8  ;;  %v4689_v17 = vmul.f32 0.5, %v4681_v59  ;;  %v10095_v31 = vld [vmem:[%s12947_s7 + $0xf8] sm:$0xff]   ;;  %9083 = vmatprep.subr.bf16.mxu0 %v10094_v32 }
 0x605   : > { %4702 = vst [vmem:[#allocation3 + $0x8] sm:$0xff] %v4694_v37  ;;  %v4687_v13 = vmul.f32 0.5, %v4679_v28  ;;  %10404 = vtanh.f32 %v4669_v12  ;;  %v10097_v59 = vld [vmem:[%s12947_s7 + $0xb8] sm:$0xff]   ;;  %9111 = vmatprep.subr.bf16.mxu1 %v10095_v31  ;;  %v10099_v28 = vld [vmem:[%s12947_s7 + $0xf0] sm:$0xff]  }
 0x606   : > { %v4697_v11 = vmul.f32 %v4689_v17, %v11975_v22  ;;  %v10100_v12 = vld [vmem:[%s12947_s7 + $0x30] sm:$0xff]  }
 0x607   : > { %v4695_v3 = vmul.f32 %v4687_v13, %v11977_v15  ;;  %v10101_v17 = vld [vmem:[%s12947_s7 + $0xb0] sm:$0xff]   ;;  %v10102_v13 = vld [vmem:[%s12947_s7 + $0x68] sm:$0xff]  }
 0x608   : > { %4705 = vst [vmem:[#allocation3 + $0x20] sm:$0xff] %v4697_v11  ;;  %v4738_v26 = vpack.c.bf16 %v4697_v11, %v4696_v8  ;;  %v10096_v8 = vld [vmem:[%s12947_s7 + $0x38] sm:$0xff]   ;;  %v10103_v11 = vld [vmem:[%s12947_s7 + $0xe8] sm:$0xff]  }
 0x609   : > { %v10399_v63 = vpop.eup %10398  ;;  %4703 = vst [vmem:[#allocation3 + $0x10] sm:$0xff] %v4695_v3  ;;  %v4735_v46 = vpack.c.bf16 %v4695_v3, %v4694_v37  ;;  %v10098_v37 = vld [vmem:[%s12947_s7 + $0x70] sm:$0xff]   ;;  %v10104_v3 = vld [vmem:[%s12947_s7 + $0x28] sm:$0xff]  }
 0x60a   : > { %v4682_v4 = vadd.f32 1.0, %v10399_v63  ;;  %v10105_v63 = vld [vmem:[%s12947_s7 + $0xa8] sm:$0xff]  }
 0x60b   : > { %4977 = vmatprep.mubr.bf16.mxu0 %v4735_v46  ;;  %v10106_v46 = vld [vmem:[%s12947_s7 + $0x60] sm:$0xff]  }
 0x60c   : > { %v4690_v47 = vmul.f32 0.5, %v4682_v4  ;;  %v4710_v29 = vld [vmem:[#allocation3 + $0x7] sm:$0xff]  ;;  %v10107_v4 = vld [vmem:[%s12947_s7 + $0xe0] sm:$0xff]  }
 0x60e   : > { %v10401_v1 = vpop.eup %10400  ;;  %v4698_v7 = vmul.f32 %v4690_v47, %v11989_v50  ;;  %v10108_v47 = vld [vmem:[%s12947_s7 + $0x20] sm:$0xff]  }
 0x60f   : > { %v10403_v42 = vpop.eup %10402  ;;  %v4684_v48 = vadd.f32 1.0, %v10401_v1  ;;  %v4713_v39 = vld [vmem:[#allocation3 + $0x1f] sm:$0xff]  ;;  %v10109_v1 = vld [vmem:[%s12947_s7 + $0xa0] sm:$0xff]  }
 0x610   : > { %v4683_v34 = vadd.f32 1.0, %v10403_v42  ;;  %4706 = vst [vmem:[#allocation3 + $0x28] sm:$0xff] %v4698_v7  ;;  %v4726_v61 = vld [vmem:[#allocation3 + $0x9] sm:$0xff]  ;;  %v4727_v22 = vld [vmem:[#allocation3 + $0x11] sm:$0xff]  ;;  %v4728_v43 = vld [vmem:[#allocation3 + $0x19] sm:$0xff] }
 0x611   : > { %v4692_v57 = vmul.f32 0.5, %v4684_v48  ;;  %v4711_v2 = vld [vmem:[#allocation3 + $0xf] sm:$0xff]  ;;  %v4736_v33 = vpack.c.bf16 %v4727_v22, %v4726_v61  ;;  %v4712_v41 = vld [vmem:[#allocation3 + $0x17] sm:$0xff]  ;;  %v10116_v61 = vld [vmem:[%s12947_s7 + $0x10] sm:$0xff]  }
 0x612   : > { %v4691_v15 = vmul.f32 0.5, %v4683_v34  ;;  %v4734_v9 = vpack.c.bf16 %v4711_v2, %v4710_v29  ;;  %v10405_v38 = vpop.eup %10404  ;;  %v4737_v55 = vpack.c.bf16 %v4713_v39, %v4712_v41  ;;  %v10110_v42 = vld [vmem:[%s12947_s7 + $0x58] sm:$0xff]   ;;  %v10114_v29 = vld [vmem:[%s12947_s7 + $0x50] sm:$0xff]   ;;  %v10118_v2 = vld [vmem:[%s12947_s7 + $0x48] sm:$0xff]  }
 0x613   : > { %v4700_v40 = vmul.f32 %v4692_v57, %v11997_v30  ;;  %v4685_v54 = vadd.f32 1.0, %v10405_v38  ;;  %9513 = vmatprep.mubr.bf16.mxu1 %v4736_v33  ;;  %v10112_v48 = vld [vmem:[%s12947_s7 + $0x18] sm:$0xff]   ;;  %v10115_v57 = vld [vmem:[%s12947_s7 + $0xd0] sm:$0xff]   ;;  %v10120_v33 = vld [vmem:[%s12947_s7 + $0x8] sm:$0xff]  }
 0x614   : > { %v4699_v18 = vmul.f32 %v4691_v15, %v11999_v16  ;;  %4978 = vmatmul.mubr.bf16.vlgmr.msra.gmra.mxu0 %v4734_v9  ;;  %v10113_v34 = vld [vmem:[%s12947_s7 + $0x98] sm:$0xff]   ;;  %v10117_v22 = vld [vmem:[%s12947_s7 + $0x90] sm:$0xff]   ;;  %v10119_v15 = vld [vmem:[%s12947_s7 + $0xc8] sm:$0xff]  }
 0x615   : > { %4708 = vst [vmem:[#allocation3 + $0x38] sm:$0xff] %v4700_v40  ;;  %4985 = vmatprep.mubr.bf16.mxu0 %v4738_v26  ;;  %v4693_v50 = vmul.f32 0.5, %v4685_v54  ;;  %9084 = vmatpush3.bf16.msra.mxu0 %v10096_v8  ;;  %v10121_v9 = vld [vmem:[%s12947_s7 + $0x88] sm:$0xff]   ;;  %v10122_v38 = vld [vmem:[%s12947_s7 + $0x40] sm:$0xff]   ;;  %v10126_v54 = vld [vmem:[%s12947_s7 + $0x178] sm:$0xff]  }
 0x616   : > { %4707 = vst [vmem:[#allocation3 + $0x30] sm:$0xff] %v4699_v18  ;;  %v4741_v30 = vpack.c.bf16 %v4699_v18, %v4698_v7  ;;  %9085 = vmatprep.subr.bf16.mxu0 %v10098_v37  ;;  %v10111_v7 = vld [vmem:[%s12947_s7 + $0xd8] sm:$0xff]   ;;  %v10124_v26 = vld [vmem:[%s12947_s7] sm:$0xff]  }
 0x617   : > { %v4701_v24 = vmul.f32 %v4693_v50, %v12009_v53  ;;  %v4729_v56 = vld [vmem:[#allocation3 + $0x21] sm:$0xff]  ;;  %v10125_v18 = vld [vmem:[%s12947_s7 + $0x80] sm:$0xff]  }
 0x618   : > { %v4739_v49 = vpack.c.bf16 %v4729_v56, %v4728_v43  ;;  %v4714_v16 = vld [vmem:[#allocation3 + $0x27] sm:$0xff]  ;;  %v12133_v56 = vld [vmem:[%s12952_s12] ss:$0 sm:$0xff] }
 0x619   : > { %4709 = vst [vmem:[#allocation3 + $0x40] sm:$0xff] %v4701_v24  ;;  %v4744_v20 = vpack.c.bf16 %v4701_v24, %v4700_v40  ;;  %9086 = vmatpush3.bf16.msra.mxu0 %v10100_v12  ;;  %v10123_v40 = vld [vmem:[%s12947_s7 + $0xc0] sm:$0xff]   ;;  %v10127_v50 = vld [vmem:[%s12947_s7 + $0x1f8] sm:$0xff]  }
 0x61a   : > { %9514 = vmatmul.mubr.bf16.vlgmr.msra.gmra.mxu1 %v4739_v49  ;;  %9087 = vmatprep.subr.bf16.mxu0 %v10102_v13 }
 0x61b   : > { %9112 = vmatpush3.bf16.msra.mxu1 %v10097_v59 }
 0x61c   : > { %4986 = vmatmul.mubr.bf16.gmra.mxu0 %v4737_v55  ;;  %9113 = vmatprep.subr.bf16.mxu1 %v10099_v28 }
 0x61d   : > { %4993 = vmatprep.mubr.bf16.mxu0 %v4741_v30  ;;  %v4730_v51 = vld [vmem:[#allocation3 + $0x29] sm:$0xff]  ;;  %v4731_v25 = vld [vmem:[#allocation3 + $0x31] sm:$0xff]  ;;  %9088 = vmatpush3.bf16.msra.mxu0 %v10104_v3 }
 0x61e   : > { %v4715_v5 = vld [vmem:[#allocation3 + $0x2f] sm:$0xff]  ;;  %v4742_v10 = vpack.c.bf16 %v4731_v25, %v4730_v51  ;;  %v4716_v27 = vld [vmem:[#allocation3 + $0x37] sm:$0xff]  ;;  %9089 = vmatprep.subr.bf16.mxu0 %v10106_v46 }
 0x61f   : > { %6128 = vst [vmem:[#allocation3 + $0x28] sm:$0xff] %v12025_v58  ;;  %v4740_v21 = vpack.c.bf16 %v4715_v5, %v4714_v16  ;;  %9114 = vmatpush3.bf16.msra.mxu1 %v10101_v17 }
 0x620   : > { %9517 = vmatprep.mubr.bf16.mxu1 %v4742_v10  ;;  %v4732_v53 = vld [vmem:[#allocation3 + $0x39] sm:$0xff]  ;;  %v4733_v6 = vld [vmem:[#allocation3 + $0x41] sm:$0xff]  ;;  %9115 = vmatprep.subr.bf16.mxu1 %v10103_v11 }
 0x621   : > { %v4745_v14 = vpack.c.bf16 %v4733_v6, %v4732_v53  ;;  %v4717_v0 = vld [vmem:[#allocation3 + $0x3f] sm:$0xff]  ;;  %9090 = vmatpush3.bf16.msra.mxu0 %v10108_v47 }
 0x622   : > { %v4743_v44 = vpack.c.bf16 %v4717_v0, %v4716_v27  ;;  %9091 = vmatprep.subr.bf16.mxu0 %v10110_v42 }
 0x623   : > { %9518 = vmatmul.mubr.bf16.gmra.mxu1 %v4745_v14 }
 0x624   : > { %4994 = vmatmul.mubr.bf16.gmra.mxu0 %v4740_v21  ;;  %9116 = vmatpush3.bf16.msra.mxu1 %v10105_v63 }
 0x625   : > { %5001 = vmatprep.mubr.bf16.mxu0 %v4744_v20  ;;  %9117 = vmatprep.subr.bf16.mxu1 %v10107_v4 }
 0x626   : > { %9092 = vmatpush3.bf16.msra.mxu0 %v10112_v48 }
 0x627   : > { %9093 = vmatprep.subr.bf16.mxu0 %v10114_v29 }
 0x628   : > { %9118 = vmatpush3.bf16.msra.mxu1 %v10109_v1 }
 0x629   : > { %9119 = vmatprep.subr.bf16.mxu1 %v10111_v7 }
 0x62a   : > { %9094 = vmatpush3.bf16.msra.mxu0 %v10116_v61 }
 0x62b   : > { %9095 = vmatprep.subr.bf16.mxu0 %v10118_v2 }
 0x62c   : > { %5002 = vmatmul.mubr.bf16.gmra.mxu0 %v4743_v44  ;;  %9120 = vmatpush3.bf16.msra.mxu1 %v10113_v34 }
 0x62d   : > { %9121 = vmatprep.subr.bf16.mxu1 %v10115_v57 }
 0x62e   : > { %9096 = vmatpush3.bf16.msra.mxu0 %v10120_v33 }
 0x62f   : > { %9097 = vmatprep.subr.bf16.mxu0 %v10122_v38 }
 0x630   : > { %9122 = vmatpush3.bf16.msra.mxu1 %v10117_v22 }
 0x631   : > { %9123 = vmatprep.subr.bf16.mxu1 %v10119_v15 }
 0x632   : > { %9098 = vmatpush3.bf16.msra.mxu0 %v10124_v26 }
 0x633   : > { %9139 = vmatprep.subr.bf16.mxu0 %v10126_v54 }
 0x634   : > { %9124 = vmatpush3.bf16.msra.mxu1 %v10121_v9 }
 0x635   : > { %9125 = vmatprep.subr.bf16.mxu1 %v10123_v40 }
 0x638   : > { %9126 = vmatpush3.bf16.msra.mxu1 %v10125_v18 }
 0x639   : > { %9167 = vmatprep.subr.bf16.mxu1 %v10127_v50 }
 0x6d4   : > { %v9047_v41 = vpop.f32.mrf.mxu0 }
 0x6d6   : > { %v9048_v39 = vpop.f32.mrf.mxu0 }
 0x6d7   : > { %v9049_v24 = vadd.f32 %v9048_v39, %v9047_v41 }
 0x6d8   : > { %v9050_v43 = vpop.f32.mrf.mxu0 }
 0x6d9   : > { %v4980_v51 = vadd.f32 %v9049_v24, %v12133_v56 }
 0x6da   : > { %v9051_v49 = vpop.f32.mrf.mxu0  ;;  %v9515_v55 = vpop.f32.mrf.mxu1 }
 0x6db   : > { %v9052_v30 = vadd.f32 %v9051_v49, %v9050_v43 }
 0x6dc   : > { %v9053_v16 = vpop.f32.mrf.mxu0  ;;  %v5044_v25 = vpop.f32.mrf.mxu1 }
 0x6dd   : > { %v5045_v5 = vadd.f32 %v5044_v25, %v4980_v51  ;;  %v4983_v20 = vadd.f32 %v9052_v30, %v12133_v56 }
 0x6de   : > { %v9054_v10 = vpop.f32.mrf.mxu0  ;;  %v9516_v6 = vpop.f32.mrf.mxu1 }
 0x6df   : > { %v9055_v53 = vadd.f32 %v9054_v10, %v9053_v16  ;;  %v12137_v21 = vadd.f32 %v5045_v5, %v11825_v52 }
 0x6e0   : > { %v9056_v14 = vpop.f32.mrf.mxu0  ;;  %v5047_v27 = vpop.f32.mrf.mxu1 }
 0x6e1   : > { %v4988_v0 = vadd.f32 %v9055_v53, %v12133_v56  ;;  %v5091_v44 = vmul.f32 %v12137_v21, %v12137_v21  ;;  %v5048_v32 = vadd.f32 %v5047_v27, %v4983_v20 }
 0x6e2   : > { %v9057_v31 = vpop.f32.mrf.mxu0 }
 0x6e3   : > { %v5053_v8 = vadd.f32 %v9515_v55, %v4988_v0  ;;  %v9058_v59 = vadd.f32 %v9057_v31, %v9056_v14  ;;  %v5099_v37 = vmul.f32 %v5091_v44, %v12137_v21  ;;  %v12145_v28 = vadd.f32 %v5048_v32, %v11833_v45  ;;  %v9519_v12 = vpop.f32.mrf.mxu1 }
 0x6e4   : > { %v9059_v52 = vpop.f32.mrf.mxu0 }
 0x6e5   : > { %v12148_v17 = vadd.f32 %v5053_v8, %v11844_v36  ;;  %v4991_v13 = vadd.f32 %v9058_v59, %v12133_v56  ;;  %v5107_v11 = vmul.f32 0.044715, %v5099_v37  ;;  %v5092_v3 = vmul.f32 %v12145_v28, %v12145_v28  ;;  %v5060_v46 = vpop.f32.mrf.mxu1 }
 0x6e6   : > { %v9060_v63 = vpop.f32.mrf.mxu0 }
 0x6e7   : > { %v5093_v4 = vmul.f32 %v12148_v17, %v12148_v17  ;;  %v5056_v47 = vadd.f32 %v9516_v6, %v4991_v13  ;;  %v9061_v1 = vadd.f32 %v9060_v63, %v9059_v52  ;;  %v5115_v45 = vadd.f32 %v5107_v11, %v12137_v21  ;;  %v9520_v61 = vpop.f32.mrf.mxu1 }
 0x6e8   : > { %v5100_v42 = vmul.f32 %v5092_v3, %v12145_v28  ;;  %v9062_v7 = vpop.f32.mrf.mxu0 }
 0x6e9   : > { %v5101_v36 = vmul.f32 %v5093_v4, %v12148_v17  ;;  %v12159_v48 = vadd.f32 %v5056_v47, %v11854_v23  ;;  %v4996_v34 = vadd.f32 %v9061_v1, %v12133_v56  ;;  %v5123_v29 = vmul.f32 0.7978846, %v5115_v45  ;;  %v5063_v41 = vpop.f32.mrf.mxu1 }
 0x6ea   : > { %v5108_v57 = vmul.f32 0.044715, %v5100_v42  ;;  %v9063_v22 = vpop.f32.mrf.mxu0 }
 0x6eb   : > { %v5109_v2 = vmul.f32 0.044715, %v5101_v36  ;;  %v5094_v15 = vmul.f32 %v12159_v48, %v12159_v48  ;;  %v5061_v33 = vadd.f32 %v5060_v46, %v4996_v34  ;;  %v9064_v9 = vadd.f32 %v9063_v22, %v9062_v7 }
 0x6ec   : > { %10406 = vtanh.f32 %v5123_v29  ;;  %v5116_v38 = vadd.f32 %v5108_v57, %v12145_v28  ;;  %v9065_v40 = vpop.f32.mrf.mxu0 }
 0x6ed   : > { %v5117_v26 = vadd.f32 %v5109_v2, %v12148_v17  ;;  %v5102_v23 = vmul.f32 %v5094_v15, %v12159_v48  ;;  %v12168_v18 = vadd.f32 %v5061_v33, %v11864_v62  ;;  %v4999_v54 = vadd.f32 %v9064_v9, %v12133_v56 }
 0x6ee   : > { %v5124_v50 = vmul.f32 0.7978846, %v5116_v38  ;;  %v9066_v39 = vpop.f32.mrf.mxu0 }
 0x6ef   : > { %v5125_v24 = vmul.f32 0.7978846, %v5117_v26  ;;  %v5110_v43 = vmul.f32 0.044715, %v5102_v23  ;;  %v5095_v49 = vmul.f32 %v12168_v18, %v12168_v18  ;;  %v5064_v55 = vadd.f32 %v5063_v41, %v4999_v54 }
 0x6f0   : > { %10408 = vtanh.f32 %v5124_v50  ;;  %v9067_v30 = vadd.f32 %v9066_v39, %v9065_v40  ;;  %v9068_v16 = vpop.f32.mrf.mxu0 }
 0x6f1   : > { %10410 = vtanh.f32 %v5125_v24  ;;  %v5118_v51 = vadd.f32 %v5110_v43, %v12159_v48  ;;  %v5103_v62 = vmul.f32 %v5095_v49, %v12168_v18  ;;  %v5088_v25 = vadd.f32 %v5064_v55, %v11871_v60  ;;  %v10128_v55 = vld [vmem:[%s12947_s7 + $0x138] sm:$0xff]  }
 0x6f2   : > { %v5004_v5 = vadd.f32 %v9067_v30, %v12133_v56  ;;  %v9069_v10 = vpop.f32.mrf.mxu0 }
 0x6f3   : > { %v5126_v53 = vmul.f32 0.7978846, %v5118_v51  ;;  %v5111_v6 = vmul.f32 0.044715, %v5103_v62  ;;  %v5096_v14 = vmul.f32 %v5088_v25, %v5088_v25  ;;  %v9070_v20 = vadd.f32 %v9069_v10, %v9068_v16  ;;  %v10129_v51 = vld [vmem:[%s12947_s7 + $0x1b8] sm:$0xff]  }
 0x6f4   : > { %v5069_v0 = vadd.f32 %v9519_v12, %v5004_v5 }
 0x6f5   : > { %10412 = vtanh.f32 %v5126_v53  ;;  %v5119_v27 = vadd.f32 %v5111_v6, %v12168_v18  ;;  %v5104_v44 = vmul.f32 %v5096_v14, %v5088_v25  ;;  %v5007_v32 = vadd.f32 %v9070_v20, %v12133_v56 }
 0x6f6   : > { %v12180_v31 = vadd.f32 %v5069_v0, %v11876_v35  ;;  %v10130_v0 = vld [vmem:[%s12947_s7 + $0x170] sm:$0xff]  }
 0x6f7   : > { %v5127_v8 = vmul.f32 0.7978846, %v5119_v27  ;;  %v5112_v59 = vmul.f32 0.044715, %v5104_v44  ;;  %v5072_v60 = vadd.f32 %v9520_v61, %v5007_v32  ;;  %v10131_v27 = vld [vmem:[%s12947_s7 + $0x1f0] sm:$0xff]  }
 0x6f8   : > { %v5097_v37 = vmul.f32 %v12180_v31, %v12180_v31 }
 0x6f9   : > { %v10407_v52 = vpop.eup %10406  ;;  %10414 = vtanh.f32 %v5127_v8  ;;  %v5120_v13 = vadd.f32 %v5112_v59, %v5088_v25  ;;  %v12185_v12 = vadd.f32 %v5072_v60, %v11879_v19  ;;  %v10132_v59 = vld [vmem:[%s12947_s7 + $0x130] sm:$0xff]  }
 0x6fa   : > { %v5139_v11 = vadd.f32 1.0, %v10407_v52  ;;  %v5105_v3 = vmul.f32 %v5097_v37, %v12180_v31  ;;  %v10133_v60 = vld [vmem:[%s12947_s7 + $0x1b0] sm:$0xff]   ;;  %v10135_v37 = vld [vmem:[%s12947_s7 + $0x1e8] sm:$0xff]  }
 0x6fb   : > { %v5128_v63 = vmul.f32 0.7978846, %v5120_v13  ;;  %v5098_v35 = vmul.f32 %v12185_v12, %v12185_v12  ;;  %v10136_v13 = vld [vmem:[%s12947_s7 + $0x128] sm:$0xff]  }
 0x6fc   : > { %v5147_v56 = vmul.f32 0.5, %v5139_v11  ;;  %v5113_v46 = vmul.f32 0.044715, %v5105_v3  ;;  %v10137_v11 = vld [vmem:[%s12947_s7 + $0x1a8] sm:$0xff]   ;;  %v10138_v3 = vld [vmem:[%s12947_s7 + $0x160] sm:$0xff]  }
 0x6fd   : > { %v10409_v4 = vpop.eup %10408  ;;  %10416 = vtanh.f32 %v5128_v63  ;;  %v5106_v47 = vmul.f32 %v5098_v35, %v12185_v12  ;;  %v10140_v63 = vld [vmem:[%s12947_s7 + $0x120] sm:$0xff]  }
 0x6fe   : > { %v10411_v1 = vpop.eup %10410  ;;  %v5155_v45 = vmul.f32 %v5147_v56, %v12137_v21  ;;  %v5140_v42 = vadd.f32 1.0, %v10409_v4  ;;  %v5121_v19 = vadd.f32 %v5113_v46, %v12180_v31  ;;  %v10141_v35 = vld [vmem:[%s12947_s7 + $0x1a0] sm:$0xff]   ;;  %v10142_v4 = vld [vmem:[%s12947_s7 + $0x158] sm:$0xff]  }
 0x6ff   : > { %v5141_v7 = vadd.f32 1.0, %v10411_v1  ;;  %v5114_v36 = vmul.f32 0.044715, %v5106_v47  ;;  %v10143_v47 = vld [vmem:[%s12947_s7 + $0x1d8] sm:$0xff]  }
 0x700   : > { %5163 = vst [vmem:[#allocation2 + $0x8] sm:$0xff] %v5155_v45  ;;  %v5148_v34 = vmul.f32 0.5, %v5140_v42  ;;  %v5129_v29 = vmul.f32 0.7978846, %v5121_v19 }
 0x701   : > { %v5149_v57 = vmul.f32 0.5, %v5141_v7  ;;  %v5122_v61 = vadd.f32 %v5114_v36, %v12185_v12 }
 0x702   : > { %v10413_v22 = vpop.eup %10412  ;;  %v5156_v2 = vmul.f32 %v5148_v34, %v12145_v28  ;;  %10418 = vtanh.f32 %v5129_v29 }
 0x703   : > { %v5157_v15 = vmul.f32 %v5149_v57, %v12148_v17  ;;  %v5142_v33 = vadd.f32 1.0, %v10413_v22  ;;  %v5130_v9 = vmul.f32 0.7978846, %v5122_v61 }
 0x704   : > { %5164 = vst [vmem:[#allocation2 + $0x10] sm:$0xff] %v5156_v2 }
 0x705   : > { %5165 = vst [vmem:[#allocation2 + $0x18] sm:$0xff] %v5157_v15  ;;  %v5150_v21 = vmul.f32 0.5, %v5142_v33  ;;  %10420 = vtanh.f32 %v5130_v9  ;;  %v10144_v15 = vld [vmem:[%s12947_s7 + $0x118] sm:$0xff]  }
 0x706   : > { %v10415_v38 = vpop.eup %10414 }
 0x707   : > { %v5158_v40 = vmul.f32 %v5150_v21, %v12159_v48  ;;  %v5143_v26 = vadd.f32 1.0, %v10415_v38 }
 0x709   : > { %5166 = vst [vmem:[#allocation2 + $0x20] sm:$0xff] %v5158_v40  ;;  %v5151_v23 = vmul.f32 0.5, %v5143_v26 }
 0x70a   : > { %v10417_v54 = vpop.eup %10416 }
 0x70b   : > { %v5159_v50 = vmul.f32 %v5151_v23, %v12168_v18  ;;  %v5144_v41 = vadd.f32 1.0, %v10417_v54  ;;  %v5175_v24 = vld [vmem:[#allocation2 + $0x5] ss:$2 sm:$0xff]  ;;  %v5171_v49 = vld [vmem:[#allocation2 + $0x4] ss:$2 sm:$0xff]  ;;  %v10145_v54 = vld [vmem:[%s12947_s7 + $0x198] sm:$0xff]  }
 0x70c   : > { %v5183_v43 = vld [vmem:[#allocation2 + $0x7] ss:$2 sm:$0xff]  ;;  %v5179_v10 = vld [vmem:[#allocation2 + $0x6] ss:$2 sm:$0xff] }
 0x70d   : > { %5167 = vst [vmem:[#allocation2 + $0x28] sm:$0xff] %v5159_v50  ;;  %v5152_v28 = vmul.f32 0.5, %v5144_v41 }
 0x70f   : > { %v10419_v39 = vpop.eup %10418  ;;  %v5160_v17 = vmul.f32 %v5152_v28, %v5088_v25  ;;  %v5191_v28 = vld [vmem:[#allocation2 + $0x9] ss:$2 sm:$0xff] }
 0x710   : > { %v5145_v30 = vadd.f32 1.0, %v10419_v39  ;;  %v5176_v48 = vld [vmem:[#allocation2 + $0x15] ss:$2 sm:$0xff]  ;;  %v5172_v5 = vld [vmem:[#allocation2 + $0x14] ss:$2 sm:$0xff] }
 0x711   : > { %v5184_v16 = vld [vmem:[#allocation2 + $0x17] ss:$2 sm:$0xff]  ;;  %5168 = vst [vmem:[#allocation2 + $0x30] sm:$0xff] %v5160_v17  ;;  %v5212_v18 = vpack.c.bf16 %v5176_v48, %v5175_v24  ;;  %v5180_v25 = vld [vmem:[#allocation2 + $0x16] ss:$2 sm:$0xff]  ;;  %v5211_v14 = vpack.c.bf16 %v5172_v5, %v5171_v49  ;;  %v10151_v48 = vld [vmem:[%s12947_s7 + $0x1c8] sm:$0xff]  }
 0x712   : > { %v5214_v62 = vpack.c.bf16 %v5184_v16, %v5183_v43  ;;  %v10421_v53 = vpop.eup %10420  ;;  %v5153_v6 = vmul.f32 0.5, %v5145_v30  ;;  %v5213_v20 = vpack.c.bf16 %v5180_v25, %v5179_v10  ;;  %v5192_v50 = vld [vmem:[#allocation2 + $0x19] ss:$2 sm:$0xff]  ;;  %v10147_v17 = vld [vmem:[%s12947_s7 + $0x1d0] sm:$0xff]   ;;  %v10150_v30 = vld [vmem:[%s12947_s7 + $0x148] sm:$0xff]  }
 0x713   : > { %v5146_v44 = vadd.f32 1.0, %v10421_v53  ;;  %5910 = vmatprep.mubr.bf16.mxu0 %v5212_v18  ;;  %v5199_v39 = vld [vmem:[#allocation2 + $0xb] ss:$2 sm:$0xff]  ;;  %v5216_v24 = vpack.c.bf16 %v5192_v50, %v5191_v28  ;;  %v10154_v18 = vld [vmem:[%s12947_s7 + $0x140] sm:$0xff]  }
 0x714   : > { %5959 = vmatprep.mubr.bf16.mxu1 %v5214_v62  ;;  %v5161_v32 = vmul.f32 %v5153_v6, %v12180_v31  ;;  %5911 = vmatmul.mubr.bf16.vlgmr.msra.gmra.mxu0 %v5211_v14  ;;  %v10134_v31 = vld [vmem:[%s12947_s7 + $0x168] sm:$0xff]   ;;  %v10148_v49 = vld [vmem:[%s12947_s7 + $0x110] sm:$0xff]   ;;  %v10155_v62 = vld [vmem:[%s12947_s7 + $0x1c0] sm:$0xff]  }
 0x715   : > { %5960 = vmatmul.mubr.bf16.vlgmr.msra.gmra.mxu1 %v5213_v20  ;;  %v5154_v8 = vmul.f32 0.5, %v5146_v44  ;;  %9140 = vmatpush3.bf16.msra.mxu0 %v10128_v55  ;;  %v5200_v42 = vld [vmem:[#allocation2 + $0x1b] ss:$2 sm:$0xff]  ;;  %v12248_v19 = vld [vmem:[#allocation2 + $0x1a] ss:$2 sm:$0xff]  ;;  %v10149_v55 = vld [vmem:[%s12947_s7 + $0x190] sm:$0xff]  }
 0x716   : > { %9168 = vmatpush3.bf16.msra.mxu1 %v10129_v51  ;;  %5169 = vst [vmem:[#allocation2 + $0x38] sm:$0xff] %v5161_v32  ;;  %9141 = vmatprep.subr.bf16.mxu0 %v10130_v0  ;;  %v12250_v7 = vld [vmem:[#allocation2 + $0x1d] ss:$2 sm:$0xff]  ;;  %v12252_v36 = vld [vmem:[#allocation2 + $0x1c] ss:$2 sm:$0xff]  ;;  %v5218_v43 = vpack.c.bf16 %v5200_v42, %v5199_v39 }
 0x717   : > { %9169 = vmatprep.subr.bf16.mxu1 %v10131_v27  ;;  %v5162_v52 = vmul.f32 %v5154_v8, %v12185_v12  ;;  %v10139_v12 = vld [vmem:[%s12947_s7 + $0x1e0] sm:$0xff]   ;;  %v10152_v16 = vld [vmem:[%s12947_s7 + $0x108] sm:$0xff]   ;;  %v10158_v25 = vld [vmem:[%s12947_s7 + $0x278] sm:$0xff]  }
 0x718   : > { %v5177_v56 = vld [vmem:[#allocation2 + $0x25] ss:$2 sm:$0xff]  ;;  %v5173_v1 = vld [vmem:[#allocation2 + $0x24] ss:$2 sm:$0xff]  ;;  %v10159_v32 = vld [vmem:[%s12947_s7 + $0x238] sm:$0xff]  }
 0x719   : > { %5170 = vst [vmem:[#allocation2 + $0x40] sm:$0xff] %v5162_v52  ;;  %9142 = vmatpush3.bf16.msra.mxu0 %v10132_v59  ;;  %v5185_v46 = vld [vmem:[#allocation2 + $0x27] ss:$2 sm:$0xff]  ;;  %v5181_v45 = vld [vmem:[#allocation2 + $0x26] ss:$2 sm:$0xff]  ;;  %v10186_v28 = vld [vmem:[%s12949_s9 + $0x18] sm:$0xff]  }
 0x71a   : > { %9170 = vmatpush3.bf16.msra.mxu1 %v10133_v60  ;;  %9143 = vmatprep.subr.bf16.mxu0 %v10134_v31  ;;  %v12254_v34 = vld [vmem:[#allocation2 + $0x29] ss:$2 sm:$0xff]  ;;  %v12258_v57 = vld [vmem:[#allocation2 + $0x28] ss:$2 sm:$0xff]  ;;  %v10156_v5 = vld [vmem:[%s12947_s7 + $0x100] sm:$0xff]  }
 0x71b   : > { %9171 = vmatprep.subr.bf16.mxu1 %v10135_v37  ;;  %v10153_v51 = vld [vmem:[%s12947_s7 + $0x188] sm:$0xff]   ;;  %v10157_v10 = vld [vmem:[%s12947_s7 + $0x180] sm:$0xff]   ;;  %v10160_v60 = vld [vmem:[%s12947_s7 + $0x270] sm:$0xff]  }
 0x71c   : > { %v5188_v53 = vld [vmem:[#allocation2 + $0x18] ss:$2 sm:$0xff]  ;;  %v5187_v20 = vld [vmem:[#allocation2 + $0x8] ss:$2 sm:$0xff] }
 0x71d   : > { %9144 = vmatpush3.bf16.msra.mxu0 %v10136_v13  ;;  %v12256_v29 = vld [vmem:[#allocation2 + $0x2b] ss:$2 sm:$0xff]  ;;  %v12260_v61 = vld [vmem:[#allocation2 + $0x2a] ss:$2 sm:$0xff]  ;;  %v5215_v27 = vpack.c.bf16 %v5188_v53, %v5187_v20  ;;  %v10183_v50 = vld [vmem:[%s12949_s9 + $0x20] sm:$0xff]  }
 0x71e   : > { %9172 = vmatpush3.bf16.msra.mxu1 %v10137_v11  ;;  %9145 = vmatprep.subr.bf16.mxu0 %v10138_v3  ;;  %v12262_v22 = vld [vmem:[#allocation2 + $0x2d] ss:$2 sm:$0xff]  ;;  %v12264_v2 = vld [vmem:[#allocation2 + $0x2c] ss:$2 sm:$0xff]  ;;  %v10187_v39 = vld [vmem:[%s12949_s9 + $0xa0] sm:$0xff]  }
 0x71f   : > { %9173 = vmatprep.subr.bf16.mxu1 %v10139_v12  ;;  %6127 = vst [vmem:[#allocation2 + $0x28] sm:$0xff] %v12025_v58  ;;  %v10146_v58 = vld [vmem:[%s12947_s7 + $0x150] sm:$0xff]   ;;  %v10162_v13 = vld [vmem:[%s12947_s7 + $0x268] sm:$0xff]  }
 0x720   : > { %v5178_v33 = vld [vmem:[#allocation2 + $0x35] ss:$2 sm:$0xff]  ;;  %v5174_v21 = vld [vmem:[#allocation2 + $0x34] ss:$2 sm:$0xff]  ;;  %v10163_v12 = vld [vmem:[%s12947_s7 + $0x228] sm:$0xff]  }
 0x721   : > { %v5186_v9 = vld [vmem:[#allocation2 + $0x37] ss:$2 sm:$0xff]  ;;  %9146 = vmatpush3.bf16.msra.mxu0 %v10140_v63  ;;  %v5222_v38 = vpack.c.bf16 %v5178_v33, %v5177_v56  ;;  %v5221_v26 = vpack.c.bf16 %v5174_v21, %v5173_v1  ;;  %v5182_v23 = vld [vmem:[#allocation2 + $0x36] ss:$2 sm:$0xff]  ;;  %v10170_v42 = vld [vmem:[%s12947_s7 + $0x248] sm:$0xff]  }
 0x722   : > { %9174 = vmatpush3.bf16.msra.mxu1 %v10141_v35  ;;  %v5224_v40 = vpack.c.bf16 %v5186_v9, %v5185_v46  ;;  %9147 = vmatprep.subr.bf16.mxu0 %v10142_v4  ;;  %v5223_v41 = vpack.c.bf16 %v5182_v23, %v5181_v45  ;;  %v5194_v6 = vld [vmem:[#allocation2 + $0x39] ss:$2 sm:$0xff]  ;;  %v5195_v0 = vld [vmem:[#allocation2 + $0xa] ss:$2 sm:$0xff]  ;;  %v5198_v52 = vld [vmem:[#allocation2 + $0x3a] ss:$2 sm:$0xff] }
 0x723   : > { %9175 = vmatprep.subr.bf16.mxu1 %v10143_v47  ;;  %5918 = vmatprep.mubr.bf16.mxu0 %v5222_v38  ;;  %v5202_v14 = vld [vmem:[#allocation2 + $0x3b] ss:$2 sm:$0xff]  ;;  %v5217_v44 = vpack.c.bf16 %v12248_v19, %v5195_v0  ;;  %v5226_v8 = vpack.c.bf16 %v5194_v6, %v12254_v34  ;;  %v10161_v31 = vld [vmem:[%s12947_s7 + $0x230] sm:$0xff]   ;;  %v5190_v37 = vld [vmem:[#allocation2 + $0x38] ss:$2 sm:$0xff]  ;;  %v5227_v3 = vpack.c.bf16 %v5198_v52, %v12260_v61 }
 0x724   : > { %5967 = vmatprep.mubr.bf16.mxu1 %v5224_v40  ;;  %5919 = vmatmul.mubr.bf16.gmra.mxu0 %v5221_v26  ;;  %v5228_v59 = vpack.c.bf16 %v5202_v14, %v12256_v29  ;;  %v5225_v11 = vpack.c.bf16 %v5190_v37, %v12258_v57  ;;  %v5207_v63 = vld [vmem:[#allocation2 + $0xd] ss:$2 sm:$0xff]  ;;  %v10164_v56 = vld [vmem:[%s12947_s7 + $0x260] sm:$0xff]   ;;  %v5203_v57 = vld [vmem:[#allocation2 + $0xc] ss:$2 sm:$0xff] }
 0x725   : > { %5968 = vmatmul.mubr.bf16.gmra.mxu1 %v5223_v41  ;;  %9148 = vmatpush3.bf16.msra.mxu0 %v10144_v15  ;;  %v5220_v35 = vpack.c.bf16 %v12250_v7, %v5207_v63  ;;  %v10165_v46 = vld [vmem:[%s12947_s7 + $0x220] sm:$0xff]   ;;  %v10166_v4 = vld [vmem:[%s12947_s7 + $0x258] sm:$0xff]   ;;  %v10168_v1 = vld [vmem:[%s12947_s7 + $0x250] sm:$0xff]   ;;  %v5219_v61 = vpack.c.bf16 %v12252_v36, %v5203_v57 }
 0x726   : > { %9176 = vmatpush3.bf16.msra.mxu1 %v10145_v54  ;;  %6008 = vmatprep.mubr.bf16.mxu0 %v5216_v24  ;;  %v10167_v47 = vld [vmem:[%s12947_s7 + $0x218] sm:$0xff]   ;;  %v10169_v45 = vld [vmem:[%s12947_s7 + $0x210] sm:$0xff]   ;;  %v10171_v19 = vld [vmem:[%s12947_s7 + $0x208] sm:$0xff]  }
 0x727   : > { %6057 = vmatprep.mubr.bf16.mxu1 %v5218_v43  ;;  %9149 = vmatprep.subr.bf16.mxu0 %v10146_v58  ;;  %v10172_v7 = vld [vmem:[%s12947_s7 + $0x240] sm:$0xff]   ;;  %v10174_v21 = vld [vmem:[%s12949_s9 + $0x78] sm:$0xff]   ;;  %v10176_v36 = vld [vmem:[%s12949_s9 + $0x70] sm:$0xff]  }
 0x728   : > { %9177 = vmatprep.subr.bf16.mxu1 %v10147_v17  ;;  %v10173_v34 = vld [vmem:[%s12947_s7 + $0x200] sm:$0xff]   ;;  %v10175_v38 = vld [vmem:[%s12949_s9 + $0x38] sm:$0xff]   ;;  %v10179_v40 = vld [vmem:[%s12949_s9 + $0x68] sm:$0xff]  }
 0x729   : > { %9150 = vmatpush3.bf16.msra.mxu0 %v10148_v49  ;;  %v5210_v29 = vld [vmem:[#allocation2 + $0x3d] ss:$2 sm:$0xff]  ;;  %v5206_v33 = vld [vmem:[#allocation2 + $0x3c] ss:$2 sm:$0xff]  ;;  %v10181_v23 = vld [vmem:[%s12949_s9 + $0xb0] sm:$0xff]  }
 0x72a   : > { %9178 = vmatpush3.bf16.msra.mxu1 %v10149_v55  ;;  %9151 = vmatprep.subr.bf16.mxu0 %v10150_v30  ;;  %v5230_v15 = vpack.c.bf16 %v5210_v29, %v12262_v22  ;;  %v5229_v9 = vpack.c.bf16 %v5206_v33, %v12264_v2  ;;  %v10178_v22 = vld [vmem:[%s12949_s9 + $0xb8] sm:$0xff]   ;;  %v10177_v2 = vld [vmem:[%s12949_s9 + $0x30] sm:$0xff]   ;;  %v10180_v26 = vld [vmem:[%s12949_s9 + $0x28] sm:$0xff]  }
 0x72b   : > { %9179 = vmatprep.subr.bf16.mxu1 %v10151_v48  ;;  %v10182_v54 = vld [vmem:[%s12949_s9 + $0x60] sm:$0xff]   ;;  %v10184_v41 = vld [vmem:[%s12949_s9 + $0xa8] sm:$0xff]   ;;  %v10185_v58 = vld [vmem:[%s12949_s9 + $0x58] sm:$0xff]  }
 0x72c   : > { %v10188_v17 = vld [vmem:[%s12949_s9 + $0x50] sm:$0xff]   ;;  %v10190_v43 = vld [vmem:[%s12949_s9 + $0x98] sm:$0xff]   ;;  %v10191_v49 = vld [vmem:[%s12949_s9 + $0x48] sm:$0xff]  }
 0x72d   : > { %9152 = vmatpush3.bf16.msra.mxu0 %v10152_v16  ;;  %v10189_v24 = vld [vmem:[%s12949_s9 + $0x10] sm:$0xff]   ;;  %v10192_v55 = vld [vmem:[%s12949_s9 + $0x8] sm:$0xff]   ;;  %v10194_v48 = vld [vmem:[%s12949_s9 + $0x40] sm:$0xff]  }
 0x72e   : > { %9180 = vmatpush3.bf16.msra.mxu1 %v10153_v51  ;;  %9153 = vmatprep.subr.bf16.mxu0 %v10154_v18  ;;  %v10193_v30 = vld [vmem:[%s12949_s9 + $0x90] sm:$0xff]   ;;  %v10195_v16 = vld [vmem:[%s12949_s9] sm:$0xff]   ;;  %v10196_v51 = vld [vmem:[%s12949_s9 + $0x88] sm:$0xff]  }
 0x72f   : > { %9181 = vmatprep.subr.bf16.mxu1 %v10155_v62  ;;  %v10197_v18 = vld [vmem:[%s12949_s9 + $0x80] sm:$0xff]  }
 0x731   : > { %9154 = vmatpush3.bf16.msra.mxu0 %v10156_v5 }
 0x732   : > { %9182 = vmatpush3.bf16.msra.mxu1 %v10157_v10  ;;  %9195 = vmatprep.subr.bf16.mxu0 %v10158_v25 }
 0x733   : > { %9223 = vmatprep.subr.bf16.mxu1 %v10174_v21 }
 0x734   : > { %6009 = vmatmul.mubr.bf16.vlgmr.msra.gmra.mxu0 %v5215_v27 }
 0x735   : > { %6058 = vmatmul.mubr.bf16.vlgmr.msra.gmra.mxu1 %v5217_v44  ;;  %6016 = vmatprep.mubr.bf16.mxu0 %v5226_v8 }
 0x736   : > { %6065 = vmatprep.mubr.bf16.mxu1 %v5228_v59  ;;  %9196 = vmatpush3.bf16.msra.mxu0 %v10159_v32 }
 0x737   : > { %9197 = vmatprep.subr.bf16.mxu0 %v10160_v60  ;;  %9224 = vmatpush3.bf16.msra.mxu1 %v10175_v38 }
 0x738   : > { %9225 = vmatprep.subr.bf16.mxu1 %v10176_v36 }
 0x73a   : > { %9198 = vmatpush3.bf16.msra.mxu0 %v10161_v31 }
 0x73b   : > { %9199 = vmatprep.subr.bf16.mxu0 %v10162_v13  ;;  %9226 = vmatpush3.bf16.msra.mxu1 %v10177_v2 }
 0x73c   : > { %6017 = vmatmul.mubr.bf16.gmra.mxu0 %v5225_v11  ;;  %9227 = vmatprep.subr.bf16.mxu1 %v10179_v40 }
 0x73d   : > { %6066 = vmatmul.mubr.bf16.gmra.mxu1 %v5227_v3  ;;  %6106 = vmatprep.mubr.bf16.mxu0 %v5220_v35 }
 0x73e   : > { %9200 = vmatpush3.bf16.msra.mxu0 %v10163_v12 }
 0x73f   : > { %9201 = vmatprep.subr.bf16.mxu0 %v10164_v56  ;;  %9228 = vmatpush3.bf16.msra.mxu1 %v10180_v26  ;;  %v8375_v56 = vld [vmem:[%s12948_s8] ss:$0 sm:$0xff] }
 0x740   : > { %9229 = vmatprep.subr.bf16.mxu1 %v10182_v54 }
 0x742   : > { %9202 = vmatpush3.bf16.msra.mxu0 %v10165_v46 }
 0x743   : > { %9203 = vmatprep.subr.bf16.mxu0 %v10166_v4  ;;  %9230 = vmatpush3.bf16.msra.mxu1 %v10183_v50 }
 0x744   : > { %9231 = vmatprep.subr.bf16.mxu1 %v10185_v58 }
 0x746   : > { %9204 = vmatpush3.bf16.msra.mxu0 %v10167_v47 }
 0x747   : > { %9205 = vmatprep.subr.bf16.mxu0 %v10168_v1  ;;  %9232 = vmatpush3.bf16.msra.mxu1 %v10186_v28 }
 0x748   : > { %9233 = vmatprep.subr.bf16.mxu1 %v10188_v17 }
 0x74a   : > { %9206 = vmatpush3.bf16.msra.mxu0 %v10169_v45 }
 0x74b   : > { %9207 = vmatprep.subr.bf16.mxu0 %v10170_v42  ;;  %9234 = vmatpush3.bf16.msra.mxu1 %v10189_v24 }
 0x74c   : > { %9235 = vmatprep.subr.bf16.mxu1 %v10191_v49 }
 0x74e   : > { %9208 = vmatpush3.bf16.msra.mxu0 %v10171_v19 }
 0x74f   : > { %9209 = vmatprep.subr.bf16.mxu0 %v10172_v7  ;;  %9236 = vmatpush3.bf16.msra.mxu1 %v10192_v55 }
 0x750   : > { %9237 = vmatprep.subr.bf16.mxu1 %v10194_v48 }
 0x752   : > { %9210 = vmatpush3.bf16.msra.mxu0 %v10173_v34 }
 0x753   : > { %9521 = vmatprep.subr.bf16.mxu0 %v10178_v22  ;;  %9238 = vmatpush3.bf16.msra.mxu1 %v10195_v16 }
 0x755   : > { %6107 = vmatmul.mubr.bf16.vlgmr.msra.gmra.mxu0 %v5219_v61 }
 0x756   : > { %6114 = vmatprep.mubr.bf16.mxu0 %v5230_v15  ;;  %9522 = vmatpush3.bf16.msra.mxu0 %v10178_v22 }
 0x757   : > { %9523 = vmatprep.subr.bf16.mxu0 %v10181_v23 }
 0x75a   : > { %9524 = vmatpush3.bf16.msra.mxu0 %v10181_v23 }
 0x75b   : > { %9525 = vmatprep.subr.bf16.mxu0 %v10184_v41 }
 0x75d   : > { %6115 = vmatmul.mubr.bf16.gmra.mxu0 %v5229_v9 }
 0x75e   : > { %9526 = vmatpush3.bf16.msra.mxu0 %v10184_v41 }
 0x75f   : > { %9527 = vmatprep.subr.bf16.mxu0 %v10187_v39 }
 0x762   : > { %9528 = vmatpush3.bf16.msra.mxu0 %v10187_v39 }
 0x763   : > { %9529 = vmatprep.subr.bf16.mxu0 %v10190_v43 }
 0x766   : > { %9530 = vmatpush3.bf16.msra.mxu0 %v10190_v43 }
 0x767   : > { %9531 = vmatprep.subr.bf16.mxu0 %v10193_v30 }
 0x76a   : > { %9532 = vmatpush3.bf16.msra.mxu0 %v10193_v30 }
 0x76b   : > { %9533 = vmatprep.subr.bf16.mxu0 %v10196_v51 }
 0x76e   : > { %9534 = vmatpush3.bf16.msra.mxu0 %v10196_v51 }
 0x76f   : > { %9535 = vmatprep.subr.bf16.mxu0 %v10197_v18 }
 0x772   : > { %9536 = vmatpush3.bf16.msra.mxu0 %v10197_v18 }
 0x7d4   : > { %v9099_v62 = vpop.f32.mrf.mxu0 }
 0x7d5   : > { %v9127_v25 = vpop.f32.mrf.mxu1 }
 0x7d6   : > { %v9100_v5 = vpop.f32.mrf.mxu0 }
 0x7d7   : > { %v9128_v14 = vpop.f32.mrf.mxu1  ;;  %v9101_v35 = vadd.f32 %v9100_v5, %v9099_v62 }
 0x7d8   : > { %v9102_v10 = vpop.f32.mrf.mxu0  ;;  %v9129_v19 = vadd.f32 %v9128_v14, %v9127_v25 }
 0x7d9   : > { %v9130_v0 = vpop.f32.mrf.mxu1  ;;  %v5913_v47 = vadd.f32 %v9101_v35, %v8375_v56 }
 0x7da   : > { %v9103_v53 = vpop.f32.mrf.mxu0 }
 0x7db   : > { %v9131_v44 = vpop.f32.mrf.mxu1  ;;  %v9104_v1 = vadd.f32 %v9103_v53, %v9102_v10  ;;  %v5962_v34 = vadd.f32 %v9129_v19, %v5913_v47  ;;  %v10198_v19 = vld [vmem:[%s12951_s11 + $0x78] sm:$0xff]  }
 0x7dc   : > { %v9132_v33 = vadd.f32 %v9131_v44, %v9130_v0  ;;  %9261 = vmatprep.subr.bf16.mxu1 %v10198_v19 }
 0x7dd   : > { %v5916_v29 = vadd.f32 %v9104_v1, %v8375_v56 }
 0x7df   : > { %v5965_v36 = vadd.f32 %v9132_v33, %v5916_v29  ;;  %v10201_v29 = vld [vmem:[%s12951_s11 + $0xb8] sm:$0xff]   ;;  %v10205_v33 = vld [vmem:[%s12951_s11 + $0x28] sm:$0xff]  }
 0x7e0   : > { %9541 = vmatprep.subr.bf16.mxu0 %v10201_v29 }
 0x7e4   : > { %v9105_v6 = vpop.f32.mrf.mxu0 }
 0x7e5   : > { %v9133_v32 = vpop.f32.mrf.mxu1 }
 0x7e6   : > { %v9106_v20 = vpop.f32.mrf.mxu0 }
 0x7e7   : > { %v9134_v60 = vpop.f32.mrf.mxu1  ;;  %v9107_v57 = vadd.f32 %v9106_v20, %v9105_v6 }
 0x7e8   : > { %v9108_v27 = vpop.f32.mrf.mxu0  ;;  %v9135_v26 = vadd.f32 %v9134_v60, %v9133_v32 }
 0x7e9   : > { %v9136_v37 = vpop.f32.mrf.mxu1  ;;  %v5921_v22 = vadd.f32 %v9107_v57, %v8375_v56  ;;  %v10202_v57 = vld [vmem:[%s12951_s11 + $0x30] sm:$0xff]  }
 0x7ea   : > { %v9109_v8 = vpop.f32.mrf.mxu0 }
 0x7eb   : > { %v9137_v13 = vpop.f32.mrf.mxu1  ;;  %v9110_v2 = vadd.f32 %v9109_v8, %v9108_v27  ;;  %v5970_v17 = vadd.f32 %v9135_v26, %v5921_v22  ;;  %v10210_v22 = vld [vmem:[%s12951_s11 + $0xa0] sm:$0xff]   ;;  %v10213_v26 = vld [vmem:[%s12951_s11 + $0x98] sm:$0xff]  }
 0x7ec   : > { %v9138_v55 = vadd.f32 %v9137_v13, %v9136_v37 }
 0x7ed   : > { %v5924_v24 = vadd.f32 %v9110_v2, %v8375_v56  ;;  %v10211_v2 = vld [vmem:[%s12951_s11 + $0x18] sm:$0xff]  }
 0x7ef   : > { %v5973_v10 = vadd.f32 %v9138_v55, %v5924_v24 }
 0x7f4   : > { %v9155_v59 = vpop.f32.mrf.mxu0 }
 0x7f5   : > { %v9183_v11 = vpop.f32.mrf.mxu1 }
 0x7f6   : > { %v9156_v31 = vpop.f32.mrf.mxu0 }
 0x7f7   : > { %v9184_v12 = vpop.f32.mrf.mxu1  ;;  %v9157_v7 = vadd.f32 %v9156_v31, %v9155_v59 }
 0x7f8   : > { %v9158_v52 = vpop.f32.mrf.mxu0  ;;  %v9185_v40 = vadd.f32 %v9184_v12, %v9183_v11 }
 0x7f9   : > { %v9186_v46 = vpop.f32.mrf.mxu1  ;;  %v6011_v9 = vadd.f32 %v9157_v7, %v5962_v34  ;;  %v10199_v7 = vld [vmem:[%s12951_s11 + $0x38] sm:$0xff]   ;;  %v10200_v34 = vld [vmem:[%s12951_s11 + $0x70] sm:$0xff]  }
 0x7fa   : > { %v9159_v3 = vpop.f32.mrf.mxu0 }
 0x7fb   : > { %v9187_v45 = vpop.f32.mrf.mxu1  ;;  %v9160_v21 = vadd.f32 %v9159_v3, %v9158_v52  ;;  %v6060_v50 = vadd.f32 %v9185_v40, %v6011_v9  ;;  %v10206_v9 = vld [vmem:[%s12951_s11 + $0x60] sm:$0xff]   ;;  %v10212_v40 = vld [vmem:[%s12951_s11 + $0x50] sm:$0xff]  }
 0x7fc   : > { %v9161_v63 = vpop.f32.mrf.mxu0  ;;  %v9188_v43 = vadd.f32 %v9187_v45, %v9186_v46 }
 0x7fd   : > { %v9189_v61 = vpop.f32.mrf.mxu1  ;;  %v6014_v41 = vadd.f32 %v9160_v21, %v5965_v36  ;;  %v10207_v21 = vld [vmem:[%s12951_s11 + $0xa8] sm:$0xff]   ;;  %v10209_v36 = vld [vmem:[%s12951_s11 + $0x58] sm:$0xff]  }
 0x7fe   : > { %v9162_v4 = vpop.f32.mrf.mxu0 }
 0x7ff   : > { %v9190_v23 = vpop.f32.mrf.mxu1  ;;  %v9163_v58 = vadd.f32 %v9162_v4, %v9161_v63  ;;  %v6063_v16 = vadd.f32 %v9188_v43, %v6014_v41  ;;  %v10217_v41 = vld [vmem:[%s12951_s11 + $0x8] sm:$0xff]  }
 0x800   : > { %v9164_v42 = vpop.f32.mrf.mxu0  ;;  %v9191_v25 = vadd.f32 %v9190_v23, %v9189_v61  ;;  %v10203_v61 = vld [vmem:[%s12951_s11 + $0x68] sm:$0xff]   ;;  %v10214_v23 = vld [vmem:[%s12951_s11 + $0x10] sm:$0xff]  }
 0x801   : > { %v9192_v30 = vpop.f32.mrf.mxu1  ;;  %v6019_v51 = vadd.f32 %v9163_v58, %v5970_v17  ;;  %v10218_v58 = vld [vmem:[%s12951_s11 + $0x40] sm:$0xff]  }
 0x802   : > { %v9165_v15 = vpop.f32.mrf.mxu0  ;;  %v10221_v17 = vld [vmem:[%s12951_s11 + $0x80] sm:$0xff]  }
 0x803   : > { %v9166_v18 = vadd.f32 %v9165_v15, %v9164_v42  ;;  %v9193_v6 = vpop.f32.mrf.mxu1  ;;  %v6068_v20 = vadd.f32 %v9191_v25, %v6019_v51  ;;  %v10204_v15 = vld [vmem:[%s12951_s11 + $0xb0] sm:$0xff]  }
 0x804   : > { %v9194_v8 = vadd.f32 %v9193_v6, %v9192_v30 }
 0x805   : > { %v6022_v0 = vadd.f32 %v9166_v18, %v5973_v10 }
 0x807   : > { %v6071_v31 = vadd.f32 %v9194_v8, %v6022_v0 }
 0x815   : > { %v9211_v38 = vpop.f32.mrf.mxu0 }
 0x817   : > { %v9212_v54 = vpop.f32.mrf.mxu0 }
 0x818   : > { %v9213_v28 = vadd.f32 %v9212_v54, %v9211_v38  ;;  %v10208_v38 = vld [vmem:[%s12951_s11 + $0x20] sm:$0xff]   ;;  %v10215_v54 = vld [vmem:[%s12951_s11 + $0x48] sm:$0xff]  }
 0x819   : > { %v9214_v39 = vpop.f32.mrf.mxu0 }
 0x81a   : > { %v12441_v49 = vadd.f32 %v9213_v28, %v6060_v50  ;;  %v10216_v50 = vld [vmem:[%s12951_s11 + $0x90] sm:$0xff]   ;;  %v10219_v28 = vld [vmem:[%s12951_s11 + $0x88] sm:$0xff]  }
 0x81b   : > { %v9215_v48 = vpop.f32.mrf.mxu0 }
 0x81c   : > { %6123 = vst [vmem:[#allocation2 + $0x8] sm:$0xff] %v12441_v49  ;;  %v9216_v62 = vadd.f32 %v9215_v48, %v9214_v39  ;;  %v10220_v39 = vld [vmem:[%s12951_s11] sm:$0xff]  }
 0x81d   : > { %v9217_v5 = vpop.f32.mrf.mxu0 }
 0x81e   : > { %v12444_v53 = vadd.f32 %v9216_v62, %v6063_v16  ;;  %v8456_v16 = vld [vmem:[%s12950_s10] ss:$0 sm:$0xff] }
 0x81f   : > { %v9218_v14 = vpop.f32.mrf.mxu0 }
 0x820   : > { %6124 = vst [vmem:[#allocation2 + $0x10] sm:$0xff] %v12444_v53  ;;  %v9219_v27 = vadd.f32 %v9218_v14, %v9217_v5  ;;  %v6142_v44 = vpack.c.bf16 %v12444_v53, %v12441_v49 }
 0x821   : > { %v9220_v32 = vpop.f32.mrf.mxu0 }
 0x822   : > { %v12449_v59 = vadd.f32 %v9219_v27, %v6068_v20  ;;  %6378 = vmatprep.mubr.bf16.mxu1 %v6142_v44 }
 0x823   : > { %v9221_v60 = vpop.f32.mrf.mxu0  ;;  %v6129_v13 = vld [vmem:[#allocation2 + $0x7] sm:$0xff] }
 0x824   : > { %6125 = vst [vmem:[#allocation2 + $0x18] sm:$0xff] %v12449_v59  ;;  %v9222_v37 = vadd.f32 %v9221_v60, %v9220_v32 }
 0x826   : > { %v12452_v52 = vadd.f32 %v9222_v37, %v6071_v31 }
 0x827   : > { %v6130_v11 = vld [vmem:[#allocation2 + $0xf] sm:$0xff] }
 0x828   : > { %6126 = vst [vmem:[#allocation2 + $0x20] sm:$0xff] %v12452_v52  ;;  %v6141_v3 = vpack.c.bf16 %v6130_v11, %v6129_v13  ;;  %v6145_v12 = vpack.c.bf16 %v12452_v52, %v12449_v59  ;;  %v6137_v63 = vld [vmem:[#allocation2 + $0x9] sm:$0xff] }
 0x82a   : > { %6379 = vmatmul.mubr.bf16.vlgmr.msra.gmra.mxu1 %v6141_v3 }
 0x82b   : > { %v6138_v35 = vld [vmem:[#allocation2 + $0x11] sm:$0xff]  ;;  %6386 = vmatprep.mubr.bf16.mxu1 %v6145_v12  ;;  %9262 = vmatpush3.bf16.msra.mxu1 %v10199_v7 }
 0x82c   : > { %v6143_v56 = vpack.c.bf16 %v6138_v35, %v6137_v63  ;;  %v6131_v46 = vld [vmem:[#allocation2 + $0x17] sm:$0xff]  ;;  %9263 = vmatprep.subr.bf16.mxu1 %v10200_v34 }
 0x82e   : > { %9537 = vmatprep.mubr.bf16.mxu0 %v6143_v56 }
 0x82f   : > { %v6139_v4 = vld [vmem:[#allocation2 + $0x19] sm:$0xff]  ;;  %v6140_v47 = vld [vmem:[#allocation2 + $0x21] sm:$0xff]  ;;  %9264 = vmatpush3.bf16.msra.mxu1 %v10202_v57 }
 0x830   : > { %v6132_v1 = vld [vmem:[#allocation2 + $0x1f] sm:$0xff]  ;;  %v6146_v45 = vpack.c.bf16 %v6140_v47, %v6139_v4  ;;  %9265 = vmatprep.subr.bf16.mxu1 %v10203_v61 }
 0x831   : > { %v6144_v42 = vpack.c.bf16 %v6132_v1, %v6131_v46 }
 0x832   : > { %9538 = vmatmul.mubr.bf16.vlgmr.msra.gmra.mxu0 %v6146_v45 }
 0x833   : > { %6387 = vmatmul.mubr.bf16.gmra.mxu1 %v6144_v42  ;;  %9542 = vmatpush3.bf16.msra.mxu0 %v10201_v29 }
 0x834   : > { %9543 = vmatprep.subr.bf16.mxu0 %v10204_v15  ;;  %9266 = vmatpush3.bf16.msra.mxu1 %v10205_v33 }
 0x835   : > { %9267 = vmatprep.subr.bf16.mxu1 %v10206_v9 }
 0x837   : > { %9544 = vmatpush3.bf16.msra.mxu0 %v10204_v15 }
 0x838   : > { %9545 = vmatprep.subr.bf16.mxu0 %v10207_v21  ;;  %9268 = vmatpush3.bf16.msra.mxu1 %v10208_v38 }
 0x839   : > { %9269 = vmatprep.subr.bf16.mxu1 %v10209_v36 }
 0x83b   : > { %9546 = vmatpush3.bf16.msra.mxu0 %v10207_v21 }
 0x83c   : > { %9547 = vmatprep.subr.bf16.mxu0 %v10210_v22  ;;  %9270 = vmatpush3.bf16.msra.mxu1 %v10211_v2 }
 0x83d   : > { %9271 = vmatprep.subr.bf16.mxu1 %v10212_v40 }
 0x83f   : > { %9548 = vmatpush3.bf16.msra.mxu0 %v10210_v22 }
 0x840   : > { %9549 = vmatprep.subr.bf16.mxu0 %v10213_v26  ;;  %9272 = vmatpush3.bf16.msra.mxu1 %v10214_v23 }
 0x841   : > { %9273 = vmatprep.subr.bf16.mxu1 %v10215_v54 }
 0x843   : > { %9550 = vmatpush3.bf16.msra.mxu0 %v10213_v26 }
 0x844   : > { %9551 = vmatprep.subr.bf16.mxu0 %v10216_v50  ;;  %9274 = vmatpush3.bf16.msra.mxu1 %v10217_v41 }
 0x845   : > { %9275 = vmatprep.subr.bf16.mxu1 %v10218_v58 }
 0x847   : > { %9552 = vmatpush3.bf16.msra.mxu0 %v10216_v50 }
 0x848   : > { %9553 = vmatprep.subr.bf16.mxu0 %v10219_v28  ;;  %9276 = vmatpush3.bf16.msra.mxu1 %v10220_v39 }
 0x84b   : > { %9554 = vmatpush3.bf16.msra.mxu0 %v10219_v28 }
 0x84c   : > { %9555 = vmatprep.subr.bf16.mxu0 %v10221_v17 }
 0x84f   : > { %9556 = vmatpush3.bf16.msra.mxu0 %v10221_v17 }
 0x8ea   : > { %v9239_v24 = vpop.f32.mrf.mxu1 }
 0x8ec   : > { %v9240_v43 = vpop.f32.mrf.mxu1 }
 0x8ed   : > { %v9241_v30 = vadd.f32 %v9240_v43, %v9239_v24 }
 0x8ee   : > { %v9242_v55 = vpop.f32.mrf.mxu1 }
 0x8ef   : > { %v6381_v5 = vadd.f32 %v9241_v30, %v8456_v16 }
 0x8f0   : > { %v9243_v48 = vpop.f32.mrf.mxu1 }
 0x8f1   : > { %v9244_v62 = vadd.f32 %v9243_v48, %v9242_v55 }
 0x8f2   : > { %v9539_v51 = vpop.f32.mrf.mxu0 }
 0x8f3   : > { %v9245_v18 = vpop.f32.mrf.mxu1  ;;  %v6384_v32 = vadd.f32 %v9244_v62, %v8456_v16 }
 0x8f4   : > { %v6429_v10 = vpop.f32.mrf.mxu0 }
 0x8f5   : > { %v9246_v25 = vpop.f32.mrf.mxu1  ;;  %v6430_v6 = vadd.f32 %v6429_v10, %v6381_v5 }
 0x8f6   : > { %v9247_v14 = vadd.f32 %v9246_v25, %v9245_v18  ;;  %v9540_v20 = vpop.f32.mrf.mxu0 }
 0x8f7   : > { %v9248_v0 = vpop.f32.mrf.mxu1  ;;  %v6444_v27 = vmul.f32 %v6430_v6, %v6430_v6 }
 0x8f8   : > { %v6389_v44 = vadd.f32 %v9247_v14, %v8456_v16  ;;  %v6432_v8 = vpop.f32.mrf.mxu0 }
 0x8f9   : > { %v9249_v60 = vpop.f32.mrf.mxu1  ;;  %v6448_v31 = vmul.f32 %v6444_v27, %v6430_v6  ;;  %v6433_v13 = vadd.f32 %v6432_v8, %v6384_v32  ;;  %v10222_v27 = vld [vmem:[%s12953_s13 + $0x78] sm:$0xff]  }
 0x8fa   : > { %v6438_v37 = vadd.f32 %v9539_v51, %v6389_v44  ;;  %v9250_v11 = vadd.f32 %v9249_v60, %v9248_v0  ;;  %v10223_v44 = vld [vmem:[%s12953_s13 + $0xf8] sm:$0xff]   ;;  %9299 = vmatprep.subr.bf16.mxu1 %v10222_v27  ;;  %v10226_v60 = vld [vmem:[%s12953_s13 + $0x70] sm:$0xff]  }
 0x8fb   : > { %v6452_v3 = vmul.f32 0.044715, %v6448_v31  ;;  %v6445_v63 = vmul.f32 %v6433_v13, %v6433_v13  ;;  %v10224_v32 = vld [vmem:[%s12953_s13 + $0x38] sm:$0xff]   ;;  %9321 = vmatprep.subr.bf16.mxu0 %v10223_v44  ;;  %v10227_v31 = vld [vmem:[%s12953_s13 + $0xf0] sm:$0xff]  }
 0x8fc   : > { %v6446_v12 = vmul.f32 %v6438_v37, %v6438_v37  ;;  %v6392_v35 = vadd.f32 %v9250_v11, %v8456_v16  ;;  %v10225_v8 = vld [vmem:[%s12953_s13 + $0xb8] sm:$0xff]   ;;  %v10230_v11 = vld [vmem:[%s12953_s13 + $0x68] sm:$0xff]  }
 0x8fd   : > { %v6456_v56 = vadd.f32 %v6452_v3, %v6430_v6  ;;  %v6449_v4 = vmul.f32 %v6445_v63, %v6433_v13  ;;  %v10231_v3 = vld [vmem:[%s12953_s13 + $0xe8] sm:$0xff]  }
 0x8fe   : > { %v6450_v46 = vmul.f32 %v6446_v12, %v6438_v37  ;;  %v6441_v47 = vadd.f32 %v9540_v20, %v6392_v35  ;;  %v12532_v20 = vld [vmem:[#allocation2] sm:$0xff]  ;;  %v10232_v12 = vld [vmem:[%s12953_s13 + $0x28] sm:$0xff]  }
 0x8ff   : > { %v6460_v1 = vmul.f32 0.7978846, %v6456_v56  ;;  %v6453_v42 = vmul.f32 0.044715, %v6449_v4  ;;  %v10233_v63 = vld [vmem:[%s12953_s13 + $0xa8] sm:$0xff]   ;;  %v10234_v35 = vld [vmem:[%s12953_s13 + $0x60] sm:$0xff]  }
 0x900   : > { %v6454_v45 = vmul.f32 0.044715, %v6450_v46  ;;  %v6447_v19 = vmul.f32 %v6441_v47, %v6441_v47  ;;  %v10235_v56 = vld [vmem:[%s12953_s13 + $0xe0] sm:$0xff]  }
 0x901   : > { %10422 = vtanh.f32 %v6460_v1  ;;  %v6457_v34 = vadd.f32 %v6453_v42, %v6433_v13  ;;  %v10236_v46 = vld [vmem:[%s12953_s13 + $0x20] sm:$0xff]   ;;  %v10239_v1 = vld [vmem:[%s12953_s13 + $0xd8] sm:$0xff]  }
 0x902   : > { %v6458_v7 = vadd.f32 %v6454_v45, %v6438_v37  ;;  %v6451_v29 = vmul.f32 %v6447_v19, %v6441_v47  ;;  %v10237_v4 = vld [vmem:[%s12953_s13 + $0xa0] sm:$0xff]   ;;  %v10240_v45 = vld [vmem:[%s12953_s13 + $0x18] sm:$0xff]   ;;  %v10242_v19 = vld [vmem:[%s12953_s13 + $0x50] sm:$0xff]  }
 0x903   : > { %v6461_v61 = vmul.f32 0.7978846, %v6457_v34  ;;  %v10241_v42 = vld [vmem:[%s12953_s13 + $0x98] sm:$0xff]   ;;  %v10244_v34 = vld [vmem:[%s12953_s13 + $0x10] sm:$0xff]  }
 0x904   : > { %v6462_v57 = vmul.f32 0.7978846, %v6458_v7  ;;  %v6455_v15 = vmul.f32 0.044715, %v6451_v29  ;;  %v10243_v7 = vld [vmem:[%s12953_s13 + $0xd0] sm:$0xff]  }
 0x905   : > { %v10245_v29 = vld [vmem:[%s12953_s13 + $0x90] sm:$0xff]  }
 0x906   : > { %10424 = vtanh.f32 %v6462_v57  ;;  %v6459_v33 = vadd.f32 %v6455_v15, %v6441_v47  ;;  %v10246_v57 = vld [vmem:[%s12953_s13 + $0x48] sm:$0xff]  }
 0x907   : > { %10426 = vtanh.f32 %v6461_v61  ;;  %v10247_v61 = vld [vmem:[%s12953_s13 + $0xc8] sm:$0xff]  }
 0x908   : > { %v6463_v9 = vmul.f32 0.7978846, %v6459_v33  ;;  %v10248_v15 = vld [vmem:[%s12953_s13 + $0x8] sm:$0xff]  }
 0x909   : > { %v10249_v33 = vld [vmem:[%s12953_s13 + $0x88] sm:$0xff]  }
 0x90a   : > { %10428 = vtanh.f32 %v6463_v9  ;;  %v10250_v9 = vld [vmem:[%s12953_s13 + $0x40] sm:$0xff]  }
 0x90e   : > { %v10423_v21 = vpop.eup %10422 }
 0x90f   : > { %v6468_v38 = vadd.f32 1.0, %v10423_v21  ;;  %v10251_v21 = vld [vmem:[%s12953_s13 + $0xc0] sm:$0xff]  }
 0x911   : > { %v6472_v36 = vmul.f32 0.5, %v6468_v38  ;;  %v10252_v38 = vld [vmem:[%s12953_s13] sm:$0xff]  }
 0x913   : > { %v10425_v22 = vpop.eup %10424  ;;  %v6476_v40 = vmul.f32 %v6472_v36, %v6430_v6  ;;  %v10253_v36 = vld [vmem:[%s12953_s13 + $0x80] sm:$0xff]  }
 0x914   : > { %v10427_v2 = vpop.eup %10426  ;;  %v6470_v26 = vadd.f32 1.0, %v10425_v22  ;;  %v10254_v22 = vld [vmem:[%s12953_s13 + $0x178] sm:$0xff]  }
 0x915   : > { %v6469_v23 = vadd.f32 1.0, %v10427_v2  ;;  %6480 = vst [vmem:[#allocation3 + $0x8] sm:$0xff] %v6476_v40  ;;  %v10255_v2 = vld [vmem:[%s12953_s13 + $0x1f8] sm:$0xff]  }
 0x916   : > { %v6474_v54 = vmul.f32 0.5, %v6470_v26 }
 0x917   : > { %v10429_v50 = vpop.eup %10428  ;;  %v6473_v41 = vmul.f32 0.5, %v6469_v23  ;;  %v8481_v23 = vld [vmem:[%s12952_s12] ss:$0 sm:$0xff] }
 0x918   : > { %v6478_v58 = vmul.f32 %v6474_v54, %v6438_v37  ;;  %v6471_v28 = vadd.f32 1.0, %v10429_v50  ;;  %v10228_v37 = vld [vmem:[%s12953_s13 + $0x30] sm:$0xff]  }
 0x919   : > { %v6477_v39 = vmul.f32 %v6473_v41, %v6433_v13  ;;  %v10229_v13 = vld [vmem:[%s12953_s13 + $0xb0] sm:$0xff]  }
 0x91a   : > { %6482 = vst [vmem:[#allocation3 + $0x18] sm:$0xff] %v6478_v58  ;;  %v6475_v17 = vmul.f32 0.5, %v6471_v28 }
 0x91b   : > { %6481 = vst [vmem:[#allocation3 + $0x10] sm:$0xff] %v6477_v39  ;;  %v6497_v24 = vpack.c.bf16 %v6477_v39, %v6476_v40 }
 0x91c   : > { %v6479_v43 = vmul.f32 %v6475_v17, %v6441_v47  ;;  %v6484_v55 = vld [vmem:[#allocation3 + $0x7] sm:$0xff] }
 0x91d   : > { %6733 = vmatprep.mubr.bf16.mxu1 %v6497_v24  ;;  %v10238_v47 = vld [vmem:[%s12953_s13 + $0x58] sm:$0xff]  }
 0x91e   : > { %6483 = vst [vmem:[#allocation3 + $0x20] sm:$0xff] %v6479_v43  ;;  %v6500_v62 = vpack.c.bf16 %v6479_v43, %v6478_v58 }
 0x922   : > { %v6485_v30 = vld [vmem:[#allocation3 + $0xf] sm:$0xff]  ;;  %v6486_v5 = vld [vmem:[#allocation3 + $0x17] sm:$0xff] }
 0x923   : > { %v6492_v48 = vld [vmem:[#allocation3 + $0x9] sm:$0xff]  ;;  %v6493_v16 = vld [vmem:[#allocation3 + $0x11] sm:$0xff]  ;;  %v6496_v51 = vpack.c.bf16 %v6485_v30, %v6484_v55 }
 0x924   : > { %v6498_v18 = vpack.c.bf16 %v6493_v16, %v6492_v48 }
 0x925   : > { %6734 = vmatmul.mubr.bf16.vlgmr.msra.gmra.mxu1 %v6496_v51  ;;  %v6494_v10 = vld [vmem:[#allocation3 + $0x19] sm:$0xff]  ;;  %v6495_v25 = vld [vmem:[#allocation3 + $0x21] sm:$0xff] }
 0x926   : > { %9557 = vmatprep.mubr.bf16.mxu0 %v6498_v18  ;;  %v6487_v6 = vld [vmem:[#allocation3 + $0x1f] sm:$0xff]  ;;  %6741 = vmatprep.mubr.bf16.mxu1 %v6500_v62  ;;  %v6501_v14 = vpack.c.bf16 %v6495_v25, %v6494_v10 }
 0x927   : > { %7732 = vst [vmem:[#allocation3 + $0x18] sm:$0xff] %v12532_v20  ;;  %v6499_v0 = vpack.c.bf16 %v6487_v6, %v6486_v5  ;;  %9300 = vmatpush3.bf16.msra.mxu1 %v10224_v32 }
 0x928   : > { %9558 = vmatmul.mubr.bf16.vlgmr.msra.gmra.mxu0 %v6501_v14  ;;  %9301 = vmatprep.subr.bf16.mxu1 %v10226_v60 }
 0x929   : > { %9322 = vmatpush3.bf16.msra.mxu0 %v10225_v8 }
 0x92a   : > { %9323 = vmatprep.subr.bf16.mxu0 %v10227_v31 }
 0x92b   : > { %9302 = vmatpush3.bf16.msra.mxu1 %v10228_v37 }
 0x92c   : > { %9303 = vmatprep.subr.bf16.mxu1 %v10230_v11 }
 0x92d   : > { %6742 = vmatmul.mubr.bf16.gmra.mxu1 %v6499_v0  ;;  %9324 = vmatpush3.bf16.msra.mxu0 %v10229_v13 }
 0x92e   : > { %9325 = vmatprep.subr.bf16.mxu0 %v10231_v3 }
 0x92f   : > { %9304 = vmatpush3.bf16.msra.mxu1 %v10232_v12 }
 0x930   : > { %9305 = vmatprep.subr.bf16.mxu1 %v10234_v35 }
 0x931   : > { %9326 = vmatpush3.bf16.msra.mxu0 %v10233_v63 }
 0x932   : > { %9327 = vmatprep.subr.bf16.mxu0 %v10235_v56 }
 0x933   : > { %9306 = vmatpush3.bf16.msra.mxu1 %v10236_v46 }
 0x934   : > { %9307 = vmatprep.subr.bf16.mxu1 %v10238_v47 }
 0x935   : > { %9328 = vmatpush3.bf16.msra.mxu0 %v10237_v4 }
 0x936   : > { %9329 = vmatprep.subr.bf16.mxu0 %v10239_v1 }
 0x937   : > { %9308 = vmatpush3.bf16.msra.mxu1 %v10240_v45 }
 0x938   : > { %9309 = vmatprep.subr.bf16.mxu1 %v10242_v19 }
 0x939   : > { %9330 = vmatpush3.bf16.msra.mxu0 %v10241_v42 }
 0x93a   : > { %9331 = vmatprep.subr.bf16.mxu0 %v10243_v7 }
 0x93b   : > { %9310 = vmatpush3.bf16.msra.mxu1 %v10244_v34 }
 0x93c   : > { %9311 = vmatprep.subr.bf16.mxu1 %v10246_v57 }
 0x93d   : > { %9332 = vmatpush3.bf16.msra.mxu0 %v10245_v29 }
 0x93e   : > { %9333 = vmatprep.subr.bf16.mxu0 %v10247_v61 }
 0x93f   : > { %9312 = vmatpush3.bf16.msra.mxu1 %v10248_v15 }
 0x940   : > { %9313 = vmatprep.subr.bf16.mxu1 %v10250_v9 }
 0x941   : > { %9334 = vmatpush3.bf16.msra.mxu0 %v10249_v33 }
 0x942   : > { %9335 = vmatprep.subr.bf16.mxu0 %v10251_v21 }
 0x943   : > { %9314 = vmatpush3.bf16.msra.mxu1 %v10252_v38 }
 0x944   : > { %9343 = vmatprep.subr.bf16.mxu1 %v10254_v22 }
 0x945   : > { %9336 = vmatpush3.bf16.msra.mxu0 %v10253_v36 }
 0x946   : > { %9365 = vmatprep.subr.bf16.mxu0 %v10255_v2 }
 0x9e5   : > { %v9277_v40 = vpop.f32.mrf.mxu1 }
 0x9e7   : > { %v9278_v26 = vpop.f32.mrf.mxu1 }
 0x9e8   : > { %v9279_v54 = vadd.f32 %v9278_v26, %v9277_v40  ;;  %v9559_v50 = vpop.f32.mrf.mxu0 }
 0x9e9   : > { %v9280_v41 = vpop.f32.mrf.mxu1 }
 0x9ea   : > { %v6736_v58 = vadd.f32 %v9279_v54, %v8481_v23  ;;  %v6784_v28 = vpop.f32.mrf.mxu0 }
 0x9eb   : > { %v9281_v39 = vpop.f32.mrf.mxu1 }
 0x9ec   : > { %v9282_v17 = vadd.f32 %v9281_v39, %v9280_v41  ;;  %v6785_v24 = vadd.f32 %v6784_v28, %v6736_v58  ;;  %v9560_v43 = vpop.f32.mrf.mxu0  ;;  %v10256_v58 = vld [vmem:[%s12953_s13 + $0x138] sm:$0xff]  }
 0x9ed   : > { %v9283_v55 = vpop.f32.mrf.mxu1  ;;  %v10257_v28 = vld [vmem:[%s12953_s13 + $0x1b8] sm:$0xff]  }
 0x9ee   : > { %v6803_v30 = vadd.f32 %v6785_v24, %v12441_v49  ;;  %v6739_v48 = vadd.f32 %v9282_v17, %v8481_v23  ;;  %v6787_v16 = vpop.f32.mrf.mxu0 }
 0x9ef   : > { %v9284_v51 = vpop.f32.mrf.mxu1 }
 0x9f0   : > { %v6807_v18 = vmul.f32 %v6803_v30, %v6803_v30  ;;  %v9285_v62 = vadd.f32 %v9284_v51, %v9283_v55  ;;  %v6788_v5 = vadd.f32 %v6787_v16, %v6739_v48 }
 0x9f1   : > { %v9286_v10 = vpop.f32.mrf.mxu1 }
 0x9f2   : > { %v6811_v25 = vmul.f32 %v6807_v18, %v6803_v30  ;;  %v6744_v6 = vadd.f32 %v9285_v62, %v8481_v23  ;;  %v6804_v14 = vadd.f32 %v6788_v5, %v12444_v53  ;;  %v10258_v5 = vld [vmem:[%s12953_s13 + $0x170] sm:$0xff]  }
 0x9f3   : > { %v9287_v0 = vpop.f32.mrf.mxu1 }
 0x9f4   : > { %v6815_v27 = vmul.f32 0.044715, %v6811_v25  ;;  %v6793_v44 = vadd.f32 %v9559_v50, %v6744_v6  ;;  %v6808_v32 = vmul.f32 %v6804_v14, %v6804_v14  ;;  %v9288_v8 = vadd.f32 %v9287_v0, %v9286_v10  ;;  %v10259_v10 = vld [vmem:[%s12953_s13 + $0x1f0] sm:$0xff]  }
 0x9f6   : > { %v6819_v60 = vadd.f32 %v6815_v27, %v6803_v30  ;;  %v6805_v31 = vadd.f32 %v6793_v44, %v12449_v59  ;;  %v6812_v49 = vmul.f32 %v6808_v32, %v6804_v14  ;;  %v6747_v37 = vadd.f32 %v9288_v8, %v8481_v23 }
 0x9f8   : > { %v6823_v13 = vmul.f32 0.7978846, %v6819_v60  ;;  %v6809_v11 = vmul.f32 %v6805_v31, %v6805_v31  ;;  %v6816_v3 = vmul.f32 0.044715, %v6812_v49  ;;  %v6796_v12 = vadd.f32 %v9560_v43, %v6747_v37  ;;  %v10260_v49 = vld [vmem:[%s12953_s13 + $0x130] sm:$0xff]  }
 0x9f9   : > { %v10261_v37 = vld [vmem:[%s12953_s13 + $0x1b0] sm:$0xff]  }
 0x9fa   : > { %10430 = vtanh.f32 %v6823_v13  ;;  %v6813_v63 = vmul.f32 %v6809_v11, %v6805_v31  ;;  %v6820_v35 = vadd.f32 %v6816_v3, %v6804_v14  ;;  %v6806_v56 = vadd.f32 %v6796_v12, %v12452_v52  ;;  %v10262_v13 = vld [vmem:[%s12953_s13 + $0x168] sm:$0xff]   ;;  %v10266_v12 = vld [vmem:[%s12953_s13 + $0x160] sm:$0xff]  }
 0x9fb   : > { %v10264_v11 = vld [vmem:[%s12953_s13 + $0x128] sm:$0xff]  }
 0x9fc   : > { %v6817_v53 = vmul.f32 0.044715, %v6813_v63  ;;  %v6824_v46 = vmul.f32 0.7978846, %v6820_v35  ;;  %v6810_v4 = vmul.f32 %v6806_v56, %v6806_v56  ;;  %v10265_v3 = vld [vmem:[%s12953_s13 + $0x1a8] sm:$0xff]   ;;  %v10267_v63 = vld [vmem:[%s12953_s13 + $0x1e0] sm:$0xff]  }
 0x9fd   : > { %v10268_v35 = vld [vmem:[%s12953_s13 + $0x120] sm:$0xff]  }
 0x9fe   : > { %v6821_v47 = vadd.f32 %v6817_v53, %v6805_v31  ;;  %10432 = vtanh.f32 %v6824_v46  ;;  %v6814_v1 = vmul.f32 %v6810_v4, %v6806_v56  ;;  %v10270_v53 = vld [vmem:[%s12953_s13 + $0x158] sm:$0xff]  }
 0x9ff   : > { %v10271_v46 = vld [vmem:[%s12953_s13 + $0x1d8] sm:$0xff]  }
 0xa00   : > { %v6825_v45 = vmul.f32 0.7978846, %v6821_v47  ;;  %v6818_v42 = vmul.f32 0.044715, %v6814_v1  ;;  %v10272_v4 = vld [vmem:[%s12953_s13 + $0x118] sm:$0xff]   ;;  %v10274_v1 = vld [vmem:[%s12953_s13 + $0x150] sm:$0xff]  }
 0xa01   : > { %v10273_v47 = vld [vmem:[%s12953_s13 + $0x198] sm:$0xff]  }
 0xa02   : > { %10434 = vtanh.f32 %v6825_v45  ;;  %v6822_v59 = vadd.f32 %v6818_v42, %v6806_v56  ;;  %v10275_v45 = vld [vmem:[%s12953_s13 + $0x1d0] sm:$0xff]  }
 0xa03   : > { %v10276_v42 = vld [vmem:[%s12953_s13 + $0x110] sm:$0xff]  }
 0xa04   : > { %v6826_v19 = vmul.f32 0.7978846, %v6822_v59  ;;  %v10277_v59 = vld [vmem:[%s12953_s13 + $0x190] sm:$0xff]  }
 0xa06   : > { %10436 = vtanh.f32 %v6826_v19  ;;  %v10278_v19 = vld [vmem:[%s12953_s13 + $0x148] sm:$0xff]  }
 0xa07   : > { %v10431_v7 = vpop.eup %10430 }
 0xa08   : > { %v6831_v34 = vadd.f32 1.0, %v10431_v7  ;;  %v10279_v7 = vld [vmem:[%s12953_s13 + $0x1c8] sm:$0xff]  }
 0xa0a   : > { %v6835_v29 = vmul.f32 0.5, %v6831_v34  ;;  %v10280_v34 = vld [vmem:[%s12953_s13 + $0x108] sm:$0xff]  }
 0xa0b   : > { %v10433_v57 = vpop.eup %10432 }
 0xa0c   : > { %v6839_v61 = vmul.f32 %v6835_v29, %v6803_v30  ;;  %v6832_v15 = vadd.f32 1.0, %v10433_v57  ;;  %v10281_v29 = vld [vmem:[%s12953_s13 + $0x188] sm:$0xff]   ;;  %v10282_v57 = vld [vmem:[%s12953_s13 + $0x140] sm:$0xff]  }
 0xa0e   : > { %6843 = vst [vmem:[#allocation2 + $0x8] sm:$0xff] %v6839_v61  ;;  %v6836_v52 = vmul.f32 0.5, %v6832_v15  ;;  %v10283_v61 = vld [vmem:[%s12953_s13 + $0x1c0] sm:$0xff]  }
 0xa0f   : > { %v10435_v33 = vpop.eup %10434  ;;  %v10284_v15 = vld [vmem:[%s12953_s13 + $0x100] sm:$0xff]  }
 0xa10   : > { %v6833_v9 = vadd.f32 1.0, %v10435_v33  ;;  %v6840_v21 = vmul.f32 %v6836_v52, %v6804_v14  ;;  %v10285_v52 = vld [vmem:[%s12953_s13 + $0x180] sm:$0xff]   ;;  %v10286_v33 = vld [vmem:[%s12953_s13 + $0x278] sm:$0xff]  }
 0xa12   : > { %v6837_v38 = vmul.f32 0.5, %v6833_v9  ;;  %6844 = vst [vmem:[#allocation2 + $0x10] sm:$0xff] %v6840_v21  ;;  %v10287_v21 = vld [vmem:[%s12953_s13 + $0x238] sm:$0xff]  }
 0xa13   : > { %v10437_v36 = vpop.eup %10436 }
 0xa14   : > { %v6841_v22 = vmul.f32 %v6837_v38, %v6805_v31  ;;  %v6834_v2 = vadd.f32 1.0, %v10437_v36 }
 0xa16   : > { %6845 = vst [vmem:[#allocation2 + $0x18] sm:$0xff] %v6841_v22  ;;  %v6838_v40 = vmul.f32 0.5, %v6834_v2  ;;  %v10288_v22 = vld [vmem:[%s12953_s13 + $0x270] sm:$0xff]   ;;  %v12985_v2 = vmov 0  }
 0xa18   : > { %v6842_v26 = vmul.f32 %v6838_v40, %v6806_v56  ;;  %v10269_v56 = vld [vmem:[%s12953_s13 + $0x1a0] sm:$0xff]  }
 0xa19   : > { %v6849_v23 = vld [vmem:[#allocation2 + $0x5] ss:$2 sm:$0xff]  ;;  %v6847_v50 = vld [vmem:[#allocation2 + $0x4] ss:$2 sm:$0xff] }
 0xa1a   : > { %6846 = vst [vmem:[#allocation2 + $0x20] sm:$0xff] %v6842_v26  ;;  %v6853_v54 = vld [vmem:[#allocation2 + $0x7] ss:$2 sm:$0xff]  ;;  %v6851_v41 = vld [vmem:[#allocation2 + $0x6] ss:$2 sm:$0xff] }
 0xa1b   : > { %v6857_v16 = vld [vmem:[#allocation2 + $0x9] ss:$2 sm:$0xff]  ;;  %v6855_v9 = vld [vmem:[#allocation2 + $0x8] ss:$2 sm:$0xff] }
 0xa1c   : > { %v10289_v26 = vld [vmem:[%s12953_s13 + $0x230] sm:$0xff]  }
 0xa1d   : > { %v6861_v18 = vld [vmem:[#allocation2 + $0xb] ss:$2 sm:$0xff]  ;;  %v12656_v25 = vld [vmem:[#allocation2 + $0xa] ss:$2 sm:$0xff] }
 0xa1e   : > { %v12660_v0 = vld [vmem:[#allocation2 + $0xd] ss:$2 sm:$0xff]  ;;  %v12662_v27 = vld [vmem:[#allocation2 + $0xc] ss:$2 sm:$0xff] }
 0xa21   : > { %v6850_v39 = vld [vmem:[#allocation2 + $0x15] ss:$2 sm:$0xff]  ;;  %v6848_v24 = vld [vmem:[#allocation2 + $0x14] ss:$2 sm:$0xff] }
 0xa22   : > { %v6854_v17 = vld [vmem:[#allocation2 + $0x17] ss:$2 sm:$0xff]  ;;  %v6868_v43 = vpack.c.bf16 %v6850_v39, %v6849_v23  ;;  %v6867_v30 = vpack.c.bf16 %v6848_v24, %v6847_v50  ;;  %v6852_v48 = vld [vmem:[#allocation2 + $0x16] ss:$2 sm:$0xff]  ;;  %v10290_v23 = vld [vmem:[%s12953_s13 + $0x268] sm:$0xff]  }
 0xa23   : > { %v6870_v55 = vpack.c.bf16 %v6854_v17, %v6853_v54  ;;  %v6858_v51 = vld [vmem:[#allocation2 + $0x19] ss:$2 sm:$0xff]  ;;  %v6869_v6 = vpack.c.bf16 %v6852_v48, %v6851_v41  ;;  %v12658_v14 = vld [vmem:[#allocation2 + $0x18] ss:$2 sm:$0xff]  ;;  %v10291_v54 = vld [vmem:[%s12953_s13 + $0x228] sm:$0xff]  }
 0xa24   : > { %v6862_v62 = vld [vmem:[#allocation2 + $0x1b] ss:$2 sm:$0xff]  ;;  %7556 = vmatprep.mubr.bf16.mxu1 %v6868_v43  ;;  %v12664_v44 = vld [vmem:[#allocation2 + $0x1a] ss:$2 sm:$0xff]  ;;  %v6872_v60 = vpack.c.bf16 %v6858_v51, %v6857_v16  ;;  %v6871_v38 = vpack.c.bf16 %v12658_v14, %v6855_v9  ;;  %v10296_v39 = vld [vmem:[%s12953_s13 + $0x250] sm:$0xff]  }
 0xa25   : > { %7597 = vmatprep.mubr.bf16.mxu0 %v6870_v55  ;;  %v12666_v32 = vld [vmem:[#allocation2 + $0x1d] ss:$2 sm:$0xff]  ;;  %v12668_v8 = vld [vmem:[#allocation2 + $0x1c] ss:$2 sm:$0xff]  ;;  %7557 = vmatmul.mubr.bf16.vlgmr.msra.gmra.mxu1 %v6867_v30  ;;  %v6874_v31 = vpack.c.bf16 %v6862_v62, %v6861_v18  ;;  %v6873_v36 = vpack.c.bf16 %v12664_v44, %v12656_v25  ;;  %v10297_v17 = vld [vmem:[%s12953_s13 + $0x210] sm:$0xff]  }
 0xa26   : > { %7598 = vmatmul.mubr.bf16.vlgmr.msra.gmra.mxu0 %v6869_v6  ;;  %7731 = vst [vmem:[#allocation2 + $0x18] sm:$0xff] %v12532_v20  ;;  %9344 = vmatpush3.bf16.msra.mxu1 %v10256_v58  ;;  %v10263_v20 = vld [vmem:[%s12953_s13 + $0x1e8] sm:$0xff]   ;;  %v6876_v40 = vpack.c.bf16 %v12666_v32, %v12660_v0  ;;  %v10292_v50 = vld [vmem:[%s12953_s13 + $0x260] sm:$0xff]   ;;  %v10294_v58 = vld [vmem:[%s12953_s13 + $0x258] sm:$0xff]   ;;  %v6875_v48 = vpack.c.bf16 %v12668_v8, %v12662_v27 }
 0xa27   : > { %9366 = vmatpush3.bf16.msra.mxu0 %v10257_v28  ;;  %7638 = vmatprep.mubr.bf16.mxu1 %v6872_v60  ;;  %v10293_v41 = vld [vmem:[%s12953_s13 + $0x220] sm:$0xff]   ;;  %v10295_v28 = vld [vmem:[%s12953_s13 + $0x218] sm:$0xff]   ;;  %v10298_v24 = vld [vmem:[%s12953_s13 + $0x248] sm:$0xff]  }
 0xa28   : > { %7679 = vmatprep.mubr.bf16.mxu0 %v6874_v31  ;;  %9345 = vmatprep.subr.bf16.mxu1 %v10258_v5  ;;  %v10299_v43 = vld [vmem:[%s12953_s13 + $0x208] sm:$0xff]   ;;  %v10300_v55 = vld [vmem:[%s12953_s13 + $0x240] sm:$0xff]   ;;  %v10302_v16 = vld [vmem:[%s12955_s15 + $0x38] sm:$0xff]  }
 0xa29   : > { %9367 = vmatprep.subr.bf16.mxu0 %v10259_v10  ;;  %v10301_v30 = vld [vmem:[%s12953_s13 + $0x200] sm:$0xff]   ;;  %v10303_v51 = vld [vmem:[%s12955_s15 + $0x30] sm:$0xff]   ;;  %v10304_v18 = vld [vmem:[%s12955_s15 + $0x28] sm:$0xff]  }
 0xa2a   : > { %9346 = vmatpush3.bf16.msra.mxu1 %v10260_v49  ;;  %v10305_v62 = vld [vmem:[%s12955_s15 + $0x20] sm:$0xff]   ;;  %v10306_v5 = vld [vmem:[%s12955_s15 + $0x18] sm:$0xff]   ;;  %v10307_v10 = vld [vmem:[%s12955_s15 + $0x10] sm:$0xff]  }
 0xa2b   : > { %9368 = vmatpush3.bf16.msra.mxu0 %v10261_v37  ;;  %9347 = vmatprep.subr.bf16.mxu1 %v10262_v13  ;;  %v10308_v25 = vld [vmem:[%s12955_s15 + $0x8] sm:$0xff]   ;;  %v10309_v6 = vld [vmem:[%s12955_s15] sm:$0xff]   ;;  %v10310_v14 = vld [vmem:[%s12955_s15 + $0x58] sm:$0xff]  }
 0xa2c   : > { %9369 = vmatprep.subr.bf16.mxu0 %v10263_v20  ;;  %v10311_v0 = vld [vmem:[%s12955_s15 + $0x50] sm:$0xff]   ;;  %v10312_v27 = vld [vmem:[%s12955_s15 + $0x48] sm:$0xff]  }
 0xa2e   : > { %9348 = vmatpush3.bf16.msra.mxu1 %v10264_v11 }
 0xa2f   : > { %9370 = vmatpush3.bf16.msra.mxu0 %v10265_v3  ;;  %9349 = vmatprep.subr.bf16.mxu1 %v10266_v12  ;;  %v8506_v12 = vld [vmem:[%s12954_s14] ss:$0 sm:$0xff] }
 0xa30   : > { %9371 = vmatprep.subr.bf16.mxu0 %v10267_v63 }
 0xa32   : > { %9350 = vmatpush3.bf16.msra.mxu1 %v10268_v35 }
 0xa33   : > { %9372 = vmatpush3.bf16.msra.mxu0 %v10269_v56  ;;  %9351 = vmatprep.subr.bf16.mxu1 %v10270_v53 }
 0xa34   : > { %9373 = vmatprep.subr.bf16.mxu0 %v10271_v46 }
 0xa36   : > { %9352 = vmatpush3.bf16.msra.mxu1 %v10272_v4 }
 0xa37   : > { %9374 = vmatpush3.bf16.msra.mxu0 %v10273_v47  ;;  %9353 = vmatprep.subr.bf16.mxu1 %v10274_v1 }
 0xa38   : > { %9375 = vmatprep.subr.bf16.mxu0 %v10275_v45 }
 0xa3a   : > { %9354 = vmatpush3.bf16.msra.mxu1 %v10276_v42 }
 0xa3b   : > { %9376 = vmatpush3.bf16.msra.mxu0 %v10277_v59  ;;  %9355 = vmatprep.subr.bf16.mxu1 %v10278_v19 }
 0xa3c   : > { %9377 = vmatprep.subr.bf16.mxu0 %v10279_v7 }
 0xa3e   : > { %9356 = vmatpush3.bf16.msra.mxu1 %v10280_v34 }
 0xa3f   : > { %9378 = vmatpush3.bf16.msra.mxu0 %v10281_v29  ;;  %9357 = vmatprep.subr.bf16.mxu1 %v10282_v57 }
 0xa40   : > { %9379 = vmatprep.subr.bf16.mxu0 %v10283_v61 }
 0xa42   : > { %9358 = vmatpush3.bf16.msra.mxu1 %v10284_v15 }
 0xa43   : > { %9380 = vmatpush3.bf16.msra.mxu0 %v10285_v52  ;;  %9387 = vmatprep.subr.bf16.mxu1 %v10286_v33 }
 0xa44   : > { %7857 = vmatprep.subr.bf16.mxu0 %v12985_v2 }
 0xa45   : > { %7639 = vmatmul.mubr.bf16.vlgmr.msra.gmra.mxu1 %v6871_v38 }
 0xa46   : > { %7680 = vmatmul.mubr.bf16.vlgmr.msra.gmra.mxu0 %v6873_v36  ;;  %9388 = vmatpush3.bf16.msra.mxu1 %v10287_v21 }
 0xa47   : > { %7720 = vmatprep.mubr.bf16.mxu1 %v6876_v40  ;;  %9389 = vmatprep.subr.bf16.mxu1 %v10288_v22 }
 0xa48   : > { %7858 = vmatpush1.bf16.msra.mxu0 %v10302_v16 }
 0xa49   : > { %7859 = vmatprep.subr.bf16.mxu0 %v12985_v2 }
 0xa4a   : > { %9390 = vmatpush3.bf16.msra.mxu1 %v10289_v26 }
 0xa4b   : > { %9391 = vmatprep.subr.bf16.mxu1 %v10290_v23 }
 0xa4c   : > { %7860 = vmatpush1.bf16.msra.mxu0 %v10303_v51 }
 0xa4d   : > { %7861 = vmatprep.subr.bf16.mxu0 %v12985_v2 }
 0xa4e   : > { %9392 = vmatpush3.bf16.msra.mxu1 %v10291_v54 }
 0xa4f   : > { %9393 = vmatprep.subr.bf16.mxu1 %v10292_v50  ;;  %v10313_v50 = vld [vmem:[%s12955_s15 + $0x40] sm:$0xff]  }
 0xa50   : > { %7862 = vmatpush1.bf16.msra.mxu0 %v10304_v18 }
 0xa51   : > { %7863 = vmatprep.subr.bf16.mxu0 %v12985_v2 }
 0xa52   : > { %9394 = vmatpush3.bf16.msra.mxu1 %v10293_v41 }
 0xa53   : > { %9395 = vmatprep.subr.bf16.mxu1 %v10294_v58 }
 0xa54   : > { %7864 = vmatpush1.bf16.msra.mxu0 %v10305_v62 }
 0xa55   : > { %7865 = vmatprep.subr.bf16.mxu0 %v12985_v2 }
 0xa56   : > { %9396 = vmatpush3.bf16.msra.mxu1 %v10295_v28 }
 0xa57   : > { %9397 = vmatprep.subr.bf16.mxu1 %v10296_v39 }
 0xa58   : > { %7866 = vmatpush1.bf16.msra.mxu0 %v10306_v5  ;;  %v10314_v5 = vld [vmem:[%s12957_s17 + $0x38] sm:$0xff]  }
 0xa59   : > { %7867 = vmatprep.subr.bf16.mxu0 %v12985_v2 }
 0xa5a   : > { %9398 = vmatpush3.bf16.msra.mxu1 %v10297_v17 }
 0xa5b   : > { %9399 = vmatprep.subr.bf16.mxu1 %v10298_v24 }
 0xa5c   : > { %7868 = vmatpush1.bf16.msra.mxu0 %v10307_v10  ;;  %v10315_v10 = vld [vmem:[%s12957_s17 + $0x30] sm:$0xff]  }
 0xa5d   : > { %7869 = vmatprep.subr.bf16.mxu0 %v12985_v2 }
 0xa5e   : > { %9400 = vmatpush3.bf16.msra.mxu1 %v10299_v43 }
 0xa5f   : > { %9401 = vmatprep.subr.bf16.mxu1 %v10300_v55 }
 0xa60   : > { %7870 = vmatpush1.bf16.msra.mxu0 %v10308_v25  ;;  %v10316_v25 = vld [vmem:[%s12957_s17 + $0x28] sm:$0xff]  }
 0xa61   : > { %7871 = vmatprep.subr.bf16.mxu0 %v12985_v2 }
 0xa62   : > { %9402 = vmatpush3.bf16.msra.mxu1 %v10301_v30 }
 0xa63   : > { %8042 = vmatprep.subr.bf16.mxu1 %v12985_v2 }
 0xa64   : > { %7872 = vmatpush1.bf16.msra.mxu0 %v10309_v6  ;;  %v10317_v6 = vld [vmem:[%s12957_s17 + $0x20] sm:$0xff]  }
 0xa65   : > { %7721 = vmatmul.mubr.bf16.vlgmr.msra.gmra.mxu1 %v6875_v48  ;;  %7881 = vmatprep.subr.bf16.mxu0 %v12985_v2 }
 0xa66   : > { %8043 = vmatpush1.bf16.msra.mxu1 %v10314_v5 }
 0xa67   : > { %8044 = vmatprep.subr.bf16.mxu1 %v12985_v2 }
 0xa68   : > { %7882 = vmatpush2.bf16.msra.mxu0 %v10310_v14  ;;  %v10318_v14 = vld [vmem:[%s12957_s17 + $0x18] sm:$0xff]  }
 0xa69   : > { %7883 = vmatprep.subr.bf16.mxu0 %v12985_v2 }
 0xa6a   : > { %8045 = vmatpush1.bf16.msra.mxu1 %v10315_v10 }
 0xa6b   : > { %8046 = vmatprep.subr.bf16.mxu1 %v12985_v2 }
 0xa6c   : > { %7884 = vmatpush2.bf16.msra.mxu0 %v10311_v0  ;;  %v10319_v0 = vld [vmem:[%s12957_s17 + $0x10] sm:$0xff]  }
 0xa6d   : > { %7885 = vmatprep.subr.bf16.mxu0 %v12985_v2 }
 0xa6e   : > { %8047 = vmatpush1.bf16.msra.mxu1 %v10316_v25 }
 0xa6f   : > { %8048 = vmatprep.subr.bf16.mxu1 %v12985_v2 }
 0xa70   : > { %7886 = vmatpush2.bf16.msra.mxu0 %v10312_v27  ;;  %v10320_v27 = vld [vmem:[%s12957_s17 + $0x8] sm:$0xff]  }
 0xa71   : > { %7887 = vmatprep.subr.bf16.mxu0 %v12985_v2 }
 0xa72   : > { %8049 = vmatpush1.bf16.msra.mxu1 %v10317_v6 }
 0xa73   : > { %8050 = vmatprep.subr.bf16.mxu1 %v12985_v2 }
 0xa74   : > { %7888 = vmatpush2.bf16.msra.mxu0 %v10313_v50 }
 0xa76   : > { %8051 = vmatpush1.bf16.msra.mxu1 %v10318_v14 }
 0xa77   : > { %8052 = vmatprep.subr.bf16.mxu1 %v12985_v2 }
 0xa7a   : > { %8053 = vmatpush1.bf16.msra.mxu1 %v10319_v0 }
 0xa7b   : > { %8054 = vmatprep.subr.bf16.mxu1 %v12985_v2 }
 0xa7e   : > { %8055 = vmatpush1.bf16.msra.mxu1 %v10320_v27 }
 0xa7f   : > { %8056 = vmatprep.subr.bf16.mxu1 %v12985_v2 }
 0xae5   : > { %v9315_v44 = vpop.f32.mrf.mxu1 }
 0xae6   : > { %v9337_v8 = vpop.f32.mrf.mxu0 }
 0xae7   : > { %v9316_v32 = vpop.f32.mrf.mxu1 }
 0xae8   : > { %v9338_v31 = vpop.f32.mrf.mxu0  ;;  %v9317_v3 = vadd.f32 %v9316_v32, %v9315_v44  ;;  %v10321_v44 = vld [vmem:[%s12957_s17] sm:$0xff]   ;;  %v10322_v32 = vld [vmem:[%s12957_s17 + $0x58] sm:$0xff]  }
 0xae9   : > { %v9318_v60 = vpop.f32.mrf.mxu1  ;;  %v9339_v4 = vadd.f32 %v9338_v31, %v9337_v8  ;;  %8057 = vmatpush1.bf16.msra.mxu1 %v10321_v44  ;;  %v10323_v8 = vld [vmem:[%s12957_s17 + $0x50] sm:$0xff]   ;;  %v8587_v31 = vld [vmem:[%s12956_s16] ss:$0 sm:$0xff] }
 0xaea   : > { %v9340_v37 = vpop.f32.mrf.mxu0  ;;  %v7559_v56 = vadd.f32 %v9317_v3, %v8506_v12  ;;  %8066 = vmatprep.subr.bf16.mxu1 %v12985_v2 }
 0xaeb   : > { %v9319_v49 = vpop.f32.mrf.mxu1 }
 0xaec   : > { %v9341_v20 = vpop.f32.mrf.mxu0  ;;  %v9320_v53 = vadd.f32 %v9319_v49, %v9318_v60  ;;  %v7600_v45 = vadd.f32 %v9339_v4, %v7559_v56  ;;  %v10324_v60 = vld [vmem:[%s12957_s17 + $0x48] sm:$0xff]  }
 0xaed   : > { %v9342_v19 = vadd.f32 %v9341_v20, %v9340_v37  ;;  %8067 = vmatpush2.bf16.msra.mxu1 %v10322_v32 }
 0xaee   : > { %v7562_v42 = vadd.f32 %v9320_v53, %v8506_v12  ;;  %8068 = vmatprep.subr.bf16.mxu1 %v12985_v2 }
 0xaf0   : > { %v7603_v57 = vadd.f32 %v9342_v19, %v7562_v42 }
 0xaf1   : > { %8069 = vmatpush2.bf16.msra.mxu1 %v10323_v8 }
 0xaf2   : > { %8070 = vmatprep.subr.bf16.mxu1 %v12985_v2 }
 0xaf5   : > { %8071 = vmatpush2.bf16.msra.mxu1 %v10324_v60 }
 0xaf6   : > { %8072 = vmatprep.subr.bf16.mxu1 %v12985_v2 }
 0xb05   : > { %v9359_v13 = vpop.f32.mrf.mxu1 }
 0xb06   : > { %v9381_v63 = vpop.f32.mrf.mxu0 }
 0xb07   : > { %v9360_v11 = vpop.f32.mrf.mxu1 }
 0xb08   : > { %v9382_v46 = vpop.f32.mrf.mxu0  ;;  %v9361_v47 = vadd.f32 %v9360_v11, %v9359_v13 }
 0xb09   : > { %v9362_v35 = vpop.f32.mrf.mxu1  ;;  %v9383_v61 = vadd.f32 %v9382_v46, %v9381_v63 }
 0xb0a   : > { %v9384_v59 = vpop.f32.mrf.mxu0  ;;  %v7641_v7 = vadd.f32 %v9361_v47, %v7600_v45 }
 0xb0b   : > { %v9363_v1 = vpop.f32.mrf.mxu1 }
 0xb0c   : > { %v9364_v34 = vadd.f32 %v9363_v1, %v9362_v35  ;;  %v9385_v15 = vpop.f32.mrf.mxu0  ;;  %v7682_v33 = vadd.f32 %v9383_v61, %v7641_v7  ;;  %v10325_v61 = vld [vmem:[%s12957_s17 + $0x40] sm:$0xff]  }
 0xb0d   : > { %v9386_v36 = vadd.f32 %v9385_v15, %v9384_v59  ;;  %8073 = vmatpush2.bf16.msra.mxu1 %v10325_v61 }
 0xb0e   : > { %v7644_v9 = vadd.f32 %v9364_v34, %v7603_v57 }
 0xb10   : > { %v7685_v26 = vadd.f32 %v9386_v36, %v7644_v9 }
 0xb25   : > { %v9403_v29 = vpop.f32.mrf.mxu1 }
 0xb27   : > { %v9404_v52 = vpop.f32.mrf.mxu1 }
 0xb28   : > { %v9405_v21 = vadd.f32 %v9404_v52, %v9403_v29 }
 0xb29   : > { %v9406_v38 = vpop.f32.mrf.mxu1 }
 0xb2a   : > { %v7723_v22 = vadd.f32 %v9405_v21, %v7682_v33 }
 0xb2b   : > { %v9407_v40 = vpop.f32.mrf.mxu1 }
 0xb2c   : > { %7729 = vst.msk [vmem:[#allocation2 + $0x8] sm:$0xff] %vm1555_vm3, %v7723_v22  ;;  %v9408_v23 = vadd.f32 %v9407_v40, %v9406_v38 }
 0xb2e   : > { %v7726_v54 = vadd.f32 %v9408_v23, %v7685_v26 }
 0xb30   : > { %7730 = vst.msk [vmem:[#allocation2 + $0x10] sm:$0xff] %vm1555_vm3, %v7726_v54 }
 0xb33   : > { %v12858_v41 = vld [vmem:[#allocation2 + $0x8] sm:$0xff] }
 0xb34   : > { %v7733_v48 = vld [vmem:[#allocation2 + $0x7] sm:$0xff] }
 0xb37   : > { %v7737_v58 = vld [vmem:[#allocation2 + $0x9] sm:$0xff]  ;;  %v7738_v28 = vld [vmem:[#allocation2 + $0x11] sm:$0xff] }
 0xb38   : > { %v12860_v39 = vld [vmem:[#allocation2 + $0x10] sm:$0xff]  ;;  %v7750_v17 = vpack.c.bf16 %v7738_v28, %v7737_v58  ;;  %v8601_v28 = vld [vmem:[%s12958_s18] ss:$0 sm:$0xff] }
 0xb39   : > { %v9898_v24 = vpack.i.bf16 %v12860_v39, %v12858_v41  ;;  %v7734_v16 = vld [vmem:[#allocation2 + $0xf] sm:$0xff] }
 0xb3a   : > { %8600 = vmatprep.mubr.msk.bf16.mxu0 %vm1555_vm3, %v7750_v17 }
 0xb3b   : > { %9899 = vrot.lane.b32.xlu0 %v9898_v24, %s12986_s28 }
 0xbad   : > { %v9900_v43 = vpop.permute.xlu0 %9899 }
 0xbae   : > { %v9902_v55 = vunpack.i.h.bf16 %v9900_v43  ;;  %v9901_v30 = vunpack.i.l.bf16 %v9900_v43 }
 0xbb0   : > { %v7747_v51 = vsel %vm1555_vm3, %v7733_v48, %v9901_v30  ;;  %v7748_v18 = vsel %vm1555_vm3, %v7734_v16, %v9902_v55 }
 0xbb1   : > { %v7749_v62 = vpack.c.bf16 %v7748_v18, %v7747_v51 }
 0xbb3   : > { %7890 = vmatmul.mubr.bf16.vlgmr.msra.gmra.mxu0 %v7749_v62 }
 0xc73   : > { %v7891_v49 = vpop.f32.mrf.mxu0 }
 0xc74   : > { %v7892_v37 = vadd.f32 %v8587_v31, %v7891_v49 }
 0xc75   : > { %v7893_v13 = vpop.f32.mrf.mxu0 }
 0xc76   : > { %v7898_v20 = vmul.f32 %v7892_v37, %v7892_v37 }
 0xc77   : > { %v7894_v11 = vpop.f32.mrf.mxu0 }
 0xc78   : > { %v7900_v3 = vmul.f32 %v7898_v20, %v7892_v37  ;;  %v7895_v12 = vadd.f32 %v8587_v31, %v7894_v11 }
 0xc79   : > { %v7896_v63 = vpop.f32.mrf.mxu0 }
 0xc7a   : > { %v7902_v35 = vmul.f32 0.044715, %v7900_v3  ;;  %v7899_v56 = vmul.f32 %v7895_v12, %v7895_v12 }
 0xc7c   : > { %v7904_v53 = vadd.f32 %v7902_v35, %v7892_v37  ;;  %v7901_v46 = vmul.f32 %v7899_v56, %v7895_v12 }
 0xc7e   : > { %v7906_v4 = vmul.f32 0.7978846, %v7904_v53  ;;  %v7903_v47 = vmul.f32 0.044715, %v7901_v46 }
 0xc80   : > { %10438 = vtanh.f32 %v7906_v4  ;;  %v7905_v2 = vadd.f32 %v7903_v47, %v7895_v12 }
 0xc82   : > { %v7907_v1 = vmul.f32 0.7978846, %v7905_v2 }
 0xc84   : > { %10440 = vtanh.f32 %v7907_v1 }
 0xc8d   : > { %v10439_v45 = vpop.eup %10438 }
 0xc8e   : > { %v7910_v42 = vadd.f32 1.0, %v10439_v45 }
 0xc90   : > { %v7912_v59 = vmul.f32 0.5, %v7910_v42 }
 0xc91   : > { %v10441_v19 = vpop.eup %10440 }
 0xc92   : > { %v7914_v7 = vmul.f32 %v7912_v59, %v7892_v37  ;;  %v7911_v34 = vadd.f32 1.0, %v10441_v19 }
 0xc94   : > { %7916 = vst.msk [vmem:[#allocation3 + $0x8] sm:$0xff] %vm1555_vm3, %v7914_v7  ;;  %v7913_v29 = vmul.f32 0.5, %v7911_v34 }
 0xc96   : > { %v7915_v57 = vmul.f32 %v7913_v29, %v7895_v12 }
 0xc98   : > { %7917 = vst.msk [vmem:[#allocation3 + $0x10] sm:$0xff] %vm1555_vm3, %v7915_v57 }
 0xc9b   : > { %v7920_v15 = vld [vmem:[#allocation3 + $0x8] sm:$0xff] }
 0xc9c   : > { %v7918_v26 = vld [vmem:[#allocation3 + $0x7] sm:$0xff] }
 0xc9f   : > { %v7922_v52 = vld [vmem:[#allocation3 + $0x9] sm:$0xff]  ;;  %v7923_v33 = vld [vmem:[#allocation3 + $0x11] sm:$0xff] }
 0xca0   : > { %v7921_v9 = vld [vmem:[#allocation3 + $0x10] sm:$0xff]  ;;  %v7935_v21 = vpack.c.bf16 %v7923_v33, %v7922_v52 }
 0xca1   : > { %v9903_v38 = vpack.i.bf16 %v7921_v9, %v7920_v15  ;;  %v7919_v23 = vld [vmem:[#allocation3 + $0xf] sm:$0xff] }
 0xca2   : > { %8614 = vmatprep.mubr.msk.bf16.mxu1 %vm1555_vm3, %v7935_v21 }
 0xca3   : > { %9904 = vrot.lane.b32.xlu1 %v9903_v38, %s12986_s28  ;;  %s8618_s28 = sshll.u32 %s12988_s30, 4 }
 0xca4   : > { %s602_s21 = scalar_lea.vmem %s12959_s19, %s8618_s28 }
 0xd15   : > { %v9905_v36 = vpop.permute.xlu1 %9904 }
 0xd16   : > { %v9907_v22 = vunpack.i.h.bf16 %v9905_v36  ;;  %v9906_v40 = vunpack.i.l.bf16 %v9905_v36 }
 0xd18   : > { %v7932_v54 = vsel %vm1555_vm3, %v7918_v26, %v9906_v40  ;;  %v7933_v50 = vsel %vm1555_vm3, %v7919_v23, %v9907_v22 }
 0xd19   : > { %v7934_v58 = vpack.c.bf16 %v7933_v50, %v7932_v54 }
 0xd1b   : > { %8075 = vmatmul.mubr.bf16.vlgmr.msra.gmra.mxu1 %v7934_v58 }
 0xddb   : > { %v8076_v17 = vpop.f32.mrf.mxu1 }
 0xddc   : > { %v8077_v24 = vadd.f32 %v8601_v28, %v8076_v17 }
 0xddd   : > { %v8078_v43 = vpop.f32.mrf.mxu1 }
 0xdde   : > { %v8085_v55 = vadd.f32 %v8077_v24, %v12858_v41 }
 0xddf   : > { %v8079_v30 = vpop.f32.mrf.mxu1 }
 0xde0   : > { %v8087_v48 = vmul.f32 %v8085_v55, %v8085_v55  ;;  %v8080_v16 = vadd.f32 %v8601_v28, %v8079_v30 }
 0xde1   : > { %v8081_v51 = vpop.f32.mrf.mxu1 }
 0xde2   : > { %v8089_v18 = vmul.f32 %v8087_v48, %v8085_v55  ;;  %v8086_v62 = vadd.f32 %v8080_v16, %v12860_v39 }
 0xde4   : > { %v8091_v5 = vmul.f32 0.044715, %v8089_v18  ;;  %v8088_v10 = vmul.f32 %v8086_v62, %v8086_v62 }
 0xde6   : > { %v8093_v25 = vadd.f32 %v8091_v5, %v8085_v55  ;;  %v8090_v6 = vmul.f32 %v8088_v10, %v8086_v62 }
 0xde8   : > { %v8095_v14 = vmul.f32 0.7978846, %v8093_v25  ;;  %v8092_v0 = vmul.f32 0.044715, %v8090_v6 }
 0xdea   : > { %10442 = vtanh.f32 %v8095_v14  ;;  %v8094_v27 = vadd.f32 %v8092_v0, %v8086_v62 }
 0xdec   : > { %v8096_v44 = vmul.f32 0.7978846, %v8094_v27 }
 0xdee   : > { %10444 = vtanh.f32 %v8096_v44 }
 0xdf7   : > { %v10443_v32 = vpop.eup %10442 }
 0xdf8   : > { %v8099_v41 = vadd.f32 1.0, %v10443_v32 }
 0xdfa   : > { %v8101_v8 = vmul.f32 0.5, %v8099_v41 }
 0xdfb   : > { %v10445_v60 = vpop.eup %10444 }
 0xdfc   : > { %v8103_v31 = vmul.f32 %v8101_v8, %v8085_v55  ;;  %v8100_v49 = vadd.f32 1.0, %v10445_v60 }
 0xdfe   : > { %8105 = vst.msk [vmem:[#allocation2 + $0x8] sm:$0xff] %vm1555_vm3, %v8103_v31  ;;  %v8102_v39 = vmul.f32 0.5, %v8100_v49 }
 0xe00   : > { %v8104_v37 = vmul.f32 %v8102_v39, %v8086_v62 }
 0xe02   : > { %8106 = vst.msk [vmem:[#allocation2 + $0x10] sm:$0xff] %vm1555_vm3, %v8104_v37 }
 0xe05   : > { %v8107_v13 = vld [vmem:[#allocation2 + $0x8] sm:$0xff] }
 0xe06   : > { %8109 = vst.msk [vmem:[%s602_s21] sm:$0xff] %vm1555_vm3, %v8107_v13 }
 0xe09   : > { %v8108_v20 = vld [vmem:[#allocation2 + $0x10] sm:$0xff] }
 0xe0a   : > { %8110 = vst.msk [vmem:[%s602_s21 + $0x8] sm:$0xff] %vm1555_vm3, %v8108_v20 }
 0xe0b PF: > { %s29_s0 = sadd.s32 1, %s10455_s0  }
 0xe0c   : > { %p26_p4 = scmp.ge.s32.totalorder %s29_s0, 4  }
 0xe0e   :  { %28 = sbr.rel (!%p26_p4) target bundleno = 5 (0x5), region = 286 }

</bundles_post_ra>
